<compile_context>
chip_gen: v7x
topology: tpu7x:2x2x1
jax: 0.10.0
libtpu: 0.0.40
codegen_flags: <defaults>
</compile_context>

<pallas_src>
import jax
import jax.numpy as jnp
from jax.experimental import pallas as pl
from jax.experimental.pallas import tpu as pltpu


def _round_up(n, m):
    return (n + m - 1) // m * m


_VMEM_SPEC = pl.BlockSpec(memory_space=pltpu.MemorySpace.VMEM)


# ----------------------------- Pallas kernels ------------------------------

def _conv_relu_kernel(x_ref, w_ref, b_ref, o_ref):
    # x: (M, K) bf16, w: (K, N) bf16, b: (1, N) f32 -> o: (M, N) bf16
    acc = jnp.dot(x_ref[...], w_ref[...], preferred_element_type=jnp.float32)
    o_ref[...] = jnp.maximum(acc + b_ref[...], 0.0).astype(o_ref.dtype)


def _conv_pool_relu_kernel(a_ref, b_ref, c_ref, d_ref, w_ref, bias_ref, o_ref):
    # Four pool-corner patch matrices (Mp, K) bf16, shared weight (K, N) bf16.
    # pool(relu(conv+b)) == relu(max_corners(conv) + b).
    w = w_ref[...]
    pa = jnp.dot(a_ref[...], w, preferred_element_type=jnp.float32)
    pb = jnp.dot(b_ref[...], w, preferred_element_type=jnp.float32)
    pc = jnp.dot(c_ref[...], w, preferred_element_type=jnp.float32)
    pd = jnp.dot(d_ref[...], w, preferred_element_type=jnp.float32)
    m = jnp.maximum(jnp.maximum(pa, pb), jnp.maximum(pc, pd))
    o_ref[...] = jnp.maximum(m + bias_ref[...], 0.0).astype(o_ref.dtype)


def _classifier_kernel(x_ref, w1_ref, b1_ref, w2_ref, b2_ref, o_ref):
    # Fused fc1 -> ReLU -> fc2; hidden activation never leaves VMEM/vregs.
    h = jnp.dot(x_ref[...], w1_ref[...], preferred_element_type=jnp.float32)
    h = jnp.maximum(h + b1_ref[...], 0.0)
    out = jnp.dot(h.astype(w2_ref.dtype), w2_ref[...],
                  preferred_element_type=jnp.float32)
    o_ref[...] = (out + b2_ref[...]).astype(o_ref.dtype)


# ------------------------------- JAX glue -----------------------------------

def _conv_patches_nhwc(x, kh, kw, stride, pad):
    # x: NHWC -> patches (N, OH, OW, kh*kw*C); feature index order (i, j, c)
    # keeps channels innermost (lane-dense), no transposes.
    N, H, W, C = x.shape
    xp = jnp.pad(x, ((0, 0), (pad, pad), (pad, pad), (0, 0)))
    OH = (H + 2 * pad - kh) // stride + 1
    OW = (W + 2 * pad - kw) // stride + 1
    taps = []
    for i in range(kh):
        for j in range(kw):
            taps.append(
                xp[:, i:i + stride * OH:stride, j:j + stride * OW:stride, :])
    return jnp.concatenate(taps, axis=-1), OH, OW


def conv_relu_nhwc(x, w_kn, b_1n, stride, pad, kh, kw):
    # Conv + bias + ReLU as a single whole-block GEMM kernel (bf16 out, NHWC).
    N = x.shape[0]
    p, OH, OW = _conv_patches_nhwc(x, kh, kw, stride, pad)
    K = p.shape[-1]
    Kp, O = w_kn.shape
    cols = p.reshape(N * OH * OW, K)
    if Kp > K:
        cols = jnp.pad(cols, ((0, 0), (0, Kp - K)))
    y = pl.pallas_call(
        _conv_relu_kernel,
        out_shape=jax.ShapeDtypeStruct((N * OH * OW, O), jnp.bfloat16),
        in_specs=[_VMEM_SPEC] * 3,
        out_specs=_VMEM_SPEC,
    )(cols, w_kn, b_1n)
    return y.reshape(N, OH, OW, O)


def conv_pool_relu_nhwc(x, w_kn, b_1n, stride, pad, kh, kw):
    # Conv + bias + ReLU + MaxPool2d(2, 2) fused into one kernel (bf16, NHWC).
    N = x.shape[0]
    p, OH, OW = _conv_patches_nhwc(x, kh, kw, stride, pad)
    K = p.shape[-1]
    Kp, O = w_kn.shape
    if Kp > K:
        p = jnp.pad(p, ((0, 0), (0, 0), (0, 0), (0, Kp - K)))
    OHp, OWp = OH // 2, OW // 2
    corners = [
        p[:, di:di + 2 * OHp:2, dj:dj + 2 * OWp:2, :].reshape(
            N * OHp * OWp, Kp)
        for di in (0, 1) for dj in (0, 1)
    ]
    y = pl.pallas_call(
        _conv_pool_relu_kernel,
        out_shape=jax.ShapeDtypeStruct((N * OHp * OWp, O), jnp.bfloat16),
        in_specs=[_VMEM_SPEC] * 6,
        out_specs=_VMEM_SPEC,
    )(*corners, w_kn, b_1n)
    return y.reshape(N, OHp, OWp, O)


def classifier_fused(x, w1, b1, w2, b2):
    M = x.shape[0]
    N = w2.shape[1]
    return pl.pallas_call(
        _classifier_kernel,
        out_shape=jax.ShapeDtypeStruct((M, N), jnp.float32),
        in_specs=[_VMEM_SPEC] * 5,
        out_specs=_VMEM_SPEC,
    )(x, w1, b1, w2, b2)


# --------------------------- AlexNet definition ------------------------------

def init_alexnet_params(key, num_classes=2, num_channel=3, img_resolution=32):
    # Raw PyTorch-layout parameters (synthetic small-scale init).
    ks = jax.random.split(key, 14)
    s = 0.05
    flat = 256 * (img_resolution // 32) * (img_resolution // 32)
    return {
        "conv1_w": jax.random.normal(ks[0], (64, num_channel, 11, 11), jnp.float32) * s,
        "conv1_b": jax.random.normal(ks[1], (64,), jnp.float32) * s,
        "conv2_w": jax.random.normal(ks[2], (192, 64, 5, 5), jnp.float32) * s,
        "conv2_b": jax.random.normal(ks[3], (192,), jnp.float32) * s,
        "conv3_w": jax.random.normal(ks[4], (384, 192, 3, 3), jnp.float32) * s,
        "conv3_b": jax.random.normal(ks[5], (384,), jnp.float32) * s,
        "conv4_w": jax.random.normal(ks[6], (256, 384, 3, 3), jnp.float32) * s,
        "conv4_b": jax.random.normal(ks[7], (256,), jnp.float32) * s,
        "conv5_w": jax.random.normal(ks[8], (256, 256, 3, 3), jnp.float32) * s,
        "conv5_b": jax.random.normal(ks[9], (256,), jnp.float32) * s,
        "fc1_w": jax.random.normal(ks[10], (1000, flat), jnp.float32) * s,
        "fc1_b": jax.random.normal(ks[11], (1000,), jnp.float32) * s,
        "fc2_w": jax.random.normal(ks[12], (num_classes, 1000), jnp.float32) * s,
        "fc2_b": jax.random.normal(ks[13], (num_classes,), jnp.float32) * s,
    }


def prepare_params(raw, num_classes=2, img_resolution=32):
    """One-time weight prep: (K_pad, N) bf16 with K padded to a 128-multiple,
    (1, N) f32 biases; fc1 reordered from PyTorch (c,h,w) to NHWC flatten."""
    def prep_conv(w, b):
        O, C, kh, kw = w.shape
        K = C * kh * kw
        wm = jnp.transpose(w, (2, 3, 1, 0)).reshape(K, O)     # (i, j, c) -> O
        Kp = _round_up(K, 128)
        wm = jnp.pad(wm, ((0, Kp - K), (0, 0))).astype(jnp.bfloat16)
        return wm, b.reshape(1, O).astype(jnp.float32)

    p = {}
    for name in ("conv1", "conv2", "conv3", "conv4", "conv5"):
        p[name + "_w"], p[name + "_b"] = prep_conv(raw[name + "_w"],
                                                   raw[name + "_b"])

    s = img_resolution // 32
    C = 256
    hid = _round_up(1000, 128)                                 # 1024
    w1 = raw["fc1_w"].reshape(1000, C, s, s).transpose(0, 2, 3, 1)
    w1 = w1.reshape(1000, C * s * s).T                         # (K, 1000)
    p["fc1_w"] = jnp.pad(w1, ((0, 0), (0, hid - 1000))).astype(jnp.bfloat16)
    p["fc1_b"] = jnp.pad(raw["fc1_b"], (0, hid - 1000)).reshape(1, hid) \
                    .astype(jnp.float32)
    p["fc2_w"] = jnp.pad(raw["fc2_w"].T,
                         ((0, hid - 1000), (0, 0))).astype(jnp.bfloat16)
    p["fc2_b"] = raw["fc2_b"].reshape(1, num_classes).astype(jnp.float32)
    return p


def alexnet_forward(params, x_nchw):
    # Single NCHW -> NHWC transpose + bf16 cast of the (tiny) network input.
    x = jnp.transpose(x_nchw, (0, 2, 3, 1)).astype(jnp.bfloat16)
    # features (+ReLU fused; pooled stages fuse MaxPool2d(2,2) too)
    x = conv_pool_relu_nhwc(x, params["conv1_w"], params["conv1_b"],
                            stride=4, pad=5, kh=11, kw=11)
    x = conv_pool_relu_nhwc(x, params["conv2_w"], params["conv2_b"],
                            stride=1, pad=2, kh=5, kw=5)
    x = conv_relu_nhwc(x, params["conv3_w"], params["conv3_b"],
                       stride=1, pad=1, kh=3, kw=3)
    x = conv_relu_nhwc(x, params["conv4_w"], params["conv4_b"],
                       stride=1, pad=1, kh=3, kw=3)
    x = conv_pool_relu_nhwc(x, params["conv5_w"], params["conv5_b"],
                            stride=1, pad=1, kh=3, kw=3)
    # classifier: view(N, -1) (NHWC flatten, weights pre-reordered) then
    # fused fc1 -> ReLU -> fc2 in one kernel.
    x = x.reshape(x.shape[0], -1)
    return classifier_fused(x, params["fc1_w"], params["fc1_b"],
                            params["fc2_w"], params["fc2_b"])


if __name__ == "__main__":
    num_classes, num_channel, img_resolution, batch = 2, 3, 32, 2
    key = jax.random.PRNGKey(0)
    k_x, k_p = jax.random.split(key)
    x = jax.random.normal(
        k_x, (batch, num_channel, img_resolution, img_resolution),
        dtype=jnp.float32)
    raw_params = init_alexnet_params(k_p, num_classes=num_classes,
                                     num_channel=num_channel,
                                     img_resolution=img_resolution)
    params = prepare_params(raw_params, num_classes=num_classes,
                            img_resolution=img_resolution)

    forward = jax.jit(alexnet_forward)
    out = jax.block_until_ready(forward(params, x))
    assert out.shape == (batch, num_classes), out.shape
    print("KERNEL_OK")
</pallas_src>

<mosaic_0001>
module attributes {stable_mosaic.version = 11 : i64} {
  func.func @_conv_pool_relu_kernel(%arg0: memref<32x384xbf16, #tpu.memory_space<vmem>>, %arg1: memref<32x384xbf16, #tpu.memory_space<vmem>>, %arg2: memref<32x384xbf16, #tpu.memory_space<vmem>>, %arg3: memref<32x384xbf16, #tpu.memory_space<vmem>>, %arg4: memref<384x64xbf16, #tpu.memory_space<vmem>>, %arg5: memref<1x64xf32, #tpu.memory_space<vmem>>, %arg6: memref<32x64xbf16, #tpu.memory_space<vmem>>) attributes {dimension_semantics = [], scalar_prefetch = 0 : i64, scratch_operands = 0 : i64, tpu.core_type = #tpu.core_type<tc>} {
    %c0 = arith.constant 0 : index
    %c0_0 = arith.constant 0 : index
    %0 = vector.load %arg4[%c0, %c0_0] : memref<384x64xbf16, #tpu.memory_space<vmem>>, vector<384x64xbf16>
    %c0_1 = arith.constant 0 : index
    %c0_2 = arith.constant 0 : index
    %1 = vector.load %arg0[%c0_1, %c0_2] : memref<32x384xbf16, #tpu.memory_space<vmem>>, vector<32x384xbf16>
    %cst = arith.constant dense<0.000000e+00> : vector<32x64xf32>
    %2 = tpu.matmul %1, %0, %cst {dimension_numbers = #tpu.dot_dimension_numbers<[1], [0], [0], [1], [0, 0, 1, 1], [], []>} : vector<32x384xbf16>, vector<384x64xbf16>, vector<32x64xf32> -> vector<32x64xf32>
    %c0_3 = arith.constant 0 : index
    %c0_4 = arith.constant 0 : index
    %3 = vector.load %arg1[%c0_3, %c0_4] : memref<32x384xbf16, #tpu.memory_space<vmem>>, vector<32x384xbf16>
    %cst_5 = arith.constant dense<0.000000e+00> : vector<32x64xf32>
    %4 = tpu.matmul %3, %0, %cst_5 {dimension_numbers = #tpu.dot_dimension_numbers<[1], [0], [0], [1], [0, 0, 1, 1], [], []>} : vector<32x384xbf16>, vector<384x64xbf16>, vector<32x64xf32> -> vector<32x64xf32>
    %c0_6 = arith.constant 0 : index
    %c0_7 = arith.constant 0 : index
    %5 = vector.load %arg2[%c0_6, %c0_7] : memref<32x384xbf16, #tpu.memory_space<vmem>>, vector<32x384xbf16>
    %cst_8 = arith.constant dense<0.000000e+00> : vector<32x64xf32>
    %6 = tpu.matmul %5, %0, %cst_8 {dimension_numbers = #tpu.dot_dimension_numbers<[1], [0], [0], [1], [0, 0, 1, 1], [], []>} : vector<32x384xbf16>, vector<384x64xbf16>, vector<32x64xf32> -> vector<32x64xf32>
    %c0_9 = arith.constant 0 : index
    %c0_10 = arith.constant 0 : index
    %7 = vector.load %arg3[%c0_9, %c0_10] : memref<32x384xbf16, #tpu.memory_space<vmem>>, vector<32x384xbf16>
    %cst_11 = arith.constant dense<0.000000e+00> : vector<32x64xf32>
    %8 = tpu.matmul %7, %0, %cst_11 {dimension_numbers = #tpu.dot_dimension_numbers<[1], [0], [0], [1], [0, 0, 1, 1], [], []>} : vector<32x384xbf16>, vector<384x64xbf16>, vector<32x64xf32> -> vector<32x64xf32>
    %9 = arith.maximumf %2, %4 : vector<32x64xf32>
    %10 = arith.maximumf %6, %8 : vector<32x64xf32>
    %11 = arith.maximumf %9, %10 : vector<32x64xf32>
    %c0_12 = arith.constant 0 : index
    %c0_13 = arith.constant 0 : index
    %12 = vector.load %arg5[%c0_12, %c0_13] : memref<1x64xf32, #tpu.memory_space<vmem>>, vector<1x64xf32>
    %13 = vector.broadcast %12 : vector<1x64xf32> to vector<32x64xf32>
    %14 = arith.addf %11, %13 : vector<32x64xf32>
    %cst_14 = arith.constant 0.000000e+00 : f32
    %15 = vector.broadcast %cst_14 : f32 to vector<32x64xf32>
    %16 = arith.maximumf %14, %15 : vector<32x64xf32>
    %17 = arith.truncf %16 : vector<32x64xf32> to vector<32x64xbf16>
    %c0_15 = arith.constant 0 : index
    %c0_16 = arith.constant 0 : index
    %18 = vector.load %arg6[%c0_15, %c0_16] : memref<32x64xbf16, #tpu.memory_space<vmem>>, vector<32x64xbf16>
    tpu.vector_store %arg6[%c0_15, %c0_16], %17 {strides = array<i32>} : memref<32x64xbf16, #tpu.memory_space<vmem>>, vector<32x64xbf16>,
    return
  }
}

module attributes {stable_mosaic.version = 11 : i64} {
  func.func @_conv_pool_relu_kernel(%arg0: memref<8x1664xbf16, #tpu.memory_space<vmem>>, %arg1: memref<8x1664xbf16, #tpu.memory_space<vmem>>, %arg2: memref<8x1664xbf16, #tpu.memory_space<vmem>>, %arg3: memref<8x1664xbf16, #tpu.memory_space<vmem>>, %arg4: memref<1664x192xbf16, #tpu.memory_space<vmem>>, %arg5: memref<1x192xf32, #tpu.memory_space<vmem>>, %arg6: memref<8x192xbf16, #tpu.memory_space<vmem>>) attributes {dimension_semantics = [], scalar_prefetch = 0 : i64, scratch_operands = 0 : i64, tpu.core_type = #tpu.core_type<tc>} {
    %c0 = arith.constant 0 : index
    %c0_0 = arith.constant 0 : index
    %0 = vector.load %arg4[%c0, %c0_0] : memref<1664x192xbf16, #tpu.memory_space<vmem>>, vector<1664x192xbf16>
    %c0_1 = arith.constant 0 : index
    %c0_2 = arith.constant 0 : index
    %1 = vector.load %arg0[%c0_1, %c0_2] : memref<8x1664xbf16, #tpu.memory_space<vmem>>, vector<8x1664xbf16>
    %cst = arith.constant dense<0.000000e+00> : vector<8x192xf32>
    %2 = tpu.matmul %1, %0, %cst {dimension_numbers = #tpu.dot_dimension_numbers<[1], [0], [0], [1], [0, 0, 1, 1], [], []>} : vector<8x1664xbf16>, vector<1664x192xbf16>, vector<8x192xf32> -> vector<8x192xf32>
    %c0_3 = arith.constant 0 : index
    %c0_4 = arith.constant 0 : index
    %3 = vector.load %arg1[%c0_3, %c0_4] : memref<8x1664xbf16, #tpu.memory_space<vmem>>, vector<8x1664xbf16>
    %cst_5 = arith.constant dense<0.000000e+00> : vector<8x192xf32>
    %4 = tpu.matmul %3, %0, %cst_5 {dimension_numbers = #tpu.dot_dimension_numbers<[1], [0], [0], [1], [0, 0, 1, 1], [], []>} : vector<8x1664xbf16>, vector<1664x192xbf16>, vector<8x192xf32> -> vector<8x192xf32>
    %c0_6 = arith.constant 0 : index
    %c0_7 = arith.constant 0 : index
    %5 = vector.load %arg2[%c0_6, %c0_7] : memref<8x1664xbf16, #tpu.memory_space<vmem>>, vector<8x1664xbf16>
    %cst_8 = arith.constant dense<0.000000e+00> : vector<8x192xf32>
    %6 = tpu.matmul %5, %0, %cst_8 {dimension_numbers = #tpu.dot_dimension_numbers<[1], [0], [0], [1], [0, 0, 1, 1], [], []>} : vector<8x1664xbf16>, vector<1664x192xbf16>, vector<8x192xf32> -> vector<8x192xf32>
    %c0_9 = arith.constant 0 : index
    %c0_10 = arith.constant 0 : index
    %7 = vector.load %arg3[%c0_9, %c0_10] : memref<8x1664xbf16, #tpu.memory_space<vmem>>, vector<8x1664xbf16>
    %cst_11 = arith.constant dense<0.000000e+00> : vector<8x192xf32>
    %8 = tpu.matmul %7, %0, %cst_11 {dimension_numbers = #tpu.dot_dimension_numbers<[1], [0], [0], [1], [0, 0, 1, 1], [], []>} : vector<8x1664xbf16>, vector<1664x192xbf16>, vector<8x192xf32> -> vector<8x192xf32>
    %9 = arith.maximumf %2, %4 : vector<8x192xf32>
    %10 = arith.maximumf %6, %8 : vector<8x192xf32>
    %11 = arith.maximumf %9, %10 : vector<8x192xf32>
    %c0_12 = arith.constant 0 : index
    %c0_13 = arith.constant 0 : index
    %12 = vector.load %arg5[%c0_12, %c0_13] : memref<1x192xf32, #tpu.memory_space<vmem>>, vector<1x192xf32>
    %13 = vector.broadcast %12 : vector<1x192xf32> to vector<8x192xf32>
    %14 = arith.addf %11, %13 : vector<8x192xf32>
    %cst_14 = arith.constant 0.000000e+00 : f32
    %15 = vector.broadcast %cst_14 : f32 to vector<8x192xf32>
    %16 = arith.maximumf %14, %15 : vector<8x192xf32>
    %17 = arith.truncf %16 : vector<8x192xf32> to vector<8x192xbf16>
    %c0_15 = arith.constant 0 : index
    %c0_16 = arith.constant 0 : index
    %18 = vector.load %arg6[%c0_15, %c0_16] : memref<8x192xbf16, #tpu.memory_space<vmem>>, vector<8x192xbf16>
    tpu.vector_store %arg6[%c0_15, %c0_16], %17 {strides = array<i32>} : memref<8x192xbf16, #tpu.memory_space<vmem>>, vector<8x192xbf16>,
    return
  }
}

module attributes {stable_mosaic.version = 11 : i64} {
  func.func @_conv_relu_kernel(%arg0: memref<8x1792xbf16, #tpu.memory_space<vmem>>, %arg1: memref<1792x384xbf16, #tpu.memory_space<vmem>>, %arg2: memref<1x384xf32, #tpu.memory_space<vmem>>, %arg3: memref<8x384xbf16, #tpu.memory_space<vmem>>) attributes {dimension_semantics = [], scalar_prefetch = 0 : i64, scratch_operands = 0 : i64, tpu.core_type = #tpu.core_type<tc>} {
    %c0 = arith.constant 0 : index
    %c0_0 = arith.constant 0 : index
    %0 = vector.load %arg0[%c0, %c0_0] : memref<8x1792xbf16, #tpu.memory_space<vmem>>, vector<8x1792xbf16>
    %c0_1 = arith.constant 0 : index
    %c0_2 = arith.constant 0 : index
    %1 = vector.load %arg1[%c0_1, %c0_2] : memref<1792x384xbf16, #tpu.memory_space<vmem>>, vector<1792x384xbf16>
    %cst = arith.constant dense<0.000000e+00> : vector<8x384xf32>
    %2 = tpu.matmul %0, %1, %cst {dimension_numbers = #tpu.dot_dimension_numbers<[1], [0], [0], [1], [0, 0, 1, 1], [], []>} : vector<8x1792xbf16>, vector<1792x384xbf16>, vector<8x384xf32> -> vector<8x384xf32>
    %c0_3 = arith.constant 0 : index
    %c0_4 = arith.constant 0 : index
    %3 = vector.load %arg2[%c0_3, %c0_4] : memref<1x384xf32, #tpu.memory_space<vmem>>, vector<1x384xf32>
    %4 = vector.broadcast %3 : vector<1x384xf32> to vector<8x384xf32>
    %5 = arith.addf %2, %4 : vector<8x384xf32>
    %cst_5 = arith.constant 0.000000e+00 : f32
    %6 = vector.broadcast %cst_5 : f32 to vector<8x384xf32>
    %7 = arith.maximumf %5, %6 : vector<8x384xf32>
    %8 = arith.truncf %7 : vector<8x384xf32> to vector<8x384xbf16>
    %c0_6 = arith.constant 0 : index
    %c0_7 = arith.constant 0 : index
    %9 = vector.load %arg3[%c0_6, %c0_7] : memref<8x384xbf16, #tpu.memory_space<vmem>>, vector<8x384xbf16>
    tpu.vector_store %arg3[%c0_6, %c0_7], %8 {strides = array<i32>} : memref<8x384xbf16, #tpu.memory_space<vmem>>, vector<8x384xbf16>,
    return
  }
}

module attributes {stable_mosaic.version = 11 : i64} {
  func.func @_conv_relu_kernel(%arg0: memref<8x3456xbf16, #tpu.memory_space<vmem>>, %arg1: memref<3456x256xbf16, #tpu.memory_space<vmem>>, %arg2: memref<1x256xf32, #tpu.memory_space<vmem>>, %arg3: memref<8x256xbf16, #tpu.memory_space<vmem>>) attributes {dimension_semantics = [], scalar_prefetch = 0 : i64, scratch_operands = 0 : i64, tpu.core_type = #tpu.core_type<tc>} {
    %c0 = arith.constant 0 : index
    %c0_0 = arith.constant 0 : index
    %0 = vector.load %arg0[%c0, %c0_0] : memref<8x3456xbf16, #tpu.memory_space<vmem>>, vector<8x3456xbf16>
    %c0_1 = arith.constant 0 : index
    %c0_2 = arith.constant 0 : index
    %1 = vector.load %arg1[%c0_1, %c0_2] : memref<3456x256xbf16, #tpu.memory_space<vmem>>, vector<3456x256xbf16>
    %cst = arith.constant dense<0.000000e+00> : vector<8x256xf32>
    %2 = tpu.matmul %0, %1, %cst {dimension_numbers = #tpu.dot_dimension_numbers<[1], [0], [0], [1], [0, 0, 1, 1], [], []>} : vector<8x3456xbf16>, vector<3456x256xbf16>, vector<8x256xf32> -> vector<8x256xf32>
    %c0_3 = arith.constant 0 : index
    %c0_4 = arith.constant 0 : index
    %3 = vector.load %arg2[%c0_3, %c0_4] : memref<1x256xf32, #tpu.memory_space<vmem>>, vector<1x256xf32>
    %4 = vector.broadcast %3 : vector<1x256xf32> to vector<8x256xf32>
    %5 = arith.addf %2, %4 : vector<8x256xf32>
    %cst_5 = arith.constant 0.000000e+00 : f32
    %6 = vector.broadcast %cst_5 : f32 to vector<8x256xf32>
    %7 = arith.maximumf %5, %6 : vector<8x256xf32>
    %8 = arith.truncf %7 : vector<8x256xf32> to vector<8x256xbf16>
    %c0_6 = arith.constant 0 : index
    %c0_7 = arith.constant 0 : index
    %9 = vector.load %arg3[%c0_6, %c0_7] : memref<8x256xbf16, #tpu.memory_space<vmem>>, vector<8x256xbf16>
    tpu.vector_store %arg3[%c0_6, %c0_7], %8 {strides = array<i32>} : memref<8x256xbf16, #tpu.memory_space<vmem>>, vector<8x256xbf16>,
    return
  }
}

module attributes {stable_mosaic.version = 11 : i64} {
  func.func @_conv_pool_relu_kernel(%arg0: memref<2x2304xbf16, #tpu.memory_space<vmem>>, %arg1: memref<2x2304xbf16, #tpu.memory_space<vmem>>, %arg2: memref<2x2304xbf16, #tpu.memory_space<vmem>>, %arg3: memref<2x2304xbf16, #tpu.memory_space<vmem>>, %arg4: memref<2304x256xbf16, #tpu.memory_space<vmem>>, %arg5: memref<1x256xf32, #tpu.memory_space<vmem>>, %arg6: memref<2x256xbf16, #tpu.memory_space<vmem>>) attributes {dimension_semantics = [], scalar_prefetch = 0 : i64, scratch_operands = 0 : i64, tpu.core_type = #tpu.core_type<tc>} {
    %c0 = arith.constant 0 : index
    %c0_0 = arith.constant 0 : index
    %0 = vector.load %arg4[%c0, %c0_0] : memref<2304x256xbf16, #tpu.memory_space<vmem>>, vector<2304x256xbf16>
    %c0_1 = arith.constant 0 : index
    %c0_2 = arith.constant 0 : index
    %1 = vector.load %arg0[%c0_1, %c0_2] : memref<2x2304xbf16, #tpu.memory_space<vmem>>, vector<2x2304xbf16>
    %cst = arith.constant dense<0.000000e+00> : vector<2x256xf32>
    %2 = tpu.matmul %1, %0, %cst {dimension_numbers = #tpu.dot_dimension_numbers<[1], [0], [0], [1], [0, 0, 1, 1], [], []>} : vector<2x2304xbf16>, vector<2304x256xbf16>, vector<2x256xf32> -> vector<2x256xf32>
    %c0_3 = arith.constant 0 : index
    %c0_4 = arith.constant 0 : index
    %3 = vector.load %arg1[%c0_3, %c0_4] : memref<2x2304xbf16, #tpu.memory_space<vmem>>, vector<2x2304xbf16>
    %cst_5 = arith.constant dense<0.000000e+00> : vector<2x256xf32>
    %4 = tpu.matmul %3, %0, %cst_5 {dimension_numbers = #tpu.dot_dimension_numbers<[1], [0], [0], [1], [0, 0, 1, 1], [], []>} : vector<2x2304xbf16>, vector<2304x256xbf16>, vector<2x256xf32> -> vector<2x256xf32>
    %c0_6 = arith.constant 0 : index
    %c0_7 = arith.constant 0 : index
    %5 = vector.load %arg2[%c0_6, %c0_7] : memref<2x2304xbf16, #tpu.memory_space<vmem>>, vector<2x2304xbf16>
    %cst_8 = arith.constant dense<0.000000e+00> : vector<2x256xf32>
    %6 = tpu.matmul %5, %0, %cst_8 {dimension_numbers = #tpu.dot_dimension_numbers<[1], [0], [0], [1], [0, 0, 1, 1], [], []>} : vector<2x2304xbf16>, vector<2304x256xbf16>, vector<2x256xf32> -> vector<2x256xf32>
    %c0_9 = arith.constant 0 : index
    %c0_10 = arith.constant 0 : index
    %7 = vector.load %arg3[%c0_9, %c0_10] : memref<2x2304xbf16, #tpu.memory_space<vmem>>, vector<2x2304xbf16>
    %cst_11 = arith.constant dense<0.000000e+00> : vector<2x256xf32>
    %8 = tpu.matmul %7, %0, %cst_11 {dimension_numbers = #tpu.dot_dimension_numbers<[1], [0], [0], [1], [0, 0, 1, 1], [], []>} : vector<2x2304xbf16>, vector<2304x256xbf16>, vector<2x256xf32> -> vector<2x256xf32>
    %9 = arith.maximumf %2, %4 : vector<2x256xf32>
    %10 = arith.maximumf %6, %8 : vector<2x256xf32>
    %11 = arith.maximumf %9, %10 : vector<2x256xf32>
    %c0_12 = arith.constant 0 : index
    %c0_13 = arith.constant 0 : index
    %12 = vector.load %arg5[%c0_12, %c0_13] : memref<1x256xf32, #tpu.memory_space<vmem>>, vector<1x256xf32>
    %13 = vector.broadcast %12 : vector<1x256xf32> to vector<2x256xf32>
    %14 = arith.addf %11, %13 : vector<2x256xf32>
    %cst_14 = arith.constant 0.000000e+00 : f32
    %15 = vector.broadcast %cst_14 : f32 to vector<2x256xf32>
    %16 = arith.maximumf %14, %15 : vector<2x256xf32>
    %17 = arith.truncf %16 : vector<2x256xf32> to vector<2x256xbf16>
    %c0_15 = arith.constant 0 : index
    %c0_16 = arith.constant 0 : index
    %18 = vector.load %arg6[%c0_15, %c0_16] : memref<2x256xbf16, #tpu.memory_space<vmem>>, vector<2x256xbf16>
    tpu.vector_store %arg6[%c0_15, %c0_16], %17 {strides = array<i32>} : memref<2x256xbf16, #tpu.memory_space<vmem>>, vector<2x256xbf16>,
    return
  }
}

module attributes {stable_mosaic.version = 11 : i64} {
  func.func @_classifier_kernel(%arg0: memref<2x256xbf16, #tpu.memory_space<vmem>>, %arg1: memref<256x1024xbf16, #tpu.memory_space<vmem>>, %arg2: memref<1x1024xf32, #tpu.memory_space<vmem>>, %arg3: memref<1024x2xbf16, #tpu.memory_space<vmem>>, %arg4: memref<1x2xf32, #tpu.memory_space<vmem>>, %arg5: memref<2x2xf32, #tpu.memory_space<vmem>>) attributes {dimension_semantics = [], scalar_prefetch = 0 : i64, scratch_operands = 0 : i64, tpu.core_type = #tpu.core_type<tc>} {
    %c0 = arith.constant 0 : index
    %c0_0 = arith.constant 0 : index
    %0 = vector.load %arg0[%c0, %c0_0] : memref<2x256xbf16, #tpu.memory_space<vmem>>, vector<2x256xbf16>
    %c0_1 = arith.constant 0 : index
    %c0_2 = arith.constant 0 : index
    %1 = vector.load %arg1[%c0_1, %c0_2] : memref<256x1024xbf16, #tpu.memory_space<vmem>>, vector<256x1024xbf16>
    %cst = arith.constant dense<0.000000e+00> : vector<2x1024xf32>
    %2 = tpu.matmul %0, %1, %cst {dimension_numbers = #tpu.dot_dimension_numbers<[1], [0], [0], [1], [0, 0, 1, 1], [], []>} : vector<2x256xbf16>, vector<256x1024xbf16>, vector<2x1024xf32> -> vector<2x1024xf32>
    %c0_3 = arith.constant 0 : index
    %c0_4 = arith.constant 0 : index
    %3 = vector.load %arg2[%c0_3, %c0_4] : memref<1x1024xf32, #tpu.memory_space<vmem>>, vector<1x1024xf32>
    %4 = vector.broadcast %3 : vector<1x1024xf32> to vector<2x1024xf32>
    %5 = arith.addf %2, %4 : vector<2x1024xf32>
    %cst_5 = arith.constant 0.000000e+00 : f32
    %6 = vector.broadcast %cst_5 : f32 to vector<2x1024xf32>
    %7 = arith.maximumf %5, %6 : vector<2x1024xf32>
    %8 = arith.truncf %7 : vector<2x1024xf32> to vector<2x1024xbf16>
    %c0_6 = arith.constant 0 : index
    %c0_7 = arith.constant 0 : index
    %9 = vector.load %arg3[%c0_6, %c0_7] : memref<1024x2xbf16, #tpu.memory_space<vmem>>, vector<1024x2xbf16>
    %cst_8 = arith.constant dense<0.000000e+00> : vector<2x2xf32>
    %10 = tpu.matmul %8, %9, %cst_8 {dimension_numbers = #tpu.dot_dimension_numbers<[1], [0], [0], [1], [0, 0, 1, 1], [], []>} : vector<2x1024xbf16>, vector<1024x2xbf16>, vector<2x2xf32> -> vector<2x2xf32>
    %c0_9 = arith.constant 0 : index
    %c0_10 = arith.constant 0 : index
    %11 = vector.load %arg4[%c0_9, %c0_10] : memref<1x2xf32, #tpu.memory_space<vmem>>, vector<1x2xf32>
    %12 = vector.broadcast %11 : vector<1x2xf32> to vector<2x2xf32>
    %13 = arith.addf %10, %12 : vector<2x2xf32>
    %c0_11 = arith.constant 0 : index
    %c0_12 = arith.constant 0 : index
    %14 = vector.load %arg5[%c0_11, %c0_12] : memref<2x2xf32, #tpu.memory_space<vmem>>, vector<2x2xf32>
    tpu.vector_store %arg5[%c0_11, %c0_12], %13 {strides = array<i32>} : memref<2x2xf32, #tpu.memory_space<vmem>>, vector<2x2xf32>,
    return
  }
}

</mosaic_0001>

<bundles_post_ra>
// kernel: alexnet_forward.6
= control target key start
LH: loop header
LB: loop body
LE: loop exit
PB: predicated region body
PF: predicated region fallthrough
CT: control target
= control target key end

     0   :  { %vm811_vm0 = vcmask 519168   ;;  %s1554_s4 = inlined_call_operand.vmem [shape: bf16[384,64], index: 4, kind: input, shape index: {}]   ;;  %s1555_s0 = inlined_call_operand.vmem [shape: bf16[32,384], index: 0, kind: input, shape index: {}]   ;;  %s1556_s1 = inlined_call_operand.vmem [shape: bf16[32,384], index: 1, kind: input, shape index: {}]   ;;  %s1557_s2 = inlined_call_operand.vmem [shape: bf16[32,384], index: 2, kind: input, shape index: {}]   ;;  %s1558_s3 = inlined_call_operand.vmem [shape: bf16[32,384], index: 3, kind: input, shape index: {}]   ;;  %s1559_s5 = inlined_call_operand.vmem [shape: f32[1,64], index: 5, kind: input, shape index: {}]   ;;  %s1560_s6 = inlined_call_operand.vmem [shape: bf16[32,64], index: 6, kind: output, shape index: {}]  }
   0x1   :  { %v1203_v0 = vld [vmem:[%s1554_s4 + $0x40] sm:$0xff]   ;;  %v1220_v3 = vld [vmem:[%s1554_s4 + $0x48] sm:$0xff]   ;;  %v1238_v6 = vld [vmem:[%s1554_s4 + $0x50] sm:$0xff]  }
   0x2   :  { %v1208_v1 = vld [vmem:[%s1554_s4] sm:$0xff]   ;;  %877 = vmatprep.subr.bf16.mxu0 %v1203_v0  ;;  %v1226_v4 = vld [vmem:[%s1554_s4 + $0x8] sm:$0xff]   ;;  %v1245_v7 = vld [vmem:[%s1554_s4 + $0x10] sm:$0xff]  }
   0x3   :  { %v1214_v2 = vld [vmem:[%s1554_s4 + $0x80] sm:$0xff]   ;;  %878 = vmatpush3.bf16.msra.mxu0 %v1208_v1  ;;  %v1233_v5 = vld [vmem:[%s1554_s4 + $0x88] sm:$0xff]   ;;  %v1251_v8 = vld [vmem:[%s1554_s4 + $0x90] sm:$0xff]  }
   0x4   :  { %1029 = vmatprep.subr.bf16.mxu1 %v1214_v2  ;;  %879 = vmatprep.subr.bf16.mxu0 %v1220_v3  ;;  %v1257_v9 = vld [vmem:[%s1554_s4 + $0x58] sm:$0xff]   ;;  %v1275_v12 = vld [vmem:[%s1554_s4 + $0x60] sm:$0xff]   ;;  %v1294_v15 = vld [vmem:[%s1554_s4 + $0x68] sm:$0xff]  }
   0x5   :  { %1030 = vmatpush3.bf16.msra.mxu1 %v1214_v2  ;;  %v1263_v10 = vld [vmem:[%s1554_s4 + $0x18] sm:$0xff]   ;;  %v1282_v13 = vld [vmem:[%s1554_s4 + $0xa0] sm:$0xff]   ;;  %v1301_v16 = vld [vmem:[%s1554_s4 + $0xa8] sm:$0xff]  }
   0x6   :  { %1031 = vmatprep.subr.bf16.mxu1 %v1233_v5  ;;  %v1269_v11 = vld [vmem:[%s1554_s4 + $0x98] sm:$0xff]   ;;  %v1288_v14 = vld [vmem:[%s1554_s4 + $0x20] sm:$0xff]   ;;  %v1307_v17 = vld [vmem:[%s1554_s4 + $0x28] sm:$0xff]  }
   0x7   :  { %880 = vmatpush3.bf16.msra.mxu0 %v1226_v4  ;;  %v1313_v18 = vld [vmem:[%s1554_s4 + $0x70] sm:$0xff]   ;;  %v1331_v21 = vld [vmem:[%s1554_s4 + $0x78] sm:$0xff]   ;;  %v1133_v26 = vld [vmem:[%s1555_s0] ss:$12 sps:$4 sm:$0xff]  }
   0x8   :  { %881 = vmatprep.subr.bf16.mxu0 %v1238_v6  ;;  %v1319_v19 = vld [vmem:[%s1554_s4 + $0x30] sm:$0xff]   ;;  %v1337_v22 = vld [vmem:[%s1554_s4 + $0xb8] sm:$0xff]   ;;  %v1137_v28 = vld [vmem:[%s1555_s0 + $0x20] ss:$12 sps:$4 sm:$0xff]  }
   0x9   :  { %1032 = vmatpush3.bf16.msra.mxu1 %v1233_v5  ;;  %v1325_v20 = vld [vmem:[%s1554_s4 + $0xb0] sm:$0xff]   ;;  %v1351_v25 = vld [vmem:[%s1554_s4 + $0x38] sm:$0xff]   ;;  %v1141_v32 = vld [vmem:[%s1556_s1] ss:$12 sps:$4 sm:$0xff]  }
   0xa   :  { %1033 = vmatprep.subr.bf16.mxu1 %v1251_v8  ;;  %v1135_v23 = vld [vmem:[%s1555_s0 + $0x4] ss:$12 sps:$4 sm:$0xff]   ;;  %v1136_v24 = vld [vmem:[%s1555_s0 + $0x8] ss:$12 sps:$4 sm:$0xff]   ;;  %v1145_v34 = vld [vmem:[%s1556_s1 + $0x20] ss:$12 sps:$4 sm:$0xff]  }
   0xb   :  { %882 = vmatpush3.bf16.msra.mxu0 %v1245_v7  ;;  %288 = vmatprep.mubr.bf16.mxu0 %v1135_v23  ;;  %v1138_v27 = vld [vmem:[%s1555_s0 + $0x1c] ss:$12 sps:$4 sm:$0xff]   ;;  %v1140_v30 = vld [vmem:[%s1555_s0 + $0x18] ss:$12 sps:$4 sm:$0xff]   ;;  %v1149_v38 = vld [vmem:[%s1557_s2] ss:$12 sps:$4 sm:$0xff]  }
   0xc   :  { %883 = vmatprep.subr.bf16.mxu0 %v1257_v9  ;;  %1045 = vmatprep.mubr.bf16.mxu1 %v1136_v24  ;;  %v1144_v29 = vld [vmem:[%s1556_s1 + $0x8] ss:$12 sps:$4 sm:$0xff]   ;;  %v1143_v31 = vld [vmem:[%s1556_s1 + $0x4] ss:$12 sps:$4 sm:$0xff]   ;;  %v1153_v40 = vld [vmem:[%s1557_s2 + $0x20] ss:$12 sps:$4 sm:$0xff]  }
   0xd   :  { %1034 = vmatpush3.bf16.msra.mxu1 %v1251_v8  ;;  %v1146_v33 = vld [vmem:[%s1556_s1 + $0x1c] ss:$12 sps:$4 sm:$0xff]   ;;  %v1148_v36 = vld [vmem:[%s1556_s1 + $0x18] ss:$12 sps:$4 sm:$0xff]   ;;  %v1157_v44 = vld [vmem:[%s1558_s3] ss:$12 sps:$4 sm:$0xff]  }
   0xe   :  { %1035 = vmatprep.subr.bf16.mxu1 %v1269_v11  ;;  %v1152_v35 = vld [vmem:[%s1557_s2 + $0x8] ss:$12 sps:$4 sm:$0xff]   ;;  %v1151_v37 = vld [vmem:[%s1557_s2 + $0x4] ss:$12 sps:$4 sm:$0xff]   ;;  %v1161_v46 = vld [vmem:[%s1558_s3 + $0x20] ss:$12 sps:$4 sm:$0xff]  }
   0xf   :  { %884 = vmatpush3.bf16.msra.mxu0 %v1263_v10  ;;  %v1154_v39 = vld [vmem:[%s1557_s2 + $0x1c] ss:$12 sps:$4 sm:$0xff]   ;;  %v1156_v42 = vld [vmem:[%s1557_s2 + $0x18] ss:$12 sps:$4 sm:$0xff]  }
  0x10   :  { %885 = vmatprep.subr.bf16.mxu0 %v1275_v12  ;;  %v1160_v41 = vld [vmem:[%s1558_s3 + $0x8] ss:$12 sps:$4 sm:$0xff]   ;;  %v1159_v43 = vld [vmem:[%s1558_s3 + $0x4] ss:$12 sps:$4 sm:$0xff]  }
  0x11   :  { %1036 = vmatpush3.bf16.msra.mxu1 %v1269_v11  ;;  %v1162_v45 = vld [vmem:[%s1558_s3 + $0x1c] ss:$12 sps:$4 sm:$0xff]   ;;  %v1164_v47 = vld [vmem:[%s1558_s3 + $0x18] ss:$12 sps:$4 sm:$0xff]  }
  0x12   :  { %1037 = vmatprep.subr.bf16.mxu1 %v1282_v13 }
  0x13   :  { %886 = vmatpush3.bf16.msra.mxu0 %v1288_v14 }
  0x14   :  { %887 = vmatprep.subr.bf16.mxu0 %v1294_v15 }
  0x15   :  { %1038 = vmatpush3.bf16.msra.mxu1 %v1282_v13 }
  0x16   :  { %1039 = vmatprep.subr.bf16.mxu1 %v1301_v16 }
  0x17   :  { %888 = vmatpush3.bf16.msra.mxu0 %v1307_v17 }
  0x18   :  { %889 = vmatprep.subr.bf16.mxu0 %v1313_v18 }
  0x19   :  { %1040 = vmatpush3.bf16.msra.mxu1 %v1301_v16 }
  0x1a   :  { %1041 = vmatprep.subr.bf16.mxu1 %v1325_v20 }
  0x1b   :  { %890 = vmatpush3.bf16.msra.mxu0 %v1319_v19 }
  0x1c   :  { %891 = vmatprep.subr.bf16.mxu0 %v1331_v21 }
  0x1d   :  { %1042 = vmatpush3.bf16.msra.mxu1 %v1325_v20 }
  0x1e   :  { %1043 = vmatprep.subr.bf16.mxu1 %v1337_v22 }
  0x1f   :  { %892 = vmatpush3.bf16.msra.mxu0 %v1351_v25 }
  0x20   :  { %915 = vmatprep.subr.bf16.mxu0 %v1203_v0 }
  0x21   :  { %1044 = vmatpush3.bf16.msra.mxu1 %v1337_v22 }
  0x22   :  { %289 = vmatmul.mubr.bf16.vlgmr.msra.gmra.mrb[0].mxu0 %v1133_v26  ;;  %1049 = vmatprep.subr.bf16.mxu1 %v1214_v2 }
  0x23   :  { %916 = vmatpush3.bf16.msra.mxu0 %v1208_v1  ;;  %296 = vmatprep.mubr.bf16.mxu0 %v1138_v27 }
  0x24   :  { %1046 = vmatmul.mubr.bf16.vlgmr.msra.gmra.mrb[0].mxu1 %v1137_v28  ;;  %917 = vmatprep.subr.bf16.mxu0 %v1220_v3 }
  0x25   :  { %1050 = vmatpush3.bf16.msra.mxu1 %v1214_v2  ;;  %1065 = vmatprep.mubr.bf16.mxu1 %v1144_v29 }
  0x26   :  { %1051 = vmatprep.subr.bf16.mxu1 %v1233_v5 }
  0x27   :  { %918 = vmatpush3.bf16.msra.mxu0 %v1226_v4 }
  0x28   :  { %919 = vmatprep.subr.bf16.mxu0 %v1238_v6 }
  0x29   :  { %1052 = vmatpush3.bf16.msra.mxu1 %v1233_v5 }
  0x2a   :  { %297 = vmatmul.mubr.bf16.gmra.mrb[4].mxu0 %v1140_v30  ;;  %1053 = vmatprep.subr.bf16.mxu1 %v1251_v8 }
  0x2b   :  { %920 = vmatpush3.bf16.msra.mxu0 %v1245_v7  ;;  %426 = vmatprep.mubr.bf16.mxu0 %v1143_v31 }
  0x2c   :  { %921 = vmatprep.subr.bf16.mxu0 %v1257_v9 }
  0x2d   :  { %1054 = vmatpush3.bf16.msra.mxu1 %v1251_v8 }
  0x2e   :  { %1055 = vmatprep.subr.bf16.mxu1 %v1269_v11 }
  0x2f   :  { %922 = vmatpush3.bf16.msra.mxu0 %v1263_v10 }
  0x30   :  { %923 = vmatprep.subr.bf16.mxu0 %v1275_v12 }
  0x31   :  { %1056 = vmatpush3.bf16.msra.mxu1 %v1269_v11 }
  0x32   :  { %1057 = vmatprep.subr.bf16.mxu1 %v1282_v13 }
  0x33   :  { %924 = vmatpush3.bf16.msra.mxu0 %v1288_v14 }
  0x34   :  { %925 = vmatprep.subr.bf16.mxu0 %v1294_v15 }
  0x35   :  { %1058 = vmatpush3.bf16.msra.mxu1 %v1282_v13 }
  0x36   :  { %1059 = vmatprep.subr.bf16.mxu1 %v1301_v16 }
  0x37   :  { %926 = vmatpush3.bf16.msra.mxu0 %v1307_v17 }
  0x38   :  { %927 = vmatprep.subr.bf16.mxu0 %v1313_v18 }
  0x39   :  { %1060 = vmatpush3.bf16.msra.mxu1 %v1301_v16 }
  0x3a   :  { %1061 = vmatprep.subr.bf16.mxu1 %v1325_v20 }
  0x3b   :  { %928 = vmatpush3.bf16.msra.mxu0 %v1319_v19 }
  0x3c   :  { %929 = vmatprep.subr.bf16.mxu0 %v1331_v21 }
  0x3d   :  { %1062 = vmatpush3.bf16.msra.mxu1 %v1325_v20 }
  0x3e   :  { %1063 = vmatprep.subr.bf16.mxu1 %v1337_v22 }
  0x3f   :  { %930 = vmatpush3.bf16.msra.mxu0 %v1351_v25 }
  0x40   :  { %953 = vmatprep.subr.bf16.mxu0 %v1203_v0 }
  0x41   :  { %1064 = vmatpush3.bf16.msra.mxu1 %v1337_v22 }
  0x42   :  { %427 = vmatmul.mubr.bf16.vlgmr.msra.gmra.mrb[8].mxu0 %v1141_v32  ;;  %1069 = vmatprep.subr.bf16.mxu1 %v1214_v2 }
  0x43   :  { %954 = vmatpush3.bf16.msra.mxu0 %v1208_v1  ;;  %434 = vmatprep.mubr.bf16.mxu0 %v1146_v33 }
  0x44   :  { %1066 = vmatmul.mubr.bf16.vlgmr.msra.gmra.mrb[4].mxu1 %v1145_v34  ;;  %955 = vmatprep.subr.bf16.mxu0 %v1220_v3 }
  0x45   :  { %1070 = vmatpush3.bf16.msra.mxu1 %v1214_v2  ;;  %1085 = vmatprep.mubr.bf16.mxu1 %v1152_v35 }
  0x46   :  { %1071 = vmatprep.subr.bf16.mxu1 %v1233_v5 }
  0x47   :  { %956 = vmatpush3.bf16.msra.mxu0 %v1226_v4 }
  0x48   :  { %957 = vmatprep.subr.bf16.mxu0 %v1238_v6 }
  0x49   :  { %1072 = vmatpush3.bf16.msra.mxu1 %v1233_v5 }
  0x4a   :  { %435 = vmatmul.mubr.bf16.gmra.mrb[12].mxu0 %v1148_v36  ;;  %1073 = vmatprep.subr.bf16.mxu1 %v1251_v8 }
  0x4b   :  { %958 = vmatpush3.bf16.msra.mxu0 %v1245_v7  ;;  %564 = vmatprep.mubr.bf16.mxu0 %v1151_v37 }
  0x4c   :  { %959 = vmatprep.subr.bf16.mxu0 %v1257_v9 }
  0x4d   :  { %1074 = vmatpush3.bf16.msra.mxu1 %v1251_v8 }
  0x4e   :  { %1075 = vmatprep.subr.bf16.mxu1 %v1269_v11 }
  0x4f   :  { %960 = vmatpush3.bf16.msra.mxu0 %v1263_v10 }
  0x50   :  { %961 = vmatprep.subr.bf16.mxu0 %v1275_v12 }
  0x51   :  { %1076 = vmatpush3.bf16.msra.mxu1 %v1269_v11 }
  0x52   :  { %1077 = vmatprep.subr.bf16.mxu1 %v1282_v13 }
  0x53   :  { %962 = vmatpush3.bf16.msra.mxu0 %v1288_v14 }
  0x54   :  { %963 = vmatprep.subr.bf16.mxu0 %v1294_v15 }
  0x55   :  { %1078 = vmatpush3.bf16.msra.mxu1 %v1282_v13 }
  0x56   :  { %1079 = vmatprep.subr.bf16.mxu1 %v1301_v16 }
  0x57   :  { %964 = vmatpush3.bf16.msra.mxu0 %v1307_v17 }
  0x58   :  { %965 = vmatprep.subr.bf16.mxu0 %v1313_v18 }
  0x59   :  { %1080 = vmatpush3.bf16.msra.mxu1 %v1301_v16 }
  0x5a   :  { %1081 = vmatprep.subr.bf16.mxu1 %v1325_v20 }
  0x5b   :  { %966 = vmatpush3.bf16.msra.mxu0 %v1319_v19 }
  0x5c   :  { %967 = vmatprep.subr.bf16.mxu0 %v1331_v21 }
  0x5d   :  { %1082 = vmatpush3.bf16.msra.mxu1 %v1325_v20 }
  0x5e   :  { %1083 = vmatprep.subr.bf16.mxu1 %v1337_v22 }
  0x5f   :  { %968 = vmatpush3.bf16.msra.mxu0 %v1351_v25 }
  0x60   :  { %991 = vmatprep.subr.bf16.mxu0 %v1203_v0 }
  0x61   :  { %1084 = vmatpush3.bf16.msra.mxu1 %v1337_v22 }
  0x62   :  { %565 = vmatmul.mubr.bf16.vlgmr.msra.gmra.mrb[16].mxu0 %v1149_v38  ;;  %1089 = vmatprep.subr.bf16.mxu1 %v1214_v2 }
  0x63   :  { %992 = vmatpush3.bf16.msra.mxu0 %v1208_v1  ;;  %572 = vmatprep.mubr.bf16.mxu0 %v1154_v39 }
  0x64   :  { %1086 = vmatmul.mubr.bf16.vlgmr.msra.gmra.mrb[8].mxu1 %v1153_v40  ;;  %993 = vmatprep.subr.bf16.mxu0 %v1220_v3 }
  0x65   :  { %1090 = vmatpush3.bf16.msra.mxu1 %v1214_v2  ;;  %1105 = vmatprep.mubr.bf16.mxu1 %v1160_v41 }
  0x66   :  { %1091 = vmatprep.subr.bf16.mxu1 %v1233_v5 }
  0x67   :  { %994 = vmatpush3.bf16.msra.mxu0 %v1226_v4 }
  0x68   :  { %995 = vmatprep.subr.bf16.mxu0 %v1238_v6 }
  0x69   :  { %1092 = vmatpush3.bf16.msra.mxu1 %v1233_v5 }
  0x6a   :  { %573 = vmatmul.mubr.bf16.gmra.mrb[20].mxu0 %v1156_v42  ;;  %1093 = vmatprep.subr.bf16.mxu1 %v1251_v8 }
  0x6b   :  { %996 = vmatpush3.bf16.msra.mxu0 %v1245_v7  ;;  %702 = vmatprep.mubr.bf16.mxu0 %v1159_v43 }
  0x6c   :  { %997 = vmatprep.subr.bf16.mxu0 %v1257_v9 }
  0x6d   :  { %1094 = vmatpush3.bf16.msra.mxu1 %v1251_v8 }
  0x6e   :  { %1095 = vmatprep.subr.bf16.mxu1 %v1269_v11 }
  0x6f   :  { %998 = vmatpush3.bf16.msra.mxu0 %v1263_v10 }
  0x70   :  { %999 = vmatprep.subr.bf16.mxu0 %v1275_v12 }
  0x71   :  { %1096 = vmatpush3.bf16.msra.mxu1 %v1269_v11 }
  0x72   :  { %1097 = vmatprep.subr.bf16.mxu1 %v1282_v13 }
  0x73   :  { %1000 = vmatpush3.bf16.msra.mxu0 %v1288_v14 }
  0x74   :  { %1001 = vmatprep.subr.bf16.mxu0 %v1294_v15 }
  0x75   :  { %1098 = vmatpush3.bf16.msra.mxu1 %v1282_v13 }
  0x76   :  { %1099 = vmatprep.subr.bf16.mxu1 %v1301_v16 }
  0x77   :  { %1002 = vmatpush3.bf16.msra.mxu0 %v1307_v17 }
  0x78   :  { %1003 = vmatprep.subr.bf16.mxu0 %v1313_v18 }
  0x79   :  { %1100 = vmatpush3.bf16.msra.mxu1 %v1301_v16 }
  0x7a   :  { %1101 = vmatprep.subr.bf16.mxu1 %v1325_v20 }
  0x7b   :  { %1004 = vmatpush3.bf16.msra.mxu0 %v1319_v19 }
  0x7c   :  { %1005 = vmatprep.subr.bf16.mxu0 %v1331_v21 }
  0x7d   :  { %1102 = vmatpush3.bf16.msra.mxu1 %v1325_v20 }
  0x7e   :  { %1103 = vmatprep.subr.bf16.mxu1 %v1337_v22 }
  0x7f   :  { %1006 = vmatpush3.bf16.msra.mxu0 %v1351_v25 }
  0x81   :  { %1104 = vmatpush3.bf16.msra.mxu1 %v1337_v22 }
  0x82   :  { %703 = vmatmul.mubr.bf16.vlgmr.msra.gmra.mrb[24].mxu0 %v1157_v44 }
  0x83   :  { %710 = vmatprep.mubr.bf16.mxu0 %v1162_v45 }
  0x84   :  { %1106 = vmatmul.mubr.bf16.vlgmr.msra.gmra.mrb[12].mxu1 %v1161_v46 }
  0x8a   :  { %711 = vmatmul.mubr.bf16.gmra.mrb[28].mxu0 %v1164_v47 }
  0xf5   :  { %v893_v48 = vpop.f32.mrb[0].mxu0 }
  0xf6   :  { %v894_v49 = vpop.f32.mrb[1].mxu0 }
  0xf7   :  { %v895_v50 = vadd.f32 %v894_v49, %v893_v48  ;;  %v896_v51 = vpop.f32.mrb[2].mxu0  ;;  %v1047_v52 = vpop.f32.mrb[0].mxu1 }
  0xf8   :  { %v897_v53 = vpop.f32.mrb[3].mxu0  ;;  %v339_v54 = vpop.f32.mrb[1].mxu1 }
  0xf9   :  { %v898_v55 = vadd.f32 %v897_v53, %v896_v51  ;;  %v1520_v56 = vadd.f32 %v895_v50, %v339_v54  ;;  %v1048_v57 = vpop.f32.mrb[2].mxu1 }
  0xfa   :  { %v342_v58 = vpop.f32.mrb[3].mxu1 }
  0xfb   :  { %v1522_v59 = vadd.f32 %v898_v55, %v342_v58 }
  0xfd   :  { %v899_v60 = vpop.f32.mrb[4].mxu0 }
  0xfe   :  { %v900_v61 = vpop.f32.mrb[5].mxu0 }
  0xff   :  { %v901_v62 = vadd.f32 %v900_v61, %v899_v60  ;;  %v902_v63 = vpop.f32.mrb[6].mxu0  ;;  %v868_v61 = vld [vmem:[%s1559_s5] ss:$0 sm:$0xff] }
 0x100   :  { %v903_v0 = vpop.f32.mrb[7].mxu0 }
 0x101   :  { %v1524_v1 = vadd.f32 %v1047_v52, %v901_v62  ;;  %v904_v2 = vadd.f32 %v903_v0, %v902_v63 }
 0x103   :  { %v1526_v3 = vadd.f32 %v1048_v57, %v904_v2 }
 0x115   :  { %v931_v4 = vpop.f32.mrb[8].mxu0 }
 0x116   :  { %v932_v5 = vpop.f32.mrb[9].mxu0 }
 0x117   :  { %v933_v6 = vadd.f32 %v932_v5, %v931_v4  ;;  %v934_v7 = vpop.f32.mrb[10].mxu0  ;;  %v1067_v8 = vpop.f32.mrb[4].mxu1 }
 0x118   :  { %v935_v9 = vpop.f32.mrb[11].mxu0  ;;  %v477_v10 = vpop.f32.mrb[5].mxu1 }
 0x119   :  { %v936_v11 = vadd.f32 %v935_v9, %v934_v7  ;;  %v478_v12 = vadd.f32 %v933_v6, %v477_v10  ;;  %v1068_v13 = vpop.f32.mrb[6].mxu1 }
 0x11a   :  { %v480_v14 = vpop.f32.mrb[7].mxu1 }
 0x11b   :  { %v768_v15 = vmax.f32 %v1520_v56, %v478_v12  ;;  %v481_v16 = vadd.f32 %v936_v11, %v480_v14 }
 0x11d   :  { %v769_v17 = vmax.f32 %v1522_v59, %v481_v16  ;;  %v937_v18 = vpop.f32.mrb[12].mxu0 }
 0x11e   :  { %v938_v19 = vpop.f32.mrb[13].mxu0 }
 0x11f   :  { %v939_v20 = vadd.f32 %v938_v19, %v937_v18  ;;  %v940_v21 = vpop.f32.mrb[14].mxu0 }
 0x120   :  { %v941_v22 = vpop.f32.mrb[15].mxu0 }
 0x121   :  { %v486_v23 = vadd.f32 %v1067_v8, %v939_v20  ;;  %v942_v24 = vadd.f32 %v941_v22, %v940_v21 }
 0x123   :  { %v770_v25 = vmax.f32 %v1524_v1, %v486_v23  ;;  %v1531_v26 = vadd.f32 %v1068_v13, %v942_v24 }
 0x125   :  { %v771_v27 = vmax.f32 %v1526_v3, %v1531_v26 }
 0x135   :  { %v969_v28 = vpop.f32.mrb[16].mxu0 }
 0x136   :  { %v970_v29 = vpop.f32.mrb[17].mxu0 }
 0x137   :  { %v971_v30 = vadd.f32 %v970_v29, %v969_v28  ;;  %v972_v31 = vpop.f32.mrb[18].mxu0  ;;  %v1087_v32 = vpop.f32.mrb[8].mxu1 }
 0x138   :  { %v973_v33 = vpop.f32.mrb[19].mxu0  ;;  %v615_v34 = vpop.f32.mrb[9].mxu1 }
 0x139   :  { %v974_v35 = vadd.f32 %v973_v33, %v972_v31  ;;  %v616_v36 = vadd.f32 %v971_v30, %v615_v34  ;;  %v1088_v37 = vpop.f32.mrb[10].mxu1 }
 0x13a   :  { %v618_v38 = vpop.f32.mrb[11].mxu1 }
 0x13b   :  { %v619_v39 = vadd.f32 %v974_v35, %v618_v38 }
 0x13d   :  { %v975_v40 = vpop.f32.mrb[20].mxu0 }
 0x13e   :  { %v976_v41 = vpop.f32.mrb[21].mxu0 }
 0x13f   :  { %v977_v42 = vadd.f32 %v976_v41, %v975_v40  ;;  %v978_v43 = vpop.f32.mrb[22].mxu0 }
 0x140   :  { %v979_v44 = vpop.f32.mrb[23].mxu0 }
 0x141   :  { %v624_v45 = vadd.f32 %v1087_v32, %v977_v42  ;;  %v980_v46 = vadd.f32 %v979_v44, %v978_v43 }
 0x143   :  { %v627_v47 = vadd.f32 %v1088_v37, %v980_v46 }
 0x155   :  { %v1007_v48 = vpop.f32.mrb[24].mxu0 }
 0x156   :  { %v1008_v49 = vpop.f32.mrb[25].mxu0 }
 0x157   :  { %v1009_v50 = vadd.f32 %v1008_v49, %v1007_v48  ;;  %v1010_v51 = vpop.f32.mrb[26].mxu0  ;;  %v1107_v52 = vpop.f32.mrb[12].mxu1 }
 0x158   :  { %v1011_v53 = vpop.f32.mrb[27].mxu0  ;;  %v753_v54 = vpop.f32.mrb[13].mxu1 }
 0x159   :  { %v1012_v55 = vadd.f32 %v1011_v53, %v1010_v51  ;;  %v754_v56 = vadd.f32 %v1009_v50, %v753_v54  ;;  %v1108_v57 = vpop.f32.mrb[14].mxu1 }
 0x15a   :  { %v756_v58 = vpop.f32.mrb[15].mxu1 }
 0x15b   :  { %v772_v59 = vmax.f32 %v616_v36, %v754_v56  ;;  %v757_v60 = vadd.f32 %v1012_v55, %v756_v58 }
 0x15d   :  { %v776_v62 = vmax.f32 %v768_v15, %v772_v59  ;;  %v773_v63 = vmax.f32 %v619_v39, %v757_v60  ;;  %v1013_v0 = vpop.f32.mrb[28].mxu0 }
 0x15e   :  { %v1014_v1 = vpop.f32.mrb[29].mxu0 }
 0x15f   :  { %v787_v2 = vadd.f32 %v868_v61, %v776_v62  ;;  %v777_v3 = vmax.f32 %v769_v17, %v773_v63  ;;  %v1015_v4 = vadd.f32 %v1014_v1, %v1013_v0  ;;  %v1016_v5 = vpop.f32.mrb[30].mxu0 }
 0x160   :  { %v1017_v6 = vpop.f32.mrb[31].mxu0 }
 0x161   :  { %v791_v7 = vmax.f32 %v787_v2, 0.0  ;;  %v788_v8 = vadd.f32 %v868_v61, %v777_v3  ;;  %v762_v9 = vadd.f32 %v1107_v52, %v1015_v4  ;;  %v1018_v10 = vadd.f32 %v1017_v6, %v1016_v5 }
 0x163   :  { %v873_v11 = vpack.c.bf16 %v791_v7, %v791_v7  ;;  %v792_v12 = vmax.f32 %v788_v8, 0.0  ;;  %v774_v13 = vmax.f32 %v624_v45, %v762_v9  ;;  %v765_v14 = vadd.f32 %v1108_v57, %v1018_v10 }
 0x165   :  { %812 = vst.msk [vmem:[%s1560_s6] sm:$0xf] %vm811_vm0, %v873_v11  ;;  %v874_v15 = vpack.c.bf16 %v792_v12, %v792_v12  ;;  %v778_v16 = vmax.f32 %v770_v25, %v774_v13  ;;  %v775_v17 = vmax.f32 %v627_v47, %v765_v14 }
 0x167   :  { %813 = vst.msk [vmem:[%s1560_s6 + $0x4] sm:$0xf] %vm811_vm0, %v874_v15  ;;  %v789_v18 = vadd.f32 %v868_v61, %v778_v16  ;;  %v779_v19 = vmax.f32 %v771_v27, %v775_v17 }
 0x169   :  { %v793_v20 = vmax.f32 %v789_v18, 0.0  ;;  %v790_v21 = vadd.f32 %v868_v61, %v779_v19 }
 0x16b   :  { %v875_v22 = vpack.c.bf16 %v793_v20, %v793_v20  ;;  %v794_v23 = vmax.f32 %v790_v21, 0.0 }
 0x16d   :  { %814 = vst.msk [vmem:[%s1560_s6 + $0x8] sm:$0xf] %vm811_vm0, %v875_v22  ;;  %v876_v24 = vpack.c.bf16 %v794_v23, %v794_v23 }
 0x16f   :  { %815 = vst.msk [vmem:[%s1560_s6 + $0xc] sm:$0xf] %vm811_vm0, %v876_v24 }

// kernel: alexnet_forward.7
= control target key start
LH: loop header
LB: loop body
LE: loop exit
PB: predicated region body
PF: predicated region fallthrough
CT: control target
= control target key end

     0   :  { %vm2662_vm0 = vcmask 1043456   ;;  %vm2663_vm1 = vcmask 523268   ;;  %s5172_s4 = inlined_call_operand.vmem [shape: bf16[1664,192], index: 4, kind: input, shape index: {}]   ;;  %s5173_s0 = inlined_call_operand.vmem [shape: bf16[8,1664], index: 0, kind: input, shape index: {}]   ;;  %s5174_s1 = inlined_call_operand.vmem [shape: bf16[8,1664], index: 1, kind: input, shape index: {}]   ;;  %s5175_s2 = inlined_call_operand.vmem [shape: bf16[8,1664], index: 2, kind: input, shape index: {}]   ;;  %s5176_s3 = inlined_call_operand.vmem [shape: bf16[8,1664], index: 3, kind: input, shape index: {}]   ;;  %s5177_s5 = inlined_call_operand.vmem [shape: f32[1,192], index: 5, kind: input, shape index: {}]   ;;  %s5178_s6 = inlined_call_operand.vmem [shape: bf16[8,192], index: 6, kind: output, shape index: {}]  }
   0x1   :  { %v3029_v0 = vld [vmem:[%s5172_s4 + $0x4] ss:$8 sps:$4 sm:$0xff]   ;;  %v3031_v1 = vld [vmem:[%s5172_s4] ss:$8 sps:$4 sm:$0xff]   ;;  %v3032_v2 = vld [vmem:[%s5172_s4 + $0x14] ss:$8 sps:$4 sm:$0xff]  }
   0x2   :  { %1325 = vmatprep.subr.bf16.mxu0 %v3029_v0  ;;  %1665 = vmatprep.subr.bf16.mxu1 %v3029_v0  ;;  %v3034_v3 = vld [vmem:[%s5172_s4 + $0x10] ss:$8 sps:$4 sm:$0xff]   ;;  %v3035_v4 = vld [vmem:[%s5172_s4 + $0x24] ss:$8 sps:$4 sm:$0xff]   ;;  %v3037_v5 = vld [vmem:[%s5172_s4 + $0x20] ss:$8 sps:$4 sm:$0xff]  }
   0x3   :  { %1326 = vmatpush1.bf16.msra.mxu0 %v3031_v1  ;;  %1666 = vmatpush1.bf16.msra.mxu1 %v3031_v1  ;;  %v3038_v6 = vld [vmem:[%s5172_s4 + $0x34] ss:$8 sps:$4 sm:$0xff]   ;;  %v3040_v7 = vld [vmem:[%s5172_s4 + $0x30] ss:$8 sps:$4 sm:$0xff]   ;;  %v3041_v8 = vld [vmem:[%s5172_s4 + $0x44] ss:$8 sps:$4 sm:$0xff]  }
   0x4   :  { %1327 = vmatprep.subr.bf16.mxu0 %v3032_v2  ;;  %1667 = vmatprep.subr.bf16.mxu1 %v3032_v2  ;;  %v3043_v9 = vld [vmem:[%s5172_s4 + $0x40] ss:$8 sps:$4 sm:$0xff]   ;;  %v3044_v10 = vld [vmem:[%s5172_s4 + $0x54] ss:$8 sps:$4 sm:$0xff]   ;;  %v3046_v11 = vld [vmem:[%s5172_s4 + $0x50] ss:$8 sps:$4 sm:$0xff]  }
   0x5   :  { %v3047_v12 = vld [vmem:[%s5172_s4 + $0x64] ss:$8 sps:$4 sm:$0xff]   ;;  %v3049_v16 = vld [vmem:[%s5172_s4 + $0x60] ss:$8 sps:$4 sm:$0xff]   ;;  %v3050_v18 = vld [vmem:[%s5172_s4 + $0x74] ss:$8 sps:$4 sm:$0xff]  }
   0x6   :  { %v3666_v13 = vld [vmem:[%s5173_s0] sm:$0xff]  ;;  %v3052_v19 = vld [vmem:[%s5172_s4 + $0x70] ss:$8 sps:$4 sm:$0xff]   ;;  %v3056_v22 = vld [vmem:[%s5172_s4 + $0x94] ss:$8 sps:$4 sm:$0xff]  }
   0x7   :  { %1328 = vmatpush1.bf16.msra.mxu0 %v3034_v3  ;;  %1668 = vmatpush1.bf16.msra.mxu1 %v3034_v3  ;;  %v2671_v14 = vcombine.high %v3666_v13, %v3666_v13  ;;  %v3673_v15 = vld [vmem:[%s5174_s1] sm:$0xff]  ;;  %v3058_v23 = vld [vmem:[%s5172_s4 + $0x90] ss:$8 sps:$4 sm:$0xff]   ;;  %v3062_v26 = vld [vmem:[%s5172_s4 + $0xb4] ss:$8 sps:$4 sm:$0xff]   ;;  %v2670_v37 = vcombine.low %v3666_v13, %v3666_v13 }
   0x8   :  { %1329 = vmatprep.subr.bf16.mxu0 %v3035_v4  ;;  %1669 = vmatprep.subr.bf16.mxu1 %v3035_v4  ;;  %v2892_v17 = vcombine.high %v3673_v15, %v3673_v15  ;;  %v3053_v20 = vld [vmem:[%s5172_s4 + $0x84] ss:$8 sps:$4 sm:$0xff]   ;;  %v3055_v21 = vld [vmem:[%s5172_s4 + $0x80] ss:$8 sps:$4 sm:$0xff]   ;;  %v3064_v27 = vld [vmem:[%s5172_s4 + $0xb0] ss:$8 sps:$4 sm:$0xff]   ;;  %v2891_v38 = vcombine.low %v3673_v15, %v3673_v15 }
   0x9   :  { %1357 = vmatprep.mubr.bf16.mxu0 %v2671_v14  ;;  %v3059_v24 = vld [vmem:[%s5172_s4 + $0xa4] ss:$8 sps:$4 sm:$0xff]   ;;  %v3061_v25 = vld [vmem:[%s5172_s4 + $0xa0] ss:$8 sps:$4 sm:$0xff]   ;;  %v3068_v30 = vld [vmem:[%s5172_s4 + $0xd4] ss:$8 sps:$4 sm:$0xff]  }
   0xa   :  { %1697 = vmatprep.mubr.bf16.mxu1 %v2892_v17  ;;  %v3065_v28 = vld [vmem:[%s5172_s4 + $0xc4] ss:$8 sps:$4 sm:$0xff]   ;;  %v3067_v29 = vld [vmem:[%s5172_s4 + $0xc0] ss:$8 sps:$4 sm:$0xff]   ;;  %v3070_v31 = vld [vmem:[%s5172_s4 + $0xd0] ss:$8 sps:$4 sm:$0xff]  }
   0xb   :  { %1330 = vmatpush1.bf16.msra.mxu0 %v3037_v5  ;;  %1670 = vmatpush1.bf16.msra.mxu1 %v3037_v5  ;;  %v3071_v32 = vld [vmem:[%s5172_s4 + $0xe4] ss:$8 sps:$4 sm:$0xff]   ;;  %v3073_v33 = vld [vmem:[%s5172_s4 + $0xe0] ss:$8 sps:$4 sm:$0xff]   ;;  %v3074_v34 = vld [vmem:[%s5172_s4 + $0xf4] ss:$8 sps:$4 sm:$0xff]  }
   0xc   :  { %1331 = vmatprep.subr.bf16.mxu0 %v3038_v6  ;;  %1671 = vmatprep.subr.bf16.mxu1 %v3038_v6  ;;  %v3076_v35 = vld [vmem:[%s5172_s4 + $0xf0] ss:$8 sps:$4 sm:$0xff]   ;;  %v3079_v36 = vld [vmem:[%s5172_s4 + $0x104] ss:$8 sps:$4 sm:$0xff]   ;;  %v3083_v41 = vld [vmem:[%s5172_s4 + $0x100] ss:$8 sps:$4 sm:$0xff]  }
   0xd   :  { %v3744_v39 = vld [vmem:[%s5173_s0 + $0x8] sm:$0xff]  ;;  %v3084_v42 = vld [vmem:[%s5172_s4 + $0x114] ss:$8 sps:$4 sm:$0xff]   ;;  %v3086_v45 = vld [vmem:[%s5172_s4 + $0x110] ss:$8 sps:$4 sm:$0xff]  }
   0xe   :  { %v3749_v40 = vld [vmem:[%s5174_s1 + $0x8] sm:$0xff]  ;;  %v2673_v43 = vcombine.high %v3744_v39, %v3744_v39  ;;  %v3090_v48 = vld [vmem:[%s5172_s4 + $0x134] ss:$8 sps:$4 sm:$0xff]   ;;  %v3092_v49 = vld [vmem:[%s5172_s4 + $0x130] ss:$8 sps:$4 sm:$0xff]  }
   0xf   :  { %1332 = vmatpush1.bf16.msra.mxu0 %v3040_v7  ;;  %1672 = vmatpush1.bf16.msra.mxu1 %v3040_v7  ;;  %v2894_v44 = vcombine.high %v3749_v40, %v3749_v40  ;;  %v3087_v46 = vld [vmem:[%s5172_s4 + $0x124] ss:$8 sps:$4 sm:$0xff]   ;;  %v3089_v47 = vld [vmem:[%s5172_s4 + $0x120] ss:$8 sps:$4 sm:$0xff]   ;;  %v3096_v52 = vld [vmem:[%s5172_s4 + $0x154] ss:$8 sps:$4 sm:$0xff]  }
  0x10   :  { %1333 = vmatprep.subr.bf16.mxu0 %v3041_v8  ;;  %1673 = vmatprep.subr.bf16.mxu1 %v3041_v8  ;;  %v3093_v50 = vld [vmem:[%s5172_s4 + $0x144] ss:$8 sps:$4 sm:$0xff]   ;;  %v3095_v51 = vld [vmem:[%s5172_s4 + $0x140] ss:$8 sps:$4 sm:$0xff]   ;;  %v3098_v53 = vld [vmem:[%s5172_s4 + $0x150] ss:$8 sps:$4 sm:$0xff]  }
  0x11   :  { %v3099_v54 = vld [vmem:[%s5172_s4 + $0x164] ss:$8 sps:$4 sm:$0xff]   ;;  %v3101_v55 = vld [vmem:[%s5172_s4 + $0x160] ss:$8 sps:$4 sm:$0xff]   ;;  %v3102_v56 = vld [vmem:[%s5172_s4 + $0x174] ss:$8 sps:$4 sm:$0xff]  }
  0x12   :  { %v3104_v57 = vld [vmem:[%s5172_s4 + $0x170] ss:$8 sps:$4 sm:$0xff]   ;;  %v3105_v58 = vld [vmem:[%s5172_s4 + $0x184] ss:$8 sps:$4 sm:$0xff]   ;;  %v3107_v59 = vld [vmem:[%s5172_s4 + $0x180] ss:$8 sps:$4 sm:$0xff]  }
  0x13   :  { %1334 = vmatpush1.bf16.msra.mxu0 %v3043_v9  ;;  %1674 = vmatpush1.bf16.msra.mxu1 %v3043_v9  ;;  %v3108_v60 = vld [vmem:[%s5172_s4 + $0x194] ss:$8 sps:$4 sm:$0xff]   ;;  %v3110_v61 = vld [vmem:[%s5172_s4 + $0x190] ss:$8 sps:$4 sm:$0xff]   ;;  %v3111_v62 = vld [vmem:[%s5172_s4 + $0x1a4] ss:$8 sps:$4 sm:$0xff]  }
  0x14   :  { %1335 = vmatprep.subr.bf16.mxu0 %v3044_v10  ;;  %1675 = vmatprep.subr.bf16.mxu1 %v3044_v10  ;;  %v3113_v63 = vld [vmem:[%s5172_s4 + $0x1a0] ss:$8 sps:$4 sm:$0xff]   ;;  %v3114_v0 = vld [vmem:[%s5172_s4 + $0x1b4] ss:$8 sps:$4 sm:$0xff]   ;;  %v3116_v1 = vld [vmem:[%s5172_s4 + $0x1b0] ss:$8 sps:$4 sm:$0xff]  }
  0x15   :  { %v3117_v2 = vld [vmem:[%s5172_s4 + $0x1c4] ss:$8 sps:$4 sm:$0xff]   ;;  %v3119_v3 = vld [vmem:[%s5172_s4 + $0x1c0] ss:$8 sps:$4 sm:$0xff]   ;;  %v3120_v4 = vld [vmem:[%s5172_s4 + $0x1d4] ss:$8 sps:$4 sm:$0xff]  }
  0x16   :  { %v3122_v5 = vld [vmem:[%s5172_s4 + $0x1d0] ss:$8 sps:$4 sm:$0xff]   ;;  %v3123_v6 = vld [vmem:[%s5172_s4 + $0x1e4] ss:$8 sps:$4 sm:$0xff]   ;;  %v3125_v7 = vld [vmem:[%s5172_s4 + $0x1e0] ss:$8 sps:$4 sm:$0xff]  }
  0x17   :  { %1336 = vmatpush1.bf16.msra.mxu0 %v3046_v11  ;;  %1676 = vmatpush1.bf16.msra.mxu1 %v3046_v11  ;;  %v3126_v8 = vld [vmem:[%s5172_s4 + $0x1f4] ss:$8 sps:$4 sm:$0xff]   ;;  %v3128_v9 = vld [vmem:[%s5172_s4 + $0x1f0] ss:$8 sps:$4 sm:$0xff]   ;;  %v3131_v10 = vld [vmem:[%s5172_s4 + $0x204] ss:$8 sps:$4 sm:$0xff]   ;;  %v2672_v11 = vcombine.low %v3744_v39, %v3744_v39 }
  0x18   :  { %1337 = vmatprep.subr.bf16.mxu0 %v3047_v12  ;;  %1677 = vmatprep.subr.bf16.mxu1 %v3047_v12  ;;  %v2893_v12 = vcombine.low %v3749_v40, %v3749_v40  ;;  %v3858_v13 = vld [vmem:[%s5173_s0 + $0x10] sm:$0xff]  ;;  %v3135_v15 = vld [vmem:[%s5172_s4 + $0x200] ss:$8 sps:$4 sm:$0xff]   ;;  %v3169_v40 = vld [vmem:[%s5172_s4 + $0x2c4] ss:$8 sps:$4 sm:$0xff]  }
  0x19   :  { %v3863_v14 = vld [vmem:[%s5174_s1 + $0x10] sm:$0xff]  ;;  %v2675_v17 = vcombine.high %v3858_v13, %v3858_v13  ;;  %vm2664_vm2 = vmor %vm2663_vm1, %vm2662_vm0 }
  0x1a   :  { %v3168_v39 = vld [vmem:[%s5172_s4 + $0x2b0] ss:$8 sps:$4 sm:$0xff]  }
  0x1b   :  { %1338 = vmatpush1.bf16.msra.mxu0 %v3049_v16  ;;  %1678 = vmatpush1.bf16.msra.mxu1 %v3049_v16  ;;  %v3136_v16 = vld [vmem:[%s5172_s4 + $0x214] ss:$8 sps:$4 sm:$0xff]  }
  0x1c   :  { %1339 = vmatprep.subr.bf16.mxu0 %v3050_v18  ;;  %1679 = vmatprep.subr.bf16.mxu1 %v3050_v18  ;;  %v2896_v18 = vcombine.high %v3863_v14, %v3863_v14 }
  0x1f   :  { %1340 = vmatpush1.bf16.msra.mxu0 %v3052_v19  ;;  %1680 = vmatpush1.bf16.msra.mxu1 %v3052_v19  ;;  %v3138_v19 = vld [vmem:[%s5172_s4 + $0x210] ss:$8 sps:$4 sm:$0xff]  }
  0x20   :  { %1341 = vmatprep.subr.bf16.mxu0 %v3053_v20  ;;  %1681 = vmatprep.subr.bf16.mxu1 %v3053_v20  ;;  %v3139_v20 = vld [vmem:[%s5172_s4 + $0x224] ss:$8 sps:$4 sm:$0xff]  }
  0x23   :  { %1342 = vmatpush1.bf16.msra.mxu0 %v3055_v21  ;;  %1682 = vmatpush1.bf16.msra.mxu1 %v3055_v21  ;;  %v3141_v21 = vld [vmem:[%s5172_s4 + $0x220] ss:$8 sps:$4 sm:$0xff]  }
  0x24   :  { %1343 = vmatprep.subr.bf16.mxu0 %v3056_v22  ;;  %1683 = vmatprep.subr.bf16.mxu1 %v3056_v22  ;;  %v3142_v22 = vld [vmem:[%s5172_s4 + $0x234] ss:$8 sps:$4 sm:$0xff]  }
  0x27   :  { %1344 = vmatpush1.bf16.msra.mxu0 %v3058_v23  ;;  %1684 = vmatpush1.bf16.msra.mxu1 %v3058_v23  ;;  %v3144_v23 = vld [vmem:[%s5172_s4 + $0x230] ss:$8 sps:$4 sm:$0xff]  }
  0x28   :  { %1345 = vmatprep.subr.bf16.mxu0 %v3059_v24  ;;  %1685 = vmatprep.subr.bf16.mxu1 %v3059_v24  ;;  %v3145_v24 = vld [vmem:[%s5172_s4 + $0x244] ss:$8 sps:$4 sm:$0xff]  }
  0x2b   :  { %1346 = vmatpush1.bf16.msra.mxu0 %v3061_v25  ;;  %1686 = vmatpush1.bf16.msra.mxu1 %v3061_v25  ;;  %v3147_v25 = vld [vmem:[%s5172_s4 + $0x240] ss:$8 sps:$4 sm:$0xff]  }
  0x2c   :  { %1347 = vmatprep.subr.bf16.mxu0 %v3062_v26  ;;  %1687 = vmatprep.subr.bf16.mxu1 %v3062_v26  ;;  %v3148_v26 = vld [vmem:[%s5172_s4 + $0x254] ss:$8 sps:$4 sm:$0xff]  }
  0x2f   :  { %1348 = vmatpush1.bf16.msra.mxu0 %v3064_v27  ;;  %1688 = vmatpush1.bf16.msra.mxu1 %v3064_v27  ;;  %v3150_v27 = vld [vmem:[%s5172_s4 + $0x250] ss:$8 sps:$4 sm:$0xff]  }
  0x30   :  { %1349 = vmatprep.subr.bf16.mxu0 %v3065_v28  ;;  %1689 = vmatprep.subr.bf16.mxu1 %v3065_v28  ;;  %v3151_v28 = vld [vmem:[%s5172_s4 + $0x264] ss:$8 sps:$4 sm:$0xff]  }
  0x33   :  { %1350 = vmatpush1.bf16.msra.mxu0 %v3067_v29  ;;  %1690 = vmatpush1.bf16.msra.mxu1 %v3067_v29  ;;  %v3153_v29 = vld [vmem:[%s5172_s4 + $0x260] ss:$8 sps:$4 sm:$0xff]  }
  0x34   :  { %1351 = vmatprep.subr.bf16.mxu0 %v3068_v30  ;;  %1691 = vmatprep.subr.bf16.mxu1 %v3068_v30  ;;  %v3154_v30 = vld [vmem:[%s5172_s4 + $0x274] ss:$8 sps:$4 sm:$0xff]  }
  0x37   :  { %1352 = vmatpush1.bf16.msra.mxu0 %v3070_v31  ;;  %1692 = vmatpush1.bf16.msra.mxu1 %v3070_v31  ;;  %v3156_v31 = vld [vmem:[%s5172_s4 + $0x270] ss:$8 sps:$4 sm:$0xff]  }
  0x38   :  { %1353 = vmatprep.subr.bf16.mxu0 %v3071_v32  ;;  %1693 = vmatprep.subr.bf16.mxu1 %v3071_v32  ;;  %v3157_v32 = vld [vmem:[%s5172_s4 + $0x284] ss:$8 sps:$4 sm:$0xff]  }
  0x3b   :  { %1354 = vmatpush1.bf16.msra.mxu0 %v3073_v33  ;;  %1694 = vmatpush1.bf16.msra.mxu1 %v3073_v33  ;;  %v3159_v33 = vld [vmem:[%s5172_s4 + $0x280] ss:$8 sps:$4 sm:$0xff]  }
  0x3c   :  { %1355 = vmatprep.subr.bf16.mxu0 %v3074_v34  ;;  %1695 = vmatprep.subr.bf16.mxu1 %v3074_v34  ;;  %v3160_v34 = vld [vmem:[%s5172_s4 + $0x294] ss:$8 sps:$4 sm:$0xff]  }
  0x3f   :  { %1356 = vmatpush1.bf16.msra.mxu0 %v3076_v35  ;;  %1696 = vmatpush1.bf16.msra.mxu1 %v3076_v35  ;;  %v3162_v35 = vld [vmem:[%s5172_s4 + $0x290] ss:$8 sps:$4 sm:$0xff]  }
  0x40   :  { %1366 = vmatprep.subr.bf16.mxu0 %v3079_v36  ;;  %1706 = vmatprep.subr.bf16.mxu1 %v3079_v36  ;;  %v3163_v36 = vld [vmem:[%s5172_s4 + $0x2a4] ss:$8 sps:$4 sm:$0xff]  }
  0x42   :  { %1358 = vmatmul.mubr.bf16.vlgmr.msra.gmra.mrb[0].mxu0 %v2670_v37  ;;  %1698 = vmatmul.mubr.bf16.vlgmr.msra.gmra.mrb[0].mxu1 %v2891_v38  ;;  %v3165_v37 = vld [vmem:[%s5172_s4 + $0x2a0] ss:$8 sps:$4 sm:$0xff]   ;;  %v3166_v38 = vld [vmem:[%s5172_s4 + $0x2b4] ss:$8 sps:$4 sm:$0xff]  }
  0x43   :  { %1367 = vmatpush1.bf16.msra.mxu0 %v3083_v41  ;;  %1707 = vmatpush1.bf16.msra.mxu1 %v3083_v41  ;;  %v3171_v41 = vld [vmem:[%s5172_s4 + $0x2c0] ss:$8 sps:$4 sm:$0xff]  }
  0x44   :  { %1368 = vmatprep.subr.bf16.mxu0 %v3084_v42  ;;  %1708 = vmatprep.subr.bf16.mxu1 %v3084_v42  ;;  %v3172_v42 = vld [vmem:[%s5172_s4 + $0x2d4] ss:$8 sps:$4 sm:$0xff]  }
  0x45   :  { %1398 = vmatprep.mubr.bf16.mxu0 %v2673_v43  ;;  %1738 = vmatprep.mubr.bf16.mxu1 %v2894_v44  ;;  %v3174_v43 = vld [vmem:[%s5172_s4 + $0x2d0] ss:$8 sps:$4 sm:$0xff]   ;;  %v3175_v44 = vld [vmem:[%s5172_s4 + $0x2e4] ss:$8 sps:$4 sm:$0xff]  }
  0x47   :  { %1369 = vmatpush1.bf16.msra.mxu0 %v3086_v45  ;;  %1709 = vmatpush1.bf16.msra.mxu1 %v3086_v45  ;;  %v3177_v45 = vld [vmem:[%s5172_s4 + $0x2e0] ss:$8 sps:$4 sm:$0xff]  }
  0x48   :  { %1370 = vmatprep.subr.bf16.mxu0 %v3087_v46  ;;  %1710 = vmatprep.subr.bf16.mxu1 %v3087_v46  ;;  %v3178_v46 = vld [vmem:[%s5172_s4 + $0x2f4] ss:$8 sps:$4 sm:$0xff]  }
  0x4b   :  { %1371 = vmatpush1.bf16.msra.mxu0 %v3089_v47  ;;  %1711 = vmatpush1.bf16.msra.mxu1 %v3089_v47  ;;  %v3180_v47 = vld [vmem:[%s5172_s4 + $0x2f0] ss:$8 sps:$4 sm:$0xff]  }
  0x4c   :  { %1372 = vmatprep.subr.bf16.mxu0 %v3090_v48  ;;  %1712 = vmatprep.subr.bf16.mxu1 %v3090_v48  ;;  %v3183_v48 = vld [vmem:[%s5172_s4 + $0x304] ss:$8 sps:$4 sm:$0xff]  }
  0x4f   :  { %1373 = vmatpush1.bf16.msra.mxu0 %v3092_v49  ;;  %1713 = vmatpush1.bf16.msra.mxu1 %v3092_v49  ;;  %v2674_v49 = vcombine.low %v3858_v13, %v3858_v13  ;;  %v3220_v13 = vld [vmem:[%s5172_s4 + $0x3b0] ss:$8 sps:$4 sm:$0xff]  }
  0x50   :  { %1374 = vmatprep.subr.bf16.mxu0 %v3093_v50  ;;  %1714 = vmatprep.subr.bf16.mxu1 %v3093_v50  ;;  %v2895_v50 = vcombine.low %v3863_v14, %v3863_v14  ;;  %v3221_v14 = vld [vmem:[%s5172_s4 + $0x3c4] ss:$8 sps:$4 sm:$0xff]  }
  0x53   :  { %1375 = vmatpush1.bf16.msra.mxu0 %v3095_v51  ;;  %1715 = vmatpush1.bf16.msra.mxu1 %v3095_v51  ;;  %v3972_v51 = vld [vmem:[%s5173_s0 + $0x18] sm:$0xff] }
  0x54   :  { %1376 = vmatprep.subr.bf16.mxu0 %v3096_v52  ;;  %1716 = vmatprep.subr.bf16.mxu1 %v3096_v52  ;;  %v3977_v52 = vld [vmem:[%s5174_s1 + $0x18] sm:$0xff] }
  0x57   :  { %1377 = vmatpush1.bf16.msra.mxu0 %v3098_v53  ;;  %1717 = vmatpush1.bf16.msra.mxu1 %v3098_v53  ;;  %v3187_v53 = vld [vmem:[%s5172_s4 + $0x300] ss:$8 sps:$4 sm:$0xff]  }
  0x58   :  { %1378 = vmatprep.subr.bf16.mxu0 %v3099_v54  ;;  %1718 = vmatprep.subr.bf16.mxu1 %v3099_v54  ;;  %v3188_v54 = vld [vmem:[%s5172_s4 + $0x314] ss:$8 sps:$4 sm:$0xff]  }
  0x5b   :  { %1379 = vmatpush1.bf16.msra.mxu0 %v3101_v55  ;;  %1719 = vmatpush1.bf16.msra.mxu1 %v3101_v55  ;;  %v2677_v55 = vcombine.high %v3972_v51, %v3972_v51 }
  0x5c   :  { %1380 = vmatprep.subr.bf16.mxu0 %v3102_v56  ;;  %1720 = vmatprep.subr.bf16.mxu1 %v3102_v56  ;;  %v2898_v56 = vcombine.high %v3977_v52, %v3977_v52 }
  0x5f   :  { %1381 = vmatpush1.bf16.msra.mxu0 %v3104_v57  ;;  %1721 = vmatpush1.bf16.msra.mxu1 %v3104_v57  ;;  %v3190_v57 = vld [vmem:[%s5172_s4 + $0x310] ss:$8 sps:$4 sm:$0xff]  }
  0x60   :  { %1382 = vmatprep.subr.bf16.mxu0 %v3105_v58  ;;  %1722 = vmatprep.subr.bf16.mxu1 %v3105_v58  ;;  %v3191_v58 = vld [vmem:[%s5172_s4 + $0x324] ss:$8 sps:$4 sm:$0xff]  }
  0x63   :  { %1383 = vmatpush1.bf16.msra.mxu0 %v3107_v59  ;;  %1723 = vmatpush1.bf16.msra.mxu1 %v3107_v59  ;;  %v3193_v59 = vld [vmem:[%s5172_s4 + $0x320] ss:$8 sps:$4 sm:$0xff]  }
  0x64   :  { %1384 = vmatprep.subr.bf16.mxu0 %v3108_v60  ;;  %1724 = vmatprep.subr.bf16.mxu1 %v3108_v60  ;;  %v3194_v60 = vld [vmem:[%s5172_s4 + $0x334] ss:$8 sps:$4 sm:$0xff]  }
  0x67   :  { %1385 = vmatpush1.bf16.msra.mxu0 %v3110_v61  ;;  %1725 = vmatpush1.bf16.msra.mxu1 %v3110_v61  ;;  %v3196_v61 = vld [vmem:[%s5172_s4 + $0x330] ss:$8 sps:$4 sm:$0xff]  }
  0x68   :  { %1386 = vmatprep.subr.bf16.mxu0 %v3111_v62  ;;  %1726 = vmatprep.subr.bf16.mxu1 %v3111_v62  ;;  %v3197_v62 = vld [vmem:[%s5172_s4 + $0x344] ss:$8 sps:$4 sm:$0xff]  }
  0x6b   :  { %1387 = vmatpush1.bf16.msra.mxu0 %v3113_v63  ;;  %1727 = vmatpush1.bf16.msra.mxu1 %v3113_v63  ;;  %v3199_v63 = vld [vmem:[%s5172_s4 + $0x340] ss:$8 sps:$4 sm:$0xff]  }
  0x6c   :  { %1388 = vmatprep.subr.bf16.mxu0 %v3114_v0  ;;  %1728 = vmatprep.subr.bf16.mxu1 %v3114_v0  ;;  %v3200_v0 = vld [vmem:[%s5172_s4 + $0x354] ss:$8 sps:$4 sm:$0xff]  }
  0x6f   :  { %1389 = vmatpush1.bf16.msra.mxu0 %v3116_v1  ;;  %1729 = vmatpush1.bf16.msra.mxu1 %v3116_v1  ;;  %v3202_v1 = vld [vmem:[%s5172_s4 + $0x350] ss:$8 sps:$4 sm:$0xff]  }
  0x70   :  { %1390 = vmatprep.subr.bf16.mxu0 %v3117_v2  ;;  %1730 = vmatprep.subr.bf16.mxu1 %v3117_v2  ;;  %v3203_v2 = vld [vmem:[%s5172_s4 + $0x364] ss:$8 sps:$4 sm:$0xff]  }
  0x73   :  { %1391 = vmatpush1.bf16.msra.mxu0 %v3119_v3  ;;  %1731 = vmatpush1.bf16.msra.mxu1 %v3119_v3  ;;  %v3205_v3 = vld [vmem:[%s5172_s4 + $0x360] ss:$8 sps:$4 sm:$0xff]  }
  0x74   :  { %1392 = vmatprep.subr.bf16.mxu0 %v3120_v4  ;;  %1732 = vmatprep.subr.bf16.mxu1 %v3120_v4  ;;  %v3206_v4 = vld [vmem:[%s5172_s4 + $0x374] ss:$8 sps:$4 sm:$0xff]  }
  0x77   :  { %1393 = vmatpush1.bf16.msra.mxu0 %v3122_v5  ;;  %1733 = vmatpush1.bf16.msra.mxu1 %v3122_v5  ;;  %v3208_v5 = vld [vmem:[%s5172_s4 + $0x370] ss:$8 sps:$4 sm:$0xff]  }
  0x78   :  { %1394 = vmatprep.subr.bf16.mxu0 %v3123_v6  ;;  %1734 = vmatprep.subr.bf16.mxu1 %v3123_v6  ;;  %v3209_v6 = vld [vmem:[%s5172_s4 + $0x384] ss:$8 sps:$4 sm:$0xff]  }
  0x7b   :  { %1395 = vmatpush1.bf16.msra.mxu0 %v3125_v7  ;;  %1735 = vmatpush1.bf16.msra.mxu1 %v3125_v7  ;;  %v3211_v7 = vld [vmem:[%s5172_s4 + $0x380] ss:$8 sps:$4 sm:$0xff]  }
  0x7c   :  { %1396 = vmatprep.subr.bf16.mxu0 %v3126_v8  ;;  %1736 = vmatprep.subr.bf16.mxu1 %v3126_v8  ;;  %v3212_v8 = vld [vmem:[%s5172_s4 + $0x394] ss:$8 sps:$4 sm:$0xff]  }
  0x7f   :  { %1397 = vmatpush1.bf16.msra.mxu0 %v3128_v9  ;;  %1737 = vmatpush1.bf16.msra.mxu1 %v3128_v9  ;;  %v3214_v9 = vld [vmem:[%s5172_s4 + $0x390] ss:$8 sps:$4 sm:$0xff]  }
  0x80   :  { %1407 = vmatprep.subr.bf16.mxu0 %v3131_v10  ;;  %1747 = vmatprep.subr.bf16.mxu1 %v3131_v10  ;;  %v3215_v10 = vld [vmem:[%s5172_s4 + $0x3a4] ss:$8 sps:$4 sm:$0xff]  }
  0x82   :  { %1399 = vmatmul.mubr.bf16.vlgmr.msra.gmra.mrb[0].mxu0 %v2672_v11  ;;  %1739 = vmatmul.mubr.bf16.vlgmr.msra.gmra.mrb[0].mxu1 %v2893_v12  ;;  %v3217_v11 = vld [vmem:[%s5172_s4 + $0x3a0] ss:$8 sps:$4 sm:$0xff]   ;;  %v3218_v12 = vld [vmem:[%s5172_s4 + $0x3b4] ss:$8 sps:$4 sm:$0xff]  }
  0x83   :  { %1408 = vmatpush1.bf16.msra.mxu0 %v3135_v15  ;;  %1748 = vmatpush1.bf16.msra.mxu1 %v3135_v15  ;;  %v3223_v15 = vld [vmem:[%s5172_s4 + $0x3c0] ss:$8 sps:$4 sm:$0xff]  }
  0x84   :  { %1409 = vmatprep.subr.bf16.mxu0 %v3136_v16  ;;  %1749 = vmatprep.subr.bf16.mxu1 %v3136_v16  ;;  %v3224_v16 = vld [vmem:[%s5172_s4 + $0x3d4] ss:$8 sps:$4 sm:$0xff]  }
  0x85   :  { %1439 = vmatprep.mubr.bf16.mxu0 %v2675_v17  ;;  %1779 = vmatprep.mubr.bf16.mxu1 %v2896_v18  ;;  %v3226_v17 = vld [vmem:[%s5172_s4 + $0x3d0] ss:$8 sps:$4 sm:$0xff]   ;;  %v3227_v18 = vld [vmem:[%s5172_s4 + $0x3e4] ss:$8 sps:$4 sm:$0xff]  }
  0x87   :  { %1410 = vmatpush1.bf16.msra.mxu0 %v3138_v19  ;;  %1750 = vmatpush1.bf16.msra.mxu1 %v3138_v19  ;;  %v3229_v19 = vld [vmem:[%s5172_s4 + $0x3e0] ss:$8 sps:$4 sm:$0xff]  }
  0x88   :  { %1411 = vmatprep.subr.bf16.mxu0 %v3139_v20  ;;  %1751 = vmatprep.subr.bf16.mxu1 %v3139_v20  ;;  %v3230_v20 = vld [vmem:[%s5172_s4 + $0x3f4] ss:$8 sps:$4 sm:$0xff]  }
  0x8b   :  { %1412 = vmatpush1.bf16.msra.mxu0 %v3141_v21  ;;  %1752 = vmatpush1.bf16.msra.mxu1 %v3141_v21  ;;  %v3232_v21 = vld [vmem:[%s5172_s4 + $0x3f0] ss:$8 sps:$4 sm:$0xff]  }
  0x8c   :  { %1413 = vmatprep.subr.bf16.mxu0 %v3142_v22  ;;  %1753 = vmatprep.subr.bf16.mxu1 %v3142_v22  ;;  %v3235_v22 = vld [vmem:[%s5172_s4 + $0x404] ss:$8 sps:$4 sm:$0xff]  }
  0x8f   :  { %1414 = vmatpush1.bf16.msra.mxu0 %v3144_v23  ;;  %1754 = vmatpush1.bf16.msra.mxu1 %v3144_v23  ;;  %v2676_v23 = vcombine.low %v3972_v51, %v3972_v51  ;;  %v3272_v51 = vld [vmem:[%s5172_s4 + $0x4b0] ss:$8 sps:$4 sm:$0xff]  }
  0x90   :  { %1415 = vmatprep.subr.bf16.mxu0 %v3145_v24  ;;  %1755 = vmatprep.subr.bf16.mxu1 %v3145_v24  ;;  %v2897_v24 = vcombine.low %v3977_v52, %v3977_v52  ;;  %v3273_v52 = vld [vmem:[%s5172_s4 + $0x4c4] ss:$8 sps:$4 sm:$0xff]  }
  0x93   :  { %1416 = vmatpush1.bf16.msra.mxu0 %v3147_v25  ;;  %1756 = vmatpush1.bf16.msra.mxu1 %v3147_v25  ;;  %v4086_v25 = vld [vmem:[%s5173_s0 + $0x20] sm:$0xff] }
  0x94   :  { %1417 = vmatprep.subr.bf16.mxu0 %v3148_v26  ;;  %1757 = vmatprep.subr.bf16.mxu1 %v3148_v26  ;;  %v4091_v26 = vld [vmem:[%s5174_s1 + $0x20] sm:$0xff] }
  0x97   :  { %1418 = vmatpush1.bf16.msra.mxu0 %v3150_v27  ;;  %1758 = vmatpush1.bf16.msra.mxu1 %v3150_v27  ;;  %v3239_v27 = vld [vmem:[%s5172_s4 + $0x400] ss:$8 sps:$4 sm:$0xff]  }
  0x98   :  { %1419 = vmatprep.subr.bf16.mxu0 %v3151_v28  ;;  %1759 = vmatprep.subr.bf16.mxu1 %v3151_v28  ;;  %v3240_v28 = vld [vmem:[%s5172_s4 + $0x414] ss:$8 sps:$4 sm:$0xff]  }
  0x9b   :  { %1420 = vmatpush1.bf16.msra.mxu0 %v3153_v29  ;;  %1760 = vmatpush1.bf16.msra.mxu1 %v3153_v29  ;;  %v2679_v29 = vcombine.high %v4086_v25, %v4086_v25 }
  0x9c   :  { %1421 = vmatprep.subr.bf16.mxu0 %v3154_v30  ;;  %1761 = vmatprep.subr.bf16.mxu1 %v3154_v30  ;;  %v2900_v30 = vcombine.high %v4091_v26, %v4091_v26 }
  0x9f   :  { %1422 = vmatpush1.bf16.msra.mxu0 %v3156_v31  ;;  %1762 = vmatpush1.bf16.msra.mxu1 %v3156_v31  ;;  %v3242_v31 = vld [vmem:[%s5172_s4 + $0x410] ss:$8 sps:$4 sm:$0xff]  }
  0xa0   :  { %1423 = vmatprep.subr.bf16.mxu0 %v3157_v32  ;;  %1763 = vmatprep.subr.bf16.mxu1 %v3157_v32  ;;  %v3243_v32 = vld [vmem:[%s5172_s4 + $0x424] ss:$8 sps:$4 sm:$0xff]  }
  0xa3   :  { %1424 = vmatpush1.bf16.msra.mxu0 %v3159_v33  ;;  %1764 = vmatpush1.bf16.msra.mxu1 %v3159_v33  ;;  %v3245_v33 = vld [vmem:[%s5172_s4 + $0x420] ss:$8 sps:$4 sm:$0xff]  }
  0xa4   :  { %1425 = vmatprep.subr.bf16.mxu0 %v3160_v34  ;;  %1765 = vmatprep.subr.bf16.mxu1 %v3160_v34  ;;  %v3246_v34 = vld [vmem:[%s5172_s4 + $0x434] ss:$8 sps:$4 sm:$0xff]  }
  0xa7   :  { %1426 = vmatpush1.bf16.msra.mxu0 %v3162_v35  ;;  %1766 = vmatpush1.bf16.msra.mxu1 %v3162_v35  ;;  %v3248_v35 = vld [vmem:[%s5172_s4 + $0x430] ss:$8 sps:$4 sm:$0xff]  }
  0xa8   :  { %1427 = vmatprep.subr.bf16.mxu0 %v3163_v36  ;;  %1767 = vmatprep.subr.bf16.mxu1 %v3163_v36  ;;  %v3249_v36 = vld [vmem:[%s5172_s4 + $0x444] ss:$8 sps:$4 sm:$0xff]  }
  0xab   :  { %1428 = vmatpush1.bf16.msra.mxu0 %v3165_v37  ;;  %1768 = vmatpush1.bf16.msra.mxu1 %v3165_v37  ;;  %v3251_v37 = vld [vmem:[%s5172_s4 + $0x440] ss:$8 sps:$4 sm:$0xff]  }
  0xac   :  { %1429 = vmatprep.subr.bf16.mxu0 %v3166_v38  ;;  %1769 = vmatprep.subr.bf16.mxu1 %v3166_v38  ;;  %v3252_v38 = vld [vmem:[%s5172_s4 + $0x454] ss:$8 sps:$4 sm:$0xff]  }
  0xaf   :  { %1430 = vmatpush1.bf16.msra.mxu0 %v3168_v39  ;;  %1770 = vmatpush1.bf16.msra.mxu1 %v3168_v39  ;;  %v3254_v39 = vld [vmem:[%s5172_s4 + $0x450] ss:$8 sps:$4 sm:$0xff]  }
  0xb0   :  { %1431 = vmatprep.subr.bf16.mxu0 %v3169_v40  ;;  %1771 = vmatprep.subr.bf16.mxu1 %v3169_v40  ;;  %v3255_v40 = vld [vmem:[%s5172_s4 + $0x464] ss:$8 sps:$4 sm:$0xff]  }
  0xb3   :  { %1432 = vmatpush1.bf16.msra.mxu0 %v3171_v41  ;;  %1772 = vmatpush1.bf16.msra.mxu1 %v3171_v41  ;;  %v3257_v41 = vld [vmem:[%s5172_s4 + $0x460] ss:$8 sps:$4 sm:$0xff]  }
  0xb4   :  { %1433 = vmatprep.subr.bf16.mxu0 %v3172_v42  ;;  %1773 = vmatprep.subr.bf16.mxu1 %v3172_v42  ;;  %v3258_v42 = vld [vmem:[%s5172_s4 + $0x474] ss:$8 sps:$4 sm:$0xff]  }
  0xb7   :  { %1434 = vmatpush1.bf16.msra.mxu0 %v3174_v43  ;;  %1774 = vmatpush1.bf16.msra.mxu1 %v3174_v43  ;;  %v3260_v43 = vld [vmem:[%s5172_s4 + $0x470] ss:$8 sps:$4 sm:$0xff]  }
  0xb8   :  { %1435 = vmatprep.subr.bf16.mxu0 %v3175_v44  ;;  %1775 = vmatprep.subr.bf16.mxu1 %v3175_v44  ;;  %v3261_v44 = vld [vmem:[%s5172_s4 + $0x484] ss:$8 sps:$4 sm:$0xff]  }
  0xbb   :  { %1436 = vmatpush1.bf16.msra.mxu0 %v3177_v45  ;;  %1776 = vmatpush1.bf16.msra.mxu1 %v3177_v45  ;;  %v3263_v45 = vld [vmem:[%s5172_s4 + $0x480] ss:$8 sps:$4 sm:$0xff]  }
  0xbc   :  { %1437 = vmatprep.subr.bf16.mxu0 %v3178_v46  ;;  %1777 = vmatprep.subr.bf16.mxu1 %v3178_v46  ;;  %v3264_v46 = vld [vmem:[%s5172_s4 + $0x494] ss:$8 sps:$4 sm:$0xff]  }
  0xbf   :  { %1438 = vmatpush1.bf16.msra.mxu0 %v3180_v47  ;;  %1778 = vmatpush1.bf16.msra.mxu1 %v3180_v47  ;;  %v3266_v47 = vld [vmem:[%s5172_s4 + $0x490] ss:$8 sps:$4 sm:$0xff]  }
  0xc0   :  { %1448 = vmatprep.subr.bf16.mxu0 %v3183_v48  ;;  %1788 = vmatprep.subr.bf16.mxu1 %v3183_v48  ;;  %v3267_v48 = vld [vmem:[%s5172_s4 + $0x4a4] ss:$8 sps:$4 sm:$0xff]  }
  0xc2   :  { %1440 = vmatmul.mubr.bf16.vlgmr.msra.gmra.mrb[0].mxu0 %v2674_v49  ;;  %1780 = vmatmul.mubr.bf16.vlgmr.msra.gmra.mrb[0].mxu1 %v2895_v50  ;;  %v3269_v49 = vld [vmem:[%s5172_s4 + $0x4a0] ss:$8 sps:$4 sm:$0xff]   ;;  %v3270_v50 = vld [vmem:[%s5172_s4 + $0x4b4] ss:$8 sps:$4 sm:$0xff]  }
  0xc3   :  { %1449 = vmatpush1.bf16.msra.mxu0 %v3187_v53  ;;  %1789 = vmatpush1.bf16.msra.mxu1 %v3187_v53  ;;  %v3275_v53 = vld [vmem:[%s5172_s4 + $0x4c0] ss:$8 sps:$4 sm:$0xff]  }
  0xc4   :  { %1450 = vmatprep.subr.bf16.mxu0 %v3188_v54  ;;  %1790 = vmatprep.subr.bf16.mxu1 %v3188_v54  ;;  %v3276_v54 = vld [vmem:[%s5172_s4 + $0x4d4] ss:$8 sps:$4 sm:$0xff]  }
  0xc5   :  { %1480 = vmatprep.mubr.bf16.mxu0 %v2677_v55  ;;  %1820 = vmatprep.mubr.bf16.mxu1 %v2898_v56  ;;  %v3278_v55 = vld [vmem:[%s5172_s4 + $0x4d0] ss:$8 sps:$4 sm:$0xff]   ;;  %v3279_v56 = vld [vmem:[%s5172_s4 + $0x4e4] ss:$8 sps:$4 sm:$0xff]  }
  0xc7   :  { %1451 = vmatpush1.bf16.msra.mxu0 %v3190_v57  ;;  %1791 = vmatpush1.bf16.msra.mxu1 %v3190_v57  ;;  %v3281_v57 = vld [vmem:[%s5172_s4 + $0x4e0] ss:$8 sps:$4 sm:$0xff]  }
  0xc8   :  { %1452 = vmatprep.subr.bf16.mxu0 %v3191_v58  ;;  %1792 = vmatprep.subr.bf16.mxu1 %v3191_v58  ;;  %v3282_v58 = vld [vmem:[%s5172_s4 + $0x4f4] ss:$8 sps:$4 sm:$0xff]  }
  0xcb   :  { %1453 = vmatpush1.bf16.msra.mxu0 %v3193_v59  ;;  %1793 = vmatpush1.bf16.msra.mxu1 %v3193_v59  ;;  %v3284_v59 = vld [vmem:[%s5172_s4 + $0x4f0] ss:$8 sps:$4 sm:$0xff]  }
  0xcc   :  { %1454 = vmatprep.subr.bf16.mxu0 %v3194_v60  ;;  %1794 = vmatprep.subr.bf16.mxu1 %v3194_v60  ;;  %v3287_v60 = vld [vmem:[%s5172_s4 + $0x504] ss:$8 sps:$4 sm:$0xff]  }
  0xcf   :  { %1455 = vmatpush1.bf16.msra.mxu0 %v3196_v61  ;;  %1795 = vmatpush1.bf16.msra.mxu1 %v3196_v61  ;;  %v2678_v61 = vcombine.low %v4086_v25, %v4086_v25  ;;  %v3324_v25 = vld [vmem:[%s5172_s4 + $0x5b0] ss:$8 sps:$4 sm:$0xff]  }
  0xd0   :  { %1456 = vmatprep.subr.bf16.mxu0 %v3197_v62  ;;  %1796 = vmatprep.subr.bf16.mxu1 %v3197_v62  ;;  %v2899_v62 = vcombine.low %v4091_v26, %v4091_v26  ;;  %v3325_v26 = vld [vmem:[%s5172_s4 + $0x5c4] ss:$8 sps:$4 sm:$0xff]  }
  0xd3   :  { %1457 = vmatpush1.bf16.msra.mxu0 %v3199_v63  ;;  %1797 = vmatpush1.bf16.msra.mxu1 %v3199_v63  ;;  %v4200_v63 = vld [vmem:[%s5173_s0 + $0x28] sm:$0xff] }
  0xd4   :  { %1458 = vmatprep.subr.bf16.mxu0 %v3200_v0  ;;  %1798 = vmatprep.subr.bf16.mxu1 %v3200_v0  ;;  %v4205_v0 = vld [vmem:[%s5174_s1 + $0x28] sm:$0xff] }
  0xd7   :  { %1459 = vmatpush1.bf16.msra.mxu0 %v3202_v1  ;;  %1799 = vmatpush1.bf16.msra.mxu1 %v3202_v1  ;;  %v3291_v1 = vld [vmem:[%s5172_s4 + $0x500] ss:$8 sps:$4 sm:$0xff]  }
  0xd8   :  { %1460 = vmatprep.subr.bf16.mxu0 %v3203_v2  ;;  %1800 = vmatprep.subr.bf16.mxu1 %v3203_v2  ;;  %v3292_v2 = vld [vmem:[%s5172_s4 + $0x514] ss:$8 sps:$4 sm:$0xff]  }
  0xdb   :  { %1461 = vmatpush1.bf16.msra.mxu0 %v3205_v3  ;;  %1801 = vmatpush1.bf16.msra.mxu1 %v3205_v3  ;;  %v2681_v3 = vcombine.high %v4200_v63, %v4200_v63 }
  0xdc   :  { %1462 = vmatprep.subr.bf16.mxu0 %v3206_v4  ;;  %1802 = vmatprep.subr.bf16.mxu1 %v3206_v4  ;;  %v2902_v4 = vcombine.high %v4205_v0, %v4205_v0 }
  0xdf   :  { %1463 = vmatpush1.bf16.msra.mxu0 %v3208_v5  ;;  %1803 = vmatpush1.bf16.msra.mxu1 %v3208_v5  ;;  %v3294_v5 = vld [vmem:[%s5172_s4 + $0x510] ss:$8 sps:$4 sm:$0xff]  }
  0xe0   :  { %1464 = vmatprep.subr.bf16.mxu0 %v3209_v6  ;;  %1804 = vmatprep.subr.bf16.mxu1 %v3209_v6  ;;  %v3295_v6 = vld [vmem:[%s5172_s4 + $0x524] ss:$8 sps:$4 sm:$0xff]  }
  0xe3   :  { %1465 = vmatpush1.bf16.msra.mxu0 %v3211_v7  ;;  %1805 = vmatpush1.bf16.msra.mxu1 %v3211_v7  ;;  %v3297_v7 = vld [vmem:[%s5172_s4 + $0x520] ss:$8 sps:$4 sm:$0xff]  }
  0xe4   :  { %1466 = vmatprep.subr.bf16.mxu0 %v3212_v8  ;;  %1806 = vmatprep.subr.bf16.mxu1 %v3212_v8  ;;  %v3298_v8 = vld [vmem:[%s5172_s4 + $0x534] ss:$8 sps:$4 sm:$0xff]  }
  0xe7   :  { %1467 = vmatpush1.bf16.msra.mxu0 %v3214_v9  ;;  %1807 = vmatpush1.bf16.msra.mxu1 %v3214_v9  ;;  %v3300_v9 = vld [vmem:[%s5172_s4 + $0x530] ss:$8 sps:$4 sm:$0xff]  }
  0xe8   :  { %1468 = vmatprep.subr.bf16.mxu0 %v3215_v10  ;;  %1808 = vmatprep.subr.bf16.mxu1 %v3215_v10  ;;  %v3301_v10 = vld [vmem:[%s5172_s4 + $0x544] ss:$8 sps:$4 sm:$0xff]  }
  0xeb   :  { %1469 = vmatpush1.bf16.msra.mxu0 %v3217_v11  ;;  %1809 = vmatpush1.bf16.msra.mxu1 %v3217_v11  ;;  %v3303_v11 = vld [vmem:[%s5172_s4 + $0x540] ss:$8 sps:$4 sm:$0xff]  }
  0xec   :  { %1470 = vmatprep.subr.bf16.mxu0 %v3218_v12  ;;  %1810 = vmatprep.subr.bf16.mxu1 %v3218_v12  ;;  %v3304_v12 = vld [vmem:[%s5172_s4 + $0x554] ss:$8 sps:$4 sm:$0xff]  }
  0xef   :  { %1471 = vmatpush1.bf16.msra.mxu0 %v3220_v13  ;;  %1811 = vmatpush1.bf16.msra.mxu1 %v3220_v13  ;;  %v3306_v13 = vld [vmem:[%s5172_s4 + $0x550] ss:$8 sps:$4 sm:$0xff]  }
  0xf0   :  { %1472 = vmatprep.subr.bf16.mxu0 %v3221_v14  ;;  %1812 = vmatprep.subr.bf16.mxu1 %v3221_v14  ;;  %v3307_v14 = vld [vmem:[%s5172_s4 + $0x564] ss:$8 sps:$4 sm:$0xff]  }
  0xf3   :  { %1473 = vmatpush1.bf16.msra.mxu0 %v3223_v15  ;;  %1813 = vmatpush1.bf16.msra.mxu1 %v3223_v15  ;;  %v3309_v15 = vld [vmem:[%s5172_s4 + $0x560] ss:$8 sps:$4 sm:$0xff]  }
  0xf4   :  { %1474 = vmatprep.subr.bf16.mxu0 %v3224_v16  ;;  %1814 = vmatprep.subr.bf16.mxu1 %v3224_v16  ;;  %v3310_v16 = vld [vmem:[%s5172_s4 + $0x574] ss:$8 sps:$4 sm:$0xff]  }
  0xf7   :  { %1475 = vmatpush1.bf16.msra.mxu0 %v3226_v17  ;;  %1815 = vmatpush1.bf16.msra.mxu1 %v3226_v17  ;;  %v3312_v17 = vld [vmem:[%s5172_s4 + $0x570] ss:$8 sps:$4 sm:$0xff]  }
  0xf8   :  { %1476 = vmatprep.subr.bf16.mxu0 %v3227_v18  ;;  %1816 = vmatprep.subr.bf16.mxu1 %v3227_v18  ;;  %v3313_v18 = vld [vmem:[%s5172_s4 + $0x584] ss:$8 sps:$4 sm:$0xff]  }
  0xfb   :  { %1477 = vmatpush1.bf16.msra.mxu0 %v3229_v19  ;;  %1817 = vmatpush1.bf16.msra.mxu1 %v3229_v19  ;;  %v3315_v19 = vld [vmem:[%s5172_s4 + $0x580] ss:$8 sps:$4 sm:$0xff]  }
  0xfc   :  { %1478 = vmatprep.subr.bf16.mxu0 %v3230_v20  ;;  %1818 = vmatprep.subr.bf16.mxu1 %v3230_v20  ;;  %v3316_v20 = vld [vmem:[%s5172_s4 + $0x594] ss:$8 sps:$4 sm:$0xff]  }
  0xff   :  { %1479 = vmatpush1.bf16.msra.mxu0 %v3232_v21  ;;  %1819 = vmatpush1.bf16.msra.mxu1 %v3232_v21  ;;  %v3318_v21 = vld [vmem:[%s5172_s4 + $0x590] ss:$8 sps:$4 sm:$0xff]  }
 0x100   :  { %1489 = vmatprep.subr.bf16.mxu0 %v3235_v22  ;;  %1829 = vmatprep.subr.bf16.mxu1 %v3235_v22  ;;  %v3319_v22 = vld [vmem:[%s5172_s4 + $0x5a4] ss:$8 sps:$4 sm:$0xff]  }
 0x102   :  { %1481 = vmatmul.mubr.bf16.vlgmr.msra.gmra.mrb[0].mxu0 %v2676_v23  ;;  %1821 = vmatmul.mubr.bf16.vlgmr.msra.gmra.mrb[0].mxu1 %v2897_v24  ;;  %v3321_v23 = vld [vmem:[%s5172_s4 + $0x5a0] ss:$8 sps:$4 sm:$0xff]   ;;  %v3322_v24 = vld [vmem:[%s5172_s4 + $0x5b4] ss:$8 sps:$4 sm:$0xff]  }
 0x103   :  { %1490 = vmatpush1.bf16.msra.mxu0 %v3239_v27  ;;  %1830 = vmatpush1.bf16.msra.mxu1 %v3239_v27  ;;  %v3327_v27 = vld [vmem:[%s5172_s4 + $0x5c0] ss:$8 sps:$4 sm:$0xff]  }
 0x104   :  { %1491 = vmatprep.subr.bf16.mxu0 %v3240_v28  ;;  %1831 = vmatprep.subr.bf16.mxu1 %v3240_v28  ;;  %v3328_v28 = vld [vmem:[%s5172_s4 + $0x5d4] ss:$8 sps:$4 sm:$0xff]  }
 0x105   :  { %1521 = vmatprep.mubr.bf16.mxu0 %v2679_v29  ;;  %1861 = vmatprep.mubr.bf16.mxu1 %v2900_v30  ;;  %v3330_v29 = vld [vmem:[%s5172_s4 + $0x5d0] ss:$8 sps:$4 sm:$0xff]   ;;  %v3331_v30 = vld [vmem:[%s5172_s4 + $0x5e4] ss:$8 sps:$4 sm:$0xff]  }
 0x107   :  { %1492 = vmatpush1.bf16.msra.mxu0 %v3242_v31  ;;  %1832 = vmatpush1.bf16.msra.mxu1 %v3242_v31  ;;  %v3333_v31 = vld [vmem:[%s5172_s4 + $0x5e0] ss:$8 sps:$4 sm:$0xff]  }
 0x108   :  { %1493 = vmatprep.subr.bf16.mxu0 %v3243_v32  ;;  %1833 = vmatprep.subr.bf16.mxu1 %v3243_v32  ;;  %v3334_v32 = vld [vmem:[%s5172_s4 + $0x5f4] ss:$8 sps:$4 sm:$0xff]  }
 0x10b   :  { %1494 = vmatpush1.bf16.msra.mxu0 %v3245_v33  ;;  %1834 = vmatpush1.bf16.msra.mxu1 %v3245_v33  ;;  %v3336_v33 = vld [vmem:[%s5172_s4 + $0x5f0] ss:$8 sps:$4 sm:$0xff]  }
 0x10c   :  { %1495 = vmatprep.subr.bf16.mxu0 %v3246_v34  ;;  %1835 = vmatprep.subr.bf16.mxu1 %v3246_v34  ;;  %v3339_v34 = vld [vmem:[%s5172_s4 + $0x604] ss:$8 sps:$4 sm:$0xff]  }
 0x10f   :  { %1496 = vmatpush1.bf16.msra.mxu0 %v3248_v35  ;;  %1836 = vmatpush1.bf16.msra.mxu1 %v3248_v35  ;;  %v2680_v35 = vcombine.low %v4200_v63, %v4200_v63  ;;  %v3397_v63 = vld [vmem:[%s5172_s4 + $0x24] ss:$8 sps:$4 sm:$0xff]  }
 0x110   :  { %1497 = vmatprep.subr.bf16.mxu0 %v3249_v36  ;;  %1837 = vmatprep.subr.bf16.mxu1 %v3249_v36  ;;  %v2901_v36 = vcombine.low %v4205_v0, %v4205_v0  ;;  %v3398_v0 = vld [vmem:[%s5172_s4 + $0x20] ss:$8 sps:$4 sm:$0xff]  }
 0x113   :  { %1498 = vmatpush1.bf16.msra.mxu0 %v3251_v37  ;;  %1838 = vmatpush1.bf16.msra.mxu1 %v3251_v37  ;;  %v3343_v37 = vld [vmem:[%s5172_s4 + $0x600] ss:$8 sps:$4 sm:$0xff]  }
 0x114   :  { %1499 = vmatprep.subr.bf16.mxu0 %v3252_v38  ;;  %1839 = vmatprep.subr.bf16.mxu1 %v3252_v38  ;;  %v4317_v38 = vld [vmem:[%s5172_s4 + $0x614] ss:$8 sps:$4 sm:$0xff]  }
 0x117   :  { %1500 = vmatpush1.bf16.msra.mxu0 %v3254_v39  ;;  %1840 = vmatpush1.bf16.msra.mxu1 %v3254_v39  ;;  %v4322_v39 = vld [vmem:[%s5172_s4 + $0x610] ss:$8 sps:$4 sm:$0xff]  }
 0x118   :  { %1501 = vmatprep.subr.bf16.mxu0 %v3255_v40  ;;  %1841 = vmatprep.subr.bf16.mxu1 %v3255_v40  ;;  %v4329_v40 = vld [vmem:[%s5172_s4 + $0x624] ss:$8 sps:$4 sm:$0xff]  }
 0x11b   :  { %1502 = vmatpush1.bf16.msra.mxu0 %v3257_v41  ;;  %1842 = vmatpush1.bf16.msra.mxu1 %v3257_v41  ;;  %v3588_v41 = vmov 0  }
 0x11c   :  { %1503 = vmatprep.subr.bf16.mxu0 %v3258_v42  ;;  %1843 = vmatprep.subr.bf16.mxu1 %v3258_v42  ;;  %v4338_v42 = vld [vmem:[%s5172_s4 + $0x620] ss:$8 sps:$4 sm:$0xff]  }
 0x11f   :  { %1504 = vmatpush1.bf16.msra.mxu0 %v3260_v43  ;;  %1844 = vmatpush1.bf16.msra.mxu1 %v3260_v43  ;;  %v4345_v43 = vld [vmem:[%s5172_s4 + $0x634] ss:$8 sps:$4 sm:$0xff]  }
 0x120   :  { %1505 = vmatprep.subr.bf16.mxu0 %v3261_v44  ;;  %1845 = vmatprep.subr.bf16.mxu1 %v3261_v44  ;;  %v4352_v44 = vld [vmem:[%s5172_s4 + $0x630] ss:$8 sps:$4 sm:$0xff]  }
 0x123   :  { %1506 = vmatpush1.bf16.msra.mxu0 %v3263_v45  ;;  %1846 = vmatpush1.bf16.msra.mxu1 %v3263_v45  ;;  %v4359_v45 = vld [vmem:[%s5172_s4 + $0x644] ss:$8 sps:$4 sm:$0xff]  }
 0x124   :  { %1507 = vmatprep.subr.bf16.mxu0 %v3264_v46  ;;  %1847 = vmatprep.subr.bf16.mxu1 %v3264_v46  ;;  %v4366_v46 = vld [vmem:[%s5172_s4 + $0x640] ss:$8 sps:$4 sm:$0xff]  }
 0x127   :  { %1508 = vmatpush1.bf16.msra.mxu0 %v3266_v47  ;;  %1848 = vmatpush1.bf16.msra.mxu1 %v3266_v47  ;;  %v4373_v47 = vld [vmem:[%s5172_s4 + $0x654] ss:$8 sps:$4 sm:$0xff]  }
 0x128   :  { %1509 = vmatprep.subr.bf16.mxu0 %v3267_v48  ;;  %1849 = vmatprep.subr.bf16.mxu1 %v3267_v48  ;;  %v4380_v48 = vld [vmem:[%s5172_s4 + $0x650] ss:$8 sps:$4 sm:$0xff]  }
 0x12b   :  { %1510 = vmatpush1.bf16.msra.mxu0 %v3269_v49  ;;  %1850 = vmatpush1.bf16.msra.mxu1 %v3269_v49  ;;  %v4387_v49 = vld [vmem:[%s5172_s4 + $0x664] ss:$8 sps:$4 sm:$0xff]  }
 0x12c   :  { %1511 = vmatprep.subr.bf16.mxu0 %v3270_v50  ;;  %1851 = vmatprep.subr.bf16.mxu1 %v3270_v50  ;;  %v4394_v50 = vld [vmem:[%s5172_s4 + $0x660] ss:$8 sps:$4 sm:$0xff]  }
 0x12f   :  { %1512 = vmatpush1.bf16.msra.mxu0 %v3272_v51  ;;  %1852 = vmatpush1.bf16.msra.mxu1 %v3272_v51  ;;  %v4401_v51 = vld [vmem:[%s5172_s4 + $0x674] ss:$8 sps:$4 sm:$0xff]  }
 0x130   :  { %1513 = vmatprep.subr.bf16.mxu0 %v3273_v52  ;;  %1853 = vmatprep.subr.bf16.mxu1 %v3273_v52  ;;  %v4408_v52 = vld [vmem:[%s5172_s4 + $0x670] ss:$8 sps:$4 sm:$0xff]  }
 0x133   :  { %1514 = vmatpush1.bf16.msra.mxu0 %v3275_v53  ;;  %1854 = vmatpush1.bf16.msra.mxu1 %v3275_v53  ;;  %v3365_v53 = vld [vmem:[%s5173_s0 + $0x30] ss:$0 sps:$4 sm:$0xff]  }
 0x134   :  { %1515 = vmatprep.subr.bf16.mxu0 %v3276_v54  ;;  %1855 = vmatprep.subr.bf16.mxu1 %v3276_v54  ;;  %v3366_v54 = vld [vmem:[%s5174_s1 + $0x30] ss:$0 sps:$4 sm:$0xff]  }
 0x137   :  { %1516 = vmatpush1.bf16.msra.mxu0 %v3278_v55  ;;  %1856 = vmatpush1.bf16.msra.mxu1 %v3278_v55  ;;  %v4421_v55 = vld [vmem:[%s5175_s2] sm:$0xff] }
 0x138   :  { %1517 = vmatprep.subr.bf16.mxu0 %v3279_v56  ;;  %1857 = vmatprep.subr.bf16.mxu1 %v3279_v56  ;;  %v4426_v56 = vld [vmem:[%s5176_s3] sm:$0xff] }
 0x13b   :  { %1518 = vmatpush1.bf16.msra.mxu0 %v3281_v57  ;;  %1858 = vmatpush1.bf16.msra.mxu1 %v3281_v57  ;;  %v3393_v57 = vld [vmem:[%s5172_s4 + $0x4] ss:$8 sps:$4 sm:$0xff]  }
 0x13c   :  { %1519 = vmatprep.subr.bf16.mxu0 %v3282_v58  ;;  %1859 = vmatprep.subr.bf16.mxu1 %v3282_v58  ;;  %v2905_v58 = vcombine.high %v4421_v55, %v4421_v55 }
 0x13f   :  { %1520 = vmatpush1.bf16.msra.mxu0 %v3284_v59  ;;  %1860 = vmatpush1.bf16.msra.mxu1 %v3284_v59  ;;  %v2918_v59 = vcombine.high %v4426_v56, %v4426_v56 }
 0x140   :  { %1530 = vmatprep.subr.bf16.mxu0 %v3287_v60  ;;  %1870 = vmatprep.subr.bf16.mxu1 %v3287_v60  ;;  %v3394_v60 = vld [vmem:[%s5172_s4] ss:$8 sps:$4 sm:$0xff]  }
 0x142   :  { %1522 = vmatmul.mubr.bf16.vlgmr.msra.gmra.mrb[0].mxu0 %v2678_v61  ;;  %1862 = vmatmul.mubr.bf16.vlgmr.msra.gmra.mrb[0].mxu1 %v2899_v62  ;;  %v3395_v61 = vld [vmem:[%s5172_s4 + $0x14] ss:$8 sps:$4 sm:$0xff]   ;;  %v3396_v62 = vld [vmem:[%s5172_s4 + $0x10] ss:$8 sps:$4 sm:$0xff]  }
 0x143   :  { %1531 = vmatpush1.bf16.msra.mxu0 %v3291_v1  ;;  %1871 = vmatpush1.bf16.msra.mxu1 %v3291_v1  ;;  %v3399_v1 = vld [vmem:[%s5172_s4 + $0x34] ss:$8 sps:$4 sm:$0xff]  }
 0x144   :  { %1532 = vmatprep.subr.bf16.mxu0 %v3292_v2  ;;  %1872 = vmatprep.subr.bf16.mxu1 %v3292_v2  ;;  %v3400_v2 = vld [vmem:[%s5172_s4 + $0x30] ss:$8 sps:$4 sm:$0xff]  }
 0x145   :  { %1562 = vmatprep.mubr.bf16.mxu0 %v2681_v3  ;;  %1902 = vmatprep.mubr.bf16.mxu1 %v2902_v4  ;;  %v3401_v3 = vld [vmem:[%s5172_s4 + $0x44] ss:$8 sps:$4 sm:$0xff]   ;;  %v3402_v4 = vld [vmem:[%s5172_s4 + $0x40] ss:$8 sps:$4 sm:$0xff]  }
 0x147   :  { %1533 = vmatpush1.bf16.msra.mxu0 %v3294_v5  ;;  %1873 = vmatpush1.bf16.msra.mxu1 %v3294_v5  ;;  %v3403_v5 = vld [vmem:[%s5172_s4 + $0x54] ss:$8 sps:$4 sm:$0xff]  }
 0x148   :  { %1534 = vmatprep.subr.bf16.mxu0 %v3295_v6  ;;  %1874 = vmatprep.subr.bf16.mxu1 %v3295_v6  ;;  %v3404_v6 = vld [vmem:[%s5172_s4 + $0x50] ss:$8 sps:$4 sm:$0xff]  }
 0x14b   :  { %1535 = vmatpush1.bf16.msra.mxu0 %v3297_v7  ;;  %1875 = vmatpush1.bf16.msra.mxu1 %v3297_v7  ;;  %v3405_v7 = vld [vmem:[%s5172_s4 + $0x64] ss:$8 sps:$4 sm:$0xff]  }
 0x14c   :  { %1536 = vmatprep.subr.bf16.mxu0 %v3298_v8  ;;  %1876 = vmatprep.subr.bf16.mxu1 %v3298_v8  ;;  %v3406_v8 = vld [vmem:[%s5172_s4 + $0x60] ss:$8 sps:$4 sm:$0xff]  }
 0x14f   :  { %1537 = vmatpush1.bf16.msra.mxu0 %v3300_v9  ;;  %1877 = vmatpush1.bf16.msra.mxu1 %v3300_v9  ;;  %v3407_v9 = vld [vmem:[%s5172_s4 + $0x74] ss:$8 sps:$4 sm:$0xff]  }
 0x150   :  { %1538 = vmatprep.subr.bf16.mxu0 %v3301_v10  ;;  %1878 = vmatprep.subr.bf16.mxu1 %v3301_v10  ;;  %v3408_v10 = vld [vmem:[%s5172_s4 + $0x70] ss:$8 sps:$4 sm:$0xff]  }
 0x153   :  { %1539 = vmatpush1.bf16.msra.mxu0 %v3303_v11  ;;  %1879 = vmatpush1.bf16.msra.mxu1 %v3303_v11  ;;  %v3409_v11 = vld [vmem:[%s5172_s4 + $0x84] ss:$8 sps:$4 sm:$0xff]  }
 0x154   :  { %1540 = vmatprep.subr.bf16.mxu0 %v3304_v12  ;;  %1880 = vmatprep.subr.bf16.mxu1 %v3304_v12  ;;  %v3410_v12 = vld [vmem:[%s5172_s4 + $0x80] ss:$8 sps:$4 sm:$0xff]  }
 0x157   :  { %1541 = vmatpush1.bf16.msra.mxu0 %v3306_v13  ;;  %1881 = vmatpush1.bf16.msra.mxu1 %v3306_v13  ;;  %v3411_v13 = vld [vmem:[%s5172_s4 + $0x94] ss:$8 sps:$4 sm:$0xff]  }
 0x158   :  { %1542 = vmatprep.subr.bf16.mxu0 %v3307_v14  ;;  %1882 = vmatprep.subr.bf16.mxu1 %v3307_v14  ;;  %v3412_v14 = vld [vmem:[%s5172_s4 + $0x90] ss:$8 sps:$4 sm:$0xff]  }
 0x15b   :  { %1543 = vmatpush1.bf16.msra.mxu0 %v3309_v15  ;;  %1883 = vmatpush1.bf16.msra.mxu1 %v3309_v15  ;;  %v3413_v15 = vld [vmem:[%s5172_s4 + $0xa4] ss:$8 sps:$4 sm:$0xff]  }
 0x15c   :  { %1544 = vmatprep.subr.bf16.mxu0 %v3310_v16  ;;  %1884 = vmatprep.subr.bf16.mxu1 %v3310_v16  ;;  %v3414_v16 = vld [vmem:[%s5172_s4 + $0xa0] ss:$8 sps:$4 sm:$0xff]  }
 0x15f   :  { %1545 = vmatpush1.bf16.msra.mxu0 %v3312_v17  ;;  %1885 = vmatpush1.bf16.msra.mxu1 %v3312_v17  ;;  %v3415_v17 = vld [vmem:[%s5172_s4 + $0xb4] ss:$8 sps:$4 sm:$0xff]  }
 0x160   :  { %1546 = vmatprep.subr.bf16.mxu0 %v3313_v18  ;;  %1886 = vmatprep.subr.bf16.mxu1 %v3313_v18  ;;  %v3416_v18 = vld [vmem:[%s5172_s4 + $0xb0] ss:$8 sps:$4 sm:$0xff]  }
 0x163   :  { %1547 = vmatpush1.bf16.msra.mxu0 %v3315_v19  ;;  %1887 = vmatpush1.bf16.msra.mxu1 %v3315_v19  ;;  %v3417_v19 = vld [vmem:[%s5172_s4 + $0xc4] ss:$8 sps:$4 sm:$0xff]  }
 0x164   :  { %1548 = vmatprep.subr.bf16.mxu0 %v3316_v20  ;;  %1888 = vmatprep.subr.bf16.mxu1 %v3316_v20  ;;  %v3418_v20 = vld [vmem:[%s5172_s4 + $0xc0] ss:$8 sps:$4 sm:$0xff]  }
 0x167   :  { %1549 = vmatpush1.bf16.msra.mxu0 %v3318_v21  ;;  %1889 = vmatpush1.bf16.msra.mxu1 %v3318_v21  ;;  %v3419_v21 = vld [vmem:[%s5172_s4 + $0xd4] ss:$8 sps:$4 sm:$0xff]  }
 0x168   :  { %1550 = vmatprep.subr.bf16.mxu0 %v3319_v22  ;;  %1890 = vmatprep.subr.bf16.mxu1 %v3319_v22  ;;  %v3420_v22 = vld [vmem:[%s5172_s4 + $0xd0] ss:$8 sps:$4 sm:$0xff]  }
 0x16b   :  { %1551 = vmatpush1.bf16.msra.mxu0 %v3321_v23  ;;  %1891 = vmatpush1.bf16.msra.mxu1 %v3321_v23  ;;  %v3421_v23 = vld [vmem:[%s5172_s4 + $0xe4] ss:$8 sps:$4 sm:$0xff]  }
 0x16c   :  { %1552 = vmatprep.subr.bf16.mxu0 %v3322_v24  ;;  %1892 = vmatprep.subr.bf16.mxu1 %v3322_v24  ;;  %v3422_v24 = vld [vmem:[%s5172_s4 + $0xe0] ss:$8 sps:$4 sm:$0xff]  }
 0x16f   :  { %1553 = vmatpush1.bf16.msra.mxu0 %v3324_v25  ;;  %1893 = vmatpush1.bf16.msra.mxu1 %v3324_v25  ;;  %v3423_v25 = vld [vmem:[%s5172_s4 + $0xf4] ss:$8 sps:$4 sm:$0xff]  }
 0x170   :  { %1554 = vmatprep.subr.bf16.mxu0 %v3325_v26  ;;  %1894 = vmatprep.subr.bf16.mxu1 %v3325_v26  ;;  %v2904_v26 = vcombine.low %v4421_v55, %v4421_v55  ;;  %v3432_v55 = vld [vmem:[%s5172_s4 + $0x130] ss:$8 sps:$4 sm:$0xff]  }
 0x173   :  { %1555 = vmatpush1.bf16.msra.mxu0 %v3327_v27  ;;  %1895 = vmatpush1.bf16.msra.mxu1 %v3327_v27  ;;  %v2917_v27 = vcombine.low %v4426_v56, %v4426_v56  ;;  %v3433_v56 = vld [vmem:[%s5172_s4 + $0x144] ss:$8 sps:$4 sm:$0xff]  }
 0x174   :  { %1556 = vmatprep.subr.bf16.mxu0 %v3328_v28  ;;  %1896 = vmatprep.subr.bf16.mxu1 %v3328_v28  ;;  %v4534_v28 = vld [vmem:[%s5175_s2 + $0x8] sm:$0xff] }
 0x177   :  { %1557 = vmatpush1.bf16.msra.mxu0 %v3330_v29  ;;  %1897 = vmatpush1.bf16.msra.mxu1 %v3330_v29  ;;  %v4539_v29 = vld [vmem:[%s5176_s3 + $0x8] sm:$0xff] }
 0x178   :  { %1558 = vmatprep.subr.bf16.mxu0 %v3331_v30  ;;  %1898 = vmatprep.subr.bf16.mxu1 %v3331_v30  ;;  %v3424_v30 = vld [vmem:[%s5172_s4 + $0xf0] ss:$8 sps:$4 sm:$0xff]  }
 0x17b   :  { %1559 = vmatpush1.bf16.msra.mxu0 %v3333_v31  ;;  %1899 = vmatpush1.bf16.msra.mxu1 %v3333_v31  ;;  %v3425_v31 = vld [vmem:[%s5172_s4 + $0x104] ss:$8 sps:$4 sm:$0xff]  }
 0x17c   :  { %1560 = vmatprep.subr.bf16.mxu0 %v3334_v32  ;;  %1900 = vmatprep.subr.bf16.mxu1 %v3334_v32  ;;  %v2907_v32 = vcombine.high %v4534_v28, %v4534_v28 }
 0x17f   :  { %1561 = vmatpush1.bf16.msra.mxu0 %v3336_v33  ;;  %1901 = vmatpush1.bf16.msra.mxu1 %v3336_v33  ;;  %v2920_v33 = vcombine.high %v4539_v29, %v4539_v29 }
 0x180   :  { %1571 = vmatprep.subr.bf16.mxu0 %v3339_v34  ;;  %1911 = vmatprep.subr.bf16.mxu1 %v3339_v34  ;;  %v3426_v34 = vld [vmem:[%s5172_s4 + $0x100] ss:$8 sps:$4 sm:$0xff]  }
 0x182   :  { %1563 = vmatmul.mubr.bf16.vlgmr.msra.gmra.mrb[0].mxu0 %v2680_v35  ;;  %1903 = vmatmul.mubr.bf16.vlgmr.msra.gmra.mrb[0].mxu1 %v2901_v36  ;;  %v3427_v35 = vld [vmem:[%s5172_s4 + $0x114] ss:$8 sps:$4 sm:$0xff]   ;;  %v3428_v36 = vld [vmem:[%s5172_s4 + $0x110] ss:$8 sps:$4 sm:$0xff]  }
 0x183   :  { %1572 = vmatpush1.bf16.msra.mxu0 %v3343_v37  ;;  %1912 = vmatpush1.bf16.msra.mxu1 %v3343_v37  ;;  %v3429_v37 = vld [vmem:[%s5172_s4 + $0x124] ss:$8 sps:$4 sm:$0xff]  }
 0x184   :  { %1573 = vmatprep.subr.bf16.mxu0 %v4317_v38  ;;  %1913 = vmatprep.subr.bf16.mxu1 %v4317_v38 }
 0x185   :  { %1603 = vmatprep.mubr.bf16.mxu0 %v3588_v41  ;;  %1943 = vmatprep.mubr.bf16.mxu1 %v3588_v41 }
 0x187   :  { %1574 = vmatpush1.bf16.msra.mxu0 %v4322_v39  ;;  %1914 = vmatpush1.bf16.msra.mxu1 %v4322_v39 }
 0x188   :  { %1575 = vmatprep.subr.bf16.mxu0 %v4329_v40  ;;  %1915 = vmatprep.subr.bf16.mxu1 %v4329_v40 }
 0x18b   :  { %1576 = vmatpush1.bf16.msra.mxu0 %v4338_v42  ;;  %1916 = vmatpush1.bf16.msra.mxu1 %v4338_v42 }
 0x18c   :  { %1577 = vmatprep.subr.bf16.mxu0 %v4345_v43  ;;  %1917 = vmatprep.subr.bf16.mxu1 %v4345_v43 }
 0x18f   :  { %1578 = vmatpush1.bf16.msra.mxu0 %v4352_v44  ;;  %1918 = vmatpush1.bf16.msra.mxu1 %v4352_v44 }
 0x190   :  { %1579 = vmatprep.subr.bf16.mxu0 %v4359_v45  ;;  %1919 = vmatprep.subr.bf16.mxu1 %v4359_v45 }
 0x193   :  { %1580 = vmatpush1.bf16.msra.mxu0 %v4366_v46  ;;  %1920 = vmatpush1.bf16.msra.mxu1 %v4366_v46 }
 0x194   :  { %1581 = vmatprep.subr.bf16.mxu0 %v4373_v47  ;;  %1921 = vmatprep.subr.bf16.mxu1 %v4373_v47 }
 0x197   :  { %1582 = vmatpush1.bf16.msra.mxu0 %v4380_v48  ;;  %1922 = vmatpush1.bf16.msra.mxu1 %v4380_v48 }
 0x198   :  { %1583 = vmatprep.subr.bf16.mxu0 %v4387_v49  ;;  %1923 = vmatprep.subr.bf16.mxu1 %v4387_v49 }
 0x19b   :  { %1584 = vmatpush1.bf16.msra.mxu0 %v4394_v50  ;;  %1924 = vmatpush1.bf16.msra.mxu1 %v4394_v50 }
 0x19c   :  { %1585 = vmatprep.subr.bf16.mxu0 %v4401_v51  ;;  %1925 = vmatprep.subr.bf16.mxu1 %v4401_v51 }
 0x19f   :  { %1586 = vmatpush1.bf16.msra.mxu0 %v4408_v52  ;;  %1926 = vmatpush1.bf16.msra.mxu1 %v4408_v52 }
 0x1a0   :  { %2005 = vmatprep.subr.bf16.mxu0 %v3393_v57  ;;  %2345 = vmatprep.subr.bf16.mxu1 %v3393_v57  ;;  %v3434_v57 = vld [vmem:[%s5172_s4 + $0x140] ss:$8 sps:$4 sm:$0xff]  }
 0x1a2   :  { %1604 = vmatmul.mubr.bf16.vlgmr.msra.gmra.mrb[0].mxu0 %v3365_v53  ;;  %1944 = vmatmul.mubr.bf16.vlgmr.msra.gmra.mrb[0].mxu1 %v3366_v54  ;;  %v3430_v53 = vld [vmem:[%s5172_s4 + $0x120] ss:$8 sps:$4 sm:$0xff]   ;;  %v3431_v54 = vld [vmem:[%s5172_s4 + $0x134] ss:$8 sps:$4 sm:$0xff]  }
 0x1a3   :  { %2006 = vmatpush1.bf16.msra.mxu0 %v3394_v60  ;;  %2346 = vmatpush1.bf16.msra.mxu1 %v3394_v60  ;;  %v3437_v60 = vld [vmem:[%s5172_s4 + $0x164] ss:$8 sps:$4 sm:$0xff]  }
 0x1a4   :  { %2007 = vmatprep.subr.bf16.mxu0 %v3395_v61  ;;  %2347 = vmatprep.subr.bf16.mxu1 %v3395_v61  ;;  %v3438_v61 = vld [vmem:[%s5172_s4 + $0x160] ss:$8 sps:$4 sm:$0xff]  }
 0x1a5   :  { %2037 = vmatprep.mubr.bf16.mxu0 %v2905_v58  ;;  %2377 = vmatprep.mubr.bf16.mxu1 %v2918_v59  ;;  %v3435_v58 = vld [vmem:[%s5172_s4 + $0x154] ss:$8 sps:$4 sm:$0xff]   ;;  %v3436_v59 = vld [vmem:[%s5172_s4 + $0x150] ss:$8 sps:$4 sm:$0xff]  }
 0x1a7   :  { %2008 = vmatpush1.bf16.msra.mxu0 %v3396_v62  ;;  %2348 = vmatpush1.bf16.msra.mxu1 %v3396_v62  ;;  %v3439_v62 = vld [vmem:[%s5172_s4 + $0x174] ss:$8 sps:$4 sm:$0xff]  }
 0x1a8   :  { %2009 = vmatprep.subr.bf16.mxu0 %v3397_v63  ;;  %2349 = vmatprep.subr.bf16.mxu1 %v3397_v63  ;;  %v3440_v63 = vld [vmem:[%s5172_s4 + $0x170] ss:$8 sps:$4 sm:$0xff]  }
 0x1ab   :  { %2010 = vmatpush1.bf16.msra.mxu0 %v3398_v0  ;;  %2350 = vmatpush1.bf16.msra.mxu1 %v3398_v0  ;;  %v3441_v0 = vld [vmem:[%s5172_s4 + $0x184] ss:$8 sps:$4 sm:$0xff]  }
 0x1ac   :  { %2011 = vmatprep.subr.bf16.mxu0 %v3399_v1  ;;  %2351 = vmatprep.subr.bf16.mxu1 %v3399_v1  ;;  %v3442_v1 = vld [vmem:[%s5172_s4 + $0x180] ss:$8 sps:$4 sm:$0xff]  }
 0x1af   :  { %2012 = vmatpush1.bf16.msra.mxu0 %v3400_v2  ;;  %2352 = vmatpush1.bf16.msra.mxu1 %v3400_v2  ;;  %v3443_v2 = vld [vmem:[%s5172_s4 + $0x194] ss:$8 sps:$4 sm:$0xff]  }
 0x1b0   :  { %2013 = vmatprep.subr.bf16.mxu0 %v3401_v3  ;;  %2353 = vmatprep.subr.bf16.mxu1 %v3401_v3  ;;  %v3444_v3 = vld [vmem:[%s5172_s4 + $0x190] ss:$8 sps:$4 sm:$0xff]  }
 0x1b3   :  { %2014 = vmatpush1.bf16.msra.mxu0 %v3402_v4  ;;  %2354 = vmatpush1.bf16.msra.mxu1 %v3402_v4  ;;  %v3445_v4 = vld [vmem:[%s5172_s4 + $0x1a4] ss:$8 sps:$4 sm:$0xff]  }
 0x1b4   :  { %2015 = vmatprep.subr.bf16.mxu0 %v3403_v5  ;;  %2355 = vmatprep.subr.bf16.mxu1 %v3403_v5  ;;  %v3446_v5 = vld [vmem:[%s5172_s4 + $0x1a0] ss:$8 sps:$4 sm:$0xff]  }
 0x1b7   :  { %2016 = vmatpush1.bf16.msra.mxu0 %v3404_v6  ;;  %2356 = vmatpush1.bf16.msra.mxu1 %v3404_v6  ;;  %v3447_v6 = vld [vmem:[%s5172_s4 + $0x1b4] ss:$8 sps:$4 sm:$0xff]  }
 0x1b8   :  { %2017 = vmatprep.subr.bf16.mxu0 %v3405_v7  ;;  %2357 = vmatprep.subr.bf16.mxu1 %v3405_v7  ;;  %v3448_v7 = vld [vmem:[%s5172_s4 + $0x1b0] ss:$8 sps:$4 sm:$0xff]  }
 0x1bb   :  { %2018 = vmatpush1.bf16.msra.mxu0 %v3406_v8  ;;  %2358 = vmatpush1.bf16.msra.mxu1 %v3406_v8  ;;  %v3449_v8 = vld [vmem:[%s5172_s4 + $0x1c4] ss:$8 sps:$4 sm:$0xff]  }
 0x1bc   :  { %2019 = vmatprep.subr.bf16.mxu0 %v3407_v9  ;;  %2359 = vmatprep.subr.bf16.mxu1 %v3407_v9  ;;  %v3450_v9 = vld [vmem:[%s5172_s4 + $0x1c0] ss:$8 sps:$4 sm:$0xff]  }
 0x1bf   :  { %2020 = vmatpush1.bf16.msra.mxu0 %v3408_v10  ;;  %2360 = vmatpush1.bf16.msra.mxu1 %v3408_v10  ;;  %v3451_v10 = vld [vmem:[%s5172_s4 + $0x1d4] ss:$8 sps:$4 sm:$0xff]  }
 0x1c0   :  { %2021 = vmatprep.subr.bf16.mxu0 %v3409_v11  ;;  %2361 = vmatprep.subr.bf16.mxu1 %v3409_v11  ;;  %v3452_v11 = vld [vmem:[%s5172_s4 + $0x1d0] ss:$8 sps:$4 sm:$0xff]  }
 0x1c3   :  { %2022 = vmatpush1.bf16.msra.mxu0 %v3410_v12  ;;  %2362 = vmatpush1.bf16.msra.mxu1 %v3410_v12  ;;  %v3453_v12 = vld [vmem:[%s5172_s4 + $0x1e4] ss:$8 sps:$4 sm:$0xff]  }
 0x1c4   :  { %2023 = vmatprep.subr.bf16.mxu0 %v3411_v13  ;;  %2363 = vmatprep.subr.bf16.mxu1 %v3411_v13  ;;  %v3454_v13 = vld [vmem:[%s5172_s4 + $0x1e0] ss:$8 sps:$4 sm:$0xff]  }
 0x1c7   :  { %2024 = vmatpush1.bf16.msra.mxu0 %v3412_v14  ;;  %2364 = vmatpush1.bf16.msra.mxu1 %v3412_v14  ;;  %v3455_v14 = vld [vmem:[%s5172_s4 + $0x1f4] ss:$8 sps:$4 sm:$0xff]  }
 0x1c8   :  { %2025 = vmatprep.subr.bf16.mxu0 %v3413_v15  ;;  %2365 = vmatprep.subr.bf16.mxu1 %v3413_v15  ;;  %v2906_v15 = vcombine.low %v4534_v28, %v4534_v28  ;;  %v3463_v28 = vld [vmem:[%s5172_s4 + $0x234] ss:$8 sps:$4 sm:$0xff]  }
 0x1cb   :  { %2026 = vmatpush1.bf16.msra.mxu0 %v3414_v16  ;;  %2366 = vmatpush1.bf16.msra.mxu1 %v3414_v16  ;;  %v2919_v16 = vcombine.low %v4539_v29, %v4539_v29  ;;  %v3464_v29 = vld [vmem:[%s5172_s4 + $0x230] ss:$8 sps:$4 sm:$0xff]  }
 0x1cc   :  { %2027 = vmatprep.subr.bf16.mxu0 %v3415_v17  ;;  %2367 = vmatprep.subr.bf16.mxu1 %v3415_v17  ;;  %v4648_v17 = vld [vmem:[%s5175_s2 + $0x10] sm:$0xff] }
 0x1cf   :  { %2028 = vmatpush1.bf16.msra.mxu0 %v3416_v18  ;;  %2368 = vmatpush1.bf16.msra.mxu1 %v3416_v18  ;;  %v4653_v18 = vld [vmem:[%s5176_s3 + $0x10] sm:$0xff] }
 0x1d0   :  { %2029 = vmatprep.subr.bf16.mxu0 %v3417_v19  ;;  %2369 = vmatprep.subr.bf16.mxu1 %v3417_v19  ;;  %v3456_v19 = vld [vmem:[%s5172_s4 + $0x1f0] ss:$8 sps:$4 sm:$0xff]  }
 0x1d3   :  { %2030 = vmatpush1.bf16.msra.mxu0 %v3418_v20  ;;  %2370 = vmatpush1.bf16.msra.mxu1 %v3418_v20  ;;  %v3457_v20 = vld [vmem:[%s5172_s4 + $0x204] ss:$8 sps:$4 sm:$0xff]  }
 0x1d4   :  { %2031 = vmatprep.subr.bf16.mxu0 %v3419_v21  ;;  %2371 = vmatprep.subr.bf16.mxu1 %v3419_v21  ;;  %v2909_v21 = vcombine.high %v4648_v17, %v4648_v17 }
 0x1d7   :  { %2032 = vmatpush1.bf16.msra.mxu0 %v3420_v22  ;;  %2372 = vmatpush1.bf16.msra.mxu1 %v3420_v22  ;;  %v2922_v22 = vcombine.high %v4653_v18, %v4653_v18 }
 0x1d8   :  { %2033 = vmatprep.subr.bf16.mxu0 %v3421_v23  ;;  %2373 = vmatprep.subr.bf16.mxu1 %v3421_v23  ;;  %v3458_v23 = vld [vmem:[%s5172_s4 + $0x200] ss:$8 sps:$4 sm:$0xff]  }
 0x1db   :  { %2034 = vmatpush1.bf16.msra.mxu0 %v3422_v24  ;;  %2374 = vmatpush1.bf16.msra.mxu1 %v3422_v24  ;;  %v3459_v24 = vld [vmem:[%s5172_s4 + $0x214] ss:$8 sps:$4 sm:$0xff]  }
 0x1dc   :  { %2035 = vmatprep.subr.bf16.mxu0 %v3423_v25  ;;  %2375 = vmatprep.subr.bf16.mxu1 %v3423_v25  ;;  %v3460_v25 = vld [vmem:[%s5172_s4 + $0x210] ss:$8 sps:$4 sm:$0xff]  }
 0x1df   :  { %2036 = vmatpush1.bf16.msra.mxu0 %v3424_v30  ;;  %2376 = vmatpush1.bf16.msra.mxu1 %v3424_v30  ;;  %v3465_v30 = vld [vmem:[%s5172_s4 + $0x244] ss:$8 sps:$4 sm:$0xff]  }
 0x1e0   :  { %2046 = vmatprep.subr.bf16.mxu0 %v3425_v31  ;;  %2386 = vmatprep.subr.bf16.mxu1 %v3425_v31  ;;  %v3466_v31 = vld [vmem:[%s5172_s4 + $0x240] ss:$8 sps:$4 sm:$0xff]  }
 0x1e2   :  { %2038 = vmatmul.mubr.bf16.vlgmr.msra.gmra.mrb[4].mxu0 %v2904_v26  ;;  %2378 = vmatmul.mubr.bf16.vlgmr.msra.gmra.mrb[4].mxu1 %v2917_v27  ;;  %v3461_v26 = vld [vmem:[%s5172_s4 + $0x224] ss:$8 sps:$4 sm:$0xff]   ;;  %v3462_v27 = vld [vmem:[%s5172_s4 + $0x220] ss:$8 sps:$4 sm:$0xff]  }
 0x1e3   :  { %2047 = vmatpush1.bf16.msra.mxu0 %v3426_v34  ;;  %2387 = vmatpush1.bf16.msra.mxu1 %v3426_v34  ;;  %v3469_v34 = vld [vmem:[%s5172_s4 + $0x264] ss:$8 sps:$4 sm:$0xff]  }
 0x1e4   :  { %2048 = vmatprep.subr.bf16.mxu0 %v3427_v35  ;;  %2388 = vmatprep.subr.bf16.mxu1 %v3427_v35  ;;  %v3470_v35 = vld [vmem:[%s5172_s4 + $0x260] ss:$8 sps:$4 sm:$0xff]  }
 0x1e5   :  { %2078 = vmatprep.mubr.bf16.mxu0 %v2907_v32  ;;  %2418 = vmatprep.mubr.bf16.mxu1 %v2920_v33  ;;  %v3467_v32 = vld [vmem:[%s5172_s4 + $0x254] ss:$8 sps:$4 sm:$0xff]   ;;  %v3468_v33 = vld [vmem:[%s5172_s4 + $0x250] ss:$8 sps:$4 sm:$0xff]  }
 0x1e7   :  { %2049 = vmatpush1.bf16.msra.mxu0 %v3428_v36  ;;  %2389 = vmatpush1.bf16.msra.mxu1 %v3428_v36  ;;  %v3471_v36 = vld [vmem:[%s5172_s4 + $0x274] ss:$8 sps:$4 sm:$0xff]  }
 0x1e8   :  { %2050 = vmatprep.subr.bf16.mxu0 %v3429_v37  ;;  %2390 = vmatprep.subr.bf16.mxu1 %v3429_v37  ;;  %v3472_v37 = vld [vmem:[%s5172_s4 + $0x270] ss:$8 sps:$4 sm:$0xff]  }
 0x1eb   :  { %2051 = vmatpush1.bf16.msra.mxu0 %v3430_v53  ;;  %2391 = vmatpush1.bf16.msra.mxu1 %v3430_v53  ;;  %v3473_v53 = vld [vmem:[%s5172_s4 + $0x284] ss:$8 sps:$4 sm:$0xff]  }
 0x1ec   :  { %2052 = vmatprep.subr.bf16.mxu0 %v3431_v54  ;;  %2392 = vmatprep.subr.bf16.mxu1 %v3431_v54  ;;  %v3474_v54 = vld [vmem:[%s5172_s4 + $0x280] ss:$8 sps:$4 sm:$0xff]  }
 0x1ef   :  { %2053 = vmatpush1.bf16.msra.mxu0 %v3432_v55  ;;  %2393 = vmatpush1.bf16.msra.mxu1 %v3432_v55  ;;  %v3475_v55 = vld [vmem:[%s5172_s4 + $0x294] ss:$8 sps:$4 sm:$0xff]  }
 0x1f0   :  { %2054 = vmatprep.subr.bf16.mxu0 %v3433_v56  ;;  %2394 = vmatprep.subr.bf16.mxu1 %v3433_v56  ;;  %v3476_v56 = vld [vmem:[%s5172_s4 + $0x290] ss:$8 sps:$4 sm:$0xff]  }
 0x1f3   :  { %2055 = vmatpush1.bf16.msra.mxu0 %v3434_v57  ;;  %2395 = vmatpush1.bf16.msra.mxu1 %v3434_v57  ;;  %v3477_v57 = vld [vmem:[%s5172_s4 + $0x2a4] ss:$8 sps:$4 sm:$0xff]  }
 0x1f4   :  { %2056 = vmatprep.subr.bf16.mxu0 %v3435_v58  ;;  %2396 = vmatprep.subr.bf16.mxu1 %v3435_v58  ;;  %v3478_v58 = vld [vmem:[%s5172_s4 + $0x2a0] ss:$8 sps:$4 sm:$0xff]  }
 0x1f7   :  { %2057 = vmatpush1.bf16.msra.mxu0 %v3436_v59  ;;  %2397 = vmatpush1.bf16.msra.mxu1 %v3436_v59  ;;  %v3479_v59 = vld [vmem:[%s5172_s4 + $0x2b4] ss:$8 sps:$4 sm:$0xff]  }
 0x1f8   :  { %2058 = vmatprep.subr.bf16.mxu0 %v3437_v60  ;;  %2398 = vmatprep.subr.bf16.mxu1 %v3437_v60  ;;  %v3480_v60 = vld [vmem:[%s5172_s4 + $0x2b0] ss:$8 sps:$4 sm:$0xff]  }
 0x1fb   :  { %2059 = vmatpush1.bf16.msra.mxu0 %v3438_v61  ;;  %2399 = vmatpush1.bf16.msra.mxu1 %v3438_v61  ;;  %v3481_v61 = vld [vmem:[%s5172_s4 + $0x2c4] ss:$8 sps:$4 sm:$0xff]  }
 0x1fc   :  { %2060 = vmatprep.subr.bf16.mxu0 %v3439_v62  ;;  %2400 = vmatprep.subr.bf16.mxu1 %v3439_v62  ;;  %v3482_v62 = vld [vmem:[%s5172_s4 + $0x2c0] ss:$8 sps:$4 sm:$0xff]  }
 0x1ff   :  { %2061 = vmatpush1.bf16.msra.mxu0 %v3440_v63  ;;  %2401 = vmatpush1.bf16.msra.mxu1 %v3440_v63  ;;  %v3483_v63 = vld [vmem:[%s5172_s4 + $0x2d4] ss:$8 sps:$4 sm:$0xff]  }
 0x200   :  { %2062 = vmatprep.subr.bf16.mxu0 %v3441_v0  ;;  %2402 = vmatprep.subr.bf16.mxu1 %v3441_v0  ;;  %v3484_v0 = vld [vmem:[%s5172_s4 + $0x2d0] ss:$8 sps:$4 sm:$0xff]  }
 0x203   :  { %2063 = vmatpush1.bf16.msra.mxu0 %v3442_v1  ;;  %2403 = vmatpush1.bf16.msra.mxu1 %v3442_v1  ;;  %v3485_v1 = vld [vmem:[%s5172_s4 + $0x2e4] ss:$8 sps:$4 sm:$0xff]  }
 0x204   :  { %2064 = vmatprep.subr.bf16.mxu0 %v3443_v2  ;;  %2404 = vmatprep.subr.bf16.mxu1 %v3443_v2  ;;  %v3486_v2 = vld [vmem:[%s5172_s4 + $0x2e0] ss:$8 sps:$4 sm:$0xff]  }
 0x207   :  { %2065 = vmatpush1.bf16.msra.mxu0 %v3444_v3  ;;  %2405 = vmatpush1.bf16.msra.mxu1 %v3444_v3  ;;  %v3487_v3 = vld [vmem:[%s5172_s4 + $0x2f4] ss:$8 sps:$4 sm:$0xff]  }
 0x208   :  { %2066 = vmatprep.subr.bf16.mxu0 %v3445_v4  ;;  %2406 = vmatprep.subr.bf16.mxu1 %v3445_v4  ;;  %v2908_v4 = vcombine.low %v4648_v17, %v4648_v17  ;;  %v3495_v17 = vld [vmem:[%s5172_s4 + $0x334] ss:$8 sps:$4 sm:$0xff]  }
 0x20b   :  { %2067 = vmatpush1.bf16.msra.mxu0 %v3446_v5  ;;  %2407 = vmatpush1.bf16.msra.mxu1 %v3446_v5  ;;  %v2921_v5 = vcombine.low %v4653_v18, %v4653_v18  ;;  %v3496_v18 = vld [vmem:[%s5172_s4 + $0x330] ss:$8 sps:$4 sm:$0xff]  }
 0x20c   :  { %2068 = vmatprep.subr.bf16.mxu0 %v3447_v6  ;;  %2408 = vmatprep.subr.bf16.mxu1 %v3447_v6  ;;  %v4762_v6 = vld [vmem:[%s5175_s2 + $0x18] sm:$0xff] }
 0x20f   :  { %2069 = vmatpush1.bf16.msra.mxu0 %v3448_v7  ;;  %2409 = vmatpush1.bf16.msra.mxu1 %v3448_v7  ;;  %v4767_v7 = vld [vmem:[%s5176_s3 + $0x18] sm:$0xff] }
 0x210   :  { %2070 = vmatprep.subr.bf16.mxu0 %v3449_v8  ;;  %2410 = vmatprep.subr.bf16.mxu1 %v3449_v8  ;;  %v3488_v8 = vld [vmem:[%s5172_s4 + $0x2f0] ss:$8 sps:$4 sm:$0xff]  }
 0x213   :  { %2071 = vmatpush1.bf16.msra.mxu0 %v3450_v9  ;;  %2411 = vmatpush1.bf16.msra.mxu1 %v3450_v9  ;;  %v3489_v9 = vld [vmem:[%s5172_s4 + $0x304] ss:$8 sps:$4 sm:$0xff]  }
 0x214   :  { %2072 = vmatprep.subr.bf16.mxu0 %v3451_v10  ;;  %2412 = vmatprep.subr.bf16.mxu1 %v3451_v10  ;;  %v2911_v10 = vcombine.high %v4762_v6, %v4762_v6 }
 0x217   :  { %2073 = vmatpush1.bf16.msra.mxu0 %v3452_v11  ;;  %2413 = vmatpush1.bf16.msra.mxu1 %v3452_v11  ;;  %v2924_v11 = vcombine.high %v4767_v7, %v4767_v7 }
 0x218   :  { %2074 = vmatprep.subr.bf16.mxu0 %v3453_v12  ;;  %2414 = vmatprep.subr.bf16.mxu1 %v3453_v12  ;;  %v3490_v12 = vld [vmem:[%s5172_s4 + $0x300] ss:$8 sps:$4 sm:$0xff]  }
 0x21b   :  { %2075 = vmatpush1.bf16.msra.mxu0 %v3454_v13  ;;  %2415 = vmatpush1.bf16.msra.mxu1 %v3454_v13  ;;  %v3491_v13 = vld [vmem:[%s5172_s4 + $0x314] ss:$8 sps:$4 sm:$0xff]  }
 0x21c   :  { %2076 = vmatprep.subr.bf16.mxu0 %v3455_v14  ;;  %2416 = vmatprep.subr.bf16.mxu1 %v3455_v14  ;;  %v3492_v14 = vld [vmem:[%s5172_s4 + $0x310] ss:$8 sps:$4 sm:$0xff]  }
 0x21f   :  { %2077 = vmatpush1.bf16.msra.mxu0 %v3456_v19  ;;  %2417 = vmatpush1.bf16.msra.mxu1 %v3456_v19  ;;  %v3497_v19 = vld [vmem:[%s5172_s4 + $0x344] ss:$8 sps:$4 sm:$0xff]  }
 0x220   :  { %2087 = vmatprep.subr.bf16.mxu0 %v3457_v20  ;;  %2427 = vmatprep.subr.bf16.mxu1 %v3457_v20  ;;  %v3498_v20 = vld [vmem:[%s5172_s4 + $0x340] ss:$8 sps:$4 sm:$0xff]  }
 0x222   :  { %2079 = vmatmul.mubr.bf16.vlgmr.msra.gmra.mrb[4].mxu0 %v2906_v15  ;;  %2419 = vmatmul.mubr.bf16.vlgmr.msra.gmra.mrb[4].mxu1 %v2919_v16  ;;  %v3493_v15 = vld [vmem:[%s5172_s4 + $0x324] ss:$8 sps:$4 sm:$0xff]   ;;  %v3494_v16 = vld [vmem:[%s5172_s4 + $0x320] ss:$8 sps:$4 sm:$0xff]  }
 0x223   :  { %2088 = vmatpush1.bf16.msra.mxu0 %v3458_v23  ;;  %2428 = vmatpush1.bf16.msra.mxu1 %v3458_v23 }
 0x224   :  { %2089 = vmatprep.subr.bf16.mxu0 %v3459_v24  ;;  %2429 = vmatprep.subr.bf16.mxu1 %v3459_v24 }
 0x225   :  { %2119 = vmatprep.mubr.bf16.mxu0 %v2909_v21  ;;  %2459 = vmatprep.mubr.bf16.mxu1 %v2922_v22  ;;  %v3499_v21 = vld [vmem:[%s5172_s4 + $0x354] ss:$8 sps:$4 sm:$0xff]  }
 0x227   :  { %2090 = vmatpush1.bf16.msra.mxu0 %v3460_v25  ;;  %2430 = vmatpush1.bf16.msra.mxu1 %v3460_v25 }
 0x228   :  { %2091 = vmatprep.subr.bf16.mxu0 %v3461_v26  ;;  %2431 = vmatprep.subr.bf16.mxu1 %v3461_v26 }
 0x22b   :  { %2092 = vmatpush1.bf16.msra.mxu0 %v3462_v27  ;;  %2432 = vmatpush1.bf16.msra.mxu1 %v3462_v27 }
 0x22c   :  { %2093 = vmatprep.subr.bf16.mxu0 %v3463_v28  ;;  %2433 = vmatprep.subr.bf16.mxu1 %v3463_v28 }
 0x22f   :  { %2094 = vmatpush1.bf16.msra.mxu0 %v3464_v29  ;;  %2434 = vmatpush1.bf16.msra.mxu1 %v3464_v29 }
 0x230   :  { %2095 = vmatprep.subr.bf16.mxu0 %v3465_v30  ;;  %2435 = vmatprep.subr.bf16.mxu1 %v3465_v30  ;;  %v3500_v30 = vld [vmem:[%s5172_s4 + $0x350] ss:$8 sps:$4 sm:$0xff]  }
 0x233   :  { %2096 = vmatpush1.bf16.msra.mxu0 %v3466_v31  ;;  %2436 = vmatpush1.bf16.msra.mxu1 %v3466_v31 }
 0x234   :  { %2097 = vmatprep.subr.bf16.mxu0 %v3467_v32  ;;  %2437 = vmatprep.subr.bf16.mxu1 %v3467_v32 }
 0x237   :  { %2098 = vmatpush1.bf16.msra.mxu0 %v3468_v33  ;;  %2438 = vmatpush1.bf16.msra.mxu1 %v3468_v33  ;;  %v3501_v33 = vld [vmem:[%s5172_s4 + $0x364] ss:$8 sps:$4 sm:$0xff]  }
 0x238   :  { %2099 = vmatprep.subr.bf16.mxu0 %v3469_v34  ;;  %2439 = vmatprep.subr.bf16.mxu1 %v3469_v34  ;;  %v3502_v34 = vld [vmem:[%s5172_s4 + $0x360] ss:$8 sps:$4 sm:$0xff]  }
 0x23b   :  { %2100 = vmatpush1.bf16.msra.mxu0 %v3470_v35  ;;  %2440 = vmatpush1.bf16.msra.mxu1 %v3470_v35  ;;  %v3503_v35 = vld [vmem:[%s5172_s4 + $0x374] ss:$8 sps:$4 sm:$0xff]  }
 0x23c   :  { %2101 = vmatprep.subr.bf16.mxu0 %v3471_v36  ;;  %2441 = vmatprep.subr.bf16.mxu1 %v3471_v36  ;;  %v3504_v36 = vld [vmem:[%s5172_s4 + $0x370] ss:$8 sps:$4 sm:$0xff]  }
 0x23f   :  { %2102 = vmatpush1.bf16.msra.mxu0 %v3472_v37  ;;  %2442 = vmatpush1.bf16.msra.mxu1 %v3472_v37  ;;  %v3505_v37 = vld [vmem:[%s5172_s4 + $0x384] ss:$8 sps:$4 sm:$0xff]  }
 0x240   :  { %2103 = vmatprep.subr.bf16.mxu0 %v3473_v53  ;;  %2443 = vmatprep.subr.bf16.mxu1 %v3473_v53  ;;  %v3506_v53 = vld [vmem:[%s5172_s4 + $0x380] ss:$8 sps:$4 sm:$0xff]  }
 0x243   :  { %2104 = vmatpush1.bf16.msra.mxu0 %v3474_v54  ;;  %2444 = vmatpush1.bf16.msra.mxu1 %v3474_v54  ;;  %v3507_v54 = vld [vmem:[%s5172_s4 + $0x394] ss:$8 sps:$4 sm:$0xff]  }
 0x244   :  { %2105 = vmatprep.subr.bf16.mxu0 %v3475_v55  ;;  %2445 = vmatprep.subr.bf16.mxu1 %v3475_v55  ;;  %v3508_v55 = vld [vmem:[%s5172_s4 + $0x390] ss:$8 sps:$4 sm:$0xff]  }
 0x247   :  { %2106 = vmatpush1.bf16.msra.mxu0 %v3476_v56  ;;  %2446 = vmatpush1.bf16.msra.mxu1 %v3476_v56  ;;  %v3509_v56 = vld [vmem:[%s5172_s4 + $0x3a4] ss:$8 sps:$4 sm:$0xff]  }
 0x248   :  { %2107 = vmatprep.subr.bf16.mxu0 %v3477_v57  ;;  %2447 = vmatprep.subr.bf16.mxu1 %v3477_v57  ;;  %v3510_v57 = vld [vmem:[%s5172_s4 + $0x3a0] ss:$8 sps:$4 sm:$0xff]  }
 0x24b   :  { %2108 = vmatpush1.bf16.msra.mxu0 %v3478_v58  ;;  %2448 = vmatpush1.bf16.msra.mxu1 %v3478_v58  ;;  %v3511_v58 = vld [vmem:[%s5172_s4 + $0x3b4] ss:$8 sps:$4 sm:$0xff]  }
 0x24c   :  { %2109 = vmatprep.subr.bf16.mxu0 %v3479_v59  ;;  %2449 = vmatprep.subr.bf16.mxu1 %v3479_v59  ;;  %v3512_v59 = vld [vmem:[%s5172_s4 + $0x3b0] ss:$8 sps:$4 sm:$0xff]  }
 0x24f   :  { %2110 = vmatpush1.bf16.msra.mxu0 %v3480_v60  ;;  %2450 = vmatpush1.bf16.msra.mxu1 %v3480_v60  ;;  %v3513_v60 = vld [vmem:[%s5172_s4 + $0x3c4] ss:$8 sps:$4 sm:$0xff]  }
 0x250   :  { %2111 = vmatprep.subr.bf16.mxu0 %v3481_v61  ;;  %2451 = vmatprep.subr.bf16.mxu1 %v3481_v61  ;;  %v3514_v61 = vld [vmem:[%s5172_s4 + $0x3c0] ss:$8 sps:$4 sm:$0xff]  }
 0x253   :  { %2112 = vmatpush1.bf16.msra.mxu0 %v3482_v62  ;;  %2452 = vmatpush1.bf16.msra.mxu1 %v3482_v62  ;;  %v3515_v62 = vld [vmem:[%s5172_s4 + $0x3d4] ss:$8 sps:$4 sm:$0xff]  }
 0x254   :  { %2113 = vmatprep.subr.bf16.mxu0 %v3483_v63  ;;  %2453 = vmatprep.subr.bf16.mxu1 %v3483_v63  ;;  %v3516_v63 = vld [vmem:[%s5172_s4 + $0x3d0] ss:$8 sps:$4 sm:$0xff]  }
 0x257   :  { %2114 = vmatpush1.bf16.msra.mxu0 %v3484_v0  ;;  %2454 = vmatpush1.bf16.msra.mxu1 %v3484_v0  ;;  %v3517_v0 = vld [vmem:[%s5172_s4 + $0x3e4] ss:$8 sps:$4 sm:$0xff]  }
 0x258   :  { %2115 = vmatprep.subr.bf16.mxu0 %v3485_v1  ;;  %2455 = vmatprep.subr.bf16.mxu1 %v3485_v1  ;;  %v3518_v1 = vld [vmem:[%s5172_s4 + $0x3e0] ss:$8 sps:$4 sm:$0xff]  }
 0x25b   :  { %2116 = vmatpush1.bf16.msra.mxu0 %v3486_v2  ;;  %2456 = vmatpush1.bf16.msra.mxu1 %v3486_v2  ;;  %v3519_v2 = vld [vmem:[%s5172_s4 + $0x3f4] ss:$8 sps:$4 sm:$0xff]  }
 0x25c   :  { %2117 = vmatprep.subr.bf16.mxu0 %v3487_v3  ;;  %2457 = vmatprep.subr.bf16.mxu1 %v3487_v3  ;;  %v2910_v3 = vcombine.low %v4762_v6, %v4762_v6  ;;  %v3521_v6 = vld [vmem:[%s5172_s4 + $0x404] ss:$8 sps:$4 sm:$0xff]  }
 0x25f   :  { %2118 = vmatpush1.bf16.msra.mxu0 %v3488_v8  ;;  %2458 = vmatpush1.bf16.msra.mxu1 %v3488_v8  ;;  %v4893_v8 = vld [vmem:[%s5176_s3 + $0x20] sm:$0xff] }
 0x260   :  { %2128 = vmatprep.subr.bf16.mxu0 %v3489_v9  ;;  %2468 = vmatprep.subr.bf16.mxu1 %v3489_v9  ;;  %v3520_v9 = vld [vmem:[%s5172_s4 + $0x3f0] ss:$8 sps:$4 sm:$0xff]  }
 0x262   :  { %2120 = vmatmul.mubr.bf16.vlgmr.msra.gmra.mrb[4].mxu0 %v2908_v4  ;;  %2460 = vmatmul.mubr.bf16.vlgmr.msra.gmra.mrb[4].mxu1 %v2921_v5  ;;  %v2923_v4 = vcombine.low %v4767_v7, %v4767_v7  ;;  %v4888_v5 = vld [vmem:[%s5175_s2 + $0x20] sm:$0xff] }
 0x263   :  { %2129 = vmatpush1.bf16.msra.mxu0 %v3490_v12  ;;  %2469 = vmatpush1.bf16.msra.mxu1 %v3490_v12  ;;  %v2913_v7 = vcombine.high %v4888_v5, %v4888_v5  ;;  %v3523_v12 = vld [vmem:[%s5172_s4 + $0x414] ss:$8 sps:$4 sm:$0xff]  }
 0x264   :  { %2130 = vmatprep.subr.bf16.mxu0 %v3491_v13  ;;  %2470 = vmatprep.subr.bf16.mxu1 %v3491_v13  ;;  %v3524_v13 = vld [vmem:[%s5172_s4 + $0x410] ss:$8 sps:$4 sm:$0xff]  }
 0x265   :  { %2160 = vmatprep.mubr.bf16.mxu0 %v2911_v10  ;;  %2500 = vmatprep.mubr.bf16.mxu1 %v2924_v11  ;;  %v2926_v10 = vcombine.high %v4893_v8, %v4893_v8  ;;  %v3522_v11 = vld [vmem:[%s5172_s4 + $0x400] ss:$8 sps:$4 sm:$0xff]  }
 0x267   :  { %2131 = vmatpush1.bf16.msra.mxu0 %v3492_v14  ;;  %2471 = vmatpush1.bf16.msra.mxu1 %v3492_v14  ;;  %v3525_v14 = vld [vmem:[%s5172_s4 + $0x424] ss:$8 sps:$4 sm:$0xff]  }
 0x268   :  { %2132 = vmatprep.subr.bf16.mxu0 %v3493_v15  ;;  %2472 = vmatprep.subr.bf16.mxu1 %v3493_v15  ;;  %v3526_v15 = vld [vmem:[%s5172_s4 + $0x420] ss:$8 sps:$4 sm:$0xff]  }
 0x26b   :  { %2133 = vmatpush1.bf16.msra.mxu0 %v3494_v16  ;;  %2473 = vmatpush1.bf16.msra.mxu1 %v3494_v16  ;;  %v3527_v16 = vld [vmem:[%s5172_s4 + $0x434] ss:$8 sps:$4 sm:$0xff]  }
 0x26c   :  { %2134 = vmatprep.subr.bf16.mxu0 %v3495_v17  ;;  %2474 = vmatprep.subr.bf16.mxu1 %v3495_v17  ;;  %v3528_v17 = vld [vmem:[%s5172_s4 + $0x430] ss:$8 sps:$4 sm:$0xff]  }
 0x26f   :  { %2135 = vmatpush1.bf16.msra.mxu0 %v3496_v18  ;;  %2475 = vmatpush1.bf16.msra.mxu1 %v3496_v18  ;;  %v3529_v18 = vld [vmem:[%s5172_s4 + $0x444] ss:$8 sps:$4 sm:$0xff]  }
 0x270   :  { %2136 = vmatprep.subr.bf16.mxu0 %v3497_v19  ;;  %2476 = vmatprep.subr.bf16.mxu1 %v3497_v19  ;;  %v3530_v19 = vld [vmem:[%s5172_s4 + $0x440] ss:$8 sps:$4 sm:$0xff]  }
 0x273   :  { %2137 = vmatpush1.bf16.msra.mxu0 %v3498_v20  ;;  %2477 = vmatpush1.bf16.msra.mxu1 %v3498_v20  ;;  %v3531_v20 = vld [vmem:[%s5172_s4 + $0x454] ss:$8 sps:$4 sm:$0xff]  }
 0x274   :  { %2138 = vmatprep.subr.bf16.mxu0 %v3499_v21  ;;  %2478 = vmatprep.subr.bf16.mxu1 %v3499_v21  ;;  %v3532_v21 = vld [vmem:[%s5172_s4 + $0x450] ss:$8 sps:$4 sm:$0xff]  }
 0x275   :  { %v4809_v22 = vpop.f32.mrb[0].mxu0  ;;  %v4811_v23 = vpop.f32.mrb[0].mxu1 }
 0x276   :  { %v2632_v24 = vmax.f32 %v4809_v22, %v4811_v23  ;;  %v4815_v25 = vpop.f32.mrb[1].mxu0  ;;  %v4817_v26 = vpop.f32.mrb[1].mxu1 }
 0x277   :  { %v2633_v27 = vmax.f32 %v4815_v25, %v4817_v26  ;;  %v1609_v28 = vpop.f32.mrb[2].mxu0  ;;  %v1949_v29 = vpop.f32.mrb[2].mxu1  ;;  %2139 = vmatpush1.bf16.msra.mxu0 %v3500_v30  ;;  %2479 = vmatpush1.bf16.msra.mxu1 %v3500_v30  ;;  %v3535_v30 = vld [vmem:[%s5172_s4 + $0x474] ss:$8 sps:$4 sm:$0xff]  }
 0x278   :  { %v1610_v31 = vpop.f32.mrb[3].mxu0  ;;  %v1950_v32 = vpop.f32.mrb[3].mxu1  ;;  %2140 = vmatprep.subr.bf16.mxu0 %v3501_v33  ;;  %2480 = vmatprep.subr.bf16.mxu1 %v3501_v33  ;;  %v3533_v28 = vld [vmem:[%s5172_s4 + $0x464] ss:$8 sps:$4 sm:$0xff]   ;;  %v3534_v29 = vld [vmem:[%s5172_s4 + $0x460] ss:$8 sps:$4 sm:$0xff]  }
 0x279   :  { %v3536_v31 = vld [vmem:[%s5172_s4 + $0x470] ss:$8 sps:$4 sm:$0xff]   ;;  %v3537_v32 = vld [vmem:[%s5172_s4 + $0x484] ss:$8 sps:$4 sm:$0xff]   ;;  %v3538_v33 = vld [vmem:[%s5172_s4 + $0x480] ss:$8 sps:$4 sm:$0xff]  }
 0x27b   :  { %2141 = vmatpush1.bf16.msra.mxu0 %v3502_v34  ;;  %2481 = vmatpush1.bf16.msra.mxu1 %v3502_v34  ;;  %v3539_v34 = vld [vmem:[%s5172_s4 + $0x494] ss:$8 sps:$4 sm:$0xff]  }
 0x27c   :  { %2142 = vmatprep.subr.bf16.mxu0 %v3503_v35  ;;  %2482 = vmatprep.subr.bf16.mxu1 %v3503_v35  ;;  %v3540_v35 = vld [vmem:[%s5172_s4 + $0x490] ss:$8 sps:$4 sm:$0xff]  }
 0x27f   :  { %2143 = vmatpush1.bf16.msra.mxu0 %v3504_v36  ;;  %2483 = vmatpush1.bf16.msra.mxu1 %v3504_v36  ;;  %v3541_v36 = vld [vmem:[%s5172_s4 + $0x4a4] ss:$8 sps:$4 sm:$0xff]  }
 0x280   :  { %2144 = vmatprep.subr.bf16.mxu0 %v3505_v37  ;;  %2484 = vmatprep.subr.bf16.mxu1 %v3505_v37  ;;  %v3542_v37 = vld [vmem:[%s5172_s4 + $0x4a0] ss:$8 sps:$4 sm:$0xff]  }
 0x283   :  { %2145 = vmatpush1.bf16.msra.mxu0 %v3506_v53  ;;  %2485 = vmatpush1.bf16.msra.mxu1 %v3506_v53  ;;  %v3543_v53 = vld [vmem:[%s5172_s4 + $0x4b4] ss:$8 sps:$4 sm:$0xff]  }
 0x284   :  { %2146 = vmatprep.subr.bf16.mxu0 %v3507_v54  ;;  %2486 = vmatprep.subr.bf16.mxu1 %v3507_v54  ;;  %v3544_v54 = vld [vmem:[%s5172_s4 + $0x4b0] ss:$8 sps:$4 sm:$0xff]  }
 0x287   :  { %2147 = vmatpush1.bf16.msra.mxu0 %v3508_v55  ;;  %2487 = vmatpush1.bf16.msra.mxu1 %v3508_v55  ;;  %v3545_v55 = vld [vmem:[%s5172_s4 + $0x4c4] ss:$8 sps:$4 sm:$0xff]  }
 0x288   :  { %2148 = vmatprep.subr.bf16.mxu0 %v3509_v56  ;;  %2488 = vmatprep.subr.bf16.mxu1 %v3509_v56  ;;  %v3546_v56 = vld [vmem:[%s5172_s4 + $0x4c0] ss:$8 sps:$4 sm:$0xff]  }
 0x28b   :  { %2149 = vmatpush1.bf16.msra.mxu0 %v3510_v57  ;;  %2489 = vmatpush1.bf16.msra.mxu1 %v3510_v57  ;;  %v3547_v57 = vld [vmem:[%s5172_s4 + $0x4d4] ss:$8 sps:$4 sm:$0xff]  }
 0x28c   :  { %2150 = vmatprep.subr.bf16.mxu0 %v3511_v58  ;;  %2490 = vmatprep.subr.bf16.mxu1 %v3511_v58  ;;  %v3548_v58 = vld [vmem:[%s5172_s4 + $0x4d0] ss:$8 sps:$4 sm:$0xff]  }
 0x28f   :  { %2151 = vmatpush1.bf16.msra.mxu0 %v3512_v59  ;;  %2491 = vmatpush1.bf16.msra.mxu1 %v3512_v59  ;;  %v3549_v59 = vld [vmem:[%s5172_s4 + $0x4e4] ss:$8 sps:$4 sm:$0xff]  }
 0x290   :  { %2152 = vmatprep.subr.bf16.mxu0 %v3513_v60  ;;  %2492 = vmatprep.subr.bf16.mxu1 %v3513_v60  ;;  %v3550_v60 = vld [vmem:[%s5172_s4 + $0x4e0] ss:$8 sps:$4 sm:$0xff]  }
 0x293   :  { %2153 = vmatpush1.bf16.msra.mxu0 %v3514_v61  ;;  %2493 = vmatpush1.bf16.msra.mxu1 %v3514_v61  ;;  %v3551_v61 = vld [vmem:[%s5172_s4 + $0x4f4] ss:$8 sps:$4 sm:$0xff]  }
 0x294   :  { %2154 = vmatprep.subr.bf16.mxu0 %v3515_v62  ;;  %2494 = vmatprep.subr.bf16.mxu1 %v3515_v62  ;;  %v2912_v62 = vcombine.low %v4888_v5, %v4888_v5 }
 0x297   :  { %2155 = vmatpush1.bf16.msra.mxu0 %v3516_v63  ;;  %2495 = vmatpush1.bf16.msra.mxu1 %v3516_v63  ;;  %v2925_v63 = vcombine.low %v4893_v8, %v4893_v8  ;;  %v3554_v8 = vld [vmem:[%s5172_s4 + $0x500] ss:$8 sps:$4 sm:$0xff]  }
 0x298   :  { %2156 = vmatprep.subr.bf16.mxu0 %v3517_v0  ;;  %2496 = vmatprep.subr.bf16.mxu1 %v3517_v0  ;;  %v5002_v0 = vld [vmem:[%s5175_s2 + $0x28] sm:$0xff] }
 0x29b   :  { %2157 = vmatpush1.bf16.msra.mxu0 %v3518_v1  ;;  %2497 = vmatpush1.bf16.msra.mxu1 %v3518_v1  ;;  %v5007_v1 = vld [vmem:[%s5176_s3 + $0x28] sm:$0xff] }
 0x29c   :  { %2158 = vmatprep.subr.bf16.mxu0 %v3519_v2  ;;  %2498 = vmatprep.subr.bf16.mxu1 %v3519_v2  ;;  %v3552_v2 = vld [vmem:[%s5172_s4 + $0x4f0] ss:$8 sps:$4 sm:$0xff]   ;;  %v2928_v5 = vcombine.high %v5007_v1, %v5007_v1 }
 0x29f   :  { %2159 = vmatpush1.bf16.msra.mxu0 %v3520_v9  ;;  %2499 = vmatpush1.bf16.msra.mxu1 %v3520_v9  ;;  %v3555_v9 = vld [vmem:[%s5172_s4 + $0x514] ss:$8 sps:$4 sm:$0xff]  }
 0x2a0   :  { %2169 = vmatprep.subr.bf16.mxu0 %v3521_v6  ;;  %2509 = vmatprep.subr.bf16.mxu1 %v3521_v6  ;;  %v3556_v6 = vld [vmem:[%s5172_s4 + $0x510] ss:$8 sps:$4 sm:$0xff]  }
 0x2a2   :  { %2161 = vmatmul.mubr.bf16.vlgmr.msra.gmra.mrb[4].mxu0 %v2910_v3  ;;  %2501 = vmatmul.mubr.bf16.vlgmr.msra.gmra.mrb[4].mxu1 %v2923_v4  ;;  %v3553_v3 = vld [vmem:[%s5172_s4 + $0x504] ss:$8 sps:$4 sm:$0xff]   ;;  %v2915_v4 = vcombine.high %v5002_v0, %v5002_v0 }
 0x2a3   :  { %2170 = vmatpush1.bf16.msra.mxu0 %v3522_v11  ;;  %2510 = vmatpush1.bf16.msra.mxu1 %v3522_v11  ;;  %v3559_v11 = vld [vmem:[%s5172_s4 + $0x534] ss:$8 sps:$4 sm:$0xff]  }
 0x2a4   :  { %2171 = vmatprep.subr.bf16.mxu0 %v3523_v12  ;;  %2511 = vmatprep.subr.bf16.mxu1 %v3523_v12  ;;  %v3560_v12 = vld [vmem:[%s5172_s4 + $0x530] ss:$8 sps:$4 sm:$0xff]  }
 0x2a5   :  { %2201 = vmatprep.mubr.bf16.mxu0 %v2913_v7  ;;  %2541 = vmatprep.mubr.bf16.mxu1 %v2926_v10  ;;  %v3557_v7 = vld [vmem:[%s5172_s4 + $0x524] ss:$8 sps:$4 sm:$0xff]   ;;  %v3558_v10 = vld [vmem:[%s5172_s4 + $0x520] ss:$8 sps:$4 sm:$0xff]  }
 0x2a7   :  { %2172 = vmatpush1.bf16.msra.mxu0 %v3524_v13  ;;  %2512 = vmatpush1.bf16.msra.mxu1 %v3524_v13  ;;  %v3561_v13 = vld [vmem:[%s5172_s4 + $0x544] ss:$8 sps:$4 sm:$0xff]  }
 0x2a8   :  { %2173 = vmatprep.subr.bf16.mxu0 %v3525_v14  ;;  %2513 = vmatprep.subr.bf16.mxu1 %v3525_v14  ;;  %v3562_v14 = vld [vmem:[%s5172_s4 + $0x540] ss:$8 sps:$4 sm:$0xff]  }
 0x2ab   :  { %2174 = vmatpush1.bf16.msra.mxu0 %v3526_v15  ;;  %2514 = vmatpush1.bf16.msra.mxu1 %v3526_v15  ;;  %v3563_v15 = vld [vmem:[%s5172_s4 + $0x554] ss:$8 sps:$4 sm:$0xff]  }
 0x2ac   :  { %2175 = vmatprep.subr.bf16.mxu0 %v3527_v16  ;;  %2515 = vmatprep.subr.bf16.mxu1 %v3527_v16  ;;  %v3564_v16 = vld [vmem:[%s5172_s4 + $0x550] ss:$8 sps:$4 sm:$0xff]  }
 0x2af   :  { %2176 = vmatpush1.bf16.msra.mxu0 %v3528_v17  ;;  %2516 = vmatpush1.bf16.msra.mxu1 %v3528_v17  ;;  %v3565_v17 = vld [vmem:[%s5172_s4 + $0x564] ss:$8 sps:$4 sm:$0xff]  }
 0x2b0   :  { %2177 = vmatprep.subr.bf16.mxu0 %v3529_v18  ;;  %2517 = vmatprep.subr.bf16.mxu1 %v3529_v18  ;;  %v3566_v18 = vld [vmem:[%s5172_s4 + $0x560] ss:$8 sps:$4 sm:$0xff]  }
 0x2b3   :  { %2178 = vmatpush1.bf16.msra.mxu0 %v3530_v19  ;;  %2518 = vmatpush1.bf16.msra.mxu1 %v3530_v19  ;;  %v3567_v19 = vld [vmem:[%s5172_s4 + $0x574] ss:$8 sps:$4 sm:$0xff]  }
 0x2b4   :  { %2179 = vmatprep.subr.bf16.mxu0 %v3531_v20  ;;  %2519 = vmatprep.subr.bf16.mxu1 %v3531_v20  ;;  %v3568_v20 = vld [vmem:[%s5172_s4 + $0x570] ss:$8 sps:$4 sm:$0xff]  }
 0x2b7   :  { %2180 = vmatpush1.bf16.msra.mxu0 %v3532_v21  ;;  %2520 = vmatpush1.bf16.msra.mxu1 %v3532_v21  ;;  %v3569_v21 = vld [vmem:[%s5172_s4 + $0x584] ss:$8 sps:$4 sm:$0xff]  }
 0x2b8   :  { %2181 = vmatprep.subr.bf16.mxu0 %v3533_v28  ;;  %2521 = vmatprep.subr.bf16.mxu1 %v3533_v28  ;;  %v3570_v28 = vld [vmem:[%s5172_s4 + $0x580] ss:$8 sps:$4 sm:$0xff]  }
 0x2bb   :  { %2182 = vmatpush1.bf16.msra.mxu0 %v3534_v29  ;;  %2522 = vmatpush1.bf16.msra.mxu1 %v3534_v29  ;;  %v3571_v29 = vld [vmem:[%s5172_s4 + $0x594] ss:$8 sps:$4 sm:$0xff]  }
 0x2bc   :  { %2183 = vmatprep.subr.bf16.mxu0 %v3535_v30  ;;  %2523 = vmatprep.subr.bf16.mxu1 %v3535_v30  ;;  %v3572_v30 = vld [vmem:[%s5172_s4 + $0x590] ss:$8 sps:$4 sm:$0xff]  }
 0x2bf   :  { %2184 = vmatpush1.bf16.msra.mxu0 %v3536_v31  ;;  %2524 = vmatpush1.bf16.msra.mxu1 %v3536_v31  ;;  %v3573_v31 = vld [vmem:[%s5172_s4 + $0x5a4] ss:$8 sps:$4 sm:$0xff]  }
 0x2c0   :  { %2185 = vmatprep.subr.bf16.mxu0 %v3537_v32  ;;  %2525 = vmatprep.subr.bf16.mxu1 %v3537_v32  ;;  %v3574_v32 = vld [vmem:[%s5172_s4 + $0x5a0] ss:$8 sps:$4 sm:$0xff]  }
 0x2c3   :  { %2186 = vmatpush1.bf16.msra.mxu0 %v3538_v33  ;;  %2526 = vmatpush1.bf16.msra.mxu1 %v3538_v33  ;;  %v3575_v33 = vld [vmem:[%s5172_s4 + $0x5b4] ss:$8 sps:$4 sm:$0xff]  }
 0x2c4   :  { %2187 = vmatprep.subr.bf16.mxu0 %v3539_v34  ;;  %2527 = vmatprep.subr.bf16.mxu1 %v3539_v34  ;;  %v3576_v34 = vld [vmem:[%s5172_s4 + $0x5b0] ss:$8 sps:$4 sm:$0xff]  }
 0x2c7   :  { %2188 = vmatpush1.bf16.msra.mxu0 %v3540_v35  ;;  %2528 = vmatpush1.bf16.msra.mxu1 %v3540_v35  ;;  %v3577_v35 = vld [vmem:[%s5172_s4 + $0x5c4] ss:$8 sps:$4 sm:$0xff]  }
 0x2c8   :  { %2189 = vmatprep.subr.bf16.mxu0 %v3541_v36  ;;  %2529 = vmatprep.subr.bf16.mxu1 %v3541_v36  ;;  %v3578_v36 = vld [vmem:[%s5172_s4 + $0x5c0] ss:$8 sps:$4 sm:$0xff]  }
 0x2cb   :  { %2190 = vmatpush1.bf16.msra.mxu0 %v3542_v37  ;;  %2530 = vmatpush1.bf16.msra.mxu1 %v3542_v37  ;;  %v3579_v37 = vld [vmem:[%s5172_s4 + $0x5d4] ss:$8 sps:$4 sm:$0xff]  }
 0x2cc   :  { %2191 = vmatprep.subr.bf16.mxu0 %v3543_v53  ;;  %2531 = vmatprep.subr.bf16.mxu1 %v3543_v53  ;;  %v3580_v53 = vld [vmem:[%s5172_s4 + $0x5d0] ss:$8 sps:$4 sm:$0xff]  }
 0x2cf   :  { %2192 = vmatpush1.bf16.msra.mxu0 %v3544_v54  ;;  %2532 = vmatpush1.bf16.msra.mxu1 %v3544_v54  ;;  %v3581_v54 = vld [vmem:[%s5172_s4 + $0x5e4] ss:$8 sps:$4 sm:$0xff]  }
 0x2d0   :  { %2193 = vmatprep.subr.bf16.mxu0 %v3545_v55  ;;  %2533 = vmatprep.subr.bf16.mxu1 %v3545_v55  ;;  %v3582_v55 = vld [vmem:[%s5172_s4 + $0x5e0] ss:$8 sps:$4 sm:$0xff]  }
 0x2d3   :  { %2194 = vmatpush1.bf16.msra.mxu0 %v3546_v56  ;;  %2534 = vmatpush1.bf16.msra.mxu1 %v3546_v56  ;;  %v3583_v56 = vld [vmem:[%s5172_s4 + $0x5f4] ss:$8 sps:$4 sm:$0xff]  }
 0x2d4   :  { %2195 = vmatprep.subr.bf16.mxu0 %v3547_v57  ;;  %2535 = vmatprep.subr.bf16.mxu1 %v3547_v57  ;;  %v2914_v57 = vcombine.low %v5002_v0, %v5002_v0 }
 0x2d7   :  { %2196 = vmatpush1.bf16.msra.mxu0 %v3548_v58  ;;  %2536 = vmatpush1.bf16.msra.mxu1 %v3548_v58  ;;  %v2927_v58 = vcombine.low %v5007_v1, %v5007_v1 }
 0x2d8   :  { %2197 = vmatprep.subr.bf16.mxu0 %v3549_v59  ;;  %2537 = vmatprep.subr.bf16.mxu1 %v3549_v59  ;;  %v3584_v59 = vld [vmem:[%s5172_s4 + $0x5f0] ss:$8 sps:$4 sm:$0xff]  }
 0x2db   :  { %2198 = vmatpush1.bf16.msra.mxu0 %v3550_v60  ;;  %2538 = vmatpush1.bf16.msra.mxu1 %v3550_v60  ;;  %v3585_v60 = vld [vmem:[%s5172_s4 + $0x604] ss:$8 sps:$4 sm:$0xff]  }
 0x2dc   :  { %2199 = vmatprep.subr.bf16.mxu0 %v3551_v61  ;;  %2539 = vmatprep.subr.bf16.mxu1 %v3551_v61  ;;  %v3586_v61 = vld [vmem:[%s5172_s4 + $0x600] ss:$8 sps:$4 sm:$0xff]  }
 0x2df   :  { %2200 = vmatpush1.bf16.msra.mxu0 %v3552_v2  ;;  %2540 = vmatpush1.bf16.msra.mxu1 %v3552_v2 }
 0x2e0   :  { %2210 = vmatprep.subr.bf16.mxu0 %v3553_v3  ;;  %2550 = vmatprep.subr.bf16.mxu1 %v3553_v3 }
 0x2e2   :  { %2202 = vmatmul.mubr.bf16.vlgmr.msra.gmra.mrb[4].mxu0 %v2912_v62  ;;  %2542 = vmatmul.mubr.bf16.vlgmr.msra.gmra.mrb[4].mxu1 %v2925_v63  ;;  %v3587_v62 = vld [vmem:[%s5172_s4 + $0x614] ss:$8 sps:$4 sm:$0xff]  }
 0x2e3   :  { %2211 = vmatpush1.bf16.msra.mxu0 %v3554_v8  ;;  %2551 = vmatpush1.bf16.msra.mxu1 %v3554_v8 }
 0x2e4   :  { %2212 = vmatprep.subr.bf16.mxu0 %v3555_v9  ;;  %2552 = vmatprep.subr.bf16.mxu1 %v3555_v9 }
 0x2e5   :  { %2242 = vmatprep.mubr.bf16.mxu0 %v2915_v4  ;;  %2582 = vmatprep.mubr.bf16.mxu1 %v2928_v5 }
 0x2e7   :  { %2213 = vmatpush1.bf16.msra.mxu0 %v3556_v6  ;;  %2553 = vmatpush1.bf16.msra.mxu1 %v3556_v6 }
 0x2e8   :  { %2214 = vmatprep.subr.bf16.mxu0 %v3557_v7  ;;  %2554 = vmatprep.subr.bf16.mxu1 %v3557_v7 }
 0x2eb   :  { %2215 = vmatpush1.bf16.msra.mxu0 %v3558_v10  ;;  %2555 = vmatpush1.bf16.msra.mxu1 %v3558_v10 }
 0x2ec   :  { %2216 = vmatprep.subr.bf16.mxu0 %v3559_v11  ;;  %2556 = vmatprep.subr.bf16.mxu1 %v3559_v11 }
 0x2ef   :  { %2217 = vmatpush1.bf16.msra.mxu0 %v3560_v12  ;;  %2557 = vmatpush1.bf16.msra.mxu1 %v3560_v12 }
 0x2f0   :  { %2218 = vmatprep.subr.bf16.mxu0 %v3561_v13  ;;  %2558 = vmatprep.subr.bf16.mxu1 %v3561_v13 }
 0x2f3   :  { %2219 = vmatpush1.bf16.msra.mxu0 %v3562_v14  ;;  %2559 = vmatpush1.bf16.msra.mxu1 %v3562_v14 }
 0x2f4   :  { %2220 = vmatprep.subr.bf16.mxu0 %v3563_v15  ;;  %2560 = vmatprep.subr.bf16.mxu1 %v3563_v15 }
 0x2f7   :  { %2221 = vmatpush1.bf16.msra.mxu0 %v3564_v16  ;;  %2561 = vmatpush1.bf16.msra.mxu1 %v3564_v16 }
 0x2f8   :  { %2222 = vmatprep.subr.bf16.mxu0 %v3565_v17  ;;  %2562 = vmatprep.subr.bf16.mxu1 %v3565_v17 }
 0x2fb   :  { %2223 = vmatpush1.bf16.msra.mxu0 %v3566_v18  ;;  %2563 = vmatpush1.bf16.msra.mxu1 %v3566_v18 }
 0x2fc   :  { %2224 = vmatprep.subr.bf16.mxu0 %v3567_v19  ;;  %2564 = vmatprep.subr.bf16.mxu1 %v3567_v19 }
 0x2ff   :  { %2225 = vmatpush1.bf16.msra.mxu0 %v3568_v20  ;;  %2565 = vmatpush1.bf16.msra.mxu1 %v3568_v20 }
 0x300   :  { %2226 = vmatprep.subr.bf16.mxu0 %v3569_v21  ;;  %2566 = vmatprep.subr.bf16.mxu1 %v3569_v21 }
 0x303   :  { %2227 = vmatpush1.bf16.msra.mxu0 %v3570_v28  ;;  %2567 = vmatpush1.bf16.msra.mxu1 %v3570_v28 }
 0x304   :  { %2228 = vmatprep.subr.bf16.mxu0 %v3571_v29  ;;  %2568 = vmatprep.subr.bf16.mxu1 %v3571_v29 }
 0x307   :  { %2229 = vmatpush1.bf16.msra.mxu0 %v3572_v30  ;;  %2569 = vmatpush1.bf16.msra.mxu1 %v3572_v30 }
 0x308   :  { %2230 = vmatprep.subr.bf16.mxu0 %v3573_v31  ;;  %2570 = vmatprep.subr.bf16.mxu1 %v3573_v31 }
 0x30b   :  { %2231 = vmatpush1.bf16.msra.mxu0 %v3574_v32  ;;  %2571 = vmatpush1.bf16.msra.mxu1 %v3574_v32 }
 0x30c   :  { %2232 = vmatprep.subr.bf16.mxu0 %v3575_v33  ;;  %2572 = vmatprep.subr.bf16.mxu1 %v3575_v33 }
 0x30f   :  { %2233 = vmatpush1.bf16.msra.mxu0 %v3576_v34  ;;  %2573 = vmatpush1.bf16.msra.mxu1 %v3576_v34 }
 0x310   :  { %2234 = vmatprep.subr.bf16.mxu0 %v3577_v35  ;;  %2574 = vmatprep.subr.bf16.mxu1 %v3577_v35 }
 0x313   :  { %2235 = vmatpush1.bf16.msra.mxu0 %v3578_v36  ;;  %2575 = vmatpush1.bf16.msra.mxu1 %v3578_v36 }
 0x314   :  { %2236 = vmatprep.subr.bf16.mxu0 %v3579_v37  ;;  %2576 = vmatprep.subr.bf16.mxu1 %v3579_v37 }
 0x317   :  { %2237 = vmatpush1.bf16.msra.mxu0 %v3580_v53  ;;  %2577 = vmatpush1.bf16.msra.mxu1 %v3580_v53 }
 0x318   :  { %2238 = vmatprep.subr.bf16.mxu0 %v3581_v54  ;;  %2578 = vmatprep.subr.bf16.mxu1 %v3581_v54 }
 0x31b   :  { %2239 = vmatpush1.bf16.msra.mxu0 %v3582_v55  ;;  %2579 = vmatpush1.bf16.msra.mxu1 %v3582_v55 }
 0x31c   :  { %2240 = vmatprep.subr.bf16.mxu0 %v3583_v56  ;;  %2580 = vmatprep.subr.bf16.mxu1 %v3583_v56 }
 0x31f   :  { %2241 = vmatpush1.bf16.msra.mxu0 %v3584_v59  ;;  %2581 = vmatpush1.bf16.msra.mxu1 %v3584_v59 }
 0x320   :  { %2251 = vmatprep.subr.bf16.mxu0 %v3585_v60  ;;  %2591 = vmatprep.subr.bf16.mxu1 %v3585_v60 }
 0x322   :  { %2243 = vmatmul.mubr.bf16.vlgmr.msra.gmra.mrb[4].mxu0 %v2914_v57  ;;  %2583 = vmatmul.mubr.bf16.vlgmr.msra.gmra.mrb[4].mxu1 %v2927_v58 }
 0x323   :  { %2252 = vmatpush1.bf16.msra.mxu0 %v3586_v61  ;;  %2592 = vmatpush1.bf16.msra.mxu1 %v3586_v61 }
 0x324   :  { %2253 = vmatprep.subr.bf16.mxu0 %v4317_v38  ;;  %2593 = vmatprep.subr.bf16.mxu1 %v3587_v62  ;;  %v3391_v38 = vld [vmem:[%s5175_s2 + $0x30] ss:$0 sps:$4 sm:$0xff]  }
 0x325   :  { %2283 = vmatprep.mubr.bf16.mxu0 %v3588_v41  ;;  %2623 = vmatprep.mubr.bf16.mxu1 %v3588_v41 }
 0x327   :  { %2254 = vmatpush1.bf16.msra.mxu0 %v4322_v39  ;;  %2594 = vmatpush1.bf16.msra.mxu1 %v4322_v39  ;;  %v3392_v39 = vld [vmem:[%s5176_s3 + $0x30] ss:$0 sps:$4 sm:$0xff]  }
 0x328   :  { %2255 = vmatprep.subr.bf16.mxu0 %v4329_v40  ;;  %2595 = vmatprep.subr.bf16.mxu1 %v4329_v40  ;;  %v2640_v40 = vlaneseq }
 0x32a   :  { %v2641_v41 = vshrl.u32 %v2640_v40, 7 }
 0x32b   :  { %2256 = vmatpush1.bf16.msra.mxu0 %v4338_v42  ;;  %2596 = vmatpush1.bf16.msra.mxu1 %v4338_v42 }
 0x32c   :  { %2257 = vmatprep.subr.bf16.mxu0 %v4345_v43  ;;  %2597 = vmatprep.subr.bf16.mxu1 %v4345_v43  ;;  %v2642_v42 = vsub.s32 0, %v2641_v41  ;;  %v2638_v43 = vld [vmem:[%s5177_s5] sm:$0x3] }
 0x32f   :  { %2258 = vmatpush1.bf16.msra.mxu0 %v4352_v44  ;;  %2598 = vmatpush1.bf16.msra.mxu1 %v4352_v44  ;;  %v2646_v44 = vsub.s32 1, %v2641_v41 }
 0x330   :  { %2259 = vmatprep.subr.bf16.mxu0 %v4359_v45  ;;  %2599 = vmatprep.subr.bf16.mxu1 %v4359_v45 }
 0x331   :  { %v2647_v63 = vrot.slane %v2638_v43, %v2646_v44 }
 0x333   :  { %2260 = vmatpush1.bf16.msra.mxu0 %v4366_v46  ;;  %2600 = vmatpush1.bf16.msra.mxu1 %v4366_v46 }
 0x334   :  { %2261 = vmatprep.subr.bf16.mxu0 %v4373_v47  ;;  %2601 = vmatprep.subr.bf16.mxu1 %v4373_v47 }
 0x337   :  { %2262 = vmatpush1.bf16.msra.mxu0 %v4380_v48  ;;  %2602 = vmatpush1.bf16.msra.mxu1 %v4380_v48  ;;  %v2643_v48 = vrot.slane %v2638_v43, %v2642_v42 }
 0x338   :  { %2263 = vmatprep.subr.bf16.mxu0 %v4387_v49  ;;  %2603 = vmatprep.subr.bf16.mxu1 %v4387_v49 }
 0x33b   :  { %2264 = vmatpush1.bf16.msra.mxu0 %v4394_v50  ;;  %2604 = vmatpush1.bf16.msra.mxu1 %v4394_v50 }
 0x33c   :  { %2265 = vmatprep.subr.bf16.mxu0 %v4401_v51  ;;  %2605 = vmatprep.subr.bf16.mxu1 %v4401_v51 }
 0x33f   :  { %2266 = vmatpush1.bf16.msra.mxu0 %v4408_v52  ;;  %2606 = vmatpush1.bf16.msra.mxu1 %v4408_v52 }
 0x342   :  { %2284 = vmatmul.mubr.bf16.vlgmr.msra.gmra.mrb[4].mxu0 %v3391_v38  ;;  %2624 = vmatmul.mubr.bf16.vlgmr.msra.gmra.mrb[4].mxu1 %v3392_v39 }
 0x415   :  { %v2285_v45 = vpop.f32.mrb[4].mxu0  ;;  %v2625_v46 = vpop.f32.mrb[4].mxu1 }
 0x416   :  { %v2634_v47 = vmax.f32 %v2285_v45, %v2625_v46  ;;  %v2287_v49 = vpop.f32.mrb[5].mxu0  ;;  %v2627_v50 = vpop.f32.mrb[5].mxu1 }
 0x417   :  { %v2635_v51 = vmax.f32 %v2287_v49, %v2627_v50  ;;  %v2289_v0 = vpop.f32.mrb[6].mxu0  ;;  %v2629_v52 = vpop.f32.mrb[6].mxu1 }
 0x418   :  { %v2636_v1 = vmax.f32 %v2632_v24, %v2634_v47  ;;  %v2290_v2 = vpop.f32.mrb[7].mxu0  ;;  %v2630_v3 = vpop.f32.mrb[7].mxu1 }
 0x419   :  { %v2637_v4 = vmax.f32 %v2633_v27, %v2635_v51 }
 0x41a   :  { %v2650_v5 = vadd.f32 %v2643_v48, %v2636_v1 }
 0x41b   :  { %v2651_v8 = vadd.f32 %v2647_v63, %v2637_v4 }
 0x41c   :  { %v2652_v9 = vmax.f32 %v2650_v5, 0.0 }
 0x41d   :  { %v2653_v6 = vmax.f32 %v2651_v8, 0.0 }
 0x41f   :  { %v2931_v7 = vpack.c.bf16 %v2653_v6, %v2652_v9 }
 0x421   :  { %2665 = vst.msk [vmem:[%s5178_s6] sm:$0xff] %vm2664_vm2, %v2931_v7 }

// kernel: alexnet_forward.8
= control target key start
LH: loop header
LB: loop body
LE: loop exit
PB: predicated region body
PF: predicated region fallthrough
CT: control target
= control target key end

     0   :  { %s5051_s1 = inlined_call_operand.vmem [shape: bf16[1792,384], index: 1, kind: input, shape index: {}]   ;;  %s5052_s0 = inlined_call_operand.vmem [shape: bf16[8,1792], index: 0, kind: input, shape index: {}]   ;;  %s5053_s2 = inlined_call_operand.vmem [shape: f32[1,384], index: 2, kind: input, shape index: {}]   ;;  %s5054_s3 = inlined_call_operand.vmem [shape: bf16[8,384], index: 3, kind: output, shape index: {}]  }
   0x1   :  { %v3449_v0 = vld [vmem:[%s5051_s1 + $0x4] ss:$12 sps:$4 sm:$0xff]   ;;  %v3453_v2 = vld [vmem:[%s5051_s1] ss:$12 sps:$4 sm:$0xff]   ;;  %v3455_v4 = vld [vmem:[%s5051_s1 + $0x1c] ss:$12 sps:$4 sm:$0xff]  }
   0x2   :  { %v3451_v1 = vld [vmem:[%s5051_s1 + $0x304] ss:$12 sps:$4 sm:$0xff]   ;;  %2328 = vmatprep.subr.bf16.mxu1 %v3449_v0  ;;  %v3454_v3 = vld [vmem:[%s5051_s1 + $0x300] ss:$12 sps:$4 sm:$0xff]   ;;  %v3457_v5 = vld [vmem:[%s5051_s1 + $0x31c] ss:$12 sps:$4 sm:$0xff]  }
   0x3   :  { %2410 = vmatprep.subr.bf16.mxu0 %v3451_v1  ;;  %2329 = vmatpush1.bf16.msra.mxu1 %v3453_v2  ;;  %v3459_v6 = vld [vmem:[%s5051_s1 + $0x18] ss:$12 sps:$4 sm:$0xff]   ;;  %v3461_v8 = vld [vmem:[%s5051_s1 + $0x34] ss:$12 sps:$4 sm:$0xff]   ;;  %v3465_v10 = vld [vmem:[%s5051_s1 + $0x30] ss:$12 sps:$4 sm:$0xff]  }
   0x4   :  { %2411 = vmatpush1.bf16.msra.mxu0 %v3454_v3  ;;  %2330 = vmatprep.subr.bf16.mxu1 %v3455_v4  ;;  %v3460_v7 = vld [vmem:[%s5051_s1 + $0x318] ss:$12 sps:$4 sm:$0xff]   ;;  %v3463_v9 = vld [vmem:[%s5051_s1 + $0x334] ss:$12 sps:$4 sm:$0xff]   ;;  %v3466_v11 = vld [vmem:[%s5051_s1 + $0x330] ss:$12 sps:$4 sm:$0xff]  }
   0x5   :  { %2412 = vmatprep.subr.bf16.mxu0 %v3457_v5  ;;  %v3467_v12 = vld [vmem:[%s5051_s1 + $0x4c] ss:$12 sps:$4 sm:$0xff]   ;;  %v3471_v14 = vld [vmem:[%s5051_s1 + $0x48] ss:$12 sps:$4 sm:$0xff]   ;;  %v3473_v16 = vld [vmem:[%s5051_s1 + $0x64] ss:$12 sps:$4 sm:$0xff]  }
   0x6   :  { %v3469_v13 = vld [vmem:[%s5051_s1 + $0x34c] ss:$12 sps:$4 sm:$0xff]   ;;  %v3472_v15 = vld [vmem:[%s5051_s1 + $0x348] ss:$12 sps:$4 sm:$0xff]   ;;  %v3475_v17 = vld [vmem:[%s5051_s1 + $0x364] ss:$12 sps:$4 sm:$0xff]  }
   0x7   :  { %2331 = vmatpush1.bf16.msra.mxu1 %v3459_v6  ;;  %v3477_v18 = vld [vmem:[%s5051_s1 + $0x60] ss:$12 sps:$4 sm:$0xff]   ;;  %v3479_v20 = vld [vmem:[%s5051_s1 + $0x7c] ss:$12 sps:$4 sm:$0xff]   ;;  %v3483_v22 = vld [vmem:[%s5051_s1 + $0x78] ss:$12 sps:$4 sm:$0xff]  }
   0x8   :  { %2413 = vmatpush1.bf16.msra.mxu0 %v3460_v7  ;;  %2332 = vmatprep.subr.bf16.mxu1 %v3461_v8  ;;  %v3478_v19 = vld [vmem:[%s5051_s1 + $0x360] ss:$12 sps:$4 sm:$0xff]   ;;  %v3481_v21 = vld [vmem:[%s5051_s1 + $0x37c] ss:$12 sps:$4 sm:$0xff]   ;;  %v3484_v23 = vld [vmem:[%s5051_s1 + $0x378] ss:$12 sps:$4 sm:$0xff]  }
   0x9   :  { %2414 = vmatprep.subr.bf16.mxu0 %v3463_v9  ;;  %v3485_v24 = vld [vmem:[%s5051_s1 + $0x94] ss:$12 sps:$4 sm:$0xff]   ;;  %v3489_v26 = vld [vmem:[%s5051_s1 + $0x90] ss:$12 sps:$4 sm:$0xff]   ;;  %v3491_v28 = vld [vmem:[%s5051_s1 + $0xac] ss:$12 sps:$4 sm:$0xff]  }
   0xa   :  { %v3487_v25 = vld [vmem:[%s5051_s1 + $0x394] ss:$12 sps:$4 sm:$0xff]   ;;  %v3490_v27 = vld [vmem:[%s5051_s1 + $0x390] ss:$12 sps:$4 sm:$0xff]   ;;  %v3493_v29 = vld [vmem:[%s5051_s1 + $0x3ac] ss:$12 sps:$4 sm:$0xff]  }
   0xb   :  { %2333 = vmatpush1.bf16.msra.mxu1 %v3465_v10  ;;  %v3495_v30 = vld [vmem:[%s5051_s1 + $0xa8] ss:$12 sps:$4 sm:$0xff]   ;;  %v3497_v32 = vld [vmem:[%s5051_s1 + $0xc4] ss:$12 sps:$4 sm:$0xff]   ;;  %v3501_v34 = vld [vmem:[%s5051_s1 + $0xc0] ss:$12 sps:$4 sm:$0xff]  }
   0xc   :  { %2415 = vmatpush1.bf16.msra.mxu0 %v3466_v11  ;;  %2334 = vmatprep.subr.bf16.mxu1 %v3467_v12  ;;  %v3496_v31 = vld [vmem:[%s5051_s1 + $0x3a8] ss:$12 sps:$4 sm:$0xff]   ;;  %v3499_v33 = vld [vmem:[%s5051_s1 + $0x3c4] ss:$12 sps:$4 sm:$0xff]   ;;  %v3502_v35 = vld [vmem:[%s5051_s1 + $0x3c0] ss:$12 sps:$4 sm:$0xff]  }
   0xd   :  { %2416 = vmatprep.subr.bf16.mxu0 %v3469_v13  ;;  %v3503_v36 = vld [vmem:[%s5051_s1 + $0xdc] ss:$12 sps:$4 sm:$0xff]   ;;  %v3507_v38 = vld [vmem:[%s5051_s1 + $0xd8] ss:$12 sps:$4 sm:$0xff]   ;;  %v3509_v40 = vld [vmem:[%s5051_s1 + $0xf4] ss:$12 sps:$4 sm:$0xff]  }
   0xe   :  { %v3505_v37 = vld [vmem:[%s5051_s1 + $0x3dc] ss:$12 sps:$4 sm:$0xff]   ;;  %v3508_v39 = vld [vmem:[%s5051_s1 + $0x3d8] ss:$12 sps:$4 sm:$0xff]   ;;  %v3511_v41 = vld [vmem:[%s5051_s1 + $0x3f4] ss:$12 sps:$4 sm:$0xff]  }
   0xf   :  { %2335 = vmatpush1.bf16.msra.mxu1 %v3471_v14  ;;  %v3513_v42 = vld [vmem:[%s5051_s1 + $0xf0] ss:$12 sps:$4 sm:$0xff]   ;;  %v3515_v44 = vld [vmem:[%s5051_s1 + $0x10c] ss:$12 sps:$4 sm:$0xff]   ;;  %v15_v46 = vld [vmem:[%s5052_s0] sm:$0xff] }
  0x10   :  { %2417 = vmatpush1.bf16.msra.mxu0 %v3472_v15  ;;  %2336 = vmatprep.subr.bf16.mxu1 %v3473_v16  ;;  %v3514_v43 = vld [vmem:[%s5051_s1 + $0x3f0] ss:$12 sps:$4 sm:$0xff]   ;;  %v3517_v45 = vld [vmem:[%s5051_s1 + $0x40c] ss:$12 sps:$4 sm:$0xff]   ;;  %v3519_v47 = vld [vmem:[%s5051_s1 + $0x108] ss:$12 sps:$4 sm:$0xff]   ;;  %v4075_v48 = vcombine.high %v15_v46, %v15_v46  ;;  %v4141_v6 = vcombine.low %v15_v46, %v15_v46 }
  0x11   :  { %2418 = vmatprep.subr.bf16.mxu0 %v3475_v17  ;;  %v3520_v49 = vld [vmem:[%s5051_s1 + $0x408] ss:$12 sps:$4 sm:$0xff]   ;;  %v3521_v51 = vld [vmem:[%s5051_s1 + $0x124] ss:$12 sps:$4 sm:$0xff]   ;;  %v3525_v54 = vld [vmem:[%s5051_s1 + $0x120] ss:$12 sps:$4 sm:$0xff]  }
  0x12   :  { %v17_v50 = vld [vmem:[%s5052_s0 + $0x10] sm:$0xff]  ;;  %2360 = vmatprep.mubr.bf16.mxu1 %v4075_v48  ;;  %v3526_v55 = vld [vmem:[%s5051_s1 + $0x420] ss:$12 sps:$4 sm:$0xff]   ;;  %v3527_v56 = vld [vmem:[%s5051_s1 + $0x13c] ss:$12 sps:$4 sm:$0xff]  }
  0x13   :  { %2337 = vmatpush1.bf16.msra.mxu1 %v3477_v18  ;;  %v3523_v52 = vld [vmem:[%s5051_s1 + $0x424] ss:$12 sps:$4 sm:$0xff]   ;;  %v4089_v53 = vcombine.high %v17_v50, %v17_v50  ;;  %v3529_v57 = vld [vmem:[%s5051_s1 + $0x43c] ss:$12 sps:$4 sm:$0xff]   ;;  %v3533_v60 = vld [vmem:[%s5051_s1 + $0x154] ss:$12 sps:$4 sm:$0xff]   ;;  %v4143_v7 = vcombine.low %v17_v50, %v17_v50 }
  0x14   :  { %2419 = vmatpush1.bf16.msra.mxu0 %v3478_v19  ;;  %2338 = vmatprep.subr.bf16.mxu1 %v3479_v20  ;;  %v3531_v58 = vld [vmem:[%s5051_s1 + $0x138] ss:$12 sps:$4 sm:$0xff]   ;;  %v3535_v61 = vld [vmem:[%s5051_s1 + $0x454] ss:$12 sps:$4 sm:$0xff]   ;;  %v3537_v62 = vld [vmem:[%s5051_s1 + $0x150] ss:$12 sps:$4 sm:$0xff]  }
  0x15   :  { %2420 = vmatprep.subr.bf16.mxu0 %v3481_v21  ;;  %2442 = vmatprep.mubr.bf16.mxu0 %v4089_v53  ;;  %v3532_v59 = vld [vmem:[%s5051_s1 + $0x438] ss:$12 sps:$4 sm:$0xff]   ;;  %v3538_v63 = vld [vmem:[%s5051_s1 + $0x450] ss:$12 sps:$4 sm:$0xff]   ;;  %v3543_v2 = vld [vmem:[%s5051_s1 + $0x168] ss:$12 sps:$4 sm:$0xff]  }
  0x16   :  { %v3539_v0 = vld [vmem:[%s5051_s1 + $0x16c] ss:$12 sps:$4 sm:$0xff]   ;;  %v3544_v3 = vld [vmem:[%s5051_s1 + $0x468] ss:$12 sps:$4 sm:$0xff]   ;;  %v3549_v4 = vld [vmem:[%s5051_s1 + $0x184] ss:$12 sps:$4 sm:$0xff]  }
  0x17   :  { %2339 = vmatpush1.bf16.msra.mxu1 %v3483_v22  ;;  %v3541_v1 = vld [vmem:[%s5051_s1 + $0x46c] ss:$12 sps:$4 sm:$0xff]   ;;  %v3554_v5 = vld [vmem:[%s5051_s1 + $0x484] ss:$12 sps:$4 sm:$0xff]   ;;  %v3557_v10 = vld [vmem:[%s5051_s1 + $0x19c] ss:$12 sps:$4 sm:$0xff]  }
  0x18   :  { %2421 = vmatpush1.bf16.msra.mxu0 %v3484_v23  ;;  %2340 = vmatprep.subr.bf16.mxu1 %v3485_v24  ;;  %v3547_v8 = vld [vmem:[%s5051_s1 + $0x180] ss:$12 sps:$4 sm:$0xff]   ;;  %v3560_v11 = vld [vmem:[%s5051_s1 + $0x49c] ss:$12 sps:$4 sm:$0xff]   ;;  %v3555_v12 = vld [vmem:[%s5051_s1 + $0x198] ss:$12 sps:$4 sm:$0xff]  }
  0x19   :  { %2422 = vmatprep.subr.bf16.mxu0 %v3487_v25  ;;  %v3552_v9 = vld [vmem:[%s5051_s1 + $0x480] ss:$12 sps:$4 sm:$0xff]   ;;  %v3558_v13 = vld [vmem:[%s5051_s1 + $0x498] ss:$12 sps:$4 sm:$0xff]   ;;  %v3561_v16 = vld [vmem:[%s5051_s1 + $0x1b0] ss:$12 sps:$4 sm:$0xff]  }
  0x1a   :  { %v3563_v14 = vld [vmem:[%s5051_s1 + $0x1b4] ss:$12 sps:$4 sm:$0xff]   ;;  %v3564_v17 = vld [vmem:[%s5051_s1 + $0x4b0] ss:$12 sps:$4 sm:$0xff]   ;;  %v3569_v18 = vld [vmem:[%s5051_s1 + $0x1cc] ss:$12 sps:$4 sm:$0xff]  }
  0x1b   :  { %2341 = vmatpush1.bf16.msra.mxu1 %v3489_v26  ;;  %v3566_v15 = vld [vmem:[%s5051_s1 + $0x4b4] ss:$12 sps:$4 sm:$0xff]   ;;  %v3572_v19 = vld [vmem:[%s5051_s1 + $0x4cc] ss:$12 sps:$4 sm:$0xff]   ;;  %v3575_v22 = vld [vmem:[%s5051_s1 + $0x1e4] ss:$12 sps:$4 sm:$0xff]  }
  0x1c   :  { %2423 = vmatpush1.bf16.msra.mxu0 %v3490_v27  ;;  %2342 = vmatprep.subr.bf16.mxu1 %v3491_v28  ;;  %v3567_v20 = vld [vmem:[%s5051_s1 + $0x1c8] ss:$12 sps:$4 sm:$0xff]   ;;  %v3578_v23 = vld [vmem:[%s5051_s1 + $0x4e4] ss:$12 sps:$4 sm:$0xff]   ;;  %v3573_v24 = vld [vmem:[%s5051_s1 + $0x1e0] ss:$12 sps:$4 sm:$0xff]  }
  0x1d   :  { %2424 = vmatprep.subr.bf16.mxu0 %v3493_v29  ;;  %v3570_v21 = vld [vmem:[%s5051_s1 + $0x4c8] ss:$12 sps:$4 sm:$0xff]   ;;  %v3576_v25 = vld [vmem:[%s5051_s1 + $0x4e0] ss:$12 sps:$4 sm:$0xff]   ;;  %v3579_v28 = vld [vmem:[%s5051_s1 + $0x1f8] ss:$12 sps:$4 sm:$0xff]  }
  0x1e   :  { %v3581_v26 = vld [vmem:[%s5051_s1 + $0x1fc] ss:$12 sps:$4 sm:$0xff]   ;;  %v3582_v29 = vld [vmem:[%s5051_s1 + $0x4f8] ss:$12 sps:$4 sm:$0xff]  }
  0x1f   :  { %2343 = vmatpush1.bf16.msra.mxu1 %v3495_v30  ;;  %v3584_v27 = vld [vmem:[%s5051_s1 + $0x4fc] ss:$12 sps:$4 sm:$0xff]   ;;  %v3587_v30 = vld [vmem:[%s5051_s1 + $0x214] ss:$12 sps:$4 sm:$0xff]   ;;  %v3606_v50 = vld [vmem:[%s5051_s1 + $0x558] ss:$12 sps:$4 sm:$0xff]  }
  0x20   :  { %2425 = vmatpush1.bf16.msra.mxu0 %v3496_v31  ;;  %2344 = vmatprep.subr.bf16.mxu1 %v3497_v32  ;;  %v3590_v31 = vld [vmem:[%s5051_s1 + $0x514] ss:$12 sps:$4 sm:$0xff]   ;;  %v4222_v32 = vld [vmem:[%s5052_s0 + $0x8] sm:$0xff] }
  0x21   :  { %2426 = vmatprep.subr.bf16.mxu0 %v3499_v33  ;;  %v4227_v33 = vld [vmem:[%s5052_s0 + $0x18] sm:$0xff] }
  0x22   :  { %v3605_v46 = vld [vmem:[%s5051_s1 + $0x25c] ss:$12 sps:$4 sm:$0xff]  }
  0x23   :  { %2345 = vmatpush1.bf16.msra.mxu1 %v3501_v34  ;;  %v3585_v34 = vld [vmem:[%s5051_s1 + $0x210] ss:$12 sps:$4 sm:$0xff]  }
  0x24   :  { %2427 = vmatpush1.bf16.msra.mxu0 %v3502_v35  ;;  %2346 = vmatprep.subr.bf16.mxu1 %v3503_v36  ;;  %v3588_v35 = vld [vmem:[%s5051_s1 + $0x510] ss:$12 sps:$4 sm:$0xff]   ;;  %v4237_v36 = vcombine.high %v4222_v32, %v4222_v32 }
  0x25   :  { %2428 = vmatprep.subr.bf16.mxu0 %v3505_v37  ;;  %v4241_v37 = vcombine.high %v4227_v33, %v4227_v33 }
  0x27   :  { %2347 = vmatpush1.bf16.msra.mxu1 %v3507_v38  ;;  %v3593_v38 = vld [vmem:[%s5051_s1 + $0x22c] ss:$12 sps:$4 sm:$0xff]  }
  0x28   :  { %2429 = vmatpush1.bf16.msra.mxu0 %v3508_v39  ;;  %2348 = vmatprep.subr.bf16.mxu1 %v3509_v40  ;;  %v3596_v39 = vld [vmem:[%s5051_s1 + $0x52c] ss:$12 sps:$4 sm:$0xff]   ;;  %v3591_v40 = vld [vmem:[%s5051_s1 + $0x228] ss:$12 sps:$4 sm:$0xff]  }
  0x29   :  { %2430 = vmatprep.subr.bf16.mxu0 %v3511_v41  ;;  %v3594_v41 = vld [vmem:[%s5051_s1 + $0x528] ss:$12 sps:$4 sm:$0xff]  }
  0x2b   :  { %2349 = vmatpush1.bf16.msra.mxu1 %v3513_v42  ;;  %v3599_v42 = vld [vmem:[%s5051_s1 + $0x244] ss:$12 sps:$4 sm:$0xff]  }
  0x2c   :  { %2431 = vmatpush1.bf16.msra.mxu0 %v3514_v43  ;;  %2350 = vmatprep.subr.bf16.mxu1 %v3515_v44  ;;  %v3602_v43 = vld [vmem:[%s5051_s1 + $0x544] ss:$12 sps:$4 sm:$0xff]   ;;  %v3597_v44 = vld [vmem:[%s5051_s1 + $0x240] ss:$12 sps:$4 sm:$0xff]  }
  0x2d   :  { %2432 = vmatprep.subr.bf16.mxu0 %v3517_v45  ;;  %v3600_v45 = vld [vmem:[%s5051_s1 + $0x540] ss:$12 sps:$4 sm:$0xff]  }
  0x2f   :  { %2351 = vmatpush1.bf16.msra.mxu1 %v3519_v47  ;;  %v3608_v47 = vld [vmem:[%s5051_s1 + $0x55c] ss:$12 sps:$4 sm:$0xff]  }
  0x30   :  { %2433 = vmatpush1.bf16.msra.mxu0 %v3520_v49  ;;  %2352 = vmatprep.subr.bf16.mxu1 %v3521_v51  ;;  %v3603_v49 = vld [vmem:[%s5051_s1 + $0x258] ss:$12 sps:$4 sm:$0xff]   ;;  %v3611_v51 = vld [vmem:[%s5051_s1 + $0x274] ss:$12 sps:$4 sm:$0xff]  }
  0x31   :  { %2434 = vmatprep.subr.bf16.mxu0 %v3523_v52  ;;  %v3614_v52 = vld [vmem:[%s5051_s1 + $0x574] ss:$12 sps:$4 sm:$0xff]  }
  0x33   :  { %2353 = vmatpush1.bf16.msra.mxu1 %v3525_v54  ;;  %v3609_v54 = vld [vmem:[%s5051_s1 + $0x270] ss:$12 sps:$4 sm:$0xff]  }
  0x34   :  { %2435 = vmatpush1.bf16.msra.mxu0 %v3526_v55  ;;  %2354 = vmatprep.subr.bf16.mxu1 %v3527_v56  ;;  %v3612_v55 = vld [vmem:[%s5051_s1 + $0x570] ss:$12 sps:$4 sm:$0xff]   ;;  %v3617_v56 = vld [vmem:[%s5051_s1 + $0x28c] ss:$12 sps:$4 sm:$0xff]  }
  0x35   :  { %2436 = vmatprep.subr.bf16.mxu0 %v3529_v57  ;;  %v3620_v57 = vld [vmem:[%s5051_s1 + $0x58c] ss:$12 sps:$4 sm:$0xff]  }
  0x37   :  { %2355 = vmatpush1.bf16.msra.mxu1 %v3531_v58  ;;  %v3615_v58 = vld [vmem:[%s5051_s1 + $0x288] ss:$12 sps:$4 sm:$0xff]  }
  0x38   :  { %2437 = vmatpush1.bf16.msra.mxu0 %v3532_v59  ;;  %2356 = vmatprep.subr.bf16.mxu1 %v3533_v60  ;;  %v3618_v59 = vld [vmem:[%s5051_s1 + $0x588] ss:$12 sps:$4 sm:$0xff]   ;;  %v3623_v60 = vld [vmem:[%s5051_s1 + $0x2a4] ss:$12 sps:$4 sm:$0xff]  }
  0x39   :  { %2438 = vmatprep.subr.bf16.mxu0 %v3535_v61  ;;  %v3626_v61 = vld [vmem:[%s5051_s1 + $0x5a4] ss:$12 sps:$4 sm:$0xff]  }
  0x3b   :  { %2357 = vmatpush1.bf16.msra.mxu1 %v3537_v62  ;;  %v3621_v62 = vld [vmem:[%s5051_s1 + $0x2a0] ss:$12 sps:$4 sm:$0xff]  }
  0x3c   :  { %2439 = vmatpush1.bf16.msra.mxu0 %v3538_v63  ;;  %2358 = vmatprep.subr.bf16.mxu1 %v3539_v0  ;;  %v3624_v63 = vld [vmem:[%s5051_s1 + $0x5a0] ss:$12 sps:$4 sm:$0xff]   ;;  %v3629_v0 = vld [vmem:[%s5051_s1 + $0x2bc] ss:$12 sps:$4 sm:$0xff]  }
  0x3d   :  { %2440 = vmatprep.subr.bf16.mxu0 %v3541_v1  ;;  %v3632_v1 = vld [vmem:[%s5051_s1 + $0x5bc] ss:$12 sps:$4 sm:$0xff]  }
  0x3f   :  { %2359 = vmatpush1.bf16.msra.mxu1 %v3543_v2  ;;  %v3627_v2 = vld [vmem:[%s5051_s1 + $0x2b8] ss:$12 sps:$4 sm:$0xff]  }
  0x40   :  { %2441 = vmatpush1.bf16.msra.mxu0 %v3544_v3  ;;  %2369 = vmatprep.subr.bf16.mxu1 %v3549_v4  ;;  %v3630_v3 = vld [vmem:[%s5051_s1 + $0x5b8] ss:$12 sps:$4 sm:$0xff]   ;;  %v3635_v4 = vld [vmem:[%s5051_s1 + $0x2d4] ss:$12 sps:$4 sm:$0xff]  }
  0x41   :  { %2451 = vmatprep.subr.bf16.mxu0 %v3554_v5  ;;  %v3638_v5 = vld [vmem:[%s5051_s1 + $0x5d4] ss:$12 sps:$4 sm:$0xff]  }
  0x42   :  { %2361 = vmatmul.mubr.bf16.vlgmr.msra.gmra.mrb[0].mxu1 %v4141_v6 }
  0x43   :  { %2443 = vmatmul.mubr.bf16.vlgmr.msra.gmra.mrb[0].mxu0 %v4143_v7  ;;  %2370 = vmatpush1.bf16.msra.mxu1 %v3547_v8  ;;  %v3633_v8 = vld [vmem:[%s5051_s1 + $0x2d0] ss:$12 sps:$4 sm:$0xff]  }
  0x44   :  { %2452 = vmatpush1.bf16.msra.mxu0 %v3552_v9  ;;  %2371 = vmatprep.subr.bf16.mxu1 %v3557_v10  ;;  %v3636_v9 = vld [vmem:[%s5051_s1 + $0x5d0] ss:$12 sps:$4 sm:$0xff]   ;;  %v3641_v10 = vld [vmem:[%s5051_s1 + $0x2ec] ss:$12 sps:$4 sm:$0xff]  }
  0x45   :  { %2453 = vmatprep.subr.bf16.mxu0 %v3560_v11  ;;  %2401 = vmatprep.mubr.bf16.mxu1 %v4237_v36  ;;  %v3644_v11 = vld [vmem:[%s5051_s1 + $0x5ec] ss:$12 sps:$4 sm:$0xff]  }
  0x46   :  { %2483 = vmatprep.mubr.bf16.mxu0 %v4241_v37 }
  0x47   :  { %2372 = vmatpush1.bf16.msra.mxu1 %v3555_v12  ;;  %v3639_v12 = vld [vmem:[%s5051_s1 + $0x2e8] ss:$12 sps:$4 sm:$0xff]  }
  0x48   :  { %2454 = vmatpush1.bf16.msra.mxu0 %v3558_v13  ;;  %2373 = vmatprep.subr.bf16.mxu1 %v3563_v14  ;;  %v3642_v13 = vld [vmem:[%s5051_s1 + $0x5e8] ss:$12 sps:$4 sm:$0xff]   ;;  %v3651_v14 = vld [vmem:[%s5051_s1 + $0x604] ss:$12 sps:$4 sm:$0xff]  }
  0x49   :  { %2455 = vmatprep.subr.bf16.mxu0 %v3566_v15  ;;  %v3652_v15 = vld [vmem:[%s5051_s1 + $0xc8] ss:$12 sps:$4 sm:$0xff]  }
  0x4b   :  { %2374 = vmatpush1.bf16.msra.mxu1 %v3561_v16  ;;  %v4361_v16 = vcombine.low %v4222_v32, %v4222_v32  ;;  %v3671_v32 = vld [vmem:[%s5051_s1 + $0x664] ss:$12 sps:$4 sm:$0xff]  }
  0x4c   :  { %2456 = vmatpush1.bf16.msra.mxu0 %v3564_v17  ;;  %2375 = vmatprep.subr.bf16.mxu1 %v3569_v18  ;;  %v4365_v17 = vcombine.low %v4227_v33, %v4227_v33  ;;  %v3649_v18 = vld [vmem:[%s5051_s1 + $0x600] ss:$12 sps:$4 sm:$0xff]   ;;  %v3672_v33 = vld [vmem:[%s5051_s1 + $0x128] ss:$12 sps:$4 sm:$0xff]  }
  0x4d   :  { %2457 = vmatprep.subr.bf16.mxu0 %v3572_v19  ;;  %v3653_v19 = vld [vmem:[%s5051_s1 + $0x8] ss:$12 sps:$4 sm:$0xff]  }
  0x4f   :  { %2376 = vmatpush1.bf16.msra.mxu1 %v3567_v20  ;;  %v3656_v20 = vld [vmem:[%s5051_s1 + $0x61c] ss:$12 sps:$4 sm:$0xff]  }
  0x50   :  { %2458 = vmatpush1.bf16.msra.mxu0 %v3570_v21  ;;  %2377 = vmatprep.subr.bf16.mxu1 %v3575_v22  ;;  %v3657_v21 = vld [vmem:[%s5051_s1 + $0xe0] ss:$12 sps:$4 sm:$0xff]   ;;  %v3654_v22 = vld [vmem:[%s5051_s1 + $0x618] ss:$12 sps:$4 sm:$0xff]  }
  0x51   :  { %2459 = vmatprep.subr.bf16.mxu0 %v3578_v23  ;;  %v3658_v23 = vld [vmem:[%s5051_s1 + $0x20] ss:$12 sps:$4 sm:$0xff]  }
  0x53   :  { %2378 = vmatpush1.bf16.msra.mxu1 %v3573_v24  ;;  %v3661_v24 = vld [vmem:[%s5051_s1 + $0x634] ss:$12 sps:$4 sm:$0xff]  }
  0x54   :  { %2460 = vmatpush1.bf16.msra.mxu0 %v3576_v25  ;;  %2379 = vmatprep.subr.bf16.mxu1 %v3581_v26  ;;  %v3662_v25 = vld [vmem:[%s5051_s1 + $0xf8] ss:$12 sps:$4 sm:$0xff]   ;;  %v3659_v26 = vld [vmem:[%s5051_s1 + $0x630] ss:$12 sps:$4 sm:$0xff]  }
  0x55   :  { %2461 = vmatprep.subr.bf16.mxu0 %v3584_v27  ;;  %v3663_v27 = vld [vmem:[%s5051_s1 + $0x38] ss:$12 sps:$4 sm:$0xff]  }
  0x57   :  { %2380 = vmatpush1.bf16.msra.mxu1 %v3579_v28  ;;  %v3666_v28 = vld [vmem:[%s5051_s1 + $0x64c] ss:$12 sps:$4 sm:$0xff]  }
  0x58   :  { %2462 = vmatpush1.bf16.msra.mxu0 %v3582_v29  ;;  %2381 = vmatprep.subr.bf16.mxu1 %v3587_v30  ;;  %v3664_v29 = vld [vmem:[%s5051_s1 + $0x648] ss:$12 sps:$4 sm:$0xff]   ;;  %v3668_v30 = vld [vmem:[%s5051_s1 + $0x50] ss:$12 sps:$4 sm:$0xff]  }
  0x59   :  { %2463 = vmatprep.subr.bf16.mxu0 %v3590_v31  ;;  %v4415_v31 = vld [vmem:[%s5052_s0 + $0x20] sm:$0xff] }
  0x5b   :  { %2382 = vmatpush1.bf16.msra.mxu1 %v3585_v34  ;;  %v4425_v34 = vcombine.high %v4415_v31, %v4415_v31 }
  0x5c   :  { %2464 = vmatpush1.bf16.msra.mxu0 %v3588_v35  ;;  %2383 = vmatprep.subr.bf16.mxu1 %v3593_v38  ;;  %v3669_v35 = vld [vmem:[%s5051_s1 + $0x660] ss:$12 sps:$4 sm:$0xff]   ;;  %v3673_v38 = vld [vmem:[%s5051_s1 + $0x68] ss:$12 sps:$4 sm:$0xff]  }
  0x5d   :  { %2465 = vmatprep.subr.bf16.mxu0 %v3596_v39  ;;  %v3676_v39 = vld [vmem:[%s5051_s1 + $0x67c] ss:$12 sps:$4 sm:$0xff]  }
  0x5f   :  { %2384 = vmatpush1.bf16.msra.mxu1 %v3591_v40  ;;  %v3677_v40 = vld [vmem:[%s5051_s1 + $0x140] ss:$12 sps:$4 sm:$0xff]  }
  0x60   :  { %2466 = vmatpush1.bf16.msra.mxu0 %v3594_v41  ;;  %2385 = vmatprep.subr.bf16.mxu1 %v3599_v42  ;;  %v3674_v41 = vld [vmem:[%s5051_s1 + $0x678] ss:$12 sps:$4 sm:$0xff]   ;;  %v3678_v42 = vld [vmem:[%s5051_s1 + $0x80] ss:$12 sps:$4 sm:$0xff]  }
  0x61   :  { %2467 = vmatprep.subr.bf16.mxu0 %v3602_v43  ;;  %v3681_v43 = vld [vmem:[%s5051_s1 + $0x694] ss:$12 sps:$4 sm:$0xff]  }
  0x63   :  { %2386 = vmatpush1.bf16.msra.mxu1 %v3597_v44  ;;  %v3682_v44 = vld [vmem:[%s5051_s1 + $0x158] ss:$12 sps:$4 sm:$0xff]  }
  0x64   :  { %2468 = vmatpush1.bf16.msra.mxu0 %v3600_v45  ;;  %2387 = vmatprep.subr.bf16.mxu1 %v3605_v46  ;;  %v3679_v45 = vld [vmem:[%s5051_s1 + $0x690] ss:$12 sps:$4 sm:$0xff]   ;;  %v3683_v46 = vld [vmem:[%s5051_s1 + $0x98] ss:$12 sps:$4 sm:$0xff]  }
  0x65   :  { %2469 = vmatprep.subr.bf16.mxu0 %v3608_v47  ;;  %v3686_v47 = vld [vmem:[%s5051_s1 + $0x6ac] ss:$12 sps:$4 sm:$0xff]  }
  0x67   :  { %2388 = vmatpush1.bf16.msra.mxu1 %v3603_v49  ;;  %v3687_v49 = vld [vmem:[%s5051_s1 + $0x170] ss:$12 sps:$4 sm:$0xff]  }
  0x68   :  { %2470 = vmatpush1.bf16.msra.mxu0 %v3606_v50  ;;  %2389 = vmatprep.subr.bf16.mxu1 %v3611_v51  ;;  %v3684_v50 = vld [vmem:[%s5051_s1 + $0x6a8] ss:$12 sps:$4 sm:$0xff]   ;;  %v3688_v51 = vld [vmem:[%s5051_s1 + $0xb0] ss:$12 sps:$4 sm:$0xff]  }
  0x69   :  { %2471 = vmatprep.subr.bf16.mxu0 %v3614_v52  ;;  %v3691_v52 = vld [vmem:[%s5051_s1 + $0x6c4] ss:$12 sps:$4 sm:$0xff]  }
  0x6b   :  { %2390 = vmatpush1.bf16.msra.mxu1 %v3609_v54  ;;  %v3692_v54 = vld [vmem:[%s5051_s1 + $0x248] ss:$12 sps:$4 sm:$0xff]  }
  0x6c   :  { %2472 = vmatpush1.bf16.msra.mxu0 %v3612_v55  ;;  %2391 = vmatprep.subr.bf16.mxu1 %v3617_v56  ;;  %v3689_v55 = vld [vmem:[%s5051_s1 + $0x6c0] ss:$12 sps:$4 sm:$0xff]   ;;  %v3693_v56 = vld [vmem:[%s5051_s1 + $0x188] ss:$12 sps:$4 sm:$0xff]  }
  0x6d   :  { %2473 = vmatprep.subr.bf16.mxu0 %v3620_v57  ;;  %v3696_v57 = vld [vmem:[%s5051_s1 + $0x6dc] ss:$12 sps:$4 sm:$0xff]  }
  0x6f   :  { %2392 = vmatpush1.bf16.msra.mxu1 %v3615_v58  ;;  %v3697_v58 = vld [vmem:[%s5051_s1 + $0x260] ss:$12 sps:$4 sm:$0xff]  }
  0x70   :  { %2474 = vmatpush1.bf16.msra.mxu0 %v3618_v59  ;;  %2393 = vmatprep.subr.bf16.mxu1 %v3623_v60  ;;  %v3694_v59 = vld [vmem:[%s5051_s1 + $0x6d8] ss:$12 sps:$4 sm:$0xff]   ;;  %v3698_v60 = vld [vmem:[%s5051_s1 + $0x1a0] ss:$12 sps:$4 sm:$0xff]  }
  0x71   :  { %2475 = vmatprep.subr.bf16.mxu0 %v3626_v61  ;;  %v3701_v61 = vld [vmem:[%s5051_s1 + $0x6f4] ss:$12 sps:$4 sm:$0xff]  }
  0x73   :  { %2394 = vmatpush1.bf16.msra.mxu1 %v3621_v62  ;;  %v3699_v62 = vld [vmem:[%s5051_s1 + $0x6f0] ss:$12 sps:$4 sm:$0xff]  }
  0x74   :  { %2476 = vmatpush1.bf16.msra.mxu0 %v3624_v63  ;;  %2395 = vmatprep.subr.bf16.mxu1 %v3629_v0  ;;  %v3703_v63 = vld [vmem:[%s5051_s1 + $0x1b8] ss:$12 sps:$4 sm:$0xff]  }
  0x75   :  { %2477 = vmatprep.subr.bf16.mxu0 %v3632_v1  ;;  %v3706_v0 = vld [vmem:[%s5051_s1 + $0x70c] ss:$12 sps:$4 sm:$0xff]   ;;  %v3707_v1 = vld [vmem:[%s5051_s1 + $0x290] ss:$12 sps:$4 sm:$0xff]  }
  0x77   :  { %2396 = vmatpush1.bf16.msra.mxu1 %v3627_v2  ;;  %v3708_v2 = vld [vmem:[%s5051_s1 + $0x1d0] ss:$12 sps:$4 sm:$0xff]  }
  0x78   :  { %2478 = vmatpush1.bf16.msra.mxu0 %v3630_v3  ;;  %2397 = vmatprep.subr.bf16.mxu1 %v3635_v4  ;;  %v3711_v3 = vld [vmem:[%s5051_s1 + $0x724] ss:$12 sps:$4 sm:$0xff]   ;;  %v3712_v4 = vld [vmem:[%s5051_s1 + $0x2a8] ss:$12 sps:$4 sm:$0xff]  }
  0x79   :  { %2479 = vmatprep.subr.bf16.mxu0 %v3638_v5  ;;  %v3709_v5 = vld [vmem:[%s5051_s1 + $0x720] ss:$12 sps:$4 sm:$0xff]  }
  0x7b   :  { %2398 = vmatpush1.bf16.msra.mxu1 %v3633_v8  ;;  %v3713_v8 = vld [vmem:[%s5051_s1 + $0x1e8] ss:$12 sps:$4 sm:$0xff]  }
  0x7c   :  { %2480 = vmatpush1.bf16.msra.mxu0 %v3636_v9  ;;  %2399 = vmatprep.subr.bf16.mxu1 %v3641_v10  ;;  %v3716_v9 = vld [vmem:[%s5051_s1 + $0x73c] ss:$12 sps:$4 sm:$0xff]   ;;  %v3717_v10 = vld [vmem:[%s5051_s1 + $0x2c0] ss:$12 sps:$4 sm:$0xff]  }
  0x7d   :  { %2481 = vmatprep.subr.bf16.mxu0 %v3644_v11  ;;  %v3714_v11 = vld [vmem:[%s5051_s1 + $0x738] ss:$12 sps:$4 sm:$0xff]  }
  0x7f   :  { %2400 = vmatpush1.bf16.msra.mxu1 %v3639_v12  ;;  %v3718_v12 = vld [vmem:[%s5051_s1 + $0x200] ss:$12 sps:$4 sm:$0xff]  }
  0x80   :  { %2482 = vmatpush1.bf16.msra.mxu0 %v3642_v13  ;;  %3271 = vmatprep.subr.bf16.mxu1 %v3652_v15  ;;  %v3721_v13 = vld [vmem:[%s5051_s1 + $0x754] ss:$12 sps:$4 sm:$0xff]   ;;  %v3719_v15 = vld [vmem:[%s5051_s1 + $0x750] ss:$12 sps:$4 sm:$0xff]  }
  0x81   :  { %2492 = vmatprep.subr.bf16.mxu0 %v3651_v14  ;;  %v3722_v14 = vld [vmem:[%s5051_s1 + $0x2d8] ss:$12 sps:$4 sm:$0xff]  }
  0x82   :  { %2402 = vmatmul.mubr.bf16.vlgmr.msra.gmra.mrb[0].mxu1 %v4361_v16 }
  0x83   :  { %2484 = vmatmul.mubr.bf16.vlgmr.msra.gmra.mrb[0].mxu0 %v4365_v17  ;;  %3272 = vmatpush3.bf16.msra.mxu1 %v3653_v19  ;;  %v3726_v19 = vld [vmem:[%s5051_s1 + $0x76c] ss:$12 sps:$4 sm:$0xff]  }
  0x84   :  { %2493 = vmatpush1.bf16.msra.mxu0 %v3649_v18  ;;  %3273 = vmatprep.subr.bf16.mxu1 %v3657_v21  ;;  %v3723_v18 = vld [vmem:[%s5051_s1 + $0x218] ss:$12 sps:$4 sm:$0xff]   ;;  %v3724_v21 = vld [vmem:[%s5051_s1 + $0x768] ss:$12 sps:$4 sm:$0xff]  }
  0x85   :  { %2494 = vmatprep.subr.bf16.mxu0 %v3656_v20  ;;  %2647 = vmatprep.mubr.bf16.mxu1 %v4075_v48  ;;  %v3667_v48 = vld [vmem:[%s5051_s1 + $0x110] ss:$12 sps:$4 sm:$0xff]  }
  0x86   :  { %2524 = vmatprep.mubr.bf16.mxu0 %v4425_v34  ;;  %v3727_v20 = vld [vmem:[%s5051_s1 + $0x2f0] ss:$12 sps:$4 sm:$0xff]  }
  0x87   :  { %3274 = vmatpush3.bf16.msra.mxu1 %v3658_v23  ;;  %v3733_v23 = vld [vmem:[%s5051_s1 + $0x784] ss:$12 sps:$4 sm:$0xff]  }
  0x88   :  { %2495 = vmatpush1.bf16.msra.mxu0 %v3654_v22  ;;  %3275 = vmatprep.subr.bf16.mxu1 %v3662_v25  ;;  %v3728_v22 = vld [vmem:[%s5051_s1 + $0x230] ss:$12 sps:$4 sm:$0xff]   ;;  %v4576_v25 = vcombine.low %v4415_v31, %v4415_v31 }
  0x89   :  { %2496 = vmatprep.subr.bf16.mxu0 %v3661_v24  ;;  %v3734_v24 = vld [vmem:[%s5051_s1 + $0x3c8] ss:$12 sps:$4 sm:$0xff]  }
  0x8b   :  { %3276 = vmatpush3.bf16.msra.mxu1 %v3663_v27  ;;  %v3735_v27 = vld [vmem:[%s5051_s1 + $0x308] ss:$12 sps:$4 sm:$0xff]  }
  0x8c   :  { %2497 = vmatpush1.bf16.msra.mxu0 %v3659_v26  ;;  %3277 = vmatprep.subr.bf16.mxu1 %v3667_v48  ;;  %v3731_v26 = vld [vmem:[%s5051_s1 + $0x780] ss:$12 sps:$4 sm:$0xff]  }
  0x8d   :  { %2498 = vmatprep.subr.bf16.mxu0 %v3666_v28  ;;  %v3738_v28 = vld [vmem:[%s5051_s1 + $0x79c] ss:$12 sps:$4 sm:$0xff]   ;;  %v3739_v48 = vld [vmem:[%s5051_s1 + $0x3e0] ss:$12 sps:$4 sm:$0xff]  }
  0x8f   :  { %3278 = vmatpush3.bf16.msra.mxu1 %v3668_v30  ;;  %v3736_v30 = vld [vmem:[%s5051_s1 + $0x798] ss:$12 sps:$4 sm:$0xff]  }
  0x90   :  { %2499 = vmatpush1.bf16.msra.mxu0 %v3664_v29  ;;  %3279 = vmatprep.subr.bf16.mxu1 %v3672_v33  ;;  %v4593_v29 = vld [vmem:[%s5052_s0 + $0x28] sm:$0xff]  ;;  %v3743_v33 = vld [vmem:[%s5051_s1 + $0x7b4] ss:$12 sps:$4 sm:$0xff]  }
  0x91   :  { %2500 = vmatprep.subr.bf16.mxu0 %v3671_v32  ;;  %v4600_v31 = vcombine.high %v4593_v29, %v4593_v29  ;;  %v3740_v32 = vld [vmem:[%s5051_s1 + $0x320] ss:$12 sps:$4 sm:$0xff]  }
  0x93   :  { %3280 = vmatpush3.bf16.msra.mxu1 %v3673_v38  ;;  %v3745_v38 = vld [vmem:[%s5051_s1 + $0x338] ss:$12 sps:$4 sm:$0xff]  }
  0x94   :  { %2501 = vmatpush1.bf16.msra.mxu0 %v3669_v35  ;;  %3281 = vmatprep.subr.bf16.mxu1 %v3677_v40  ;;  %v3744_v35 = vld [vmem:[%s5051_s1 + $0x3f8] ss:$12 sps:$4 sm:$0xff]   ;;  %v3746_v40 = vld [vmem:[%s5051_s1 + $0x7c8] ss:$12 sps:$4 sm:$0xff]  }
  0x95   :  { %2502 = vmatprep.subr.bf16.mxu0 %v3676_v39  ;;  %v3748_v39 = vld [vmem:[%s5051_s1 + $0x7cc] ss:$12 sps:$4 sm:$0xff]  }
  0x97   :  { %3282 = vmatpush3.bf16.msra.mxu1 %v3678_v42  ;;  %v3753_v42 = vld [vmem:[%s5051_s1 + $0x7e4] ss:$12 sps:$4 sm:$0xff]  }
  0x98   :  { %2503 = vmatpush1.bf16.msra.mxu0 %v3674_v41  ;;  %3283 = vmatprep.subr.bf16.mxu1 %v3682_v44  ;;  %v3750_v41 = vld [vmem:[%s5051_s1 + $0x350] ss:$12 sps:$4 sm:$0xff]   ;;  %v3751_v44 = vld [vmem:[%s5051_s1 + $0x7e0] ss:$12 sps:$4 sm:$0xff]  }
  0x99   :  { %2504 = vmatprep.subr.bf16.mxu0 %v3681_v43  ;;  %v3754_v43 = vld [vmem:[%s5051_s1 + $0x428] ss:$12 sps:$4 sm:$0xff]  }
  0x9b   :  { %3284 = vmatpush3.bf16.msra.mxu1 %v3683_v46  ;;  %v3758_v46 = vld [vmem:[%s5051_s1 + $0x7fc] ss:$12 sps:$4 sm:$0xff]  }
  0x9c   :  { %2505 = vmatpush1.bf16.msra.mxu0 %v3679_v45  ;;  %3285 = vmatprep.subr.bf16.mxu1 %v3687_v49  ;;  %v3755_v45 = vld [vmem:[%s5051_s1 + $0x368] ss:$12 sps:$4 sm:$0xff]   ;;  %v3756_v49 = vld [vmem:[%s5051_s1 + $0x7f8] ss:$12 sps:$4 sm:$0xff]  }
  0x9d   :  { %2506 = vmatprep.subr.bf16.mxu0 %v3686_v47  ;;  %v3759_v47 = vld [vmem:[%s5051_s1 + $0x440] ss:$12 sps:$4 sm:$0xff]  }
  0x9f   :  { %3286 = vmatpush3.bf16.msra.mxu1 %v3688_v51  ;;  %v3763_v51 = vld [vmem:[%s5051_s1 + $0x814] ss:$12 sps:$4 sm:$0xff]  }
  0xa0   :  { %2507 = vmatpush1.bf16.msra.mxu0 %v3684_v50  ;;  %3293 = vmatprep.subr.bf16.mxu1 %v3692_v54  ;;  %v3760_v50 = vld [vmem:[%s5051_s1 + $0x380] ss:$12 sps:$4 sm:$0xff]   ;;  %v3761_v54 = vld [vmem:[%s5051_s1 + $0x810] ss:$12 sps:$4 sm:$0xff]  }
  0xa1   :  { %2508 = vmatprep.subr.bf16.mxu0 %v3691_v52  ;;  %v3764_v52 = vld [vmem:[%s5051_s1 + $0x458] ss:$12 sps:$4 sm:$0xff]  }
  0xa2   :  { %2648 = vmatmul.mubr.bf16.vlgmr.msra.gmra.mrb[4].mxu1 %v4141_v6  ;;  %v3702_v6 = vld [vmem:[%s5051_s1 + $0x278] ss:$12 sps:$4 sm:$0xff]  }
  0xa3   :  { %3294 = vmatpush3.bf16.msra.mxu1 %v3693_v56  ;;  %2687 = vmatprep.mubr.bf16.mxu1 %v4237_v36  ;;  %v3704_v36 = vld [vmem:[%s5051_s1 + $0x708] ss:$12 sps:$4 sm:$0xff]   ;;  %v3768_v56 = vld [vmem:[%s5051_s1 + $0x82c] ss:$12 sps:$4 sm:$0xff]  }
  0xa4   :  { %2509 = vmatpush1.bf16.msra.mxu0 %v3689_v55  ;;  %3295 = vmatprep.subr.bf16.mxu1 %v3697_v58  ;;  %v3765_v55 = vld [vmem:[%s5051_s1 + $0x398] ss:$12 sps:$4 sm:$0xff]   ;;  %v3766_v58 = vld [vmem:[%s5051_s1 + $0x828] ss:$12 sps:$4 sm:$0xff]  }
  0xa5   :  { %2510 = vmatprep.subr.bf16.mxu0 %v3696_v57  ;;  %v3769_v57 = vld [vmem:[%s5051_s1 + $0x470] ss:$12 sps:$4 sm:$0xff]  }
  0xa7   :  { %3296 = vmatpush3.bf16.msra.mxu1 %v3698_v60  ;;  %v3773_v60 = vld [vmem:[%s5051_s1 + $0x844] ss:$12 sps:$4 sm:$0xff]  }
  0xa8   :  { %2511 = vmatpush1.bf16.msra.mxu0 %v3694_v59  ;;  %3297 = vmatprep.subr.bf16.mxu1 %v3702_v6  ;;  %v3770_v59 = vld [vmem:[%s5051_s1 + $0x3b0] ss:$12 sps:$4 sm:$0xff]   ;;  %v3771_v6 = vld [vmem:[%s5051_s1 + $0x840] ss:$12 sps:$4 sm:$0xff]  }
  0xa9   :  { %2512 = vmatprep.subr.bf16.mxu0 %v3701_v61  ;;  %v3774_v61 = vld [vmem:[%s5051_s1 + $0x548] ss:$12 sps:$4 sm:$0xff]  }
  0xab   :  { %3298 = vmatpush3.bf16.msra.mxu1 %v3703_v63  ;;  %v3778_v63 = vld [vmem:[%s5051_s1 + $0x85c] ss:$12 sps:$4 sm:$0xff]  }
  0xac   :  { %2513 = vmatpush1.bf16.msra.mxu0 %v3699_v62  ;;  %3299 = vmatprep.subr.bf16.mxu1 %v3707_v1  ;;  %v3775_v62 = vld [vmem:[%s5051_s1 + $0x488] ss:$12 sps:$4 sm:$0xff]   ;;  %v3776_v1 = vld [vmem:[%s5051_s1 + $0x858] ss:$12 sps:$4 sm:$0xff]  }
  0xad   :  { %2514 = vmatprep.subr.bf16.mxu0 %v3706_v0  ;;  %v3779_v0 = vld [vmem:[%s5051_s1 + $0x560] ss:$12 sps:$4 sm:$0xff]  }
  0xaf   :  { %3300 = vmatpush3.bf16.msra.mxu1 %v3708_v2  ;;  %v3783_v2 = vld [vmem:[%s5051_s1 + $0x874] ss:$12 sps:$4 sm:$0xff]  }
  0xb0   :  { %2515 = vmatpush1.bf16.msra.mxu0 %v3704_v36  ;;  %3301 = vmatprep.subr.bf16.mxu1 %v3712_v4  ;;  %v3780_v36 = vld [vmem:[%s5051_s1 + $0x4a0] ss:$12 sps:$4 sm:$0xff]   ;;  %v3785_v4 = vld [vmem:[%s5051_s1 + $0x4b8] ss:$12 sps:$4 sm:$0xff]  }
  0xb1   :  { %2516 = vmatprep.subr.bf16.mxu0 %v3711_v3  ;;  %v3781_v3 = vld [vmem:[%s5051_s1 + $0x870] ss:$12 sps:$4 sm:$0xff]  }
  0xb3   :  { %3302 = vmatpush3.bf16.msra.mxu1 %v3713_v8  ;;  %v3786_v8 = vld [vmem:[%s5051_s1 + $0x888] ss:$12 sps:$4 sm:$0xff]  }
  0xb4   :  { %2517 = vmatpush1.bf16.msra.mxu0 %v3709_v5  ;;  %3303 = vmatprep.subr.bf16.mxu1 %v3717_v10  ;;  %v3788_v5 = vld [vmem:[%s5051_s1 + $0x88c] ss:$12 sps:$4 sm:$0xff]   ;;  %v3793_v10 = vld [vmem:[%s5051_s1 + $0x8a4] ss:$12 sps:$4 sm:$0xff]  }
  0xb5   :  { %2518 = vmatprep.subr.bf16.mxu0 %v3716_v9  ;;  %v3790_v9 = vld [vmem:[%s5051_s1 + $0x4d0] ss:$12 sps:$4 sm:$0xff]  }
  0xb7   :  { %3304 = vmatpush3.bf16.msra.mxu1 %v3718_v12  ;;  %v3791_v12 = vld [vmem:[%s5051_s1 + $0x8a0] ss:$12 sps:$4 sm:$0xff]  }
  0xb8   :  { %2519 = vmatpush1.bf16.msra.mxu0 %v3714_v11  ;;  %3305 = vmatprep.subr.bf16.mxu1 %v3722_v14  ;;  %v3794_v11 = vld [vmem:[%s5051_s1 + $0x5a8] ss:$12 sps:$4 sm:$0xff]  }
  0xb9   :  { %2520 = vmatprep.subr.bf16.mxu0 %v3721_v13  ;;  %v3795_v13 = vld [vmem:[%s5051_s1 + $0x4e8] ss:$12 sps:$4 sm:$0xff]  }
  0xba   :  { %v3798_v14 = vld [vmem:[%s5051_s1 + $0x8bc] ss:$12 sps:$4 sm:$0xff]  }
  0xbb   :  { %3306 = vmatpush3.bf16.msra.mxu1 %v3723_v18  ;;  %v3796_v18 = vld [vmem:[%s5051_s1 + $0x8b8] ss:$12 sps:$4 sm:$0xff]  }
  0xbc   :  { %2521 = vmatpush1.bf16.msra.mxu0 %v3719_v15  ;;  %3307 = vmatprep.subr.bf16.mxu1 %v3727_v20  ;;  %v3799_v15 = vld [vmem:[%s5051_s1 + $0x5c0] ss:$12 sps:$4 sm:$0xff]  }
  0xbd   :  { %2522 = vmatprep.subr.bf16.mxu0 %v3726_v19  ;;  %v3800_v19 = vld [vmem:[%s5051_s1 + $0x500] ss:$12 sps:$4 sm:$0xff]  }
  0xbe   :  { %v3803_v20 = vld [vmem:[%s5051_s1 + $0x8d4] ss:$12 sps:$4 sm:$0xff]  }
  0xbf   :  { %3308 = vmatpush3.bf16.msra.mxu1 %v3728_v22  ;;  %v3801_v22 = vld [vmem:[%s5051_s1 + $0x8d0] ss:$12 sps:$4 sm:$0xff]  }
  0xc0   :  { %2523 = vmatpush1.bf16.msra.mxu0 %v3724_v21  ;;  %3315 = vmatprep.subr.bf16.mxu1 %v3734_v24  ;;  %v3804_v21 = vld [vmem:[%s5051_s1 + $0x5d8] ss:$12 sps:$4 sm:$0xff]  }
  0xc1   :  { %2533 = vmatprep.subr.bf16.mxu0 %v3733_v23  ;;  %v3805_v23 = vld [vmem:[%s5051_s1 + $0x518] ss:$12 sps:$4 sm:$0xff]  }
  0xc2   :  { %2688 = vmatmul.mubr.bf16.vlgmr.msra.gmra.mrb[8].mxu1 %v4361_v16  ;;  %v3741_v16 = vld [vmem:[%s5051_s1 + $0x7b0] ss:$12 sps:$4 sm:$0xff]   ;;  %v3808_v24 = vld [vmem:[%s5051_s1 + $0x8ec] ss:$12 sps:$4 sm:$0xff]  }
  0xc3   :  { %2525 = vmatmul.mubr.bf16.vlgmr.msra.gmra.mrb[0].mxu0 %v4576_v25  ;;  %3316 = vmatpush3.bf16.msra.mxu1 %v3735_v27  ;;  %v3806_v27 = vld [vmem:[%s5051_s1 + $0x8e8] ss:$12 sps:$4 sm:$0xff]  }
  0xc4   :  { %2534 = vmatpush1.bf16.msra.mxu0 %v3731_v26  ;;  %3317 = vmatprep.subr.bf16.mxu1 %v3739_v48  ;;  %v3809_v26 = vld [vmem:[%s5051_s1 + $0x5f0] ss:$12 sps:$4 sm:$0xff]  }
  0xc5   :  { %2535 = vmatprep.subr.bf16.mxu0 %v3738_v28  ;;  %2727 = vmatprep.mubr.bf16.mxu1 %v4089_v53  ;;  %v3749_v53 = vld [vmem:[%s5051_s1 + $0x410] ss:$12 sps:$4 sm:$0xff]  }
  0xc6   :  { %2565 = vmatprep.mubr.bf16.mxu0 %v4600_v31  ;;  %v3810_v28 = vld [vmem:[%s5051_s1 + $0x530] ss:$12 sps:$4 sm:$0xff]  }
  0xc7   :  { %3318 = vmatpush3.bf16.msra.mxu1 %v3740_v32  ;;  %v3815_v48 = vld [vmem:[%s5051_s1 + $0x904] ss:$12 sps:$4 sm:$0xff]   ;;  %v3813_v32 = vld [vmem:[%s5051_s1 + $0x900] ss:$12 sps:$4 sm:$0xff]  }
  0xc8   :  { %2536 = vmatpush1.bf16.msra.mxu0 %v3736_v30  ;;  %3319 = vmatprep.subr.bf16.mxu1 %v3744_v35  ;;  %v3816_v30 = vld [vmem:[%s5051_s1 + $0x6c8] ss:$12 sps:$4 sm:$0xff]  }
  0xc9   :  { %2537 = vmatprep.subr.bf16.mxu0 %v3743_v33  ;;  %v4790_v33 = vcombine.low %v4593_v29, %v4593_v29  ;;  %v4795_v35 = vld [vmem:[%s5052_s0 + $0x30] sm:$0xff]  ;;  %v3821_v29 = vld [vmem:[%s5051_s1 + $0x6e0] ss:$12 sps:$4 sm:$0xff]  }
  0xcb   :  { %3320 = vmatpush3.bf16.msra.mxu1 %v3745_v38  ;;  %v3820_v38 = vld [vmem:[%s5051_s1 + $0x91c] ss:$12 sps:$4 sm:$0xff]  }
  0xcc   :  { %2538 = vmatpush1.bf16.msra.mxu0 %v3741_v16  ;;  %3321 = vmatprep.subr.bf16.mxu1 %v3749_v53  ;;  %v3817_v16 = vld [vmem:[%s5051_s1 + $0x608] ss:$12 sps:$4 sm:$0xff]   ;;  %v4811_v53 = vcombine.high %v4795_v35, %v4795_v35 }
  0xcd   :  { %2539 = vmatprep.subr.bf16.mxu0 %v3748_v39  ;;  %v3818_v39 = vld [vmem:[%s5051_s1 + $0x918] ss:$12 sps:$4 sm:$0xff]  }
  0xcf   :  { %3322 = vmatpush3.bf16.msra.mxu1 %v3750_v41  ;;  %v3825_v41 = vld [vmem:[%s5051_s1 + $0x934] ss:$12 sps:$4 sm:$0xff]  }
  0xd0   :  { %2540 = vmatpush1.bf16.msra.mxu0 %v3746_v40  ;;  %3323 = vmatprep.subr.bf16.mxu1 %v3754_v43  ;;  %v3822_v40 = vld [vmem:[%s5051_s1 + $0x620] ss:$12 sps:$4 sm:$0xff]   ;;  %v3827_v43 = vld [vmem:[%s5051_s1 + $0x638] ss:$12 sps:$4 sm:$0xff]  }
  0xd1   :  { %2541 = vmatprep.subr.bf16.mxu0 %v3753_v42  ;;  %v3826_v42 = vld [vmem:[%s5051_s1 + $0x6f8] ss:$12 sps:$4 sm:$0xff]  }
  0xd3   :  { %3324 = vmatpush3.bf16.msra.mxu1 %v3755_v45  ;;  %v3828_v45 = vld [vmem:[%s5051_s1 + $0x948] ss:$12 sps:$4 sm:$0xff]  }
  0xd4   :  { %2542 = vmatpush1.bf16.msra.mxu0 %v3751_v44  ;;  %3325 = vmatprep.subr.bf16.mxu1 %v3759_v47  ;;  %v3830_v44 = vld [vmem:[%s5051_s1 + $0x94c] ss:$12 sps:$4 sm:$0xff]   ;;  %v3835_v47 = vld [vmem:[%s5051_s1 + $0x964] ss:$12 sps:$4 sm:$0xff]  }
  0xd5   :  { %2543 = vmatprep.subr.bf16.mxu0 %v3758_v46  ;;  %v3832_v46 = vld [vmem:[%s5051_s1 + $0x650] ss:$12 sps:$4 sm:$0xff]  }
  0xd7   :  { %3326 = vmatpush3.bf16.msra.mxu1 %v3760_v50  ;;  %v3833_v50 = vld [vmem:[%s5051_s1 + $0x960] ss:$12 sps:$4 sm:$0xff]  }
  0xd8   :  { %2544 = vmatpush1.bf16.msra.mxu0 %v3756_v49  ;;  %3327 = vmatprep.subr.bf16.mxu1 %v3764_v52  ;;  %v3836_v49 = vld [vmem:[%s5051_s1 + $0x728] ss:$12 sps:$4 sm:$0xff]  }
  0xd9   :  { %2545 = vmatprep.subr.bf16.mxu0 %v3763_v51  ;;  %v3837_v51 = vld [vmem:[%s5051_s1 + $0x668] ss:$12 sps:$4 sm:$0xff]  }
  0xda   :  { %v3840_v52 = vld [vmem:[%s5051_s1 + $0x97c] ss:$12 sps:$4 sm:$0xff]  }
  0xdb   :  { %3328 = vmatpush3.bf16.msra.mxu1 %v3765_v55  ;;  %v3838_v55 = vld [vmem:[%s5051_s1 + $0x978] ss:$12 sps:$4 sm:$0xff]  }
  0xdc   :  { %2546 = vmatpush1.bf16.msra.mxu0 %v3761_v54  ;;  %3329 = vmatprep.subr.bf16.mxu1 %v3769_v57  ;;  %v3841_v54 = vld [vmem:[%s5051_s1 + $0x740] ss:$12 sps:$4 sm:$0xff]  }
  0xdd   :  { %2547 = vmatprep.subr.bf16.mxu0 %v3768_v56  ;;  %v3842_v56 = vld [vmem:[%s5051_s1 + $0x680] ss:$12 sps:$4 sm:$0xff]  }
  0xde   :  { %v3845_v57 = vld [vmem:[%s5051_s1 + $0x994] ss:$12 sps:$4 sm:$0xff]  }
  0xdf   :  { %3330 = vmatpush3.bf16.msra.mxu1 %v3770_v59  ;;  %v3843_v59 = vld [vmem:[%s5051_s1 + $0x990] ss:$12 sps:$4 sm:$0xff]  }
  0xe0   :  { %2548 = vmatpush1.bf16.msra.mxu0 %v3766_v58  ;;  %3337 = vmatprep.subr.bf16.mxu1 %v3774_v61  ;;  %v3846_v58 = vld [vmem:[%s5051_s1 + $0x758] ss:$12 sps:$4 sm:$0xff]  }
  0xe1   :  { %2549 = vmatprep.subr.bf16.mxu0 %v3773_v60  ;;  %v3847_v60 = vld [vmem:[%s5051_s1 + $0x698] ss:$12 sps:$4 sm:$0xff]  }
  0xe2   :  { %2728 = vmatmul.mubr.bf16.vlgmr.msra.gmra.mrb[12].mxu1 %v4143_v7  ;;  %v3784_v7 = vld [vmem:[%s5051_s1 + $0x578] ss:$12 sps:$4 sm:$0xff]  }
  0xe3   :  { %3338 = vmatpush3.bf16.msra.mxu1 %v3775_v62  ;;  %2767 = vmatprep.mubr.bf16.mxu1 %v4241_v37  ;;  %v3789_v37 = vld [vmem:[%s5051_s1 + $0x590] ss:$12 sps:$4 sm:$0xff]   ;;  %v3850_v61 = vld [vmem:[%s5051_s1 + $0x9ac] ss:$12 sps:$4 sm:$0xff]   ;;  %v3848_v62 = vld [vmem:[%s5051_s1 + $0x9a8] ss:$12 sps:$4 sm:$0xff]  }
  0xe4   :  { %2550 = vmatpush1.bf16.msra.mxu0 %v3771_v6  ;;  %3339 = vmatprep.subr.bf16.mxu1 %v3779_v0  ;;  %v3851_v6 = vld [vmem:[%s5051_s1 + $0x770] ss:$12 sps:$4 sm:$0xff]  }
  0xe5   :  { %2551 = vmatprep.subr.bf16.mxu0 %v3778_v63  ;;  %v3852_v63 = vld [vmem:[%s5051_s1 + $0x6b0] ss:$12 sps:$4 sm:$0xff]  }
  0xe6   :  { %v3855_v0 = vld [vmem:[%s5051_s1 + $0x9c4] ss:$12 sps:$4 sm:$0xff]  }
  0xe7   :  { %3340 = vmatpush3.bf16.msra.mxu1 %v3780_v36  ;;  %v3853_v36 = vld [vmem:[%s5051_s1 + $0x9c0] ss:$12 sps:$4 sm:$0xff]  }
  0xe8   :  { %2552 = vmatpush1.bf16.msra.mxu0 %v3776_v1  ;;  %3341 = vmatprep.subr.bf16.mxu1 %v3784_v7  ;;  %v3856_v1 = vld [vmem:[%s5051_s1 + $0x848] ss:$12 sps:$4 sm:$0xff]  }
  0xe9   :  { %2553 = vmatprep.subr.bf16.mxu0 %v3783_v2  ;;  %v3857_v2 = vld [vmem:[%s5051_s1 + $0x788] ss:$12 sps:$4 sm:$0xff]  }
  0xea   :  { %v3860_v7 = vld [vmem:[%s5051_s1 + $0x9dc] ss:$12 sps:$4 sm:$0xff]  }
  0xeb   :  { %3342 = vmatpush3.bf16.msra.mxu1 %v3785_v4  ;;  %v3858_v4 = vld [vmem:[%s5051_s1 + $0x9d8] ss:$12 sps:$4 sm:$0xff]  }
  0xec   :  { %2554 = vmatpush1.bf16.msra.mxu0 %v3781_v3  ;;  %3343 = vmatprep.subr.bf16.mxu1 %v3789_v37  ;;  %v3861_v3 = vld [vmem:[%s5051_s1 + $0x860] ss:$12 sps:$4 sm:$0xff]  }
  0xed   :  { %2555 = vmatprep.subr.bf16.mxu0 %v3788_v5  ;;  %v3862_v5 = vld [vmem:[%s5051_s1 + $0x7a0] ss:$12 sps:$4 sm:$0xff]  }
  0xee   :  { %v3865_v37 = vld [vmem:[%s5051_s1 + $0x9f4] ss:$12 sps:$4 sm:$0xff]  }
  0xef   :  { %3344 = vmatpush3.bf16.msra.mxu1 %v3790_v9  ;;  %v3867_v9 = vld [vmem:[%s5051_s1 + $0x7b8] ss:$12 sps:$4 sm:$0xff]  }
  0xf0   :  { %2556 = vmatpush1.bf16.msra.mxu0 %v3786_v8  ;;  %3345 = vmatprep.subr.bf16.mxu1 %v3794_v11  ;;  %v3863_v8 = vld [vmem:[%s5051_s1 + $0x9f0] ss:$12 sps:$4 sm:$0xff]   ;;  %v3868_v11 = vld [vmem:[%s5051_s1 + $0xa08] ss:$12 sps:$4 sm:$0xff]  }
  0xf1   :  { %2557 = vmatprep.subr.bf16.mxu0 %v3793_v10  ;;  %v3870_v10 = vld [vmem:[%s5051_s1 + $0xa0c] ss:$12 sps:$4 sm:$0xff]  }
  0xf3   :  { %3346 = vmatpush3.bf16.msra.mxu1 %v3795_v13  ;;  %v3875_v13 = vld [vmem:[%s5051_s1 + $0xa24] ss:$12 sps:$4 sm:$0xff]  }
  0xf4   :  { %2558 = vmatpush1.bf16.msra.mxu0 %v3791_v12  ;;  %3347 = vmatprep.subr.bf16.mxu1 %v3799_v15  ;;  %v3872_v12 = vld [vmem:[%s5051_s1 + $0x7d0] ss:$12 sps:$4 sm:$0xff]   ;;  %v3873_v15 = vld [vmem:[%s5051_s1 + $0xa20] ss:$12 sps:$4 sm:$0xff]  }
  0xf5   :  { %2559 = vmatprep.subr.bf16.mxu0 %v3798_v14  ;;  %v3876_v14 = vld [vmem:[%s5051_s1 + $0x8a8] ss:$12 sps:$4 sm:$0xff]  }
  0xf7   :  { %3348 = vmatpush3.bf16.msra.mxu1 %v3800_v19  ;;  %v3880_v19 = vld [vmem:[%s5051_s1 + $0xa3c] ss:$12 sps:$4 sm:$0xff]  }
  0xf8   :  { %2560 = vmatpush1.bf16.msra.mxu0 %v3796_v18  ;;  %3349 = vmatprep.subr.bf16.mxu1 %v3804_v21  ;;  %v3877_v18 = vld [vmem:[%s5051_s1 + $0x7e8] ss:$12 sps:$4 sm:$0xff]   ;;  %v3878_v21 = vld [vmem:[%s5051_s1 + $0xa38] ss:$12 sps:$4 sm:$0xff]  }
  0xf9   :  { %2561 = vmatprep.subr.bf16.mxu0 %v3803_v20  ;;  %v3881_v20 = vld [vmem:[%s5051_s1 + $0x8c0] ss:$12 sps:$4 sm:$0xff]  }
  0xfb   :  { %3350 = vmatpush3.bf16.msra.mxu1 %v3805_v23  ;;  %v3885_v23 = vld [vmem:[%s5051_s1 + $0xa54] ss:$12 sps:$4 sm:$0xff]  }
  0xfc   :  { %2562 = vmatpush1.bf16.msra.mxu0 %v3801_v22  ;;  %3351 = vmatprep.subr.bf16.mxu1 %v3809_v26  ;;  %v3882_v22 = vld [vmem:[%s5051_s1 + $0x800] ss:$12 sps:$4 sm:$0xff]   ;;  %v3883_v26 = vld [vmem:[%s5051_s1 + $0xa50] ss:$12 sps:$4 sm:$0xff]  }
  0xfd   :  { %2563 = vmatprep.subr.bf16.mxu0 %v3808_v24  ;;  %v3886_v24 = vld [vmem:[%s5051_s1 + $0x8d8] ss:$12 sps:$4 sm:$0xff]  }
  0xff   :  { %3352 = vmatpush3.bf16.msra.mxu1 %v3810_v28  ;;  %v3890_v28 = vld [vmem:[%s5051_s1 + $0xa6c] ss:$12 sps:$4 sm:$0xff]  }
 0x100   :  { %2564 = vmatpush1.bf16.msra.mxu0 %v3806_v27  ;;  %3359 = vmatprep.subr.bf16.mxu1 %v3816_v30  ;;  %v3887_v27 = vld [vmem:[%s5051_s1 + $0x818] ss:$12 sps:$4 sm:$0xff]   ;;  %v3888_v30 = vld [vmem:[%s5051_s1 + $0xa68] ss:$12 sps:$4 sm:$0xff]  }
 0x101   :  { %2574 = vmatprep.subr.bf16.mxu0 %v3815_v48  ;;  %v3891_v48 = vld [vmem:[%s5051_s1 + $0x8f0] ss:$12 sps:$4 sm:$0xff]  }
 0x102   :  { %2768 = vmatmul.mubr.bf16.vlgmr.msra.gmra.mrb[16].mxu1 %v4365_v17  ;;  %v3823_v17 = vld [vmem:[%s5051_s1 + $0x930] ss:$12 sps:$4 sm:$0xff]  }
 0x103   :  { %2566 = vmatmul.mubr.bf16.vlgmr.msra.gmra.mrb[0].mxu0 %v4790_v33  ;;  %3360 = vmatpush3.bf16.msra.mxu1 %v3817_v16  ;;  %v3895_v16 = vld [vmem:[%s5051_s1 + $0x9c8] ss:$12 sps:$4 sm:$0xff]  }
 0x104   :  { %2575 = vmatpush1.bf16.msra.mxu0 %v3813_v32  ;;  %3361 = vmatprep.subr.bf16.mxu1 %v3821_v29  ;;  %v3892_v32 = vld [vmem:[%s5051_s1 + $0x830] ss:$12 sps:$4 sm:$0xff]   ;;  %v3896_v29 = vld [vmem:[%s5051_s1 + $0x908] ss:$12 sps:$4 sm:$0xff]  }
 0x105   :  { %2576 = vmatprep.subr.bf16.mxu0 %v3820_v38  ;;  %2807 = vmatprep.mubr.bf16.mxu1 %v4425_v34  ;;  %v3831_v34 = vld [vmem:[%s5051_s1 + $0x710] ss:$12 sps:$4 sm:$0xff]   ;;  %v2929_v38 = vcombine.low %v4795_v35, %v4795_v35  ;;  %v3899_v35 = vld [vmem:[%s5051_s1 + $0x9f8] ss:$12 sps:$4 sm:$0xff]  }
 0x106   :  { %2606 = vmatprep.mubr.bf16.mxu0 %v4811_v53 }
 0x107   :  { %3362 = vmatpush3.bf16.msra.mxu1 %v3822_v40  ;;  %v3898_v40 = vld [vmem:[%s5051_s1 + $0x920] ss:$12 sps:$4 sm:$0xff]  }
 0x108   :  { %2577 = vmatpush1.bf16.msra.mxu0 %v3818_v39  ;;  %3363 = vmatprep.subr.bf16.mxu1 %v3826_v42  ;;  %v3897_v39 = vld [vmem:[%s5051_s1 + $0x9e0] ss:$12 sps:$4 sm:$0xff]   ;;  %v3903_v42 = vld [vmem:[%s5051_s1 + $0xa28] ss:$12 sps:$4 sm:$0xff]  }
 0x109   :  { %2578 = vmatprep.subr.bf16.mxu0 %v3825_v41  ;;  %v3900_v41 = vld [vmem:[%s5051_s1 + $0x938] ss:$12 sps:$4 sm:$0xff]  }
 0x10b   :  { %3364 = vmatpush3.bf16.msra.mxu1 %v3827_v43  ;;  %v3905_v43 = vld [vmem:[%s5051_s1 + $0xa40] ss:$12 sps:$4 sm:$0xff]  }
 0x10c   :  { %2579 = vmatpush1.bf16.msra.mxu0 %v3823_v17  ;;  %3365 = vmatprep.subr.bf16.mxu1 %v3831_v34  ;;  %v3904_v17 = vld [vmem:[%s5051_s1 + $0x968] ss:$12 sps:$4 sm:$0xff]   ;;  %v3907_v34 = vld [vmem:[%s5051_s1 + $0xa58] ss:$12 sps:$4 sm:$0xff]  }
 0x10d   :  { %2580 = vmatprep.subr.bf16.mxu0 %v3830_v44  ;;  %v3906_v44 = vld [vmem:[%s5051_s1 + $0x980] ss:$12 sps:$4 sm:$0xff]  }
 0x10f   :  { %3366 = vmatpush3.bf16.msra.mxu1 %v3832_v46 }
 0x110   :  { %2581 = vmatpush1.bf16.msra.mxu0 %v3828_v45  ;;  %3367 = vmatprep.subr.bf16.mxu1 %v3836_v49  ;;  %v3908_v49 = vld [vmem:[%s5051_s1 + $0x998] ss:$12 sps:$4 sm:$0xff]  }
 0x111   :  { %2582 = vmatprep.subr.bf16.mxu0 %v3835_v47 }
 0x113   :  { %3368 = vmatpush3.bf16.msra.mxu1 %v3837_v51  ;;  %v3909_v51 = vld [vmem:[%s5051_s1 + $0xa70] ss:$12 sps:$4 sm:$0xff]  }
 0x114   :  { %2583 = vmatpush1.bf16.msra.mxu0 %v3833_v50  ;;  %3369 = vmatprep.subr.bf16.mxu1 %v3841_v54 }
 0x115   :  { %2584 = vmatprep.subr.bf16.mxu0 %v3840_v52  ;;  %v3910_v52 = vld [vmem:[%s5051_s1 + $0x9b0] ss:$12 sps:$4 sm:$0xff]  }
 0x117   :  { %3370 = vmatpush3.bf16.msra.mxu1 %v3842_v56 }
 0x118   :  { %2585 = vmatpush1.bf16.msra.mxu0 %v3838_v55  ;;  %3371 = vmatprep.subr.bf16.mxu1 %v3846_v58 }
 0x119   :  { %2586 = vmatprep.subr.bf16.mxu0 %v3845_v57 }
 0x11b   :  { %3372 = vmatpush3.bf16.msra.mxu1 %v3847_v60 }
 0x11c   :  { %2587 = vmatpush1.bf16.msra.mxu0 %v3843_v59  ;;  %3373 = vmatprep.subr.bf16.mxu1 %v3851_v6  ;;  %v472_v59 = vlaneseq  ;;  %v470_v6 = vld [vmem:[%s5053_s2] sm:$0x7] }
 0x11d   :  { %2588 = vmatprep.subr.bf16.mxu0 %v3850_v61 }
 0x11e   :  { %v473_v60 = vshrl.u32 %v472_v59, 7 }
 0x11f   :  { %3374 = vmatpush3.bf16.msra.mxu1 %v3852_v63 }
 0x120   :  { %2589 = vmatpush1.bf16.msra.mxu0 %v3848_v62  ;;  %3381 = vmatprep.subr.bf16.mxu1 %v3856_v1  ;;  %v482_v61 = vsub.s32 2, %v473_v60 }
 0x121   :  { %2590 = vmatprep.subr.bf16.mxu0 %v3855_v0 }
 0x122   :  { %2808 = vmatmul.mubr.bf16.vlgmr.msra.gmra.mrb[20].mxu1 %v4576_v25  ;;  %v3866_v25 = vld [vmem:[%s5051_s1 + $0x878] ss:$12 sps:$4 sm:$0xff]   ;;  %v483_v62 = vrot.slane %v470_v6, %v482_v61 }
 0x123   :  { %3382 = vmatpush3.bf16.msra.mxu1 %v3857_v2  ;;  %2847 = vmatprep.mubr.bf16.mxu1 %v4600_v31  ;;  %v3871_v31 = vld [vmem:[%s5051_s1 + $0x890] ss:$12 sps:$4 sm:$0xff]  }
 0x124   :  { %2591 = vmatpush1.bf16.msra.mxu0 %v3853_v36  ;;  %3383 = vmatprep.subr.bf16.mxu1 %v3861_v3 }
 0x125   :  { %2592 = vmatprep.subr.bf16.mxu0 %v3860_v7 }
 0x127   :  { %3384 = vmatpush3.bf16.msra.mxu1 %v3862_v5 }
 0x128   :  { %2593 = vmatpush1.bf16.msra.mxu0 %v3858_v4  ;;  %3385 = vmatprep.subr.bf16.mxu1 %v3866_v25 }
 0x129   :  { %2594 = vmatprep.subr.bf16.mxu0 %v3865_v37 }
 0x12b   :  { %3386 = vmatpush3.bf16.msra.mxu1 %v3867_v9 }
 0x12c   :  { %2595 = vmatpush1.bf16.msra.mxu0 %v3863_v8  ;;  %3387 = vmatprep.subr.bf16.mxu1 %v3871_v31 }
 0x12d   :  { %2596 = vmatprep.subr.bf16.mxu0 %v3870_v10 }
 0x12f   :  { %3388 = vmatpush3.bf16.msra.mxu1 %v3872_v12 }
 0x130   :  { %2597 = vmatpush1.bf16.msra.mxu0 %v3868_v11  ;;  %3389 = vmatprep.subr.bf16.mxu1 %v3876_v14 }
 0x131   :  { %2598 = vmatprep.subr.bf16.mxu0 %v3875_v13 }
 0x133   :  { %3390 = vmatpush3.bf16.msra.mxu1 %v3877_v18 }
 0x134   :  { %2599 = vmatpush1.bf16.msra.mxu0 %v3873_v15  ;;  %3391 = vmatprep.subr.bf16.mxu1 %v3881_v20 }
 0x135   :  { %2600 = vmatprep.subr.bf16.mxu0 %v3880_v19 }
 0x137   :  { %3392 = vmatpush3.bf16.msra.mxu1 %v3882_v22 }
 0x138   :  { %2601 = vmatpush1.bf16.msra.mxu0 %v3878_v21  ;;  %3393 = vmatprep.subr.bf16.mxu1 %v3886_v24  ;;  %v478_v24 = vsub.s32 1, %v473_v60 }
 0x139   :  { %2602 = vmatprep.subr.bf16.mxu0 %v3885_v23  ;;  %v474_v23 = vsub.s32 0, %v473_v60 }
 0x13b   :  { %3394 = vmatpush3.bf16.msra.mxu1 %v3887_v27  ;;  %v479_v27 = vrot.slane %v470_v6, %v478_v24 }
 0x13c   :  { %2603 = vmatpush1.bf16.msra.mxu0 %v3883_v26  ;;  %3395 = vmatprep.subr.bf16.mxu1 %v3891_v48  ;;  %v475_v26 = vrot.slane %v470_v6, %v474_v23 }
 0x13d   :  { %2604 = vmatprep.subr.bf16.mxu0 %v3890_v28 }
 0x13f   :  { %3396 = vmatpush3.bf16.msra.mxu1 %v3892_v32 }
 0x140   :  { %2605 = vmatpush1.bf16.msra.mxu0 %v3888_v30  ;;  %3403 = vmatprep.subr.bf16.mxu1 %v3895_v16 }
 0x142   :  { %2848 = vmatmul.mubr.bf16.vlgmr.msra.gmra.mrb[24].mxu1 %v4790_v33  ;;  %v3901_v33 = vld [vmem:[%s5051_s1 + $0xa10] ss:$12 sps:$4 sm:$0xff]  }
 0x143   :  { %2607 = vmatmul.mubr.bf16.vlgmr.msra.gmra.mrb[0].mxu0 %v2929_v38  ;;  %3404 = vmatpush3.bf16.msra.mxu1 %v3896_v29 }
 0x144   :  { %2887 = vmatprep.mubr.bf16.mxu1 %v4811_v53  ;;  %3405 = vmatprep.subr.bf16.mxu1 %v3897_v39  ;;  %v3902_v53 = vld [vmem:[%s5051_s1 + $0x950] ss:$12 sps:$4 sm:$0xff]  }
 0x147   :  { %3406 = vmatpush3.bf16.msra.mxu1 %v3898_v40 }
 0x148   :  { %3407 = vmatprep.subr.bf16.mxu1 %v3899_v35 }
 0x14b   :  { %3408 = vmatpush3.bf16.msra.mxu1 %v3900_v41 }
 0x14c   :  { %3409 = vmatprep.subr.bf16.mxu1 %v3901_v33 }
 0x14f   :  { %3410 = vmatpush3.bf16.msra.mxu1 %v3902_v53 }
 0x150   :  { %3411 = vmatprep.subr.bf16.mxu1 %v3903_v42 }
 0x153   :  { %3412 = vmatpush3.bf16.msra.mxu1 %v3904_v17 }
 0x154   :  { %3413 = vmatprep.subr.bf16.mxu1 %v3905_v43 }
 0x155   :  { %v2403_v45 = vpop.f32.mrb[0].mxu1 }
 0x156   :  { %v2405_v46 = vpop.f32.mrb[1].mxu1  ;;  %v3425_v28 = vadd.f32 %v2403_v45, %v475_v26 }
 0x157   :  { %v2407_v47 = vpop.f32.mrb[2].mxu1  ;;  %3414 = vmatpush3.bf16.msra.mxu1 %v3906_v44  ;;  %v3427_v48 = vadd.f32 %v2405_v46, %v479_v27 }
 0x158   :  { %v2408_v50 = vpop.f32.mrb[3].mxu1  ;;  %3415 = vmatprep.subr.bf16.mxu1 %v3907_v34 }
 0x15b   :  { %3416 = vmatpush3.bf16.msra.mxu1 %v3908_v49 }
 0x15c   :  { %3417 = vmatprep.subr.bf16.mxu1 %v3909_v51 }
 0x15f   :  { %3418 = vmatpush3.bf16.msra.mxu1 %v3910_v52 }
 0x162   :  { %2888 = vmatmul.mubr.bf16.vlgmr.msra.gmra.mrb[28].mxu1 %v2929_v38 }
 0x175   :  { %v3287_v54 = vpop.f32.mrb[4].mxu1 }
 0x176   :  { %v3288_v55 = vpop.f32.mrb[5].mxu1 }
 0x177   :  { %v3289_v56 = vadd.f32 %v3288_v55, %v3287_v54  ;;  %v3290_v57 = vpop.f32.mrb[6].mxu1 }
 0x178   :  { %v3291_v58 = vpop.f32.mrb[7].mxu1 }
 0x179   :  { %v2650_v1 = vadd.f32 %v3289_v56, %v483_v62 }
 0x195   :  { %v3309_v63 = vpop.f32.mrb[8].mxu1 }
 0x196   :  { %v3310_v0 = vpop.f32.mrb[9].mxu1 }
 0x197   :  { %v3311_v36 = vadd.f32 %v3310_v0, %v3309_v63  ;;  %v3312_v2 = vpop.f32.mrb[10].mxu1 }
 0x198   :  { %v3313_v7 = vpop.f32.mrb[11].mxu1 }
 0x199   :  { %v2690_v3 = vadd.f32 %v3311_v36, %v2650_v1 }
 0x1b5   :  { %v3331_v4 = vpop.f32.mrb[12].mxu1 }
 0x1b6   :  { %v3332_v5 = vpop.f32.mrb[13].mxu1 }
 0x1b7   :  { %v3333_v37 = vadd.f32 %v3332_v5, %v3331_v4  ;;  %v3334_v25 = vpop.f32.mrb[14].mxu1 }
 0x1b8   :  { %v3335_v8 = vpop.f32.mrb[15].mxu1 }
 0x1b9   :  { %v2730_v9 = vadd.f32 %v3333_v37, %v2690_v3 }
 0x1d5   :  { %v3353_v10 = vpop.f32.mrb[16].mxu1 }
 0x1d6   :  { %v3354_v31 = vpop.f32.mrb[17].mxu1 }
 0x1d7   :  { %v3355_v11 = vadd.f32 %v3354_v31, %v3353_v10  ;;  %v3356_v12 = vpop.f32.mrb[18].mxu1 }
 0x1d8   :  { %v3357_v13 = vpop.f32.mrb[19].mxu1 }
 0x1d9   :  { %v2770_v14 = vadd.f32 %v3355_v11, %v2730_v9 }
 0x1f5   :  { %v3375_v15 = vpop.f32.mrb[20].mxu1 }
 0x1f6   :  { %v3376_v18 = vpop.f32.mrb[21].mxu1 }
 0x1f7   :  { %v3377_v19 = vadd.f32 %v3376_v18, %v3375_v15  ;;  %v3378_v20 = vpop.f32.mrb[22].mxu1 }
 0x1f8   :  { %v3379_v21 = vpop.f32.mrb[23].mxu1 }
 0x1f9   :  { %v2810_v22 = vadd.f32 %v3377_v19, %v2770_v14 }
 0x215   :  { %v3397_v32 = vpop.f32.mrb[24].mxu1 }
 0x216   :  { %v2608_v30 = vpop.f32.mrb[0].mxu0  ;;  %v3398_v29 = vpop.f32.mrb[25].mxu1 }
 0x217   :  { %v3426_v16 = vadd.f32 %v3425_v28, %v2608_v30  ;;  %v2610_v38 = vpop.f32.mrb[1].mxu0  ;;  %v3399_v40 = vadd.f32 %v3398_v29, %v3397_v32  ;;  %v3400_v41 = vpop.f32.mrb[26].mxu1 }
 0x218   :  { %v3428_v39 = vadd.f32 %v3427_v48, %v2610_v38  ;;  %v2612_v35 = vpop.f32.mrb[2].mxu0  ;;  %v3401_v42 = vpop.f32.mrb[27].mxu1 }
 0x219   :  { %v2895_v33 = vmax.f32 %v3426_v16, 0.0  ;;  %v2613_v53 = vpop.f32.mrb[3].mxu0  ;;  %v2850_v43 = vadd.f32 %v3399_v40, %v2810_v22 }
 0x21a   :  { %v2896_v17 = vmax.f32 %v3428_v39, 0.0 }
 0x21c   :  { %v3269_v44 = vpack.c.bf16 %v2896_v17, %v2895_v33 }
 0x21e   :  { %2911 = vst [vmem:[%s5054_s3] sm:$0xff] %v3269_v44 }
 0x235   :  { %v3419_v34 = vpop.f32.mrb[28].mxu1 }
 0x236   :  { %v3420_v45 = vpop.f32.mrb[29].mxu1 }
 0x237   :  { %v3421_v46 = vadd.f32 %v3420_v45, %v3419_v34  ;;  %v3422_v47 = vpop.f32.mrb[30].mxu1 }
 0x238   :  { %v3423_v49 = vpop.f32.mrb[31].mxu1 }
 0x239   :  { %v2890_v50 = vadd.f32 %v3421_v46, %v2850_v43 }
 0x23b   :  { %v2897_v51 = vmax.f32 %v2890_v50, 0.0 }
 0x23d   :  { %v3270_v52 = vpack.c.bf16 %v2897_v51, %v2897_v51 }
 0x23f   :  { %2912 = vst [vmem:[%s5054_s3 + $0x8] sm:$0xf] %v3270_v52 }

// kernel: alexnet_forward.9
= control target key start
LH: loop header
LB: loop body
LE: loop exit
PB: predicated region body
PF: predicated region fallthrough
CT: control target
= control target key end

     0   :  { %s5937_s1 = inlined_call_operand.vmem [shape: bf16[3456,256], index: 1, kind: input, shape index: {}]   ;;  %s5938_s0 = inlined_call_operand.vmem [shape: bf16[8,3456], index: 0, kind: input, shape index: {}]   ;;  %s5939_s2 = inlined_call_operand.vmem [shape: f32[1,256], index: 2, kind: input, shape index: {}]   ;;  %s5940_s3 = inlined_call_operand.vmem [shape: bf16[8,256], index: 3, kind: output, shape index: {}]  }
   0x1   :  { %v3831_v0 = vld [vmem:[%s5937_s1 + $0x4] ss:$8 sps:$4 sm:$0xff]   ;;  %v3835_v2 = vld [vmem:[%s5937_s1] ss:$8 sps:$4 sm:$0xff]   ;;  %v3837_v4 = vld [vmem:[%s5937_s1 + $0x14] ss:$8 sps:$4 sm:$0xff]  }
   0x2   :  { %v3833_v1 = vld [vmem:[%s5937_s1 + $0x704] ss:$8 sps:$4 sm:$0xff]   ;;  %2728 = vmatprep.subr.bf16.mxu1 %v3831_v0  ;;  %v3836_v3 = vld [vmem:[%s5937_s1 + $0x700] ss:$8 sps:$4 sm:$0xff]   ;;  %v3839_v5 = vld [vmem:[%s5937_s1 + $0x714] ss:$8 sps:$4 sm:$0xff]  }
   0x3   :  { %3015 = vmatprep.subr.bf16.mxu0 %v3833_v1  ;;  %2729 = vmatpush1.bf16.msra.mxu1 %v3835_v2  ;;  %v3841_v6 = vld [vmem:[%s5937_s1 + $0x10] ss:$8 sps:$4 sm:$0xff]   ;;  %v3843_v8 = vld [vmem:[%s5937_s1 + $0x24] ss:$8 sps:$4 sm:$0xff]   ;;  %v3847_v10 = vld [vmem:[%s5937_s1 + $0x20] ss:$8 sps:$4 sm:$0xff]  }
   0x4   :  { %3016 = vmatpush1.bf16.msra.mxu0 %v3836_v3  ;;  %2730 = vmatprep.subr.bf16.mxu1 %v3837_v4  ;;  %v3842_v7 = vld [vmem:[%s5937_s1 + $0x710] ss:$8 sps:$4 sm:$0xff]   ;;  %v3845_v9 = vld [vmem:[%s5937_s1 + $0x724] ss:$8 sps:$4 sm:$0xff]   ;;  %v3848_v11 = vld [vmem:[%s5937_s1 + $0x720] ss:$8 sps:$4 sm:$0xff]  }
   0x5   :  { %3017 = vmatprep.subr.bf16.mxu0 %v3839_v5  ;;  %v3849_v12 = vld [vmem:[%s5937_s1 + $0x34] ss:$8 sps:$4 sm:$0xff]   ;;  %v3853_v14 = vld [vmem:[%s5937_s1 + $0x30] ss:$8 sps:$4 sm:$0xff]   ;;  %v3855_v16 = vld [vmem:[%s5937_s1 + $0x44] ss:$8 sps:$4 sm:$0xff]  }
   0x6   :  { %v3851_v13 = vld [vmem:[%s5937_s1 + $0x734] ss:$8 sps:$4 sm:$0xff]   ;;  %v3854_v15 = vld [vmem:[%s5937_s1 + $0x730] ss:$8 sps:$4 sm:$0xff]   ;;  %v3857_v17 = vld [vmem:[%s5937_s1 + $0x744] ss:$8 sps:$4 sm:$0xff]  }
   0x7   :  { %2731 = vmatpush1.bf16.msra.mxu1 %v3841_v6  ;;  %v3859_v18 = vld [vmem:[%s5937_s1 + $0x40] ss:$8 sps:$4 sm:$0xff]   ;;  %v3861_v20 = vld [vmem:[%s5937_s1 + $0x54] ss:$8 sps:$4 sm:$0xff]   ;;  %v3865_v22 = vld [vmem:[%s5937_s1 + $0x50] ss:$8 sps:$4 sm:$0xff]  }
   0x8   :  { %3018 = vmatpush1.bf16.msra.mxu0 %v3842_v7  ;;  %2732 = vmatprep.subr.bf16.mxu1 %v3843_v8  ;;  %v3860_v19 = vld [vmem:[%s5937_s1 + $0x740] ss:$8 sps:$4 sm:$0xff]   ;;  %v3863_v21 = vld [vmem:[%s5937_s1 + $0x754] ss:$8 sps:$4 sm:$0xff]   ;;  %v3866_v23 = vld [vmem:[%s5937_s1 + $0x750] ss:$8 sps:$4 sm:$0xff]  }
   0x9   :  { %3019 = vmatprep.subr.bf16.mxu0 %v3845_v9  ;;  %v3867_v24 = vld [vmem:[%s5937_s1 + $0x64] ss:$8 sps:$4 sm:$0xff]   ;;  %v3871_v26 = vld [vmem:[%s5937_s1 + $0x60] ss:$8 sps:$4 sm:$0xff]   ;;  %v3873_v28 = vld [vmem:[%s5937_s1 + $0x74] ss:$8 sps:$4 sm:$0xff]  }
   0xa   :  { %v3869_v25 = vld [vmem:[%s5937_s1 + $0x764] ss:$8 sps:$4 sm:$0xff]   ;;  %v3872_v27 = vld [vmem:[%s5937_s1 + $0x760] ss:$8 sps:$4 sm:$0xff]   ;;  %v3875_v29 = vld [vmem:[%s5937_s1 + $0x774] ss:$8 sps:$4 sm:$0xff]  }
   0xb   :  { %2733 = vmatpush1.bf16.msra.mxu1 %v3847_v10  ;;  %v3877_v30 = vld [vmem:[%s5937_s1 + $0x70] ss:$8 sps:$4 sm:$0xff]   ;;  %v3879_v32 = vld [vmem:[%s5937_s1 + $0x84] ss:$8 sps:$4 sm:$0xff]   ;;  %v3883_v34 = vld [vmem:[%s5937_s1 + $0x80] ss:$8 sps:$4 sm:$0xff]  }
   0xc   :  { %3020 = vmatpush1.bf16.msra.mxu0 %v3848_v11  ;;  %2734 = vmatprep.subr.bf16.mxu1 %v3849_v12  ;;  %v3878_v31 = vld [vmem:[%s5937_s1 + $0x770] ss:$8 sps:$4 sm:$0xff]   ;;  %v3881_v33 = vld [vmem:[%s5937_s1 + $0x784] ss:$8 sps:$4 sm:$0xff]   ;;  %v3884_v35 = vld [vmem:[%s5937_s1 + $0x780] ss:$8 sps:$4 sm:$0xff]  }
   0xd   :  { %3021 = vmatprep.subr.bf16.mxu0 %v3851_v13  ;;  %v3885_v36 = vld [vmem:[%s5937_s1 + $0x94] ss:$8 sps:$4 sm:$0xff]   ;;  %v3889_v38 = vld [vmem:[%s5937_s1 + $0x90] ss:$8 sps:$4 sm:$0xff]   ;;  %v3891_v40 = vld [vmem:[%s5937_s1 + $0xa4] ss:$8 sps:$4 sm:$0xff]  }
   0xe   :  { %v3887_v37 = vld [vmem:[%s5937_s1 + $0x794] ss:$8 sps:$4 sm:$0xff]   ;;  %v3890_v39 = vld [vmem:[%s5937_s1 + $0x790] ss:$8 sps:$4 sm:$0xff]   ;;  %v3893_v41 = vld [vmem:[%s5937_s1 + $0x7a4] ss:$8 sps:$4 sm:$0xff]  }
   0xf   :  { %2735 = vmatpush1.bf16.msra.mxu1 %v3853_v14  ;;  %v3895_v42 = vld [vmem:[%s5937_s1 + $0xa0] ss:$8 sps:$4 sm:$0xff]   ;;  %v3897_v44 = vld [vmem:[%s5937_s1 + $0xb4] ss:$8 sps:$4 sm:$0xff]   ;;  %v3901_v47 = vld [vmem:[%s5937_s1 + $0xb0] ss:$8 sps:$4 sm:$0xff]  }
  0x10   :  { %3022 = vmatpush1.bf16.msra.mxu0 %v3854_v15  ;;  %2736 = vmatprep.subr.bf16.mxu1 %v3855_v16  ;;  %v3896_v43 = vld [vmem:[%s5937_s1 + $0x7a0] ss:$8 sps:$4 sm:$0xff]   ;;  %v3899_v45 = vld [vmem:[%s5937_s1 + $0x7b4] ss:$8 sps:$4 sm:$0xff]   ;;  %v3902_v49 = vld [vmem:[%s5937_s1 + $0x7b0] ss:$8 sps:$4 sm:$0xff]  }
  0x11   :  { %3023 = vmatprep.subr.bf16.mxu0 %v3857_v17  ;;  %v15_v46 = vld [vmem:[%s5938_s0] sm:$0xff]  ;;  %v22_v50 = vld [vmem:[%s5938_s0 + $0x38] sm:$0xff] }
  0x12   :  { %v3318_v48 = vcombine.high %v15_v46, %v15_v46  ;;  %v3903_v51 = vld [vmem:[%s5937_s1 + $0xc4] ss:$8 sps:$4 sm:$0xff]   ;;  %v3332_v53 = vcombine.high %v22_v50, %v22_v50  ;;  %v3907_v54 = vld [vmem:[%s5937_s1 + $0xc0] ss:$8 sps:$4 sm:$0xff]   ;;  %v3909_v56 = vld [vmem:[%s5937_s1 + $0xd4] ss:$8 sps:$4 sm:$0xff]   ;;  %v3317_v6 = vcombine.low %v15_v46, %v15_v46  ;;  %v3331_v7 = vcombine.low %v22_v50, %v22_v50 }
  0x13   :  { %2737 = vmatpush1.bf16.msra.mxu1 %v3859_v18  ;;  %v3905_v52 = vld [vmem:[%s5937_s1 + $0x7c4] ss:$8 sps:$4 sm:$0xff]   ;;  %v3908_v55 = vld [vmem:[%s5937_s1 + $0x7c0] ss:$8 sps:$4 sm:$0xff]   ;;  %v3911_v57 = vld [vmem:[%s5937_s1 + $0x7d4] ss:$8 sps:$4 sm:$0xff]  }
  0x14   :  { %3024 = vmatpush1.bf16.msra.mxu0 %v3860_v19  ;;  %2738 = vmatprep.subr.bf16.mxu1 %v3861_v20  ;;  %v3913_v58 = vld [vmem:[%s5937_s1 + $0xd0] ss:$8 sps:$4 sm:$0xff]   ;;  %v3915_v60 = vld [vmem:[%s5937_s1 + $0xe4] ss:$8 sps:$4 sm:$0xff]   ;;  %v3919_v62 = vld [vmem:[%s5937_s1 + $0xe0] ss:$8 sps:$4 sm:$0xff]  }
  0x15   :  { %3025 = vmatprep.subr.bf16.mxu0 %v3863_v21  ;;  %2760 = vmatprep.mubr.bf16.mxu1 %v3318_v48  ;;  %v3914_v59 = vld [vmem:[%s5937_s1 + $0x7d0] ss:$8 sps:$4 sm:$0xff]   ;;  %v3917_v61 = vld [vmem:[%s5937_s1 + $0x7e4] ss:$8 sps:$4 sm:$0xff]   ;;  %v3920_v63 = vld [vmem:[%s5937_s1 + $0x7e0] ss:$8 sps:$4 sm:$0xff]  }
  0x16   :  { %3047 = vmatprep.mubr.bf16.mxu0 %v3332_v53  ;;  %v3921_v0 = vld [vmem:[%s5937_s1 + $0xf4] ss:$8 sps:$4 sm:$0xff]   ;;  %v3925_v2 = vld [vmem:[%s5937_s1 + $0xf0] ss:$8 sps:$4 sm:$0xff]   ;;  %v3931_v4 = vld [vmem:[%s5937_s1 + $0x104] ss:$8 sps:$4 sm:$0xff]  }
  0x17   :  { %2739 = vmatpush1.bf16.msra.mxu1 %v3865_v22  ;;  %v3923_v1 = vld [vmem:[%s5937_s1 + $0x7f4] ss:$8 sps:$4 sm:$0xff]   ;;  %v3926_v3 = vld [vmem:[%s5937_s1 + $0x7f0] ss:$8 sps:$4 sm:$0xff]   ;;  %v3936_v5 = vld [vmem:[%s5937_s1 + $0x804] ss:$8 sps:$4 sm:$0xff]  }
  0x18   :  { %3026 = vmatpush1.bf16.msra.mxu0 %v3866_v23  ;;  %2740 = vmatprep.subr.bf16.mxu1 %v3867_v24  ;;  %v3929_v8 = vld [vmem:[%s5937_s1 + $0x100] ss:$8 sps:$4 sm:$0xff]   ;;  %v3939_v10 = vld [vmem:[%s5937_s1 + $0x114] ss:$8 sps:$4 sm:$0xff]   ;;  %v3937_v12 = vld [vmem:[%s5937_s1 + $0x110] ss:$8 sps:$4 sm:$0xff]  }
  0x19   :  { %3027 = vmatprep.subr.bf16.mxu0 %v3869_v25  ;;  %v3934_v9 = vld [vmem:[%s5937_s1 + $0x800] ss:$8 sps:$4 sm:$0xff]   ;;  %v3942_v11 = vld [vmem:[%s5937_s1 + $0x814] ss:$8 sps:$4 sm:$0xff]   ;;  %v3940_v13 = vld [vmem:[%s5937_s1 + $0x810] ss:$8 sps:$4 sm:$0xff]  }
  0x1a   :  { %v3945_v14 = vld [vmem:[%s5937_s1 + $0x124] ss:$8 sps:$4 sm:$0xff]   ;;  %v3943_v16 = vld [vmem:[%s5937_s1 + $0x120] ss:$8 sps:$4 sm:$0xff]   ;;  %v3951_v18 = vld [vmem:[%s5937_s1 + $0x134] ss:$8 sps:$4 sm:$0xff]  }
  0x1b   :  { %2741 = vmatpush1.bf16.msra.mxu1 %v3871_v26  ;;  %v3948_v15 = vld [vmem:[%s5937_s1 + $0x824] ss:$8 sps:$4 sm:$0xff]   ;;  %v3946_v17 = vld [vmem:[%s5937_s1 + $0x820] ss:$8 sps:$4 sm:$0xff]   ;;  %v3954_v19 = vld [vmem:[%s5937_s1 + $0x834] ss:$8 sps:$4 sm:$0xff]  }
  0x1c   :  { %3028 = vmatpush1.bf16.msra.mxu0 %v3872_v27  ;;  %2742 = vmatprep.subr.bf16.mxu1 %v3873_v28  ;;  %v3949_v20 = vld [vmem:[%s5937_s1 + $0x130] ss:$8 sps:$4 sm:$0xff]   ;;  %v3957_v22 = vld [vmem:[%s5937_s1 + $0x144] ss:$8 sps:$4 sm:$0xff]   ;;  %v3955_v24 = vld [vmem:[%s5937_s1 + $0x140] ss:$8 sps:$4 sm:$0xff]  }
  0x1d   :  { %3029 = vmatprep.subr.bf16.mxu0 %v3875_v29  ;;  %v3952_v21 = vld [vmem:[%s5937_s1 + $0x830] ss:$8 sps:$4 sm:$0xff]   ;;  %v3960_v23 = vld [vmem:[%s5937_s1 + $0x844] ss:$8 sps:$4 sm:$0xff]   ;;  %v3958_v25 = vld [vmem:[%s5937_s1 + $0x840] ss:$8 sps:$4 sm:$0xff]  }
  0x1e   :  { %v3963_v26 = vld [vmem:[%s5937_s1 + $0x154] ss:$8 sps:$4 sm:$0xff]   ;;  %v3961_v28 = vld [vmem:[%s5937_s1 + $0x150] ss:$8 sps:$4 sm:$0xff]   ;;  %v3993_v50 = vld [vmem:[%s5937_s1 + $0x1a4] ss:$8 sps:$4 sm:$0xff]  }
  0x1f   :  { %2743 = vmatpush1.bf16.msra.mxu1 %v3877_v30  ;;  %v3966_v27 = vld [vmem:[%s5937_s1 + $0x854] ss:$8 sps:$4 sm:$0xff]   ;;  %v3964_v29 = vld [vmem:[%s5937_s1 + $0x850] ss:$8 sps:$4 sm:$0xff]   ;;  %v3969_v30 = vld [vmem:[%s5937_s1 + $0x164] ss:$8 sps:$4 sm:$0xff]  }
  0x20   :  { %3030 = vmatpush1.bf16.msra.mxu0 %v3878_v31  ;;  %2744 = vmatprep.subr.bf16.mxu1 %v3879_v32  ;;  %v3972_v31 = vld [vmem:[%s5937_s1 + $0x864] ss:$8 sps:$4 sm:$0xff]   ;;  %v3987_v46 = vld [vmem:[%s5937_s1 + $0x194] ss:$8 sps:$4 sm:$0xff]   ;;  %v3985_v48 = vld [vmem:[%s5937_s1 + $0x190] ss:$8 sps:$4 sm:$0xff]  }
  0x21   :  { %3031 = vmatprep.subr.bf16.mxu0 %v3881_v33  ;;  %v4806_v32 = vld [vmem:[%s5938_s0 + $0x8] sm:$0xff] }
  0x22   :  { %v3967_v33 = vld [vmem:[%s5937_s1 + $0x160] ss:$8 sps:$4 sm:$0xff]  }
  0x23   :  { %2745 = vmatpush1.bf16.msra.mxu1 %v3883_v34  ;;  %v3970_v34 = vld [vmem:[%s5937_s1 + $0x860] ss:$8 sps:$4 sm:$0xff]  }
  0x24   :  { %3032 = vmatpush1.bf16.msra.mxu0 %v3884_v35  ;;  %2746 = vmatprep.subr.bf16.mxu1 %v3885_v36  ;;  %v3320_v35 = vcombine.high %v4806_v32, %v4806_v32  ;;  %v4819_v36 = vld [vmem:[%s5938_s0 + $0x40] sm:$0xff] }
  0x25   :  { %3033 = vmatprep.subr.bf16.mxu0 %v3887_v37  ;;  %v3975_v37 = vld [vmem:[%s5937_s1 + $0x174] ss:$8 sps:$4 sm:$0xff]   ;;  %v3994_v53 = vld [vmem:[%s5937_s1 + $0x8a0] ss:$8 sps:$4 sm:$0xff]  }
  0x27   :  { %2747 = vmatpush1.bf16.msra.mxu1 %v3889_v38  ;;  %v3334_v38 = vcombine.high %v4819_v36, %v4819_v36 }
  0x28   :  { %3034 = vmatpush1.bf16.msra.mxu0 %v3890_v39  ;;  %2748 = vmatprep.subr.bf16.mxu1 %v3891_v40  ;;  %v3978_v39 = vld [vmem:[%s5937_s1 + $0x874] ss:$8 sps:$4 sm:$0xff]   ;;  %v3973_v40 = vld [vmem:[%s5937_s1 + $0x170] ss:$8 sps:$4 sm:$0xff]  }
  0x29   :  { %3035 = vmatprep.subr.bf16.mxu0 %v3893_v41  ;;  %v3976_v41 = vld [vmem:[%s5937_s1 + $0x870] ss:$8 sps:$4 sm:$0xff]  }
  0x2b   :  { %2749 = vmatpush1.bf16.msra.mxu1 %v3895_v42  ;;  %v3981_v42 = vld [vmem:[%s5937_s1 + $0x184] ss:$8 sps:$4 sm:$0xff]  }
  0x2c   :  { %3036 = vmatpush1.bf16.msra.mxu0 %v3896_v43  ;;  %2750 = vmatprep.subr.bf16.mxu1 %v3897_v44  ;;  %v3984_v43 = vld [vmem:[%s5937_s1 + $0x884] ss:$8 sps:$4 sm:$0xff]   ;;  %v3979_v44 = vld [vmem:[%s5937_s1 + $0x180] ss:$8 sps:$4 sm:$0xff]  }
  0x2d   :  { %3037 = vmatprep.subr.bf16.mxu0 %v3899_v45  ;;  %v3982_v45 = vld [vmem:[%s5937_s1 + $0x880] ss:$8 sps:$4 sm:$0xff]  }
  0x2f   :  { %2751 = vmatpush1.bf16.msra.mxu1 %v3901_v47  ;;  %v3990_v47 = vld [vmem:[%s5937_s1 + $0x894] ss:$8 sps:$4 sm:$0xff]  }
  0x30   :  { %3038 = vmatpush1.bf16.msra.mxu0 %v3902_v49  ;;  %2752 = vmatprep.subr.bf16.mxu1 %v3903_v51  ;;  %v3988_v49 = vld [vmem:[%s5937_s1 + $0x890] ss:$8 sps:$4 sm:$0xff]   ;;  %v3996_v51 = vld [vmem:[%s5937_s1 + $0x8a4] ss:$8 sps:$4 sm:$0xff]  }
  0x31   :  { %3039 = vmatprep.subr.bf16.mxu0 %v3905_v52  ;;  %v3991_v52 = vld [vmem:[%s5937_s1 + $0x1a0] ss:$8 sps:$4 sm:$0xff]  }
  0x33   :  { %2753 = vmatpush1.bf16.msra.mxu1 %v3907_v54  ;;  %v3999_v54 = vld [vmem:[%s5937_s1 + $0x1b4] ss:$8 sps:$4 sm:$0xff]  }
  0x34   :  { %3040 = vmatpush1.bf16.msra.mxu0 %v3908_v55  ;;  %2754 = vmatprep.subr.bf16.mxu1 %v3909_v56  ;;  %v4002_v55 = vld [vmem:[%s5937_s1 + $0x8b4] ss:$8 sps:$4 sm:$0xff]   ;;  %v3997_v56 = vld [vmem:[%s5937_s1 + $0x1b0] ss:$8 sps:$4 sm:$0xff]  }
  0x35   :  { %3041 = vmatprep.subr.bf16.mxu0 %v3911_v57  ;;  %v4000_v57 = vld [vmem:[%s5937_s1 + $0x8b0] ss:$8 sps:$4 sm:$0xff]  }
  0x37   :  { %2755 = vmatpush1.bf16.msra.mxu1 %v3913_v58  ;;  %v4005_v58 = vld [vmem:[%s5937_s1 + $0x1c4] ss:$8 sps:$4 sm:$0xff]  }
  0x38   :  { %3042 = vmatpush1.bf16.msra.mxu0 %v3914_v59  ;;  %2756 = vmatprep.subr.bf16.mxu1 %v3915_v60  ;;  %v4008_v59 = vld [vmem:[%s5937_s1 + $0x8c4] ss:$8 sps:$4 sm:$0xff]   ;;  %v4003_v60 = vld [vmem:[%s5937_s1 + $0x1c0] ss:$8 sps:$4 sm:$0xff]  }
  0x39   :  { %3043 = vmatprep.subr.bf16.mxu0 %v3917_v61  ;;  %v4006_v61 = vld [vmem:[%s5937_s1 + $0x8c0] ss:$8 sps:$4 sm:$0xff]  }
  0x3b   :  { %2757 = vmatpush1.bf16.msra.mxu1 %v3919_v62  ;;  %v4011_v62 = vld [vmem:[%s5937_s1 + $0x1d4] ss:$8 sps:$4 sm:$0xff]  }
  0x3c   :  { %3044 = vmatpush1.bf16.msra.mxu0 %v3920_v63  ;;  %2758 = vmatprep.subr.bf16.mxu1 %v3921_v0  ;;  %v4014_v63 = vld [vmem:[%s5937_s1 + $0x8d4] ss:$8 sps:$4 sm:$0xff]   ;;  %v4009_v0 = vld [vmem:[%s5937_s1 + $0x1d0] ss:$8 sps:$4 sm:$0xff]  }
  0x3d   :  { %3045 = vmatprep.subr.bf16.mxu0 %v3923_v1  ;;  %v4012_v1 = vld [vmem:[%s5937_s1 + $0x8d0] ss:$8 sps:$4 sm:$0xff]  }
  0x3f   :  { %2759 = vmatpush1.bf16.msra.mxu1 %v3925_v2  ;;  %v4017_v2 = vld [vmem:[%s5937_s1 + $0x1e4] ss:$8 sps:$4 sm:$0xff]  }
  0x40   :  { %3046 = vmatpush1.bf16.msra.mxu0 %v3926_v3  ;;  %2769 = vmatprep.subr.bf16.mxu1 %v3931_v4  ;;  %v4020_v3 = vld [vmem:[%s5937_s1 + $0x8e4] ss:$8 sps:$4 sm:$0xff]   ;;  %v4015_v4 = vld [vmem:[%s5937_s1 + $0x1e0] ss:$8 sps:$4 sm:$0xff]  }
  0x41   :  { %3056 = vmatprep.subr.bf16.mxu0 %v3936_v5  ;;  %v4018_v5 = vld [vmem:[%s5937_s1 + $0x8e0] ss:$8 sps:$4 sm:$0xff]  }
  0x42   :  { %2761 = vmatmul.mubr.bf16.vlgmr.msra.gmra.mrb[0].mxu1 %v3317_v6  ;;  %v4023_v6 = vld [vmem:[%s5937_s1 + $0x1f4] ss:$8 sps:$4 sm:$0xff]  }
  0x43   :  { %3048 = vmatmul.mubr.bf16.vlgmr.msra.gmra.mrb[0].mxu0 %v3331_v7  ;;  %2770 = vmatpush1.bf16.msra.mxu1 %v3929_v8  ;;  %v4026_v7 = vld [vmem:[%s5937_s1 + $0x8f4] ss:$8 sps:$4 sm:$0xff]   ;;  %v4021_v8 = vld [vmem:[%s5937_s1 + $0x1f0] ss:$8 sps:$4 sm:$0xff]  }
  0x44   :  { %3057 = vmatpush1.bf16.msra.mxu0 %v3934_v9  ;;  %2771 = vmatprep.subr.bf16.mxu1 %v3939_v10  ;;  %v4024_v9 = vld [vmem:[%s5937_s1 + $0x8f0] ss:$8 sps:$4 sm:$0xff]   ;;  %v4031_v10 = vld [vmem:[%s5937_s1 + $0x204] ss:$8 sps:$4 sm:$0xff]  }
  0x45   :  { %3058 = vmatprep.subr.bf16.mxu0 %v3942_v11  ;;  %2801 = vmatprep.mubr.bf16.mxu1 %v3320_v35  ;;  %v4036_v11 = vld [vmem:[%s5937_s1 + $0x904] ss:$8 sps:$4 sm:$0xff]   ;;  %v4058_v35 = vld [vmem:[%s5937_s1 + $0x940] ss:$8 sps:$4 sm:$0xff]  }
  0x46   :  { %3088 = vmatprep.mubr.bf16.mxu0 %v3334_v38  ;;  %v4061_v38 = vld [vmem:[%s5937_s1 + $0x250] ss:$8 sps:$4 sm:$0xff]  }
  0x47   :  { %2772 = vmatpush1.bf16.msra.mxu1 %v3937_v12  ;;  %v3319_v12 = vcombine.low %v4806_v32, %v4806_v32  ;;  %v4057_v32 = vld [vmem:[%s5937_s1 + $0x244] ss:$8 sps:$4 sm:$0xff]  }
  0x48   :  { %3059 = vmatpush1.bf16.msra.mxu0 %v3940_v13  ;;  %2773 = vmatprep.subr.bf16.mxu1 %v3945_v14  ;;  %v4029_v13 = vld [vmem:[%s5937_s1 + $0x200] ss:$8 sps:$4 sm:$0xff]   ;;  %v3333_v14 = vcombine.low %v4819_v36, %v4819_v36  ;;  %v4063_v36 = vld [vmem:[%s5937_s1 + $0x254] ss:$8 sps:$4 sm:$0xff]  }
  0x49   :  { %3060 = vmatprep.subr.bf16.mxu0 %v3948_v15  ;;  %v4034_v15 = vld [vmem:[%s5937_s1 + $0x900] ss:$8 sps:$4 sm:$0xff]  }
  0x4b   :  { %2774 = vmatpush1.bf16.msra.mxu1 %v3943_v16  ;;  %v4039_v16 = vld [vmem:[%s5937_s1 + $0x214] ss:$8 sps:$4 sm:$0xff]  }
  0x4c   :  { %3061 = vmatpush1.bf16.msra.mxu0 %v3946_v17  ;;  %2775 = vmatprep.subr.bf16.mxu1 %v3951_v18  ;;  %v4042_v17 = vld [vmem:[%s5937_s1 + $0x914] ss:$8 sps:$4 sm:$0xff]  }
  0x4d   :  { %3062 = vmatprep.subr.bf16.mxu0 %v3954_v19  ;;  %v4956_v18 = vld [vmem:[%s5938_s0 + $0x10] sm:$0xff] }
  0x4e   :  { %v3322_v19 = vcombine.high %v4956_v18, %v4956_v18 }
  0x4f   :  { %2776 = vmatpush1.bf16.msra.mxu1 %v3949_v20  ;;  %v4963_v20 = vld [vmem:[%s5938_s0 + $0x48] sm:$0xff] }
  0x50   :  { %3063 = vmatpush1.bf16.msra.mxu0 %v3952_v21  ;;  %2777 = vmatprep.subr.bf16.mxu1 %v3957_v22  ;;  %v4037_v21 = vld [vmem:[%s5937_s1 + $0x210] ss:$8 sps:$4 sm:$0xff]  }
  0x51   :  { %3064 = vmatprep.subr.bf16.mxu0 %v3960_v23  ;;  %v4040_v22 = vld [vmem:[%s5937_s1 + $0x910] ss:$8 sps:$4 sm:$0xff]   ;;  %v3336_v23 = vcombine.high %v4963_v20, %v4963_v20 }
  0x53   :  { %2778 = vmatpush1.bf16.msra.mxu1 %v3955_v24  ;;  %v4045_v24 = vld [vmem:[%s5937_s1 + $0x224] ss:$8 sps:$4 sm:$0xff]  }
  0x54   :  { %3065 = vmatpush1.bf16.msra.mxu0 %v3958_v25  ;;  %2779 = vmatprep.subr.bf16.mxu1 %v3963_v26  ;;  %v4048_v25 = vld [vmem:[%s5937_s1 + $0x924] ss:$8 sps:$4 sm:$0xff]   ;;  %v4043_v26 = vld [vmem:[%s5937_s1 + $0x220] ss:$8 sps:$4 sm:$0xff]  }
  0x55   :  { %3066 = vmatprep.subr.bf16.mxu0 %v3966_v27  ;;  %v4046_v27 = vld [vmem:[%s5937_s1 + $0x920] ss:$8 sps:$4 sm:$0xff]  }
  0x57   :  { %2780 = vmatpush1.bf16.msra.mxu1 %v3961_v28  ;;  %v4051_v28 = vld [vmem:[%s5937_s1 + $0x234] ss:$8 sps:$4 sm:$0xff]  }
  0x58   :  { %3067 = vmatpush1.bf16.msra.mxu0 %v3964_v29  ;;  %2781 = vmatprep.subr.bf16.mxu1 %v3969_v30  ;;  %v4054_v29 = vld [vmem:[%s5937_s1 + $0x934] ss:$8 sps:$4 sm:$0xff]   ;;  %v4049_v30 = vld [vmem:[%s5937_s1 + $0x230] ss:$8 sps:$4 sm:$0xff]  }
  0x59   :  { %3068 = vmatprep.subr.bf16.mxu0 %v3972_v31  ;;  %v4052_v31 = vld [vmem:[%s5937_s1 + $0x930] ss:$8 sps:$4 sm:$0xff]  }
  0x5b   :  { %2782 = vmatpush1.bf16.msra.mxu1 %v3967_v33  ;;  %v4060_v33 = vld [vmem:[%s5937_s1 + $0x944] ss:$8 sps:$4 sm:$0xff]  }
  0x5c   :  { %3069 = vmatpush1.bf16.msra.mxu0 %v3970_v34  ;;  %2783 = vmatprep.subr.bf16.mxu1 %v3975_v37  ;;  %v4055_v34 = vld [vmem:[%s5937_s1 + $0x240] ss:$8 sps:$4 sm:$0xff]   ;;  %v4066_v37 = vld [vmem:[%s5937_s1 + $0x954] ss:$8 sps:$4 sm:$0xff]  }
  0x5d   :  { %3070 = vmatprep.subr.bf16.mxu0 %v3978_v39  ;;  %v4064_v39 = vld [vmem:[%s5937_s1 + $0x950] ss:$8 sps:$4 sm:$0xff]  }
  0x5f   :  { %2784 = vmatpush1.bf16.msra.mxu1 %v3973_v40  ;;  %v4069_v40 = vld [vmem:[%s5937_s1 + $0x264] ss:$8 sps:$4 sm:$0xff]  }
  0x60   :  { %3071 = vmatpush1.bf16.msra.mxu0 %v3976_v41  ;;  %2785 = vmatprep.subr.bf16.mxu1 %v3981_v42  ;;  %v4072_v41 = vld [vmem:[%s5937_s1 + $0x964] ss:$8 sps:$4 sm:$0xff]   ;;  %v4067_v42 = vld [vmem:[%s5937_s1 + $0x260] ss:$8 sps:$4 sm:$0xff]  }
  0x61   :  { %3072 = vmatprep.subr.bf16.mxu0 %v3984_v43  ;;  %v4070_v43 = vld [vmem:[%s5937_s1 + $0x960] ss:$8 sps:$4 sm:$0xff]  }
  0x63   :  { %2786 = vmatpush1.bf16.msra.mxu1 %v3979_v44  ;;  %v4075_v44 = vld [vmem:[%s5937_s1 + $0x274] ss:$8 sps:$4 sm:$0xff]  }
  0x64   :  { %3073 = vmatpush1.bf16.msra.mxu0 %v3982_v45  ;;  %2787 = vmatprep.subr.bf16.mxu1 %v3987_v46  ;;  %v4078_v45 = vld [vmem:[%s5937_s1 + $0x974] ss:$8 sps:$4 sm:$0xff]   ;;  %v4073_v46 = vld [vmem:[%s5937_s1 + $0x270] ss:$8 sps:$4 sm:$0xff]  }
  0x65   :  { %3074 = vmatprep.subr.bf16.mxu0 %v3990_v47  ;;  %v4076_v47 = vld [vmem:[%s5937_s1 + $0x970] ss:$8 sps:$4 sm:$0xff]  }
  0x67   :  { %2788 = vmatpush1.bf16.msra.mxu1 %v3985_v48  ;;  %v4081_v48 = vld [vmem:[%s5937_s1 + $0x284] ss:$8 sps:$4 sm:$0xff]  }
  0x68   :  { %3075 = vmatpush1.bf16.msra.mxu0 %v3988_v49  ;;  %2789 = vmatprep.subr.bf16.mxu1 %v3993_v50  ;;  %v4084_v49 = vld [vmem:[%s5937_s1 + $0x984] ss:$8 sps:$4 sm:$0xff]   ;;  %v4079_v50 = vld [vmem:[%s5937_s1 + $0x280] ss:$8 sps:$4 sm:$0xff]  }
  0x69   :  { %3076 = vmatprep.subr.bf16.mxu0 %v3996_v51  ;;  %v4082_v51 = vld [vmem:[%s5937_s1 + $0x980] ss:$8 sps:$4 sm:$0xff]  }
  0x6b   :  { %2790 = vmatpush1.bf16.msra.mxu1 %v3991_v52  ;;  %v4087_v52 = vld [vmem:[%s5937_s1 + $0x294] ss:$8 sps:$4 sm:$0xff]  }
  0x6c   :  { %3077 = vmatpush1.bf16.msra.mxu0 %v3994_v53  ;;  %2791 = vmatprep.subr.bf16.mxu1 %v3999_v54  ;;  %v4090_v53 = vld [vmem:[%s5937_s1 + $0x994] ss:$8 sps:$4 sm:$0xff]   ;;  %v4085_v54 = vld [vmem:[%s5937_s1 + $0x290] ss:$8 sps:$4 sm:$0xff]  }
  0x6d   :  { %3078 = vmatprep.subr.bf16.mxu0 %v4002_v55  ;;  %v4088_v55 = vld [vmem:[%s5937_s1 + $0x990] ss:$8 sps:$4 sm:$0xff]  }
  0x6f   :  { %2792 = vmatpush1.bf16.msra.mxu1 %v3997_v56  ;;  %v4093_v56 = vld [vmem:[%s5937_s1 + $0x2a4] ss:$8 sps:$4 sm:$0xff]  }
  0x70   :  { %3079 = vmatpush1.bf16.msra.mxu0 %v4000_v57  ;;  %2793 = vmatprep.subr.bf16.mxu1 %v4005_v58  ;;  %v4096_v57 = vld [vmem:[%s5937_s1 + $0x9a4] ss:$8 sps:$4 sm:$0xff]   ;;  %v4091_v58 = vld [vmem:[%s5937_s1 + $0x2a0] ss:$8 sps:$4 sm:$0xff]  }
  0x71   :  { %3080 = vmatprep.subr.bf16.mxu0 %v4008_v59  ;;  %v4094_v59 = vld [vmem:[%s5937_s1 + $0x9a0] ss:$8 sps:$4 sm:$0xff]  }
  0x73   :  { %2794 = vmatpush1.bf16.msra.mxu1 %v4003_v60  ;;  %v4099_v60 = vld [vmem:[%s5937_s1 + $0x2b4] ss:$8 sps:$4 sm:$0xff]  }
  0x74   :  { %3081 = vmatpush1.bf16.msra.mxu0 %v4006_v61  ;;  %2795 = vmatprep.subr.bf16.mxu1 %v4011_v62  ;;  %v4102_v61 = vld [vmem:[%s5937_s1 + $0x9b4] ss:$8 sps:$4 sm:$0xff]   ;;  %v4097_v62 = vld [vmem:[%s5937_s1 + $0x2b0] ss:$8 sps:$4 sm:$0xff]  }
  0x75   :  { %3082 = vmatprep.subr.bf16.mxu0 %v4014_v63  ;;  %v4100_v63 = vld [vmem:[%s5937_s1 + $0x9b0] ss:$8 sps:$4 sm:$0xff]  }
  0x77   :  { %2796 = vmatpush1.bf16.msra.mxu1 %v4009_v0  ;;  %v4105_v0 = vld [vmem:[%s5937_s1 + $0x2c4] ss:$8 sps:$4 sm:$0xff]  }
  0x78   :  { %3083 = vmatpush1.bf16.msra.mxu0 %v4012_v1  ;;  %2797 = vmatprep.subr.bf16.mxu1 %v4017_v2  ;;  %v4108_v1 = vld [vmem:[%s5937_s1 + $0x9c4] ss:$8 sps:$4 sm:$0xff]   ;;  %v4103_v2 = vld [vmem:[%s5937_s1 + $0x2c0] ss:$8 sps:$4 sm:$0xff]  }
  0x79   :  { %3084 = vmatprep.subr.bf16.mxu0 %v4020_v3  ;;  %v4106_v3 = vld [vmem:[%s5937_s1 + $0x9c0] ss:$8 sps:$4 sm:$0xff]  }
  0x7b   :  { %2798 = vmatpush1.bf16.msra.mxu1 %v4015_v4  ;;  %v4111_v4 = vld [vmem:[%s5937_s1 + $0x2d4] ss:$8 sps:$4 sm:$0xff]  }
  0x7c   :  { %3085 = vmatpush1.bf16.msra.mxu0 %v4018_v5  ;;  %2799 = vmatprep.subr.bf16.mxu1 %v4023_v6  ;;  %v4114_v5 = vld [vmem:[%s5937_s1 + $0x9d4] ss:$8 sps:$4 sm:$0xff]   ;;  %v4109_v6 = vld [vmem:[%s5937_s1 + $0x2d0] ss:$8 sps:$4 sm:$0xff]  }
  0x7d   :  { %3086 = vmatprep.subr.bf16.mxu0 %v4026_v7  ;;  %v4112_v7 = vld [vmem:[%s5937_s1 + $0x9d0] ss:$8 sps:$4 sm:$0xff]  }
  0x7f   :  { %2800 = vmatpush1.bf16.msra.mxu1 %v4021_v8  ;;  %v4117_v8 = vld [vmem:[%s5937_s1 + $0x2e4] ss:$8 sps:$4 sm:$0xff]  }
  0x80   :  { %3087 = vmatpush1.bf16.msra.mxu0 %v4024_v9  ;;  %2810 = vmatprep.subr.bf16.mxu1 %v4031_v10  ;;  %v4120_v9 = vld [vmem:[%s5937_s1 + $0x9e4] ss:$8 sps:$4 sm:$0xff]   ;;  %v4115_v10 = vld [vmem:[%s5937_s1 + $0x2e0] ss:$8 sps:$4 sm:$0xff]  }
  0x81   :  { %3097 = vmatprep.subr.bf16.mxu0 %v4036_v11  ;;  %v4118_v11 = vld [vmem:[%s5937_s1 + $0x9e0] ss:$8 sps:$4 sm:$0xff]  }
  0x82   :  { %2802 = vmatmul.mubr.bf16.vlgmr.msra.gmra.mrb[0].mxu1 %v3319_v12  ;;  %v4123_v12 = vld [vmem:[%s5937_s1 + $0x2f4] ss:$8 sps:$4 sm:$0xff]  }
  0x83   :  { %3089 = vmatmul.mubr.bf16.vlgmr.msra.gmra.mrb[0].mxu0 %v3333_v14  ;;  %2811 = vmatpush1.bf16.msra.mxu1 %v4029_v13  ;;  %v4126_v13 = vld [vmem:[%s5937_s1 + $0x9f4] ss:$8 sps:$4 sm:$0xff]   ;;  %v4121_v14 = vld [vmem:[%s5937_s1 + $0x2f0] ss:$8 sps:$4 sm:$0xff]  }
  0x84   :  { %3098 = vmatpush1.bf16.msra.mxu0 %v4034_v15  ;;  %2812 = vmatprep.subr.bf16.mxu1 %v4039_v16  ;;  %v4124_v15 = vld [vmem:[%s5937_s1 + $0x9f0] ss:$8 sps:$4 sm:$0xff]   ;;  %v4131_v16 = vld [vmem:[%s5937_s1 + $0x304] ss:$8 sps:$4 sm:$0xff]  }
  0x85   :  { %3099 = vmatprep.subr.bf16.mxu0 %v4042_v17  ;;  %2842 = vmatprep.mubr.bf16.mxu1 %v3322_v19  ;;  %v4136_v17 = vld [vmem:[%s5937_s1 + $0xa04] ss:$8 sps:$4 sm:$0xff]   ;;  %v4129_v19 = vld [vmem:[%s5937_s1 + $0x300] ss:$8 sps:$4 sm:$0xff]  }
  0x86   :  { %3129 = vmatprep.mubr.bf16.mxu0 %v3336_v23  ;;  %v3335_v23 = vcombine.low %v4963_v20, %v4963_v20 }
  0x87   :  { %2813 = vmatpush1.bf16.msra.mxu1 %v4037_v21  ;;  %v4134_v21 = vld [vmem:[%s5937_s1 + $0xa00] ss:$8 sps:$4 sm:$0xff]  }
  0x88   :  { %3100 = vmatpush1.bf16.msra.mxu0 %v4040_v22  ;;  %2814 = vmatprep.subr.bf16.mxu1 %v4045_v24  ;;  %v3321_v22 = vcombine.low %v4956_v18, %v4956_v18  ;;  %v5160_v24 = vld [vmem:[%s5938_s0 + $0x18] sm:$0xff] }
  0x89   :  { %3101 = vmatprep.subr.bf16.mxu0 %v4048_v25  ;;  %v5165_v25 = vld [vmem:[%s5938_s0 + $0x50] sm:$0xff]  ;;  %v3324_v20 = vcombine.high %v5160_v24, %v5160_v24 }
  0x8a   :  { %v4142_v18 = vld [vmem:[%s5937_s1 + $0xa14] ss:$8 sps:$4 sm:$0xff]  }
  0x8b   :  { %2815 = vmatpush1.bf16.msra.mxu1 %v4043_v26  ;;  %v4139_v26 = vld [vmem:[%s5937_s1 + $0x314] ss:$8 sps:$4 sm:$0xff]  }
  0x8c   :  { %3102 = vmatpush1.bf16.msra.mxu0 %v4046_v27  ;;  %2816 = vmatprep.subr.bf16.mxu1 %v4051_v28  ;;  %v3338_v27 = vcombine.high %v5165_v25, %v5165_v25  ;;  %v4137_v28 = vld [vmem:[%s5937_s1 + $0x310] ss:$8 sps:$4 sm:$0xff]  }
  0x8d   :  { %3103 = vmatprep.subr.bf16.mxu0 %v4054_v29  ;;  %v4140_v29 = vld [vmem:[%s5937_s1 + $0xa10] ss:$8 sps:$4 sm:$0xff]  }
  0x8f   :  { %2817 = vmatpush1.bf16.msra.mxu1 %v4049_v30  ;;  %v4145_v30 = vld [vmem:[%s5937_s1 + $0x324] ss:$8 sps:$4 sm:$0xff]  }
  0x90   :  { %3104 = vmatpush1.bf16.msra.mxu0 %v4052_v31  ;;  %2818 = vmatprep.subr.bf16.mxu1 %v4057_v32  ;;  %v4148_v31 = vld [vmem:[%s5937_s1 + $0xa24] ss:$8 sps:$4 sm:$0xff]   ;;  %v4143_v32 = vld [vmem:[%s5937_s1 + $0x320] ss:$8 sps:$4 sm:$0xff]  }
  0x91   :  { %3105 = vmatprep.subr.bf16.mxu0 %v4060_v33  ;;  %v4146_v33 = vld [vmem:[%s5937_s1 + $0xa20] ss:$8 sps:$4 sm:$0xff]  }
  0x93   :  { %2819 = vmatpush1.bf16.msra.mxu1 %v4055_v34  ;;  %v4151_v34 = vld [vmem:[%s5937_s1 + $0x334] ss:$8 sps:$4 sm:$0xff]  }
  0x94   :  { %3106 = vmatpush1.bf16.msra.mxu0 %v4058_v35  ;;  %2820 = vmatprep.subr.bf16.mxu1 %v4063_v36  ;;  %v4154_v35 = vld [vmem:[%s5937_s1 + $0xa34] ss:$8 sps:$4 sm:$0xff]   ;;  %v4149_v36 = vld [vmem:[%s5937_s1 + $0x330] ss:$8 sps:$4 sm:$0xff]  }
  0x95   :  { %3107 = vmatprep.subr.bf16.mxu0 %v4066_v37  ;;  %v4152_v37 = vld [vmem:[%s5937_s1 + $0xa30] ss:$8 sps:$4 sm:$0xff]  }
  0x97   :  { %2821 = vmatpush1.bf16.msra.mxu1 %v4061_v38  ;;  %v4157_v38 = vld [vmem:[%s5937_s1 + $0x344] ss:$8 sps:$4 sm:$0xff]  }
  0x98   :  { %3108 = vmatpush1.bf16.msra.mxu0 %v4064_v39  ;;  %2822 = vmatprep.subr.bf16.mxu1 %v4069_v40  ;;  %v4160_v39 = vld [vmem:[%s5937_s1 + $0xa44] ss:$8 sps:$4 sm:$0xff]   ;;  %v4155_v40 = vld [vmem:[%s5937_s1 + $0x340] ss:$8 sps:$4 sm:$0xff]  }
  0x99   :  { %3109 = vmatprep.subr.bf16.mxu0 %v4072_v41  ;;  %v4158_v41 = vld [vmem:[%s5937_s1 + $0xa40] ss:$8 sps:$4 sm:$0xff]  }
  0x9b   :  { %2823 = vmatpush1.bf16.msra.mxu1 %v4067_v42  ;;  %v4163_v42 = vld [vmem:[%s5937_s1 + $0x354] ss:$8 sps:$4 sm:$0xff]  }
  0x9c   :  { %3110 = vmatpush1.bf16.msra.mxu0 %v4070_v43  ;;  %2824 = vmatprep.subr.bf16.mxu1 %v4075_v44  ;;  %v4166_v43 = vld [vmem:[%s5937_s1 + $0xa54] ss:$8 sps:$4 sm:$0xff]   ;;  %v4161_v44 = vld [vmem:[%s5937_s1 + $0x350] ss:$8 sps:$4 sm:$0xff]  }
  0x9d   :  { %3111 = vmatprep.subr.bf16.mxu0 %v4078_v45  ;;  %v4164_v45 = vld [vmem:[%s5937_s1 + $0xa50] ss:$8 sps:$4 sm:$0xff]  }
  0x9f   :  { %2825 = vmatpush1.bf16.msra.mxu1 %v4073_v46  ;;  %v4169_v46 = vld [vmem:[%s5937_s1 + $0x364] ss:$8 sps:$4 sm:$0xff]  }
  0xa0   :  { %3112 = vmatpush1.bf16.msra.mxu0 %v4076_v47  ;;  %2826 = vmatprep.subr.bf16.mxu1 %v4081_v48  ;;  %v4172_v47 = vld [vmem:[%s5937_s1 + $0xa64] ss:$8 sps:$4 sm:$0xff]   ;;  %v4167_v48 = vld [vmem:[%s5937_s1 + $0x360] ss:$8 sps:$4 sm:$0xff]  }
  0xa1   :  { %3113 = vmatprep.subr.bf16.mxu0 %v4084_v49  ;;  %v4170_v49 = vld [vmem:[%s5937_s1 + $0xa60] ss:$8 sps:$4 sm:$0xff]  }
  0xa3   :  { %2827 = vmatpush1.bf16.msra.mxu1 %v4079_v50  ;;  %v4175_v50 = vld [vmem:[%s5937_s1 + $0x374] ss:$8 sps:$4 sm:$0xff]  }
  0xa4   :  { %3114 = vmatpush1.bf16.msra.mxu0 %v4082_v51  ;;  %2828 = vmatprep.subr.bf16.mxu1 %v4087_v52  ;;  %v4178_v51 = vld [vmem:[%s5937_s1 + $0xa74] ss:$8 sps:$4 sm:$0xff]   ;;  %v4173_v52 = vld [vmem:[%s5937_s1 + $0x370] ss:$8 sps:$4 sm:$0xff]  }
  0xa5   :  { %3115 = vmatprep.subr.bf16.mxu0 %v4090_v53  ;;  %v4176_v53 = vld [vmem:[%s5937_s1 + $0xa70] ss:$8 sps:$4 sm:$0xff]  }
  0xa7   :  { %2829 = vmatpush1.bf16.msra.mxu1 %v4085_v54  ;;  %v4181_v54 = vld [vmem:[%s5937_s1 + $0x384] ss:$8 sps:$4 sm:$0xff]  }
  0xa8   :  { %3116 = vmatpush1.bf16.msra.mxu0 %v4088_v55  ;;  %2830 = vmatprep.subr.bf16.mxu1 %v4093_v56  ;;  %v4184_v55 = vld [vmem:[%s5937_s1 + $0xa84] ss:$8 sps:$4 sm:$0xff]   ;;  %v4179_v56 = vld [vmem:[%s5937_s1 + $0x380] ss:$8 sps:$4 sm:$0xff]  }
  0xa9   :  { %3117 = vmatprep.subr.bf16.mxu0 %v4096_v57  ;;  %v4182_v57 = vld [vmem:[%s5937_s1 + $0xa80] ss:$8 sps:$4 sm:$0xff]  }
  0xab   :  { %2831 = vmatpush1.bf16.msra.mxu1 %v4091_v58  ;;  %v4187_v58 = vld [vmem:[%s5937_s1 + $0x394] ss:$8 sps:$4 sm:$0xff]  }
  0xac   :  { %3118 = vmatpush1.bf16.msra.mxu0 %v4094_v59  ;;  %2832 = vmatprep.subr.bf16.mxu1 %v4099_v60  ;;  %v4190_v59 = vld [vmem:[%s5937_s1 + $0xa94] ss:$8 sps:$4 sm:$0xff]   ;;  %v4185_v60 = vld [vmem:[%s5937_s1 + $0x390] ss:$8 sps:$4 sm:$0xff]  }
  0xad   :  { %3119 = vmatprep.subr.bf16.mxu0 %v4102_v61  ;;  %v4188_v61 = vld [vmem:[%s5937_s1 + $0xa90] ss:$8 sps:$4 sm:$0xff]  }
  0xaf   :  { %2833 = vmatpush1.bf16.msra.mxu1 %v4097_v62  ;;  %v4193_v62 = vld [vmem:[%s5937_s1 + $0x3a4] ss:$8 sps:$4 sm:$0xff]  }
  0xb0   :  { %3120 = vmatpush1.bf16.msra.mxu0 %v4100_v63  ;;  %2834 = vmatprep.subr.bf16.mxu1 %v4105_v0  ;;  %v4196_v63 = vld [vmem:[%s5937_s1 + $0xaa4] ss:$8 sps:$4 sm:$0xff]   ;;  %v4191_v0 = vld [vmem:[%s5937_s1 + $0x3a0] ss:$8 sps:$4 sm:$0xff]  }
  0xb1   :  { %3121 = vmatprep.subr.bf16.mxu0 %v4108_v1  ;;  %v4194_v1 = vld [vmem:[%s5937_s1 + $0xaa0] ss:$8 sps:$4 sm:$0xff]  }
  0xb3   :  { %2835 = vmatpush1.bf16.msra.mxu1 %v4103_v2  ;;  %v4199_v2 = vld [vmem:[%s5937_s1 + $0x3b4] ss:$8 sps:$4 sm:$0xff]  }
  0xb4   :  { %3122 = vmatpush1.bf16.msra.mxu0 %v4106_v3  ;;  %2836 = vmatprep.subr.bf16.mxu1 %v4111_v4  ;;  %v4202_v3 = vld [vmem:[%s5937_s1 + $0xab4] ss:$8 sps:$4 sm:$0xff]   ;;  %v4197_v4 = vld [vmem:[%s5937_s1 + $0x3b0] ss:$8 sps:$4 sm:$0xff]  }
  0xb5   :  { %3123 = vmatprep.subr.bf16.mxu0 %v4114_v5  ;;  %v4200_v5 = vld [vmem:[%s5937_s1 + $0xab0] ss:$8 sps:$4 sm:$0xff]  }
  0xb7   :  { %2837 = vmatpush1.bf16.msra.mxu1 %v4109_v6  ;;  %v4205_v6 = vld [vmem:[%s5937_s1 + $0x3c4] ss:$8 sps:$4 sm:$0xff]  }
  0xb8   :  { %3124 = vmatpush1.bf16.msra.mxu0 %v4112_v7  ;;  %2838 = vmatprep.subr.bf16.mxu1 %v4117_v8  ;;  %v4208_v7 = vld [vmem:[%s5937_s1 + $0xac4] ss:$8 sps:$4 sm:$0xff]   ;;  %v4203_v8 = vld [vmem:[%s5937_s1 + $0x3c0] ss:$8 sps:$4 sm:$0xff]  }
  0xb9   :  { %3125 = vmatprep.subr.bf16.mxu0 %v4120_v9  ;;  %v4206_v9 = vld [vmem:[%s5937_s1 + $0xac0] ss:$8 sps:$4 sm:$0xff]  }
  0xbb   :  { %2839 = vmatpush1.bf16.msra.mxu1 %v4115_v10  ;;  %v4211_v10 = vld [vmem:[%s5937_s1 + $0x3d4] ss:$8 sps:$4 sm:$0xff]  }
  0xbc   :  { %3126 = vmatpush1.bf16.msra.mxu0 %v4118_v11  ;;  %2840 = vmatprep.subr.bf16.mxu1 %v4123_v12  ;;  %v4214_v11 = vld [vmem:[%s5937_s1 + $0xad4] ss:$8 sps:$4 sm:$0xff]   ;;  %v4209_v12 = vld [vmem:[%s5937_s1 + $0x3d0] ss:$8 sps:$4 sm:$0xff]  }
  0xbd   :  { %3127 = vmatprep.subr.bf16.mxu0 %v4126_v13  ;;  %v4212_v13 = vld [vmem:[%s5937_s1 + $0xad0] ss:$8 sps:$4 sm:$0xff]  }
  0xbf   :  { %2841 = vmatpush1.bf16.msra.mxu1 %v4121_v14  ;;  %v4217_v14 = vld [vmem:[%s5937_s1 + $0x3e4] ss:$8 sps:$4 sm:$0xff]  }
  0xc0   :  { %3128 = vmatpush1.bf16.msra.mxu0 %v4124_v15  ;;  %2851 = vmatprep.subr.bf16.mxu1 %v4131_v16  ;;  %v4220_v15 = vld [vmem:[%s5937_s1 + $0xae4] ss:$8 sps:$4 sm:$0xff]   ;;  %v4215_v16 = vld [vmem:[%s5937_s1 + $0x3e0] ss:$8 sps:$4 sm:$0xff]  }
  0xc1   :  { %3138 = vmatprep.subr.bf16.mxu0 %v4136_v17  ;;  %v4218_v17 = vld [vmem:[%s5937_s1 + $0xae0] ss:$8 sps:$4 sm:$0xff]  }
  0xc2   :  { %2843 = vmatmul.mubr.bf16.vlgmr.msra.gmra.mrb[0].mxu1 %v3321_v22  ;;  %v4221_v22 = vld [vmem:[%s5937_s1 + $0x3f0] ss:$8 sps:$4 sm:$0xff]  }
  0xc3   :  { %3130 = vmatmul.mubr.bf16.vlgmr.msra.gmra.mrb[0].mxu0 %v3335_v23  ;;  %2852 = vmatpush1.bf16.msra.mxu1 %v4129_v19  ;;  %v4223_v19 = vld [vmem:[%s5937_s1 + $0x3f4] ss:$8 sps:$4 sm:$0xff]   ;;  %v4224_v23 = vld [vmem:[%s5937_s1 + $0xaf0] ss:$8 sps:$4 sm:$0xff]  }
  0xc4   :  { %3139 = vmatpush1.bf16.msra.mxu0 %v4134_v21  ;;  %2853 = vmatprep.subr.bf16.mxu1 %v4139_v26  ;;  %v4226_v21 = vld [vmem:[%s5937_s1 + $0xaf4] ss:$8 sps:$4 sm:$0xff]   ;;  %v4231_v26 = vld [vmem:[%s5937_s1 + $0x404] ss:$8 sps:$4 sm:$0xff]  }
  0xc5   :  { %3140 = vmatprep.subr.bf16.mxu0 %v4142_v18  ;;  %2883 = vmatprep.mubr.bf16.mxu1 %v3324_v20  ;;  %v4236_v18 = vld [vmem:[%s5937_s1 + $0xb04] ss:$8 sps:$4 sm:$0xff]  }
  0xc6   :  { %3170 = vmatprep.mubr.bf16.mxu0 %v3338_v27  ;;  %v5360_v20 = vld [vmem:[%s5938_s0 + $0x20] sm:$0xff]  ;;  %v3323_v27 = vcombine.low %v5160_v24, %v5160_v24  ;;  %v4239_v24 = vld [vmem:[%s5937_s1 + $0x414] ss:$8 sps:$4 sm:$0xff]  }
  0xc7   :  { %2854 = vmatpush1.bf16.msra.mxu1 %v4137_v28  ;;  %v3337_v28 = vcombine.low %v5165_v25, %v5165_v25  ;;  %v4242_v25 = vld [vmem:[%s5937_s1 + $0xb14] ss:$8 sps:$4 sm:$0xff]  }
  0xc8   :  { %3141 = vmatpush1.bf16.msra.mxu0 %v4140_v29  ;;  %2855 = vmatprep.subr.bf16.mxu1 %v4145_v30  ;;  %v5369_v29 = vld [vmem:[%s5938_s0 + $0x58] sm:$0xff]  ;;  %v4229_v30 = vld [vmem:[%s5937_s1 + $0x400] ss:$8 sps:$4 sm:$0xff]  }
  0xc9   :  { %3142 = vmatprep.subr.bf16.mxu0 %v4148_v31  ;;  %v4234_v31 = vld [vmem:[%s5937_s1 + $0xb00] ss:$8 sps:$4 sm:$0xff]  }
  0xcb   :  { %2856 = vmatpush1.bf16.msra.mxu1 %v4143_v32  ;;  %v3326_v32 = vcombine.high %v5360_v20, %v5360_v20 }
  0xcc   :  { %3143 = vmatpush1.bf16.msra.mxu0 %v4146_v33  ;;  %2857 = vmatprep.subr.bf16.mxu1 %v4151_v34  ;;  %v3340_v33 = vcombine.high %v5369_v29, %v5369_v29  ;;  %v4237_v34 = vld [vmem:[%s5937_s1 + $0x410] ss:$8 sps:$4 sm:$0xff]  }
  0xcd   :  { %3144 = vmatprep.subr.bf16.mxu0 %v4154_v35  ;;  %v4240_v35 = vld [vmem:[%s5937_s1 + $0xb10] ss:$8 sps:$4 sm:$0xff]  }
  0xcf   :  { %2858 = vmatpush1.bf16.msra.mxu1 %v4149_v36  ;;  %v4245_v36 = vld [vmem:[%s5937_s1 + $0x424] ss:$8 sps:$4 sm:$0xff]  }
  0xd0   :  { %3145 = vmatpush1.bf16.msra.mxu0 %v4152_v37  ;;  %2859 = vmatprep.subr.bf16.mxu1 %v4157_v38  ;;  %v4248_v37 = vld [vmem:[%s5937_s1 + $0xb24] ss:$8 sps:$4 sm:$0xff]   ;;  %v4243_v38 = vld [vmem:[%s5937_s1 + $0x420] ss:$8 sps:$4 sm:$0xff]  }
  0xd1   :  { %3146 = vmatprep.subr.bf16.mxu0 %v4160_v39  ;;  %v4246_v39 = vld [vmem:[%s5937_s1 + $0xb20] ss:$8 sps:$4 sm:$0xff]  }
  0xd3   :  { %2860 = vmatpush1.bf16.msra.mxu1 %v4155_v40  ;;  %v4251_v40 = vld [vmem:[%s5937_s1 + $0x434] ss:$8 sps:$4 sm:$0xff]  }
  0xd4   :  { %3147 = vmatpush1.bf16.msra.mxu0 %v4158_v41  ;;  %2861 = vmatprep.subr.bf16.mxu1 %v4163_v42  ;;  %v4254_v41 = vld [vmem:[%s5937_s1 + $0xb34] ss:$8 sps:$4 sm:$0xff]   ;;  %v4249_v42 = vld [vmem:[%s5937_s1 + $0x430] ss:$8 sps:$4 sm:$0xff]  }
  0xd5   :  { %3148 = vmatprep.subr.bf16.mxu0 %v4166_v43  ;;  %v4252_v43 = vld [vmem:[%s5937_s1 + $0xb30] ss:$8 sps:$4 sm:$0xff]  }
  0xd7   :  { %2862 = vmatpush1.bf16.msra.mxu1 %v4161_v44  ;;  %v4257_v44 = vld [vmem:[%s5937_s1 + $0x444] ss:$8 sps:$4 sm:$0xff]  }
  0xd8   :  { %3149 = vmatpush1.bf16.msra.mxu0 %v4164_v45  ;;  %2863 = vmatprep.subr.bf16.mxu1 %v4169_v46  ;;  %v4260_v45 = vld [vmem:[%s5937_s1 + $0xb44] ss:$8 sps:$4 sm:$0xff]   ;;  %v4255_v46 = vld [vmem:[%s5937_s1 + $0x440] ss:$8 sps:$4 sm:$0xff]  }
  0xd9   :  { %3150 = vmatprep.subr.bf16.mxu0 %v4172_v47  ;;  %v4258_v47 = vld [vmem:[%s5937_s1 + $0xb40] ss:$8 sps:$4 sm:$0xff]  }
  0xdb   :  { %2864 = vmatpush1.bf16.msra.mxu1 %v4167_v48  ;;  %v4263_v48 = vld [vmem:[%s5937_s1 + $0x454] ss:$8 sps:$4 sm:$0xff]  }
  0xdc   :  { %3151 = vmatpush1.bf16.msra.mxu0 %v4170_v49  ;;  %2865 = vmatprep.subr.bf16.mxu1 %v4175_v50  ;;  %v4266_v49 = vld [vmem:[%s5937_s1 + $0xb54] ss:$8 sps:$4 sm:$0xff]   ;;  %v4261_v50 = vld [vmem:[%s5937_s1 + $0x450] ss:$8 sps:$4 sm:$0xff]  }
  0xdd   :  { %3152 = vmatprep.subr.bf16.mxu0 %v4178_v51  ;;  %v4264_v51 = vld [vmem:[%s5937_s1 + $0xb50] ss:$8 sps:$4 sm:$0xff]  }
  0xdf   :  { %2866 = vmatpush1.bf16.msra.mxu1 %v4173_v52  ;;  %v4269_v52 = vld [vmem:[%s5937_s1 + $0x464] ss:$8 sps:$4 sm:$0xff]  }
  0xe0   :  { %3153 = vmatpush1.bf16.msra.mxu0 %v4176_v53  ;;  %2867 = vmatprep.subr.bf16.mxu1 %v4181_v54  ;;  %v4272_v53 = vld [vmem:[%s5937_s1 + $0xb64] ss:$8 sps:$4 sm:$0xff]   ;;  %v4267_v54 = vld [vmem:[%s5937_s1 + $0x460] ss:$8 sps:$4 sm:$0xff]  }
  0xe1   :  { %3154 = vmatprep.subr.bf16.mxu0 %v4184_v55  ;;  %v4270_v55 = vld [vmem:[%s5937_s1 + $0xb60] ss:$8 sps:$4 sm:$0xff]  }
  0xe3   :  { %2868 = vmatpush1.bf16.msra.mxu1 %v4179_v56  ;;  %v4275_v56 = vld [vmem:[%s5937_s1 + $0x474] ss:$8 sps:$4 sm:$0xff]  }
  0xe4   :  { %3155 = vmatpush1.bf16.msra.mxu0 %v4182_v57  ;;  %2869 = vmatprep.subr.bf16.mxu1 %v4187_v58  ;;  %v4278_v57 = vld [vmem:[%s5937_s1 + $0xb74] ss:$8 sps:$4 sm:$0xff]   ;;  %v4273_v58 = vld [vmem:[%s5937_s1 + $0x470] ss:$8 sps:$4 sm:$0xff]  }
  0xe5   :  { %3156 = vmatprep.subr.bf16.mxu0 %v4190_v59  ;;  %v4276_v59 = vld [vmem:[%s5937_s1 + $0xb70] ss:$8 sps:$4 sm:$0xff]  }
  0xe7   :  { %2870 = vmatpush1.bf16.msra.mxu1 %v4185_v60  ;;  %v4281_v60 = vld [vmem:[%s5937_s1 + $0x484] ss:$8 sps:$4 sm:$0xff]  }
  0xe8   :  { %3157 = vmatpush1.bf16.msra.mxu0 %v4188_v61  ;;  %2871 = vmatprep.subr.bf16.mxu1 %v4193_v62  ;;  %v4284_v61 = vld [vmem:[%s5937_s1 + $0xb84] ss:$8 sps:$4 sm:$0xff]   ;;  %v4279_v62 = vld [vmem:[%s5937_s1 + $0x480] ss:$8 sps:$4 sm:$0xff]  }
  0xe9   :  { %3158 = vmatprep.subr.bf16.mxu0 %v4196_v63  ;;  %v4282_v63 = vld [vmem:[%s5937_s1 + $0xb80] ss:$8 sps:$4 sm:$0xff]  }
  0xeb   :  { %2872 = vmatpush1.bf16.msra.mxu1 %v4191_v0  ;;  %v4287_v0 = vld [vmem:[%s5937_s1 + $0x494] ss:$8 sps:$4 sm:$0xff]  }
  0xec   :  { %3159 = vmatpush1.bf16.msra.mxu0 %v4194_v1  ;;  %2873 = vmatprep.subr.bf16.mxu1 %v4199_v2  ;;  %v4290_v1 = vld [vmem:[%s5937_s1 + $0xb94] ss:$8 sps:$4 sm:$0xff]   ;;  %v4285_v2 = vld [vmem:[%s5937_s1 + $0x490] ss:$8 sps:$4 sm:$0xff]  }
  0xed   :  { %3160 = vmatprep.subr.bf16.mxu0 %v4202_v3  ;;  %v4288_v3 = vld [vmem:[%s5937_s1 + $0xb90] ss:$8 sps:$4 sm:$0xff]  }
  0xef   :  { %2874 = vmatpush1.bf16.msra.mxu1 %v4197_v4  ;;  %v4293_v4 = vld [vmem:[%s5937_s1 + $0x4a4] ss:$8 sps:$4 sm:$0xff]  }
  0xf0   :  { %3161 = vmatpush1.bf16.msra.mxu0 %v4200_v5  ;;  %2875 = vmatprep.subr.bf16.mxu1 %v4205_v6  ;;  %v4296_v5 = vld [vmem:[%s5937_s1 + $0xba4] ss:$8 sps:$4 sm:$0xff]   ;;  %v4291_v6 = vld [vmem:[%s5937_s1 + $0x4a0] ss:$8 sps:$4 sm:$0xff]  }
  0xf1   :  { %3162 = vmatprep.subr.bf16.mxu0 %v4208_v7  ;;  %v4294_v7 = vld [vmem:[%s5937_s1 + $0xba0] ss:$8 sps:$4 sm:$0xff]  }
  0xf3   :  { %2876 = vmatpush1.bf16.msra.mxu1 %v4203_v8  ;;  %v4299_v8 = vld [vmem:[%s5937_s1 + $0x4b4] ss:$8 sps:$4 sm:$0xff]  }
  0xf4   :  { %3163 = vmatpush1.bf16.msra.mxu0 %v4206_v9  ;;  %2877 = vmatprep.subr.bf16.mxu1 %v4211_v10  ;;  %v4302_v9 = vld [vmem:[%s5937_s1 + $0xbb4] ss:$8 sps:$4 sm:$0xff]   ;;  %v4297_v10 = vld [vmem:[%s5937_s1 + $0x4b0] ss:$8 sps:$4 sm:$0xff]  }
  0xf5   :  { %3164 = vmatprep.subr.bf16.mxu0 %v4214_v11  ;;  %v4300_v11 = vld [vmem:[%s5937_s1 + $0xbb0] ss:$8 sps:$4 sm:$0xff]  }
  0xf7   :  { %2878 = vmatpush1.bf16.msra.mxu1 %v4209_v12  ;;  %v4305_v12 = vld [vmem:[%s5937_s1 + $0x4c4] ss:$8 sps:$4 sm:$0xff]  }
  0xf8   :  { %3165 = vmatpush1.bf16.msra.mxu0 %v4212_v13  ;;  %2879 = vmatprep.subr.bf16.mxu1 %v4217_v14  ;;  %v4308_v13 = vld [vmem:[%s5937_s1 + $0xbc4] ss:$8 sps:$4 sm:$0xff]   ;;  %v4303_v14 = vld [vmem:[%s5937_s1 + $0x4c0] ss:$8 sps:$4 sm:$0xff]  }
  0xf9   :  { %3166 = vmatprep.subr.bf16.mxu0 %v4220_v15  ;;  %v4306_v15 = vld [vmem:[%s5937_s1 + $0xbc0] ss:$8 sps:$4 sm:$0xff]  }
  0xfb   :  { %2880 = vmatpush1.bf16.msra.mxu1 %v4215_v16  ;;  %v4311_v16 = vld [vmem:[%s5937_s1 + $0x4d4] ss:$8 sps:$4 sm:$0xff]  }
  0xfc   :  { %3167 = vmatpush1.bf16.msra.mxu0 %v4218_v17  ;;  %2881 = vmatprep.subr.bf16.mxu1 %v4223_v19  ;;  %v4314_v17 = vld [vmem:[%s5937_s1 + $0xbd4] ss:$8 sps:$4 sm:$0xff]   ;;  %v4309_v19 = vld [vmem:[%s5937_s1 + $0x4d0] ss:$8 sps:$4 sm:$0xff]  }
  0xfd   :  { %3168 = vmatprep.subr.bf16.mxu0 %v4226_v21  ;;  %v4312_v21 = vld [vmem:[%s5937_s1 + $0xbd0] ss:$8 sps:$4 sm:$0xff]  }
  0xff   :  { %2882 = vmatpush1.bf16.msra.mxu1 %v4221_v22  ;;  %v4317_v22 = vld [vmem:[%s5937_s1 + $0x4e4] ss:$8 sps:$4 sm:$0xff]  }
 0x100   :  { %3169 = vmatpush1.bf16.msra.mxu0 %v4224_v23  ;;  %2892 = vmatprep.subr.bf16.mxu1 %v4231_v26  ;;  %v4320_v23 = vld [vmem:[%s5937_s1 + $0xbe4] ss:$8 sps:$4 sm:$0xff]   ;;  %v4315_v26 = vld [vmem:[%s5937_s1 + $0x4e0] ss:$8 sps:$4 sm:$0xff]  }
 0x101   :  { %3179 = vmatprep.subr.bf16.mxu0 %v4236_v18  ;;  %v4318_v18 = vld [vmem:[%s5937_s1 + $0xbe0] ss:$8 sps:$4 sm:$0xff]  }
 0x102   :  { %2884 = vmatmul.mubr.bf16.vlgmr.msra.gmra.mrb[0].mxu1 %v3323_v27  ;;  %v4323_v27 = vld [vmem:[%s5937_s1 + $0x4f4] ss:$8 sps:$4 sm:$0xff]  }
 0x103   :  { %3171 = vmatmul.mubr.bf16.vlgmr.msra.gmra.mrb[0].mxu0 %v3337_v28  ;;  %2893 = vmatpush1.bf16.msra.mxu1 %v4229_v30  ;;  %v4326_v28 = vld [vmem:[%s5937_s1 + $0xbf4] ss:$8 sps:$4 sm:$0xff]   ;;  %v4321_v30 = vld [vmem:[%s5937_s1 + $0x4f0] ss:$8 sps:$4 sm:$0xff]  }
 0x104   :  { %3180 = vmatpush1.bf16.msra.mxu0 %v4234_v31  ;;  %2894 = vmatprep.subr.bf16.mxu1 %v4239_v24  ;;  %v4324_v31 = vld [vmem:[%s5937_s1 + $0xbf0] ss:$8 sps:$4 sm:$0xff]   ;;  %v4331_v24 = vld [vmem:[%s5937_s1 + $0x504] ss:$8 sps:$4 sm:$0xff]  }
 0x105   :  { %3181 = vmatprep.subr.bf16.mxu0 %v4242_v25  ;;  %2924 = vmatprep.mubr.bf16.mxu1 %v3326_v32  ;;  %v4336_v25 = vld [vmem:[%s5937_s1 + $0xc04] ss:$8 sps:$4 sm:$0xff]   ;;  %v3325_v32 = vcombine.low %v5360_v20, %v5360_v20  ;;  %v4334_v20 = vld [vmem:[%s5937_s1 + $0xc00] ss:$8 sps:$4 sm:$0xff]  }
 0x106   :  { %3211 = vmatprep.mubr.bf16.mxu0 %v3340_v33  ;;  %v3339_v33 = vcombine.low %v5369_v29, %v5369_v29  ;;  %v4339_v29 = vld [vmem:[%s5937_s1 + $0x514] ss:$8 sps:$4 sm:$0xff]  }
 0x107   :  { %2895 = vmatpush1.bf16.msra.mxu1 %v4237_v34  ;;  %v5574_v34 = vld [vmem:[%s5938_s0 + $0x28] sm:$0xff] }
 0x108   :  { %3182 = vmatpush1.bf16.msra.mxu0 %v4240_v35  ;;  %2896 = vmatprep.subr.bf16.mxu1 %v4245_v36  ;;  %v5579_v35 = vld [vmem:[%s5938_s0 + $0x60] sm:$0xff] }
 0x109   :  { %3183 = vmatprep.subr.bf16.mxu0 %v4248_v37  ;;  %v4329_v36 = vld [vmem:[%s5937_s1 + $0x500] ss:$8 sps:$4 sm:$0xff]   ;;  %v4342_v37 = vld [vmem:[%s5937_s1 + $0xc14] ss:$8 sps:$4 sm:$0xff]  }
 0x10b   :  { %2897 = vmatpush1.bf16.msra.mxu1 %v4243_v38  ;;  %v3328_v38 = vcombine.high %v5574_v34, %v5574_v34 }
 0x10c   :  { %3184 = vmatpush1.bf16.msra.mxu0 %v4246_v39  ;;  %2898 = vmatprep.subr.bf16.mxu1 %v4251_v40  ;;  %v3342_v39 = vcombine.high %v5579_v35, %v5579_v35  ;;  %v4337_v40 = vld [vmem:[%s5937_s1 + $0x510] ss:$8 sps:$4 sm:$0xff]  }
 0x10d   :  { %3185 = vmatprep.subr.bf16.mxu0 %v4254_v41  ;;  %v4340_v41 = vld [vmem:[%s5937_s1 + $0xc10] ss:$8 sps:$4 sm:$0xff]  }
 0x10f   :  { %2899 = vmatpush1.bf16.msra.mxu1 %v4249_v42  ;;  %v4345_v42 = vld [vmem:[%s5937_s1 + $0x524] ss:$8 sps:$4 sm:$0xff]  }
 0x110   :  { %3186 = vmatpush1.bf16.msra.mxu0 %v4252_v43  ;;  %2900 = vmatprep.subr.bf16.mxu1 %v4257_v44  ;;  %v4348_v43 = vld [vmem:[%s5937_s1 + $0xc24] ss:$8 sps:$4 sm:$0xff]   ;;  %v4343_v44 = vld [vmem:[%s5937_s1 + $0x520] ss:$8 sps:$4 sm:$0xff]  }
 0x111   :  { %3187 = vmatprep.subr.bf16.mxu0 %v4260_v45  ;;  %v4346_v45 = vld [vmem:[%s5937_s1 + $0xc20] ss:$8 sps:$4 sm:$0xff]  }
 0x113   :  { %2901 = vmatpush1.bf16.msra.mxu1 %v4255_v46  ;;  %v4351_v46 = vld [vmem:[%s5937_s1 + $0x534] ss:$8 sps:$4 sm:$0xff]  }
 0x114   :  { %3188 = vmatpush1.bf16.msra.mxu0 %v4258_v47  ;;  %2902 = vmatprep.subr.bf16.mxu1 %v4263_v48  ;;  %v4354_v47 = vld [vmem:[%s5937_s1 + $0xc34] ss:$8 sps:$4 sm:$0xff]   ;;  %v4349_v48 = vld [vmem:[%s5937_s1 + $0x530] ss:$8 sps:$4 sm:$0xff]  }
 0x115   :  { %3189 = vmatprep.subr.bf16.mxu0 %v4266_v49  ;;  %v4352_v49 = vld [vmem:[%s5937_s1 + $0xc30] ss:$8 sps:$4 sm:$0xff]  }
 0x117   :  { %2903 = vmatpush1.bf16.msra.mxu1 %v4261_v50  ;;  %v4357_v50 = vld [vmem:[%s5937_s1 + $0x544] ss:$8 sps:$4 sm:$0xff]  }
 0x118   :  { %3190 = vmatpush1.bf16.msra.mxu0 %v4264_v51  ;;  %2904 = vmatprep.subr.bf16.mxu1 %v4269_v52  ;;  %v4360_v51 = vld [vmem:[%s5937_s1 + $0xc44] ss:$8 sps:$4 sm:$0xff]   ;;  %v4355_v52 = vld [vmem:[%s5937_s1 + $0x540] ss:$8 sps:$4 sm:$0xff]  }
 0x119   :  { %3191 = vmatprep.subr.bf16.mxu0 %v4272_v53  ;;  %v4358_v53 = vld [vmem:[%s5937_s1 + $0xc40] ss:$8 sps:$4 sm:$0xff]  }
 0x11b   :  { %2905 = vmatpush1.bf16.msra.mxu1 %v4267_v54  ;;  %v4363_v54 = vld [vmem:[%s5937_s1 + $0x554] ss:$8 sps:$4 sm:$0xff]  }
 0x11c   :  { %3192 = vmatpush1.bf16.msra.mxu0 %v4270_v55  ;;  %2906 = vmatprep.subr.bf16.mxu1 %v4275_v56  ;;  %v4366_v55 = vld [vmem:[%s5937_s1 + $0xc54] ss:$8 sps:$4 sm:$0xff]   ;;  %v4361_v56 = vld [vmem:[%s5937_s1 + $0x550] ss:$8 sps:$4 sm:$0xff]  }
 0x11d   :  { %3193 = vmatprep.subr.bf16.mxu0 %v4278_v57  ;;  %v4364_v57 = vld [vmem:[%s5937_s1 + $0xc50] ss:$8 sps:$4 sm:$0xff]  }
 0x11f   :  { %2907 = vmatpush1.bf16.msra.mxu1 %v4273_v58  ;;  %v4369_v58 = vld [vmem:[%s5937_s1 + $0x564] ss:$8 sps:$4 sm:$0xff]  }
 0x120   :  { %3194 = vmatpush1.bf16.msra.mxu0 %v4276_v59  ;;  %2908 = vmatprep.subr.bf16.mxu1 %v4281_v60  ;;  %v4372_v59 = vld [vmem:[%s5937_s1 + $0xc64] ss:$8 sps:$4 sm:$0xff]   ;;  %v4367_v60 = vld [vmem:[%s5937_s1 + $0x560] ss:$8 sps:$4 sm:$0xff]  }
 0x121   :  { %3195 = vmatprep.subr.bf16.mxu0 %v4284_v61  ;;  %v4370_v61 = vld [vmem:[%s5937_s1 + $0xc60] ss:$8 sps:$4 sm:$0xff]  }
 0x123   :  { %2909 = vmatpush1.bf16.msra.mxu1 %v4279_v62  ;;  %v4375_v62 = vld [vmem:[%s5937_s1 + $0x574] ss:$8 sps:$4 sm:$0xff]  }
 0x124   :  { %3196 = vmatpush1.bf16.msra.mxu0 %v4282_v63  ;;  %2910 = vmatprep.subr.bf16.mxu1 %v4287_v0  ;;  %v4378_v63 = vld [vmem:[%s5937_s1 + $0xc74] ss:$8 sps:$4 sm:$0xff]   ;;  %v4373_v0 = vld [vmem:[%s5937_s1 + $0x570] ss:$8 sps:$4 sm:$0xff]  }
 0x125   :  { %3197 = vmatprep.subr.bf16.mxu0 %v4290_v1  ;;  %v4376_v1 = vld [vmem:[%s5937_s1 + $0xc70] ss:$8 sps:$4 sm:$0xff]  }
 0x127   :  { %2911 = vmatpush1.bf16.msra.mxu1 %v4285_v2  ;;  %v4381_v2 = vld [vmem:[%s5937_s1 + $0x584] ss:$8 sps:$4 sm:$0xff]  }
 0x128   :  { %3198 = vmatpush1.bf16.msra.mxu0 %v4288_v3  ;;  %2912 = vmatprep.subr.bf16.mxu1 %v4293_v4  ;;  %v4384_v3 = vld [vmem:[%s5937_s1 + $0xc84] ss:$8 sps:$4 sm:$0xff]   ;;  %v4379_v4 = vld [vmem:[%s5937_s1 + $0x580] ss:$8 sps:$4 sm:$0xff]  }
 0x129   :  { %3199 = vmatprep.subr.bf16.mxu0 %v4296_v5  ;;  %v4382_v5 = vld [vmem:[%s5937_s1 + $0xc80] ss:$8 sps:$4 sm:$0xff]  }
 0x12b   :  { %2913 = vmatpush1.bf16.msra.mxu1 %v4291_v6  ;;  %v4387_v6 = vld [vmem:[%s5937_s1 + $0x594] ss:$8 sps:$4 sm:$0xff]  }
 0x12c   :  { %3200 = vmatpush1.bf16.msra.mxu0 %v4294_v7  ;;  %2914 = vmatprep.subr.bf16.mxu1 %v4299_v8  ;;  %v4390_v7 = vld [vmem:[%s5937_s1 + $0xc94] ss:$8 sps:$4 sm:$0xff]   ;;  %v4385_v8 = vld [vmem:[%s5937_s1 + $0x590] ss:$8 sps:$4 sm:$0xff]  }
 0x12d   :  { %3201 = vmatprep.subr.bf16.mxu0 %v4302_v9  ;;  %v4388_v9 = vld [vmem:[%s5937_s1 + $0xc90] ss:$8 sps:$4 sm:$0xff]  }
 0x12f   :  { %2915 = vmatpush1.bf16.msra.mxu1 %v4297_v10  ;;  %v4393_v10 = vld [vmem:[%s5937_s1 + $0x5a4] ss:$8 sps:$4 sm:$0xff]  }
 0x130   :  { %3202 = vmatpush1.bf16.msra.mxu0 %v4300_v11  ;;  %2916 = vmatprep.subr.bf16.mxu1 %v4305_v12  ;;  %v4396_v11 = vld [vmem:[%s5937_s1 + $0xca4] ss:$8 sps:$4 sm:$0xff]   ;;  %v4391_v12 = vld [vmem:[%s5937_s1 + $0x5a0] ss:$8 sps:$4 sm:$0xff]  }
 0x131   :  { %3203 = vmatprep.subr.bf16.mxu0 %v4308_v13  ;;  %v4394_v13 = vld [vmem:[%s5937_s1 + $0xca0] ss:$8 sps:$4 sm:$0xff]  }
 0x133   :  { %2917 = vmatpush1.bf16.msra.mxu1 %v4303_v14  ;;  %v4399_v14 = vld [vmem:[%s5937_s1 + $0x5b4] ss:$8 sps:$4 sm:$0xff]  }
 0x134   :  { %3204 = vmatpush1.bf16.msra.mxu0 %v4306_v15  ;;  %2918 = vmatprep.subr.bf16.mxu1 %v4311_v16  ;;  %v4402_v15 = vld [vmem:[%s5937_s1 + $0xcb4] ss:$8 sps:$4 sm:$0xff]   ;;  %v4397_v16 = vld [vmem:[%s5937_s1 + $0x5b0] ss:$8 sps:$4 sm:$0xff]  }
 0x135   :  { %3205 = vmatprep.subr.bf16.mxu0 %v4314_v17  ;;  %v4400_v17 = vld [vmem:[%s5937_s1 + $0xcb0] ss:$8 sps:$4 sm:$0xff]  }
 0x137   :  { %2919 = vmatpush1.bf16.msra.mxu1 %v4309_v19  ;;  %v4405_v19 = vld [vmem:[%s5937_s1 + $0x5c4] ss:$8 sps:$4 sm:$0xff]  }
 0x138   :  { %3206 = vmatpush1.bf16.msra.mxu0 %v4312_v21  ;;  %2920 = vmatprep.subr.bf16.mxu1 %v4317_v22  ;;  %v4408_v21 = vld [vmem:[%s5937_s1 + $0xcc4] ss:$8 sps:$4 sm:$0xff]   ;;  %v4403_v22 = vld [vmem:[%s5937_s1 + $0x5c0] ss:$8 sps:$4 sm:$0xff]  }
 0x139   :  { %3207 = vmatprep.subr.bf16.mxu0 %v4320_v23  ;;  %v4406_v23 = vld [vmem:[%s5937_s1 + $0xcc0] ss:$8 sps:$4 sm:$0xff]  }
 0x13b   :  { %2921 = vmatpush1.bf16.msra.mxu1 %v4315_v26  ;;  %v4411_v26 = vld [vmem:[%s5937_s1 + $0x5d4] ss:$8 sps:$4 sm:$0xff]  }
 0x13c   :  { %3208 = vmatpush1.bf16.msra.mxu0 %v4318_v18  ;;  %2922 = vmatprep.subr.bf16.mxu1 %v4323_v27  ;;  %v4414_v18 = vld [vmem:[%s5937_s1 + $0xcd4] ss:$8 sps:$4 sm:$0xff]   ;;  %v4409_v27 = vld [vmem:[%s5937_s1 + $0x5d0] ss:$8 sps:$4 sm:$0xff]  }
 0x13d   :  { %3209 = vmatprep.subr.bf16.mxu0 %v4326_v28  ;;  %v4412_v28 = vld [vmem:[%s5937_s1 + $0xcd0] ss:$8 sps:$4 sm:$0xff]  }
 0x13f   :  { %2923 = vmatpush1.bf16.msra.mxu1 %v4321_v30  ;;  %v4417_v30 = vld [vmem:[%s5937_s1 + $0x5e4] ss:$8 sps:$4 sm:$0xff]  }
 0x140   :  { %3210 = vmatpush1.bf16.msra.mxu0 %v4324_v31  ;;  %2933 = vmatprep.subr.bf16.mxu1 %v4331_v24  ;;  %v4420_v31 = vld [vmem:[%s5937_s1 + $0xce4] ss:$8 sps:$4 sm:$0xff]   ;;  %v4415_v24 = vld [vmem:[%s5937_s1 + $0x5e0] ss:$8 sps:$4 sm:$0xff]  }
 0x141   :  { %3220 = vmatprep.subr.bf16.mxu0 %v4336_v25  ;;  %v4418_v25 = vld [vmem:[%s5937_s1 + $0xce0] ss:$8 sps:$4 sm:$0xff]  }
 0x142   :  { %2925 = vmatmul.mubr.bf16.vlgmr.msra.gmra.mrb[0].mxu1 %v3325_v32  ;;  %v4423_v32 = vld [vmem:[%s5937_s1 + $0x5f4] ss:$8 sps:$4 sm:$0xff]  }
 0x143   :  { %3212 = vmatmul.mubr.bf16.vlgmr.msra.gmra.mrb[0].mxu0 %v3339_v33  ;;  %2934 = vmatpush1.bf16.msra.mxu1 %v4329_v36  ;;  %v4426_v33 = vld [vmem:[%s5937_s1 + $0xcf4] ss:$8 sps:$4 sm:$0xff]   ;;  %v4421_v36 = vld [vmem:[%s5937_s1 + $0x5f0] ss:$8 sps:$4 sm:$0xff]  }
 0x144   :  { %3221 = vmatpush1.bf16.msra.mxu0 %v4334_v20  ;;  %2935 = vmatprep.subr.bf16.mxu1 %v4339_v29  ;;  %v4424_v20 = vld [vmem:[%s5937_s1 + $0xcf0] ss:$8 sps:$4 sm:$0xff]   ;;  %v4431_v29 = vld [vmem:[%s5937_s1 + $0x604] ss:$8 sps:$4 sm:$0xff]  }
 0x145   :  { %3222 = vmatprep.subr.bf16.mxu0 %v4342_v37  ;;  %2965 = vmatprep.mubr.bf16.mxu1 %v3328_v38  ;;  %v4436_v37 = vld [vmem:[%s5937_s1 + $0xd04] ss:$8 sps:$4 sm:$0xff]   ;;  %v3327_v38 = vcombine.low %v5574_v34, %v5574_v34  ;;  %v4439_v34 = vld [vmem:[%s5937_s1 + $0x614] ss:$8 sps:$4 sm:$0xff]  }
 0x146   :  { %3252 = vmatprep.mubr.bf16.mxu0 %v3342_v39  ;;  %v3341_v39 = vcombine.low %v5579_v35, %v5579_v35  ;;  %v4442_v35 = vld [vmem:[%s5937_s1 + $0xd14] ss:$8 sps:$4 sm:$0xff]  }
 0x147   :  { %2936 = vmatpush1.bf16.msra.mxu1 %v4337_v40  ;;  %v5784_v40 = vld [vmem:[%s5938_s0 + $0x30] sm:$0xff] }
 0x148   :  { %3223 = vmatpush1.bf16.msra.mxu0 %v4340_v41  ;;  %2937 = vmatprep.subr.bf16.mxu1 %v4345_v42  ;;  %v4429_v41 = vld [vmem:[%s5937_s1 + $0x600] ss:$8 sps:$4 sm:$0xff]  }
 0x149   :  { %3224 = vmatprep.subr.bf16.mxu0 %v4348_v43  ;;  %v4434_v42 = vld [vmem:[%s5937_s1 + $0xd00] ss:$8 sps:$4 sm:$0xff]   ;;  %v3330_v43 = vcombine.high %v5784_v40, %v5784_v40 }
 0x14b   :  { %2938 = vmatpush1.bf16.msra.mxu1 %v4343_v44  ;;  %v4437_v44 = vld [vmem:[%s5937_s1 + $0x610] ss:$8 sps:$4 sm:$0xff]  }
 0x14c   :  { %3225 = vmatpush1.bf16.msra.mxu0 %v4346_v45  ;;  %2939 = vmatprep.subr.bf16.mxu1 %v4351_v46  ;;  %v4440_v45 = vld [vmem:[%s5937_s1 + $0xd10] ss:$8 sps:$4 sm:$0xff]   ;;  %v4445_v46 = vld [vmem:[%s5937_s1 + $0x624] ss:$8 sps:$4 sm:$0xff]  }
 0x14d   :  { %3226 = vmatprep.subr.bf16.mxu0 %v4354_v47  ;;  %v4448_v47 = vld [vmem:[%s5937_s1 + $0xd24] ss:$8 sps:$4 sm:$0xff]  }
 0x14f   :  { %2940 = vmatpush1.bf16.msra.mxu1 %v4349_v48  ;;  %v4506_v48 = vmov 0  }
 0x150   :  { %3227 = vmatpush1.bf16.msra.mxu0 %v4352_v49  ;;  %2941 = vmatprep.subr.bf16.mxu1 %v4357_v50  ;;  %v4443_v49 = vld [vmem:[%s5937_s1 + $0x620] ss:$8 sps:$4 sm:$0xff]  }
 0x151   :  { %3228 = vmatprep.subr.bf16.mxu0 %v4360_v51  ;;  %v4446_v50 = vld [vmem:[%s5937_s1 + $0xd20] ss:$8 sps:$4 sm:$0xff]   ;;  %v4451_v51 = vld [vmem:[%s5937_s1 + $0x634] ss:$8 sps:$4 sm:$0xff]  }
 0x153   :  { %2942 = vmatpush1.bf16.msra.mxu1 %v4355_v52  ;;  %v4454_v52 = vld [vmem:[%s5937_s1 + $0xd34] ss:$8 sps:$4 sm:$0xff]  }
 0x154   :  { %3229 = vmatpush1.bf16.msra.mxu0 %v4358_v53  ;;  %2943 = vmatprep.subr.bf16.mxu1 %v4363_v54  ;;  %v4449_v53 = vld [vmem:[%s5937_s1 + $0x630] ss:$8 sps:$4 sm:$0xff]  }
 0x155   :  { %3230 = vmatprep.subr.bf16.mxu0 %v4366_v55  ;;  %v4452_v54 = vld [vmem:[%s5937_s1 + $0xd30] ss:$8 sps:$4 sm:$0xff]   ;;  %v4457_v55 = vld [vmem:[%s5937_s1 + $0x644] ss:$8 sps:$4 sm:$0xff]  }
 0x157   :  { %2944 = vmatpush1.bf16.msra.mxu1 %v4361_v56  ;;  %v4460_v56 = vld [vmem:[%s5937_s1 + $0xd44] ss:$8 sps:$4 sm:$0xff]  }
 0x158   :  { %3231 = vmatpush1.bf16.msra.mxu0 %v4364_v57  ;;  %2945 = vmatprep.subr.bf16.mxu1 %v4369_v58  ;;  %v4455_v57 = vld [vmem:[%s5937_s1 + $0x640] ss:$8 sps:$4 sm:$0xff]  }
 0x159   :  { %3232 = vmatprep.subr.bf16.mxu0 %v4372_v59  ;;  %v4458_v58 = vld [vmem:[%s5937_s1 + $0xd40] ss:$8 sps:$4 sm:$0xff]   ;;  %v4463_v59 = vld [vmem:[%s5937_s1 + $0x654] ss:$8 sps:$4 sm:$0xff]  }
 0x15b   :  { %2946 = vmatpush1.bf16.msra.mxu1 %v4367_v60  ;;  %v4466_v60 = vld [vmem:[%s5937_s1 + $0xd54] ss:$8 sps:$4 sm:$0xff]  }
 0x15c   :  { %3233 = vmatpush1.bf16.msra.mxu0 %v4370_v61  ;;  %2947 = vmatprep.subr.bf16.mxu1 %v4375_v62  ;;  %v4461_v61 = vld [vmem:[%s5937_s1 + $0x650] ss:$8 sps:$4 sm:$0xff]  }
 0x15d   :  { %3234 = vmatprep.subr.bf16.mxu0 %v4378_v63  ;;  %v4464_v62 = vld [vmem:[%s5937_s1 + $0xd50] ss:$8 sps:$4 sm:$0xff]   ;;  %v4469_v63 = vld [vmem:[%s5937_s1 + $0x664] ss:$8 sps:$4 sm:$0xff]  }
 0x15f   :  { %2948 = vmatpush1.bf16.msra.mxu1 %v4373_v0  ;;  %v4472_v0 = vld [vmem:[%s5937_s1 + $0xd64] ss:$8 sps:$4 sm:$0xff]  }
 0x160   :  { %3235 = vmatpush1.bf16.msra.mxu0 %v4376_v1  ;;  %2949 = vmatprep.subr.bf16.mxu1 %v4381_v2  ;;  %v4467_v1 = vld [vmem:[%s5937_s1 + $0x660] ss:$8 sps:$4 sm:$0xff]  }
 0x161   :  { %3236 = vmatprep.subr.bf16.mxu0 %v4384_v3  ;;  %v4470_v2 = vld [vmem:[%s5937_s1 + $0xd60] ss:$8 sps:$4 sm:$0xff]   ;;  %v4475_v3 = vld [vmem:[%s5937_s1 + $0x674] ss:$8 sps:$4 sm:$0xff]  }
 0x163   :  { %2950 = vmatpush1.bf16.msra.mxu1 %v4379_v4  ;;  %v4478_v4 = vld [vmem:[%s5937_s1 + $0xd74] ss:$8 sps:$4 sm:$0xff]  }
 0x164   :  { %3237 = vmatpush1.bf16.msra.mxu0 %v4382_v5  ;;  %2951 = vmatprep.subr.bf16.mxu1 %v4387_v6  ;;  %v4473_v5 = vld [vmem:[%s5937_s1 + $0x670] ss:$8 sps:$4 sm:$0xff]  }
 0x165   :  { %3238 = vmatprep.subr.bf16.mxu0 %v4390_v7  ;;  %v4476_v6 = vld [vmem:[%s5937_s1 + $0xd70] ss:$8 sps:$4 sm:$0xff]   ;;  %v4481_v7 = vld [vmem:[%s5937_s1 + $0x684] ss:$8 sps:$4 sm:$0xff]  }
 0x167   :  { %2952 = vmatpush1.bf16.msra.mxu1 %v4385_v8  ;;  %v4482_v8 = vld [vmem:[%s5938_s0 + $0x68] ss:$0 sps:$4 sm:$0xff]  }
 0x168   :  { %3239 = vmatpush1.bf16.msra.mxu0 %v4388_v9  ;;  %2953 = vmatprep.subr.bf16.mxu1 %v4393_v10  ;;  %v4479_v9 = vld [vmem:[%s5937_s1 + $0x680] ss:$8 sps:$4 sm:$0xff]   ;;  %v4485_v10 = vld [vmem:[%s5937_s1 + $0x694] ss:$8 sps:$4 sm:$0xff]  }
 0x169   :  { %3240 = vmatprep.subr.bf16.mxu0 %v4396_v11  ;;  %v4483_v11 = vld [vmem:[%s5937_s1 + $0x690] ss:$8 sps:$4 sm:$0xff]  }
 0x16b   :  { %2954 = vmatpush1.bf16.msra.mxu1 %v4391_v12  ;;  %v4488_v12 = vld [vmem:[%s5937_s1 + $0x6a4] ss:$8 sps:$4 sm:$0xff]  }
 0x16c   :  { %3241 = vmatpush1.bf16.msra.mxu0 %v4394_v13  ;;  %2955 = vmatprep.subr.bf16.mxu1 %v4399_v14  ;;  %v4486_v13 = vld [vmem:[%s5937_s1 + $0x6a0] ss:$8 sps:$4 sm:$0xff]   ;;  %v4491_v14 = vld [vmem:[%s5937_s1 + $0x6b4] ss:$8 sps:$4 sm:$0xff]  }
 0x16d   :  { %3242 = vmatprep.subr.bf16.mxu0 %v4402_v15  ;;  %v4489_v15 = vld [vmem:[%s5937_s1 + $0x6b0] ss:$8 sps:$4 sm:$0xff]  }
 0x16f   :  { %2956 = vmatpush1.bf16.msra.mxu1 %v4397_v16  ;;  %v4494_v16 = vld [vmem:[%s5937_s1 + $0x6c4] ss:$8 sps:$4 sm:$0xff]  }
 0x170   :  { %3243 = vmatpush1.bf16.msra.mxu0 %v4400_v17  ;;  %2957 = vmatprep.subr.bf16.mxu1 %v4405_v19  ;;  %v4492_v17 = vld [vmem:[%s5937_s1 + $0x6c0] ss:$8 sps:$4 sm:$0xff]   ;;  %v4497_v19 = vld [vmem:[%s5937_s1 + $0x6d4] ss:$8 sps:$4 sm:$0xff]  }
 0x171   :  { %3244 = vmatprep.subr.bf16.mxu0 %v4408_v21  ;;  %v4495_v21 = vld [vmem:[%s5937_s1 + $0x6d0] ss:$8 sps:$4 sm:$0xff]  }
 0x173   :  { %2958 = vmatpush1.bf16.msra.mxu1 %v4403_v22  ;;  %v4500_v22 = vld [vmem:[%s5937_s1 + $0x6e4] ss:$8 sps:$4 sm:$0xff]  }
 0x174   :  { %3245 = vmatpush1.bf16.msra.mxu0 %v4406_v23  ;;  %2959 = vmatprep.subr.bf16.mxu1 %v4411_v26  ;;  %v4498_v23 = vld [vmem:[%s5937_s1 + $0x6e0] ss:$8 sps:$4 sm:$0xff]   ;;  %v4503_v26 = vld [vmem:[%s5937_s1 + $0x6f4] ss:$8 sps:$4 sm:$0xff]  }
 0x175   :  { %3246 = vmatprep.subr.bf16.mxu0 %v4414_v18  ;;  %v4501_v18 = vld [vmem:[%s5937_s1 + $0x6f0] ss:$8 sps:$4 sm:$0xff]  }
 0x177   :  { %2960 = vmatpush1.bf16.msra.mxu1 %v4409_v27  ;;  %v3329_v27 = vcombine.low %v5784_v40, %v5784_v40 }
 0x178   :  { %3247 = vmatpush1.bf16.msra.mxu0 %v4412_v28  ;;  %2961 = vmatprep.subr.bf16.mxu1 %v4417_v30 }
 0x179   :  { %3248 = vmatprep.subr.bf16.mxu0 %v4420_v31 }
 0x17b   :  { %2962 = vmatpush1.bf16.msra.mxu1 %v4415_v24 }
 0x17c   :  { %3249 = vmatpush1.bf16.msra.mxu0 %v4418_v25  ;;  %2963 = vmatprep.subr.bf16.mxu1 %v4423_v32  ;;  %v463_v25 = vlaneseq }
 0x17d   :  { %3250 = vmatprep.subr.bf16.mxu0 %v4426_v33 }
 0x17e   :  { %v464_v32 = vshrl.u32 %v463_v25, 7 }
 0x17f   :  { %2964 = vmatpush1.bf16.msra.mxu1 %v4421_v36  ;;  %v461_v36 = vld [vmem:[%s5939_s2] sm:$0x3] }
 0x180   :  { %3251 = vmatpush1.bf16.msra.mxu0 %v4424_v20  ;;  %2974 = vmatprep.subr.bf16.mxu1 %v4431_v29  ;;  %v465_v33 = vsub.s32 0, %v464_v32  ;;  %v469_v20 = vsub.s32 1, %v464_v32 }
 0x181   :  { %3261 = vmatprep.subr.bf16.mxu0 %v4436_v37 }
 0x182   :  { %2966 = vmatmul.mubr.bf16.vlgmr.msra.gmra.mrb[0].mxu1 %v3327_v38  ;;  %v466_v29 = vrot.slane %v461_v36, %v465_v33  ;;  %v470_v37 = vrot.slane %v461_v36, %v469_v20 }
 0x183   :  { %3253 = vmatmul.mubr.bf16.vlgmr.msra.gmra.mrb[0].mxu0 %v3341_v39  ;;  %2975 = vmatpush1.bf16.msra.mxu1 %v4429_v41 }
 0x184   :  { %3262 = vmatpush1.bf16.msra.mxu0 %v4434_v42  ;;  %2976 = vmatprep.subr.bf16.mxu1 %v4439_v34 }
 0x185   :  { %3263 = vmatprep.subr.bf16.mxu0 %v4442_v35  ;;  %3293 = vmatprep.mubr.bf16.mxu0 %v4506_v48 }
 0x186   :  { %3006 = vmatprep.mubr.bf16.mxu1 %v3330_v43 }
 0x187   :  { %2977 = vmatpush1.bf16.msra.mxu1 %v4437_v44 }
 0x188   :  { %3264 = vmatpush1.bf16.msra.mxu0 %v4440_v45  ;;  %2978 = vmatprep.subr.bf16.mxu1 %v4445_v46 }
 0x189   :  { %3265 = vmatprep.subr.bf16.mxu0 %v4448_v47 }
 0x18b   :  { %2979 = vmatpush1.bf16.msra.mxu1 %v4443_v49 }
 0x18c   :  { %3266 = vmatpush1.bf16.msra.mxu0 %v4446_v50  ;;  %2980 = vmatprep.subr.bf16.mxu1 %v4451_v51 }
 0x18d   :  { %3267 = vmatprep.subr.bf16.mxu0 %v4454_v52 }
 0x18f   :  { %2981 = vmatpush1.bf16.msra.mxu1 %v4449_v53 }
 0x190   :  { %3268 = vmatpush1.bf16.msra.mxu0 %v4452_v54  ;;  %2982 = vmatprep.subr.bf16.mxu1 %v4457_v55 }
 0x191   :  { %3269 = vmatprep.subr.bf16.mxu0 %v4460_v56 }
 0x193   :  { %2983 = vmatpush1.bf16.msra.mxu1 %v4455_v57 }
 0x194   :  { %3270 = vmatpush1.bf16.msra.mxu0 %v4458_v58  ;;  %2984 = vmatprep.subr.bf16.mxu1 %v4463_v59 }
 0x195   :  { %3271 = vmatprep.subr.bf16.mxu0 %v4466_v60 }
 0x197   :  { %2985 = vmatpush1.bf16.msra.mxu1 %v4461_v61 }
 0x198   :  { %3272 = vmatpush1.bf16.msra.mxu0 %v4464_v62  ;;  %2986 = vmatprep.subr.bf16.mxu1 %v4469_v63 }
 0x199   :  { %3273 = vmatprep.subr.bf16.mxu0 %v4472_v0 }
 0x19b   :  { %2987 = vmatpush1.bf16.msra.mxu1 %v4467_v1 }
 0x19c   :  { %3274 = vmatpush1.bf16.msra.mxu0 %v4470_v2  ;;  %2988 = vmatprep.subr.bf16.mxu1 %v4475_v3 }
 0x19d   :  { %3275 = vmatprep.subr.bf16.mxu0 %v4478_v4 }
 0x19f   :  { %2989 = vmatpush1.bf16.msra.mxu1 %v4473_v5 }
 0x1a0   :  { %3276 = vmatpush1.bf16.msra.mxu0 %v4476_v6  ;;  %2990 = vmatprep.subr.bf16.mxu1 %v4481_v7 }
 0x1a3   :  { %3294 = vmatmul.mubr.bf16.vlgmr.msra.gmra.mrb[0].mxu0 %v4482_v8  ;;  %2991 = vmatpush1.bf16.msra.mxu1 %v4479_v9 }
 0x1a4   :  { %2992 = vmatprep.subr.bf16.mxu1 %v4485_v10 }
 0x1a7   :  { %2993 = vmatpush1.bf16.msra.mxu1 %v4483_v11 }
 0x1a8   :  { %2994 = vmatprep.subr.bf16.mxu1 %v4488_v12 }
 0x1ab   :  { %2995 = vmatpush1.bf16.msra.mxu1 %v4486_v13 }
 0x1ac   :  { %2996 = vmatprep.subr.bf16.mxu1 %v4491_v14 }
 0x1af   :  { %2997 = vmatpush1.bf16.msra.mxu1 %v4489_v15 }
 0x1b0   :  { %2998 = vmatprep.subr.bf16.mxu1 %v4494_v16 }
 0x1b3   :  { %2999 = vmatpush1.bf16.msra.mxu1 %v4492_v17 }
 0x1b4   :  { %3000 = vmatprep.subr.bf16.mxu1 %v4497_v19 }
 0x1b7   :  { %3001 = vmatpush1.bf16.msra.mxu1 %v4495_v21 }
 0x1b8   :  { %3002 = vmatprep.subr.bf16.mxu1 %v4500_v22 }
 0x1bb   :  { %3003 = vmatpush1.bf16.msra.mxu1 %v4498_v23 }
 0x1bc   :  { %3004 = vmatprep.subr.bf16.mxu1 %v4503_v26 }
 0x1bf   :  { %3005 = vmatpush1.bf16.msra.mxu1 %v4501_v18 }
 0x1c2   :  { %3007 = vmatmul.mubr.bf16.vlgmr.msra.gmra.mrb[0].mxu1 %v3329_v27 }
 0x276   :  { %v3295_v28 = vpop.f32.mrb[0].mxu0 }
 0x277   :  { %v3297_v30 = vpop.f32.mrb[1].mxu0 }
 0x278   :  { %v3299_v31 = vpop.f32.mrb[2].mxu0 }
 0x279   :  { %v3300_v24 = vpop.f32.mrb[3].mxu0 }
 0x295   :  { %v3008_v38 = vpop.f32.mrb[0].mxu1 }
 0x296   :  { %v3778_v39 = vadd.f32 %v3008_v38, %v466_v29  ;;  %v3010_v41 = vpop.f32.mrb[1].mxu1 }
 0x297   :  { %v3780_v40 = vadd.f32 %v3010_v41, %v470_v37  ;;  %v3012_v42 = vpop.f32.mrb[2].mxu1 }
 0x298   :  { %v3779_v34 = vadd.f32 %v3778_v39, %v3295_v28  ;;  %v3013_v35 = vpop.f32.mrb[3].mxu1 }
 0x299   :  { %v3781_v43 = vadd.f32 %v3780_v40, %v3297_v30 }
 0x29a   :  { %v3302_v44 = vmax.f32 %v3779_v34, 0.0 }
 0x29b   :  { %v3303_v45 = vmax.f32 %v3781_v43, 0.0 }
 0x29d   :  { %v3777_v46 = vpack.c.bf16 %v3303_v45, %v3302_v44 }
 0x29f   :  { %3312 = vst [vmem:[%s5940_s3] sm:$0xff] %v3777_v46 }

// kernel: alexnet_forward.11
= control target key start
LH: loop header
LB: loop body
LE: loop exit
PB: predicated region body
PF: predicated region fallthrough
CT: control target
= control target key end

     0   :  { %v153_v35 = vlaneseq  ;;  %v2105_v36 = vmov 1966171168   ;;  %s2776_s0 = inlined_call_operand.vmem [shape: bf16[2,256], index: 0, kind: input, shape index: {}]   ;;  %s2777_s1 = inlined_call_operand.vmem [shape: bf16[256,1024], index: 1, kind: input, shape index: {}]   ;;  %s2778_s2 = inlined_call_operand.vmem [shape: f32[1,1024], index: 2, kind: input, shape index: {}]   ;;  %s2779_s3 = inlined_call_operand.vmem [shape: bf16[1024,2], index: 3, kind: input, shape index: {}]   ;;  %s2780_s4 = inlined_call_operand.vmem [shape: f32[1,2], index: 4, kind: input, shape index: {}]   ;;  %s2781_s5 = inlined_call_operand.hbm [shape: f32[2,2], index: 5, kind: output, shape index: {}]  }
   0x1   :  { %v23_v0 = vld [vmem:[%s2777_s1] sm:$0xff]  ;;  %v24_v2 = vld [vmem:[%s2777_s1 + $0x8] sm:$0xff]  ;;  %v203_v37 = vunpack.c.l.s4 %v2105_v36 }
   0x2   :  { %v27_v1 = vld [vmem:[%s2777_s1 + $0x20] sm:$0xff]  ;;  %v28_v4 = vld [vmem:[%s2777_s1 + $0x28] sm:$0xff]  ;;  %v2209_v46 = vshrl.u32 %v153_v35, 7 }
   0x3   :  { %v1735_v3 = vcombine.high %v23_v0, %v27_v1  ;;  %v1734_v5 = vcombine.low %v23_v0, %v27_v1  ;;  %v31_v6 = vld [vmem:[%s2777_s1 + $0x40] sm:$0xff]  ;;  %v1737_v8 = vcombine.high %v24_v2, %v28_v4  ;;  %v1736_v9 = vcombine.low %v24_v2, %v28_v4  ;;  %v32_v11 = vld [vmem:[%s2777_s1 + $0x48] sm:$0xff] }
   0x4   :  { %v35_v7 = vld [vmem:[%s2777_s1 + $0x60] sm:$0xff]  ;;  %v36_v12 = vld [vmem:[%s2777_s1 + $0x68] sm:$0xff]  ;;  %v204_v47 = vunpack.c.0.s8 %v203_v37 }
   0x5   :  { %v1743_v10 = vcombine.high %v31_v6, %v35_v7  ;;  %v39_v13 = vld [vmem:[%s2777_s1 + $0x80] sm:$0xff]  ;;  %858 = vmatprep.subr.bf16.mxu0 %v1735_v3  ;;  %v1745_v14 = vcombine.high %v32_v11, %v36_v12  ;;  %v40_v16 = vld [vmem:[%s2777_s1 + $0x88] sm:$0xff]  ;;  %899 = vmatprep.subr.bf16.mxu1 %v1737_v8  ;;  %v1742_v18 = vcombine.low %v31_v6, %v35_v7 }
   0x6   :  { %v43_v15 = vld [vmem:[%s2777_s1 + $0xa0] sm:$0xff]  ;;  %v44_v17 = vld [vmem:[%s2777_s1 + $0xa8] sm:$0xff]  ;;  %859 = vmatpush1.bf16.msra.mxu0 %v1734_v5  ;;  %900 = vmatpush1.bf16.msra.mxu1 %v1736_v9  ;;  %v1744_v19 = vcombine.low %v32_v11, %v36_v12  ;;  %v2224_v56 = vsub.s32 %v204_v47, %v2209_v46 }
   0x7   :  { %860 = vmatprep.subr.bf16.mxu0 %v1743_v10  ;;  %v1751_v20 = vcombine.high %v39_v13, %v43_v15  ;;  %901 = vmatprep.subr.bf16.mxu1 %v1745_v14  ;;  %v1753_v21 = vcombine.high %v40_v16, %v44_v17  ;;  %v47_v22 = vld [vmem:[%s2777_s1 + $0xc0] sm:$0xff]  ;;  %v48_v24 = vld [vmem:[%s2777_s1 + $0xc8] sm:$0xff]  ;;  %v1750_v26 = vcombine.low %v39_v13, %v43_v15 }
   0x8   :  { %v51_v23 = vld [vmem:[%s2777_s1 + $0xe0] sm:$0xff]  ;;  %v52_v25 = vld [vmem:[%s2777_s1 + $0xe8] sm:$0xff]  ;;  %v1752_v27 = vcombine.low %v40_v16, %v44_v17 }
   0x9   :  { %v1759_v28 = vcombine.high %v47_v22, %v51_v23  ;;  %v1761_v29 = vcombine.high %v48_v24, %v52_v25  ;;  %v55_v30 = vld [vmem:[%s2777_s1 + $0x100] sm:$0xff]  ;;  %v56_v32 = vld [vmem:[%s2777_s1 + $0x108] sm:$0xff]  ;;  %v1758_v34 = vcombine.low %v47_v22, %v51_v23  ;;  %v1760_v38 = vcombine.low %v48_v24, %v52_v25 }
   0xa   :  { %861 = vmatpush1.bf16.msra.mxu0 %v1742_v18  ;;  %902 = vmatpush1.bf16.msra.mxu1 %v1744_v19  ;;  %v59_v31 = vld [vmem:[%s2777_s1 + $0x120] sm:$0xff]  ;;  %v60_v33 = vld [vmem:[%s2777_s1 + $0x128] sm:$0xff] }
   0xb   :  { %862 = vmatprep.subr.bf16.mxu0 %v1751_v20  ;;  %903 = vmatprep.subr.bf16.mxu1 %v1753_v21  ;;  %v1767_v39 = vcombine.high %v55_v30, %v59_v31  ;;  %v1769_v40 = vcombine.high %v56_v32, %v60_v33  ;;  %v63_v41 = vld [vmem:[%s2777_s1 + $0x140] sm:$0xff]  ;;  %v64_v43 = vld [vmem:[%s2777_s1 + $0x148] sm:$0xff]  ;;  %v1766_v45 = vcombine.low %v55_v30, %v59_v31 }
   0xc   :  { %v67_v42 = vld [vmem:[%s2777_s1 + $0x160] sm:$0xff]  ;;  %v68_v44 = vld [vmem:[%s2777_s1 + $0x168] sm:$0xff]  ;;  %v1768_v48 = vcombine.low %v56_v32, %v60_v33 }
   0xd   :  { %v1775_v49 = vcombine.high %v63_v41, %v67_v42  ;;  %v1777_v50 = vcombine.high %v64_v43, %v68_v44  ;;  %v71_v51 = vld [vmem:[%s2777_s1 + $0x180] sm:$0xff]  ;;  %v72_v53 = vld [vmem:[%s2777_s1 + $0x188] sm:$0xff]  ;;  %v1774_v55 = vcombine.low %v63_v41, %v67_v42  ;;  %v1776_v57 = vcombine.low %v64_v43, %v68_v44 }
   0xe   :  { %863 = vmatpush1.bf16.msra.mxu0 %v1750_v26  ;;  %904 = vmatpush1.bf16.msra.mxu1 %v1752_v27  ;;  %v75_v52 = vld [vmem:[%s2777_s1 + $0x1a0] sm:$0xff]  ;;  %v76_v54 = vld [vmem:[%s2777_s1 + $0x1a8] sm:$0xff] }
   0xf   :  { %864 = vmatprep.subr.bf16.mxu0 %v1759_v28  ;;  %905 = vmatprep.subr.bf16.mxu1 %v1761_v29  ;;  %v1783_v58 = vcombine.high %v71_v51, %v75_v52  ;;  %v2229_v59 = vld.sshfl [vmem:[%s2776_s0] sm:$0x11 pattern:$0x75316420]  ;;  %v1785_v60 = vcombine.high %v72_v53, %v76_v54  ;;  %v80_v0 = vld [vmem:[%s2777_s1 + $0x1c8] sm:$0xff]  ;;  %v1782_v2 = vcombine.low %v71_v51, %v75_v52 }
  0x10   :  { %v79_v61 = vld [vmem:[%s2777_s1 + $0x1c0] sm:$0xff]  ;;  %v201_v63 = vcombine.high %v2229_v59, %v2229_v59  ;;  %v84_v1 = vld [vmem:[%s2777_s1 + $0x1e8] sm:$0xff]  ;;  %v1784_v4 = vcombine.low %v72_v53, %v76_v54 }
  0x11   :  { %v83_v62 = vld [vmem:[%s2777_s1 + $0x1e0] sm:$0xff]  ;;  %v1793_v6 = vcombine.high %v80_v0, %v84_v1  ;;  %v88_v9 = vld [vmem:[%s2777_s1 + $0x208] sm:$0xff]  ;;  %v1792_v12 = vcombine.low %v80_v0, %v84_v1 }
  0x12   :  { %865 = vmatpush1.bf16.msra.mxu0 %v1758_v34  ;;  %906 = vmatpush1.bf16.msra.mxu1 %v1760_v38  ;;  %v2246_v3 = vrot.slane %v201_v63, %v2224_v56  ;;  %v1791_v5 = vcombine.high %v79_v61, %v83_v62  ;;  %v87_v7 = vld [vmem:[%s2777_s1 + $0x200] sm:$0xff]  ;;  %v92_v10 = vld [vmem:[%s2777_s1 + $0x228] sm:$0xff]  ;;  %v1790_v11 = vcombine.low %v79_v61, %v83_v62 }
  0x13   :  { %866 = vmatprep.subr.bf16.mxu0 %v1767_v39  ;;  %907 = vmatprep.subr.bf16.mxu1 %v1769_v40  ;;  %v91_v8 = vld [vmem:[%s2777_s1 + $0x220] sm:$0xff]  ;;  %v1801_v14 = vcombine.high %v88_v9, %v92_v10  ;;  %v96_v17 = vld [vmem:[%s2777_s1 + $0x248] sm:$0xff]  ;;  %v1800_v20 = vcombine.low %v88_v9, %v92_v10 }
  0x14   :  { %890 = vmatprep.mubr.bf16.mxu0 %v2246_v3  ;;  %931 = vmatprep.mubr.bf16.mxu1 %v2246_v3  ;;  %v1799_v13 = vcombine.high %v87_v7, %v91_v8  ;;  %v95_v15 = vld [vmem:[%s2777_s1 + $0x240] sm:$0xff]  ;;  %v100_v18 = vld [vmem:[%s2777_s1 + $0x268] sm:$0xff]  ;;  %v1798_v19 = vcombine.low %v87_v7, %v91_v8  ;;  %v25_v8 = vld [vmem:[%s2777_s1 + $0x10] sm:$0xff] }
  0x15   :  { %v99_v16 = vld [vmem:[%s2777_s1 + $0x260] sm:$0xff]  ;;  %v1809_v22 = vcombine.high %v96_v17, %v100_v18  ;;  %v104_v25 = vld [vmem:[%s2777_s1 + $0x288] sm:$0xff]  ;;  %v1808_v28 = vcombine.low %v96_v17, %v100_v18 }
  0x16   :  { %867 = vmatpush1.bf16.msra.mxu0 %v1766_v45  ;;  %908 = vmatpush1.bf16.msra.mxu1 %v1768_v48  ;;  %v1807_v21 = vcombine.high %v95_v15, %v99_v16  ;;  %v103_v23 = vld [vmem:[%s2777_s1 + $0x280] sm:$0xff]  ;;  %v108_v26 = vld [vmem:[%s2777_s1 + $0x2a8] sm:$0xff]  ;;  %v1806_v27 = vcombine.low %v95_v15, %v99_v16  ;;  %v33_v16 = vld [vmem:[%s2777_s1 + $0x50] sm:$0xff] }
  0x17   :  { %868 = vmatprep.subr.bf16.mxu0 %v1775_v49  ;;  %909 = vmatprep.subr.bf16.mxu1 %v1777_v50  ;;  %v107_v24 = vld [vmem:[%s2777_s1 + $0x2a0] sm:$0xff]  ;;  %v1817_v30 = vcombine.high %v104_v25, %v108_v26  ;;  %v112_v33 = vld [vmem:[%s2777_s1 + $0x2c8] sm:$0xff]  ;;  %v1816_v36 = vcombine.low %v104_v25, %v108_v26  ;;  %v41_v25 = vld [vmem:[%s2777_s1 + $0x90] sm:$0xff] }
  0x18   :  { %v1815_v29 = vcombine.high %v103_v23, %v107_v24  ;;  %v111_v31 = vld [vmem:[%s2777_s1 + $0x2c0] sm:$0xff]  ;;  %v116_v34 = vld [vmem:[%s2777_s1 + $0x2e8] sm:$0xff]  ;;  %v1814_v35 = vcombine.low %v103_v23, %v107_v24  ;;  %v38_v23 = vld [vmem:[%s2777_s1 + $0x78] sm:$0xff] }
  0x19   :  { %v115_v32 = vld [vmem:[%s2777_s1 + $0x2e0] sm:$0xff]  ;;  %v1825_v38 = vcombine.high %v112_v33, %v116_v34  ;;  %v120_v41 = vld [vmem:[%s2777_s1 + $0x308] sm:$0xff]  ;;  %v1824_v45 = vcombine.low %v112_v33, %v116_v34 }
  0x1a   :  { %869 = vmatpush1.bf16.msra.mxu0 %v1774_v55  ;;  %910 = vmatpush1.bf16.msra.mxu1 %v1776_v57  ;;  %v1823_v37 = vcombine.high %v111_v31, %v115_v32  ;;  %v119_v39 = vld [vmem:[%s2777_s1 + $0x300] sm:$0xff]  ;;  %v124_v42 = vld [vmem:[%s2777_s1 + $0x328] sm:$0xff]  ;;  %v1822_v43 = vcombine.low %v111_v31, %v115_v32  ;;  %v49_v31 = vld [vmem:[%s2777_s1 + $0xd0] sm:$0xff] }
  0x1b   :  { %870 = vmatprep.subr.bf16.mxu0 %v1783_v58  ;;  %911 = vmatprep.subr.bf16.mxu1 %v1785_v60  ;;  %v123_v40 = vld [vmem:[%s2777_s1 + $0x320] sm:$0xff]  ;;  %v1833_v49 = vcombine.high %v120_v41, %v124_v42  ;;  %v128_v50 = vld [vmem:[%s2777_s1 + $0x348] sm:$0xff]  ;;  %v1832_v54 = vcombine.low %v120_v41, %v124_v42  ;;  %v53_v32 = vld [vmem:[%s2777_s1 + $0xf0] sm:$0xff] }
  0x1c   :  { %v127_v44 = vld [vmem:[%s2777_s1 + $0x340] sm:$0xff]  ;;  %v1831_v47 = vcombine.high %v119_v39, %v123_v40  ;;  %v132_v51 = vld [vmem:[%s2777_s1 + $0x368] sm:$0xff]  ;;  %v1830_v52 = vcombine.low %v119_v39, %v123_v40  ;;  %v57_v39 = vld [vmem:[%s2777_s1 + $0x110] sm:$0xff]  ;;  %v1763_v42 = vcombine.high %v49_v31, %v53_v32 }
  0x1d   :  { %v131_v48 = vld [vmem:[%s2777_s1 + $0x360] sm:$0xff]  ;;  %v1841_v58 = vcombine.high %v128_v50, %v132_v51  ;;  %v136_v60 = vld [vmem:[%s2777_s1 + $0x388] sm:$0xff]  ;;  %v1840_v0 = vcombine.low %v128_v50, %v132_v51  ;;  %v61_v40 = vld [vmem:[%s2777_s1 + $0x130] sm:$0xff] }
  0x1e   :  { %871 = vmatpush1.bf16.msra.mxu0 %v1782_v2  ;;  %912 = vmatpush1.bf16.msra.mxu1 %v1784_v4  ;;  %v135_v53 = vld [vmem:[%s2777_s1 + $0x380] sm:$0xff]  ;;  %v1839_v55 = vcombine.high %v127_v44, %v131_v48  ;;  %v140_v61 = vld [vmem:[%s2777_s1 + $0x3a8] sm:$0xff]  ;;  %v1838_v62 = vcombine.low %v127_v44, %v131_v48  ;;  %v69_v48 = vld [vmem:[%s2777_s1 + $0x170] sm:$0xff]  ;;  %v1771_v50 = vcombine.high %v57_v39, %v61_v40 }
  0x1f   :  { %872 = vmatprep.subr.bf16.mxu0 %v1791_v5  ;;  %913 = vmatprep.subr.bf16.mxu1 %v1793_v6  ;;  %v139_v57 = vld [vmem:[%s2777_s1 + $0x3a0] sm:$0xff]  ;;  %v1849_v4 = vcombine.high %v136_v60, %v140_v61  ;;  %v144_v5 = vld [vmem:[%s2777_s1 + $0x3c8] sm:$0xff]  ;;  %v1848_v9 = vcombine.low %v136_v60, %v140_v61  ;;  %v66_v51 = vld [vmem:[%s2777_s1 + $0x158] sm:$0xff] }
  0x20   :  { %v143_v63 = vld [vmem:[%s2777_s1 + $0x3c0] sm:$0xff]  ;;  %v1847_v1 = vcombine.high %v135_v53, %v139_v57  ;;  %v148_v6 = vld [vmem:[%s2777_s1 + $0x3e8] sm:$0xff]  ;;  %v1846_v7 = vcombine.low %v135_v53, %v139_v57  ;;  %v77_v57 = vld [vmem:[%s2777_s1 + $0x1b0] sm:$0xff] }
  0x21   :  { %v147_v2 = vld [vmem:[%s2777_s1 + $0x3e0] sm:$0xff]  ;;  %v1856_v17 = vcombine.low %v144_v5, %v148_v6  ;;  %v74_v61 = vld [vmem:[%s2777_s1 + $0x198] sm:$0xff] }
  0x22   :  { %873 = vmatpush1.bf16.msra.mxu0 %v1790_v11  ;;  %914 = vmatpush1.bf16.msra.mxu1 %v1792_v12  ;;  %v1855_v10 = vcombine.high %v143_v63, %v147_v2  ;;  %v29_v11 = vld [vmem:[%s2777_s1 + $0x30] sm:$0xff]  ;;  %v1857_v12 = vcombine.high %v144_v5, %v148_v6  ;;  %v1854_v15 = vcombine.low %v143_v63, %v147_v2  ;;  %v82_v6 = vld [vmem:[%s2777_s1 + $0x1d8] sm:$0xff] }
  0x23   :  { %874 = vmatprep.subr.bf16.mxu0 %v1799_v13  ;;  %915 = vmatprep.subr.bf16.mxu1 %v1801_v14  ;;  %v26_v13 = vld [vmem:[%s2777_s1 + $0x18] sm:$0xff]  ;;  %v1739_v18 = vcombine.high %v25_v8, %v29_v11  ;;  %v1738_v24 = vcombine.low %v25_v8, %v29_v11  ;;  %v85_v2 = vld [vmem:[%s2777_s1 + $0x1f0] sm:$0xff] }
  0x24   :  { %v30_v14 = vld [vmem:[%s2777_s1 + $0x38] sm:$0xff]  ;;  %v93_v11 = vld [vmem:[%s2777_s1 + $0x230] sm:$0xff] }
  0x25   :  { %v1740_v26 = vcombine.low %v26_v13, %v30_v14 }
  0x26   :  { %875 = vmatpush1.bf16.msra.mxu0 %v1798_v19  ;;  %916 = vmatpush1.bf16.msra.mxu1 %v1800_v20  ;;  %v37_v19 = vld [vmem:[%s2777_s1 + $0x70] sm:$0xff]  ;;  %v1741_v20 = vcombine.high %v26_v13, %v30_v14  ;;  %v90_v14 = vld [vmem:[%s2777_s1 + $0x218] sm:$0xff] }
  0x27   :  { %876 = vmatprep.subr.bf16.mxu0 %v1807_v21  ;;  %917 = vmatprep.subr.bf16.mxu1 %v1809_v22  ;;  %v34_v21 = vld [vmem:[%s2777_s1 + $0x58] sm:$0xff]  ;;  %v2369_v22 = vrot.slane %v2229_v59, %v2224_v56 }
  0x28   :  { %v1749_v56 = vcombine.high %v34_v21, %v38_v23  ;;  %v42_v59 = vld [vmem:[%s2777_s1 + $0x98] sm:$0xff]  ;;  %v1748_v33 = vcombine.low %v34_v21, %v38_v23  ;;  %v97_v21 = vld [vmem:[%s2777_s1 + $0x250] sm:$0xff] }
  0x29   :  { %v101_v23 = vld [vmem:[%s2777_s1 + $0x270] sm:$0xff] }
  0x2a   :  { %877 = vmatpush1.bf16.msra.mxu0 %v1806_v27  ;;  %918 = vmatpush1.bf16.msra.mxu1 %v1808_v28  ;;  %v1747_v27 = vcombine.high %v33_v16, %v37_v19  ;;  %v45_v28 = vld [vmem:[%s2777_s1 + $0xb0] sm:$0xff] }
  0x2b   :  { %878 = vmatprep.subr.bf16.mxu0 %v1815_v29  ;;  %919 = vmatprep.subr.bf16.mxu1 %v1817_v30  ;;  %v46_v29 = vld [vmem:[%s2777_s1 + $0xb8] sm:$0xff]  ;;  %v1746_v30 = vcombine.low %v33_v16, %v37_v19  ;;  %v1755_v34 = vcombine.high %v41_v25, %v45_v28 }
  0x2c   :  { %v1756_v41 = vcombine.low %v42_v59, %v46_v29 }
  0x2e   :  { %879 = vmatpush1.bf16.msra.mxu0 %v1814_v35  ;;  %920 = vmatpush1.bf16.msra.mxu1 %v1816_v36  ;;  %v50_v35 = vld [vmem:[%s2777_s1 + $0xd8] sm:$0xff] }
  0x2f   :  { %880 = vmatprep.subr.bf16.mxu0 %v1823_v37  ;;  %921 = vmatprep.subr.bf16.mxu1 %v1825_v38  ;;  %v54_v36 = vld [vmem:[%s2777_s1 + $0xf8] sm:$0xff]  ;;  %v1757_v37 = vcombine.high %v42_v59, %v46_v29  ;;  %v1754_v38 = vcombine.low %v41_v25, %v45_v28 }
  0x30   :  { %v1765_v44 = vcombine.high %v50_v35, %v54_v36 }
  0x32   :  { %881 = vmatpush1.bf16.msra.mxu0 %v1822_v43  ;;  %922 = vmatpush1.bf16.msra.mxu1 %v1824_v45  ;;  %v58_v43 = vld [vmem:[%s2777_s1 + $0x118] sm:$0xff]  ;;  %v1762_v45 = vcombine.low %v49_v31, %v53_v32 }
  0x33   :  { %882 = vmatprep.subr.bf16.mxu0 %v1831_v47  ;;  %923 = vmatprep.subr.bf16.mxu1 %v1833_v49  ;;  %v65_v47 = vld [vmem:[%s2777_s1 + $0x150] sm:$0xff]  ;;  %v1764_v49 = vcombine.low %v50_v35, %v54_v36 }
  0x34   :  { %v1779_v60 = vcombine.high %v65_v47, %v69_v48 }
  0x36   :  { %883 = vmatpush1.bf16.msra.mxu0 %v1830_v52  ;;  %924 = vmatpush1.bf16.msra.mxu1 %v1832_v54  ;;  %v70_v52 = vld [vmem:[%s2777_s1 + $0x178] sm:$0xff]  ;;  %v1770_v54 = vcombine.low %v57_v39, %v61_v40 }
  0x37   :  { %884 = vmatprep.subr.bf16.mxu0 %v1839_v55  ;;  %925 = vmatprep.subr.bf16.mxu1 %v1841_v58  ;;  %v73_v55 = vld [vmem:[%s2777_s1 + $0x190] sm:$0xff]  ;;  %v1781_v63 = vcombine.high %v66_v51, %v70_v52 }
  0x38   :  { %v1787_v5 = vcombine.high %v73_v55, %v77_v57 }
  0x3a   :  { %885 = vmatpush1.bf16.msra.mxu0 %v1838_v62  ;;  %926 = vmatpush1.bf16.msra.mxu1 %v1840_v0  ;;  %v78_v62 = vld [vmem:[%s2777_s1 + $0x1b8] sm:$0xff]  ;;  %v1778_v0 = vcombine.low %v65_v47, %v69_v48 }
  0x3b   :  { %886 = vmatprep.subr.bf16.mxu0 %v1847_v1  ;;  %927 = vmatprep.subr.bf16.mxu1 %v1849_v4  ;;  %v81_v1 = vld [vmem:[%s2777_s1 + $0x1d0] sm:$0xff]  ;;  %v1780_v4 = vcombine.low %v66_v51, %v70_v52  ;;  %v1789_v8 = vcombine.high %v74_v61, %v78_v62 }
  0x3c   :  { %v1795_v13 = vcombine.high %v81_v1, %v85_v2 }
  0x3e   :  { %887 = vmatpush1.bf16.msra.mxu0 %v1846_v7  ;;  %928 = vmatpush1.bf16.msra.mxu1 %v1848_v9  ;;  %v86_v7 = vld [vmem:[%s2777_s1 + $0x1f8] sm:$0xff]  ;;  %v1786_v9 = vcombine.low %v73_v55, %v77_v57 }
  0x3f   :  { %888 = vmatprep.subr.bf16.mxu0 %v1855_v10  ;;  %929 = vmatprep.subr.bf16.mxu1 %v1857_v12  ;;  %v89_v10 = vld [vmem:[%s2777_s1 + $0x210] sm:$0xff]  ;;  %v1788_v12 = vcombine.low %v74_v61, %v78_v62  ;;  %v1797_v16 = vcombine.high %v82_v6, %v86_v7 }
  0x40   :  { %v1803_v19 = vcombine.high %v89_v10, %v93_v11 }
  0x42   :  { %889 = vmatpush1.bf16.msra.mxu0 %v1854_v15  ;;  %930 = vmatpush1.bf16.msra.mxu1 %v1856_v17  ;;  %v94_v15 = vld [vmem:[%s2777_s1 + $0x238] sm:$0xff]  ;;  %v1794_v17 = vcombine.low %v81_v1, %v85_v2 }
  0x43   :  { %940 = vmatprep.subr.bf16.mxu0 %v1739_v18  ;;  %981 = vmatprep.subr.bf16.mxu1 %v1741_v20  ;;  %v1796_v18 = vcombine.low %v82_v6, %v86_v7  ;;  %v1805_v20 = vcombine.high %v90_v14, %v94_v15 }
  0x45   :  { %891 = vmatmul.mubr.bf16.vlgmr.msra.gmra.mrb[0].mxu0 %v2369_v22  ;;  %932 = vmatmul.mubr.bf16.vlgmr.msra.gmra.mrb[0].mxu1 %v2369_v22 }
  0x46   :  { %941 = vmatpush1.bf16.msra.mxu0 %v1738_v24  ;;  %982 = vmatpush1.bf16.msra.mxu1 %v1740_v26 }
  0x47   :  { %942 = vmatprep.subr.bf16.mxu0 %v1747_v27  ;;  %983 = vmatprep.subr.bf16.mxu1 %v1749_v56 }
  0x48   :  { %972 = vmatprep.mubr.bf16.mxu0 %v2246_v3  ;;  %1013 = vmatprep.mubr.bf16.mxu1 %v2246_v3  ;;  %v62_v3 = vld [vmem:[%s2777_s1 + $0x138] sm:$0xff] }
  0x49   :  { %v1773_v53 = vcombine.high %v58_v43, %v62_v3  ;;  %v1772_v58 = vcombine.low %v58_v43, %v62_v3 }
  0x4a   :  { %943 = vmatpush1.bf16.msra.mxu0 %v1746_v30  ;;  %984 = vmatpush1.bf16.msra.mxu1 %v1748_v33 }
  0x4b   :  { %944 = vmatprep.subr.bf16.mxu0 %v1755_v34  ;;  %985 = vmatprep.subr.bf16.mxu1 %v1757_v37 }
  0x4e   :  { %945 = vmatpush1.bf16.msra.mxu0 %v1754_v38  ;;  %986 = vmatpush1.bf16.msra.mxu1 %v1756_v41 }
  0x4f   :  { %946 = vmatprep.subr.bf16.mxu0 %v1763_v42  ;;  %987 = vmatprep.subr.bf16.mxu1 %v1765_v44 }
  0x52   :  { %947 = vmatpush1.bf16.msra.mxu0 %v1762_v45  ;;  %988 = vmatpush1.bf16.msra.mxu1 %v1764_v49 }
  0x53   :  { %948 = vmatprep.subr.bf16.mxu0 %v1771_v50  ;;  %989 = vmatprep.subr.bf16.mxu1 %v1773_v53 }
  0x56   :  { %949 = vmatpush1.bf16.msra.mxu0 %v1770_v54  ;;  %990 = vmatpush1.bf16.msra.mxu1 %v1772_v58 }
  0x57   :  { %950 = vmatprep.subr.bf16.mxu0 %v1779_v60  ;;  %991 = vmatprep.subr.bf16.mxu1 %v1781_v63 }
  0x5a   :  { %951 = vmatpush1.bf16.msra.mxu0 %v1778_v0  ;;  %992 = vmatpush1.bf16.msra.mxu1 %v1780_v4 }
  0x5b   :  { %952 = vmatprep.subr.bf16.mxu0 %v1787_v5  ;;  %993 = vmatprep.subr.bf16.mxu1 %v1789_v8 }
  0x5e   :  { %953 = vmatpush1.bf16.msra.mxu0 %v1786_v9  ;;  %994 = vmatpush1.bf16.msra.mxu1 %v1788_v12 }
  0x5f   :  { %954 = vmatprep.subr.bf16.mxu0 %v1795_v13  ;;  %995 = vmatprep.subr.bf16.mxu1 %v1797_v16 }
  0x60   :  { %10 = vsyncpa [#allocation3], 0  ;;  %v98_v24 = vld [vmem:[%s2777_s1 + $0x258] sm:$0xff]  ;;  %v1802_v26 = vcombine.low %v89_v10, %v93_v11  ;;  %v1804_v27 = vcombine.low %v90_v14, %v94_v15  ;;  %v1811_v28 = vcombine.high %v97_v21, %v101_v23  ;;  %v105_v59 = vld [vmem:[%s2777_s1 + $0x290] sm:$0xff]  ;;  %v1810_v32 = vcombine.low %v97_v21, %v101_v23 }
  0x61   :  { %v102_v25 = vld [vmem:[%s2777_s1 + $0x278] sm:$0xff]  ;;  %v109_v29 = vld [vmem:[%s2777_s1 + $0x2b0] sm:$0xff]  ;;  %v2021_v21 = vld [vmem:[%s2779_s3 + $0x48] sm:$0xff]   ;;  %vm1717_vm0 = vcmask 9216  }
  0x62   :  { %955 = vmatpush1.bf16.msra.mxu0 %v1794_v17  ;;  %996 = vmatpush1.bf16.msra.mxu1 %v1796_v18  ;;  %v1813_v56 = vcombine.high %v98_v24, %v102_v25  ;;  %v106_v30 = vld [vmem:[%s2777_s1 + $0x298] sm:$0xff]  ;;  %v1812_v33 = vcombine.low %v98_v24, %v102_v25  ;;  %v1819_v34 = vcombine.high %v105_v59, %v109_v29  ;;  %v113_v36 = vld [vmem:[%s2777_s1 + $0x2d0] sm:$0xff]  ;;  %v2017_v17 = vld [vmem:[%s2779_s3 + $0x40] sm:$0xff]  }
  0x63   :  { %956 = vmatprep.subr.bf16.mxu0 %v1803_v19  ;;  %997 = vmatprep.subr.bf16.mxu1 %v1805_v20  ;;  %v110_v31 = vld [vmem:[%s2777_s1 + $0x2b8] sm:$0xff]  ;;  %v117_v37 = vld [vmem:[%s2777_s1 + $0x2f0] sm:$0xff]  ;;  %v1818_v40 = vcombine.low %v105_v59, %v109_v29  ;;  %v2018_v18 = vld [vmem:[%s2779_s3 + $0xc0] sm:$0xff]  }
  0x64   :  { %v1821_v35 = vcombine.high %v106_v30, %v110_v31  ;;  %v114_v38 = vld [vmem:[%s2777_s1 + $0x2d8] sm:$0xff]  ;;  %v1820_v41 = vcombine.low %v106_v30, %v110_v31  ;;  %v1827_v42 = vcombine.high %v113_v36, %v117_v37  ;;  %v121_v3 = vld [vmem:[%s2777_s1 + $0x310] sm:$0xff]  ;;  %v1826_v48 = vcombine.low %v113_v36, %v117_v37  ;;  %v2019_v19 = vld [vmem:[%s2779_s3] sm:$0xff]  }
  0x65   :  { %v118_v39 = vld [vmem:[%s2777_s1 + $0x2f8] sm:$0xff]  ;;  %v125_v44 = vld [vmem:[%s2777_s1 + $0x330] sm:$0xff]  ;;  %v2020_v20 = vld [vmem:[%s2779_s3 + $0x80] sm:$0xff]  }
  0x66   :  { %957 = vmatpush1.bf16.msra.mxu0 %v1802_v26  ;;  %998 = vmatpush1.bf16.msra.mxu1 %v1804_v27  ;;  %v1829_v43 = vcombine.high %v114_v38, %v118_v39  ;;  %v122_v45 = vld [vmem:[%s2777_s1 + $0x318] sm:$0xff]  ;;  %v1828_v49 = vcombine.low %v114_v38, %v118_v39  ;;  %v1835_v50 = vcombine.high %v121_v3, %v125_v44  ;;  %v129_v52 = vld [vmem:[%s2777_s1 + $0x350] sm:$0xff]  ;;  %v2022_v23 = vld [vmem:[%s2779_s3 + $0xc8] sm:$0xff]  }
  0x67   :  { %958 = vmatprep.subr.bf16.mxu0 %v1811_v28  ;;  %999 = vmatprep.subr.bf16.mxu1 %v1813_v56  ;;  %v126_v47 = vld [vmem:[%s2777_s1 + $0x338] sm:$0xff]  ;;  %v133_v53 = vld [vmem:[%s2777_s1 + $0x370] sm:$0xff]  ;;  %v1834_v57 = vcombine.low %v121_v3, %v125_v44  ;;  %v2023_v24 = vld [vmem:[%s2779_s3 + $0x8] sm:$0xff]  }
  0x68   :  { %v1837_v51 = vcombine.high %v122_v45, %v126_v47  ;;  %v130_v54 = vld [vmem:[%s2777_s1 + $0x358] sm:$0xff]  ;;  %v1836_v58 = vcombine.low %v122_v45, %v126_v47  ;;  %v1843_v60 = vcombine.high %v129_v52, %v133_v53  ;;  %v137_v62 = vld [vmem:[%s2777_s1 + $0x390] sm:$0xff]  ;;  %v1842_v2 = vcombine.low %v129_v52, %v133_v53  ;;  %v2024_v25 = vld [vmem:[%s2779_s3 + $0x88] sm:$0xff]  }
  0x69   :  { %v134_v55 = vld [vmem:[%s2777_s1 + $0x378] sm:$0xff]  ;;  %v141_v63 = vld [vmem:[%s2777_s1 + $0x3b0] sm:$0xff]  ;;  %v2033_v31 = vld [vmem:[%s2779_s3 + $0x60] sm:$0xff]   ;;  %v159_v52 = vsub.s32 1, %v2209_v46  ;;  %v167_v53 = vsub.s32 3, %v2209_v46 }
  0x6a   :  { %959 = vmatpush1.bf16.msra.mxu0 %v1810_v32  ;;  %1000 = vmatpush1.bf16.msra.mxu1 %v1812_v33  ;;  %v1845_v61 = vcombine.high %v130_v54, %v134_v55  ;;  %v138_v0 = vld [vmem:[%s2777_s1 + $0x398] sm:$0xff]  ;;  %v1844_v4 = vcombine.low %v130_v54, %v134_v55  ;;  %v1851_v5 = vcombine.high %v137_v62, %v141_v63  ;;  %v145_v7 = vld [vmem:[%s2777_s1 + $0x3d0] sm:$0xff]  ;;  %v2034_v32 = vld [vmem:[%s2779_s3 + $0xe0] sm:$0xff]  }
  0x6b   :  { %960 = vmatprep.subr.bf16.mxu0 %v1819_v34  ;;  %1001 = vmatprep.subr.bf16.mxu1 %v1821_v35  ;;  %v142_v1 = vld [vmem:[%s2777_s1 + $0x3b8] sm:$0xff]  ;;  %v149_v8 = vld [vmem:[%s2777_s1 + $0x3f0] sm:$0xff]  ;;  %v1850_v11 = vcombine.low %v137_v62, %v141_v63  ;;  %v2035_v33 = vld [vmem:[%s2779_s3 + $0x20] sm:$0xff]  }
  0x6c   :  { %v1853_v6 = vcombine.high %v138_v0, %v142_v1  ;;  %v146_v9 = vld [vmem:[%s2777_s1 + $0x3d8] sm:$0xff]  ;;  %v1852_v12 = vcombine.low %v138_v0, %v142_v1  ;;  %v1859_v13 = vcombine.high %v145_v7, %v149_v8  ;;  %v1858_v15 = vcombine.low %v145_v7, %v149_v8  ;;  %v2025_v26 = vld [vmem:[%s2779_s3 + $0x50] sm:$0xff]   ;;  %v2036_v34 = vld [vmem:[%s2779_s3 + $0xa0] sm:$0xff]  }
  0x6d   :  { %v150_v10 = vld [vmem:[%s2777_s1 + $0x3f8] sm:$0xff]  ;;  %v2027_v27 = vld [vmem:[%s2779_s3 + $0x10] sm:$0xff]   ;;  %v2037_v35 = vld [vmem:[%s2779_s3 + $0x68] sm:$0xff]  }
  0x6e   :  { %961 = vmatpush1.bf16.msra.mxu0 %v1818_v40  ;;  %1002 = vmatpush1.bf16.msra.mxu1 %v1820_v41  ;;  %v1861_v14 = vcombine.high %v146_v9, %v150_v10  ;;  %v1860_v16 = vcombine.low %v146_v9, %v150_v10  ;;  %v2028_v28 = vld [vmem:[%s2779_s3 + $0x90] sm:$0xff]   ;;  %v2029_v56 = vld [vmem:[%s2779_s3 + $0x58] sm:$0xff]   ;;  %v2038_v36 = vld [vmem:[%s2779_s3 + $0xe8] sm:$0xff]  }
  0x6f   :  { %962 = vmatprep.subr.bf16.mxu0 %v1827_v42  ;;  %1003 = vmatprep.subr.bf16.mxu1 %v1829_v43  ;;  %v2030_v59 = vld [vmem:[%s2779_s3 + $0xd8] sm:$0xff]   ;;  %v2039_v37 = vld [vmem:[%s2779_s3 + $0x28] sm:$0xff]   ;;  %v2041_v39 = vld [vmem:[%s2779_s3 + $0x70] sm:$0xff]  }
  0x70   :  { %v2031_v29 = vld [vmem:[%s2779_s3 + $0x18] sm:$0xff]   ;;  %v2040_v38 = vld [vmem:[%s2779_s3 + $0xa8] sm:$0xff]   ;;  %v2042_v40 = vld [vmem:[%s2779_s3 + $0xf0] sm:$0xff]  }
  0x71   :  { %v2032_v30 = vld [vmem:[%s2779_s3 + $0x98] sm:$0xff]   ;;  %v2043_v41 = vld [vmem:[%s2779_s3 + $0x30] sm:$0xff]   ;;  %v2049_v47 = vld [vmem:[%s2779_s3 + $0x140] sm:$0xff]  }
  0x72   :  { %963 = vmatpush1.bf16.msra.mxu0 %v1826_v48  ;;  %1004 = vmatpush1.bf16.msra.mxu1 %v1828_v49  ;;  %v2044_v42 = vld [vmem:[%s2779_s3 + $0xb0] sm:$0xff]   ;;  %v2045_v43 = vld [vmem:[%s2779_s3 + $0x78] sm:$0xff]   ;;  %v2050_v48 = vld [vmem:[%s2779_s3 + $0x1c0] sm:$0xff]   ;;  %v155_v49 = vsub.s32 0, %v2209_v46 }
  0x73   :  { %964 = vmatprep.subr.bf16.mxu0 %v1835_v50  ;;  %1005 = vmatprep.subr.bf16.mxu1 %v1837_v51  ;;  %v2046_v3 = vld [vmem:[%s2779_s3 + $0xf8] sm:$0xff]   ;;  %v2654_v50 = vld [vmem:[%s2778_s2] sm:$0xff]  ;;  %v163_v51 = vsub.s32 2, %v2209_v46 }
  0x74   :  { %v2047_v44 = vld [vmem:[%s2779_s3 + $0x38] sm:$0xff]   ;;  %v156_v54 = vrot.slane %v2654_v50, %v155_v49 }
  0x75   :  { %v2048_v45 = vld [vmem:[%s2779_s3 + $0xb8] sm:$0xff]   ;;  %v164_v55 = vrot.slane %v2654_v50, %v163_v51 }
  0x76   :  { %965 = vmatpush1.bf16.msra.mxu0 %v1834_v57  ;;  %1006 = vmatpush1.bf16.msra.mxu1 %v1836_v58  ;;  %v160_v57 = vrot.slane %v2654_v50, %v159_v52  ;;  %v168_v58 = vrot.slane %v2654_v50, %v167_v53 }
  0x77   :  { %966 = vmatprep.subr.bf16.mxu0 %v1843_v60  ;;  %1007 = vmatprep.subr.bf16.mxu1 %v1845_v61 }
  0x7a   :  { %967 = vmatpush1.bf16.msra.mxu0 %v1842_v2  ;;  %1008 = vmatpush1.bf16.msra.mxu1 %v1844_v4 }
  0x7b   :  { %968 = vmatprep.subr.bf16.mxu0 %v1851_v5  ;;  %1009 = vmatprep.subr.bf16.mxu1 %v1853_v6 }
  0x7e   :  { %969 = vmatpush1.bf16.msra.mxu0 %v1850_v11  ;;  %1010 = vmatpush1.bf16.msra.mxu1 %v1852_v12 }
  0x7f   :  { %970 = vmatprep.subr.bf16.mxu0 %v1859_v13  ;;  %1011 = vmatprep.subr.bf16.mxu1 %v1861_v14 }
  0x82   :  { %971 = vmatpush1.bf16.msra.mxu0 %v1858_v15  ;;  %1012 = vmatpush1.bf16.msra.mxu1 %v1860_v16  ;;  %v2051_v16 = vld [vmem:[%s2779_s3 + $0x100] sm:$0xff]  }
  0x83   :  { %1927 = vmatprep.subr.bf16.mxu0 %v2017_v17  ;;  %1949 = vmatprep.subr.bf16.mxu1 %v2018_v18  ;;  %v2052_v18 = vld [vmem:[%s2779_s3 + $0x180] sm:$0xff]  }
  0x85   :  { %973 = vmatmul.mubr.bf16.vlgmr.msra.gmra.mrb[4].mxu0 %v2369_v22  ;;  %1014 = vmatmul.mubr.bf16.vlgmr.msra.gmra.mrb[4].mxu1 %v2369_v22  ;;  %v2026_v22 = vld [vmem:[%s2779_s3 + $0xd0] sm:$0xff]  }
  0x86   :  { %1928 = vmatpush3.bf16.msra.mxu0 %v2019_v19  ;;  %1950 = vmatpush3.bf16.msra.mxu1 %v2020_v20  ;;  %v2053_v19 = vld [vmem:[%s2779_s3 + $0x148] sm:$0xff]  }
  0x87   :  { %1929 = vmatprep.subr.bf16.mxu0 %v2021_v21  ;;  %1951 = vmatprep.subr.bf16.mxu1 %v2022_v23  ;;  %v2054_v20 = vld [vmem:[%s2779_s3 + $0x1c8] sm:$0xff]  }
  0x88   :  { %v2055_v21 = vld [vmem:[%s2779_s3 + $0x108] sm:$0xff]  }
  0x89   :  { %v2056_v23 = vld [vmem:[%s2779_s3 + $0x188] sm:$0xff]  }
  0x8a   :  { %1930 = vmatpush3.bf16.msra.mxu0 %v2023_v24  ;;  %1952 = vmatpush3.bf16.msra.mxu1 %v2024_v25  ;;  %v2057_v24 = vld [vmem:[%s2779_s3 + $0x150] sm:$0xff]  }
  0x8b   :  { %1931 = vmatprep.subr.bf16.mxu0 %v2025_v26  ;;  %1953 = vmatprep.subr.bf16.mxu1 %v2026_v22  ;;  %v2058_v25 = vld [vmem:[%s2779_s3 + $0x1d0] sm:$0xff]  }
  0x8c   :  { %v2059_v26 = vld [vmem:[%s2779_s3 + $0x110] sm:$0xff]  }
  0x8d   :  { %v2060_v22 = vld [vmem:[%s2779_s3 + $0x190] sm:$0xff]  }
  0x8e   :  { %1932 = vmatpush3.bf16.msra.mxu0 %v2027_v27  ;;  %1954 = vmatpush3.bf16.msra.mxu1 %v2028_v28  ;;  %v2061_v27 = vld [vmem:[%s2779_s3 + $0x158] sm:$0xff]  }
  0x8f   :  { %1933 = vmatprep.subr.bf16.mxu0 %v2029_v56  ;;  %1955 = vmatprep.subr.bf16.mxu1 %v2030_v59  ;;  %v2062_v28 = vld [vmem:[%s2779_s3 + $0x1d8] sm:$0xff]  }
  0x90   :  { %v2063_v56 = vld [vmem:[%s2779_s3 + $0x118] sm:$0xff]  }
  0x91   :  { %v2064_v59 = vld [vmem:[%s2779_s3 + $0x198] sm:$0xff]  }
  0x92   :  { %1934 = vmatpush3.bf16.msra.mxu0 %v2031_v29  ;;  %1956 = vmatpush3.bf16.msra.mxu1 %v2032_v30  ;;  %v2065_v29 = vld [vmem:[%s2779_s3 + $0x160] sm:$0xff]  }
  0x93   :  { %1935 = vmatprep.subr.bf16.mxu0 %v2033_v31  ;;  %1957 = vmatprep.subr.bf16.mxu1 %v2034_v32  ;;  %v2066_v30 = vld [vmem:[%s2779_s3 + $0x1e0] sm:$0xff]  }
  0x94   :  { %v2067_v31 = vld [vmem:[%s2779_s3 + $0x120] sm:$0xff]  }
  0x95   :  { %v2068_v32 = vld [vmem:[%s2779_s3 + $0x1a0] sm:$0xff]  }
  0x96   :  { %1936 = vmatpush3.bf16.msra.mxu0 %v2035_v33  ;;  %1958 = vmatpush3.bf16.msra.mxu1 %v2036_v34  ;;  %v2069_v33 = vld [vmem:[%s2779_s3 + $0x168] sm:$0xff]  }
  0x97   :  { %1937 = vmatprep.subr.bf16.mxu0 %v2037_v35  ;;  %1959 = vmatprep.subr.bf16.mxu1 %v2038_v36  ;;  %v2070_v34 = vld [vmem:[%s2779_s3 + $0x1e8] sm:$0xff]  }
  0x98   :  { %v2071_v35 = vld [vmem:[%s2779_s3 + $0x128] sm:$0xff]  }
  0x99   :  { %v2072_v36 = vld [vmem:[%s2779_s3 + $0x1a8] sm:$0xff]  }
  0x9a   :  { %1938 = vmatpush3.bf16.msra.mxu0 %v2039_v37  ;;  %1960 = vmatpush3.bf16.msra.mxu1 %v2040_v38  ;;  %v2073_v37 = vld [vmem:[%s2779_s3 + $0x170] sm:$0xff]  }
  0x9b   :  { %1939 = vmatprep.subr.bf16.mxu0 %v2041_v39  ;;  %1961 = vmatprep.subr.bf16.mxu1 %v2042_v40  ;;  %v2074_v38 = vld [vmem:[%s2779_s3 + $0x1f0] sm:$0xff]  }
  0x9c   :  { %v2075_v39 = vld [vmem:[%s2779_s3 + $0x130] sm:$0xff]  }
  0x9d   :  { %v2076_v40 = vld [vmem:[%s2779_s3 + $0x1b0] sm:$0xff]  }
  0x9e   :  { %1940 = vmatpush3.bf16.msra.mxu0 %v2043_v41  ;;  %1962 = vmatpush3.bf16.msra.mxu1 %v2044_v42  ;;  %v2077_v41 = vld [vmem:[%s2779_s3 + $0x178] sm:$0xff]  }
  0x9f   :  { %1941 = vmatprep.subr.bf16.mxu0 %v2045_v43  ;;  %1963 = vmatprep.subr.bf16.mxu1 %v2046_v3  ;;  %v2078_v42 = vld [vmem:[%s2779_s3 + $0x1f8] sm:$0xff]  }
  0xa0   :  { %v2079_v43 = vld [vmem:[%s2779_s3 + $0x138] sm:$0xff]  }
  0xa1   :  { %v2080_v3 = vld [vmem:[%s2779_s3 + $0x1b8] sm:$0xff]  }
  0xa2   :  { %1942 = vmatpush3.bf16.msra.mxu0 %v2047_v44  ;;  %1964 = vmatpush3.bf16.msra.mxu1 %v2048_v45  ;;  %v171_v44 = vsub.s32 4, %v2209_v46  ;;  %v179_v45 = vsub.s32 6, %v2209_v46 }
  0xa3   :  { %1971 = vmatprep.subr.bf16.mxu0 %v2049_v47  ;;  %1993 = vmatprep.subr.bf16.mxu1 %v2050_v48  ;;  %v175_v47 = vsub.s32 5, %v2209_v46  ;;  %v183_v48 = vsub.s32 7, %v2209_v46 }
  0xa4   :  { %v172_v49 = vrot.slane %v2654_v50, %v171_v44  ;;  %v180_v51 = vrot.slane %v2654_v50, %v179_v45 }
  0xa5   :  { %v176_v52 = vrot.slane %v2654_v50, %v175_v47  ;;  %v184_v53 = vrot.slane %v2654_v50, %v183_v48 }
 0x118   :  { %v892_v60 = vpop.f32.mrb[0].mxu0  ;;  %v933_v62 = vpop.f32.mrb[0].mxu1 }
 0x119   :  { %v893_v61 = vadd.f32 %v892_v60, %v156_v54  ;;  %v894_v63 = vpop.f32.mrb[1].mxu0  ;;  %v934_v0 = vadd.f32 %v933_v62, %v164_v55  ;;  %v935_v2 = vpop.f32.mrb[1].mxu1 }
 0x11a   :  { %v895_v1 = vadd.f32 %v894_v63, %v160_v57  ;;  %v896_v4 = vpop.f32.mrb[2].mxu0  ;;  %v936_v6 = vadd.f32 %v935_v2, %v168_v58  ;;  %v937_v7 = vpop.f32.mrb[2].mxu1 }
 0x11b   :  { %v1022_v5 = vmax.f32 %v893_v61, 0.0  ;;  %v897_v8 = vpop.f32.mrb[3].mxu0  ;;  %v1024_v9 = vmax.f32 %v934_v0, 0.0  ;;  %v938_v11 = vpop.f32.mrb[3].mxu1 }
 0x11c   :  { %v1023_v10 = vmax.f32 %v895_v1, 0.0  ;;  %v1025_v13 = vmax.f32 %v936_v6, 0.0 }
 0x11d   :  { %v1030_v12 = vpack.c.bf16 %v1022_v5, %v1022_v5  ;;  %v1032_v14 = vpack.c.bf16 %v1024_v9, %v1024_v9 }
 0x11e   :  { %v1031_v15 = vpack.c.bf16 %v1023_v10, %v1023_v10  ;;  %v1033_v17 = vpack.c.bf16 %v1025_v13, %v1025_v13  ;;  %v1862_v13 = vld [vmem:[%s2780_s4] ss:$0 sm:$0xff]  ;;  %s2106_s4 = smov [#allocation2]  }
 0x11f   :  { %s1725_s11 = sshll.u32 %s2106_s4, 4  ;;  %s1726_s11 = int_to_ptr.vmem [resolvable:$true] %s1725_s11 }
 0x120   :  { %1589 = vmatprep.mubr.bf16.mxu0 %v1031_v15  ;;  %1629 = vmatprep.mubr.bf16.mxu1 %v1033_v17  ;;  %s2081_s12 = scalar_lea.vmem %s1726_s11, 32  ;;  %p2086_p1 = scmp.lt.s32.totalorder %s1726_s11, %s1726_s11 }
 0x121   :  { %1590 = vmatmul.mubr.bf16.vlgmr.msra.gmra.mrb[8].mxu0 %v1030_v12  ;;  %1630 = vmatmul.mubr.bf16.vlgmr.msra.gmra.mrb[8].mxu1 %v1032_v14  ;;  %p2082_p0 = scmp.ne.s32.totalorder %s1726_s11, %s2081_s12  ;;  %p2087_p2 = scmp.lt.s32.totalorder %s2081_s12, %s2081_s12 }
 0x122   :  { %1972 = vmatpush3.bf16.msra.mxu0 %v2051_v16  ;;  %1994 = vmatpush3.bf16.msra.mxu1 %v2052_v18 }
 0x123   :  { %1973 = vmatprep.subr.bf16.mxu0 %v2053_v19  ;;  %1995 = vmatprep.subr.bf16.mxu1 %v2054_v20  ;;  %p2088_p3 = por %p2087_p2, %p2086_p1 }
 0x125   :  { %p2089_p4 = pnand %p2088_p3, %p2082_p0 }
 0x126   :  { %1974 = vmatpush3.bf16.msra.mxu0 %v2055_v21  ;;  %1996 = vmatpush3.bf16.msra.mxu1 %v2056_v23 }
 0x127   :  { %1975 = vmatprep.subr.bf16.mxu0 %v2057_v24  ;;  %1997 = vmatprep.subr.bf16.mxu1 %v2058_v25 }
 0x12a   :  { %1976 = vmatpush3.bf16.msra.mxu0 %v2059_v26  ;;  %1998 = vmatpush3.bf16.msra.mxu1 %v2060_v22 }
 0x12b   :  { %1977 = vmatprep.subr.bf16.mxu0 %v2061_v27  ;;  %1999 = vmatprep.subr.bf16.mxu1 %v2062_v28 }
 0x12e   :  { %1978 = vmatpush3.bf16.msra.mxu0 %v2063_v56  ;;  %2000 = vmatpush3.bf16.msra.mxu1 %v2064_v59 }
 0x12f   :  { %1979 = vmatprep.subr.bf16.mxu0 %v2065_v29  ;;  %2001 = vmatprep.subr.bf16.mxu1 %v2066_v30 }
 0x132   :  { %1980 = vmatpush3.bf16.msra.mxu0 %v2067_v31  ;;  %2002 = vmatpush3.bf16.msra.mxu1 %v2068_v32 }
 0x133   :  { %1981 = vmatprep.subr.bf16.mxu0 %v2069_v33  ;;  %2003 = vmatprep.subr.bf16.mxu1 %v2070_v34 }
 0x136   :  { %1982 = vmatpush3.bf16.msra.mxu0 %v2071_v35  ;;  %2004 = vmatpush3.bf16.msra.mxu1 %v2072_v36 }
 0x137   :  { %1983 = vmatprep.subr.bf16.mxu0 %v2073_v37  ;;  %2005 = vmatprep.subr.bf16.mxu1 %v2074_v38 }
 0x13a   :  { %1984 = vmatpush3.bf16.msra.mxu0 %v2075_v39  ;;  %2006 = vmatpush3.bf16.msra.mxu1 %v2076_v40 }
 0x13b   :  { %1985 = vmatprep.subr.bf16.mxu0 %v2077_v41  ;;  %2007 = vmatprep.subr.bf16.mxu1 %v2078_v42 }
 0x13e   :  { %1986 = vmatpush3.bf16.msra.mxu0 %v2079_v43  ;;  %2008 = vmatpush3.bf16.msra.mxu1 %v2080_v3 }
 0x158   :  { %v974_v54 = vpop.f32.mrb[4].mxu0  ;;  %v1015_v57 = vpop.f32.mrb[4].mxu1 }
 0x159   :  { %v975_v55 = vadd.f32 %v974_v54, %v172_v49  ;;  %v976_v58 = vpop.f32.mrb[5].mxu0  ;;  %v1016_v60 = vadd.f32 %v1015_v57, %v180_v51  ;;  %v1017_v62 = vpop.f32.mrb[5].mxu1 }
 0x15a   :  { %v977_v61 = vadd.f32 %v976_v58, %v176_v52  ;;  %v978_v63 = vpop.f32.mrb[6].mxu0  ;;  %v1018_v1 = vadd.f32 %v1017_v62, %v184_v53  ;;  %v1019_v2 = vpop.f32.mrb[6].mxu1 }
 0x15b   :  { %v1026_v0 = vmax.f32 %v975_v55, 0.0  ;;  %v979_v46 = vpop.f32.mrb[7].mxu0  ;;  %v1028_v4 = vmax.f32 %v1016_v60, 0.0  ;;  %v1020_v6 = vpop.f32.mrb[7].mxu1 }
 0x15c   :  { %v1027_v5 = vmax.f32 %v977_v61, 0.0  ;;  %v1029_v7 = vmax.f32 %v1018_v1, 0.0 }
 0x15d   :  { %v1036_v8 = vpack.c.bf16 %v1028_v4, %v1028_v4  ;;  %v1034_v10 = vpack.c.bf16 %v1026_v0, %v1026_v0 }
 0x15e   :  { %v1035_v9 = vpack.c.bf16 %v1027_v5, %v1027_v5  ;;  %v1037_v50 = vpack.c.bf16 %v1029_v7, %v1029_v7 }
 0x160   :  { %1669 = vmatprep.mubr.bf16.mxu0 %v1035_v9  ;;  %1709 = vmatprep.mubr.bf16.mxu1 %v1037_v50 }
 0x161   :  { %1670 = vmatmul.mubr.bf16.vlgmr.msra.gmra.mrb[12].mxu0 %v1034_v10  ;;  %1710 = vmatmul.mubr.bf16.vlgmr.msra.gmra.mrb[12].mxu1 %v1036_v8 }
 0x1f4   :  { %v1943_v11 = vpop.f32.mrb[8].mxu0  ;;  %v1965_v12 = vpop.f32.mrb[8].mxu1 }
 0x1f5   :  { %v1944_v14 = vpop.f32.mrb[9].mxu0  ;;  %v1966_v16 = vpop.f32.mrb[9].mxu1 }
 0x1f6   :  { %v1945_v15 = vadd.f32 %v1944_v14, %v1943_v11  ;;  %v1946_v17 = vpop.f32.mrb[10].mxu0  ;;  %v1967_v18 = vadd.f32 %v1966_v16, %v1965_v12  ;;  %v1968_v19 = vpop.f32.mrb[10].mxu1 }
 0x1f7   :  { %v1947_v20 = vpop.f32.mrb[11].mxu0  ;;  %v1969_v23 = vpop.f32.mrb[11].mxu1 }
 0x1f8   :  { %v1592_v21 = vadd.f32 %v1945_v15, %v1862_v13 }
 0x1fa   :  { %v1632_v24 = vadd.f32 %v1967_v18, %v1592_v21 }
 0x234   :  { %v1987_v25 = vpop.f32.mrb[12].mxu0  ;;  %v2009_v26 = vpop.f32.mrb[12].mxu1 }
 0x235   :  { %v1988_v22 = vpop.f32.mrb[13].mxu0  ;;  %v2010_v28 = vpop.f32.mrb[13].mxu1 }
 0x236   :  { %v1989_v27 = vadd.f32 %v1988_v22, %v1987_v25  ;;  %v1990_v56 = vpop.f32.mrb[14].mxu0  ;;  %v2011_v59 = vadd.f32 %v2010_v28, %v2009_v26  ;;  %v2012_v29 = vpop.f32.mrb[14].mxu1 }
 0x237   :  { %v1991_v30 = vpop.f32.mrb[15].mxu0  ;;  %v2013_v32 = vpop.f32.mrb[15].mxu1 }
 0x238   :  { %v1672_v31 = vadd.f32 %v1989_v27, %v1632_v24 }
 0x23a   :  { %v1712_v33 = vadd.f32 %v2011_v59, %v1672_v31 }
 0x23c   :  { %1718 = vst.msk [vmem:[#allocation2] sm:$0x3] %vm1717_vm0, %v1712_v33 }
 0x23d   :  { %2092 = shalt.err (!%p2089_p4)
}
 0x23e   :  { %s2093_s15 = scalar_lea.hbm %s2781_s5, 32 }
 0x23f   :  { %p2094_p5 = scmp.ne.s32.totalorder %s2781_s5, %s2093_s15  ;;  %p2097_p6 = scmp.lt.u32.totalorder %s2093_s15, %s2781_s5 }
 0x241   :  { %p2099_p7 = pnand %p2097_p6, %p2094_p5 }
 0x243   :  { %2102 = shalt.err (!%p2099_p7)
}
 0x244   :  { %1728 = dma.vmem_to_hbm [thread:$0]  %s1726_s11, 32, %s2781_s5, [#allocation3]  }
 0x245   :  { %2103 = dma.done.wait [#allocation3], 32  }
 0x246   :  { %2104 = vsyncadd [#allocation3], 4294967264 }
 0x247   :  { %1732 = vsyncpa [#allocation3], 1 }

// kernel: alexnet_forward.10
= control target key start
LH: loop header
LB: loop body
LE: loop exit
PB: predicated region body
PF: predicated region fallthrough
CT: control target
= control target key end

     0   :  { %v5001_v7 = vmov 1966171168   ;;  %v321_v9 = vlaneseq  ;;  %s7189_s4 = inlined_call_operand.vmem [shape: bf16[2304,256], index: 4, kind: input, shape index: {}]   ;;  %s7190_s0 = inlined_call_operand.vmem [shape: bf16[2,2304], index: 0, kind: input, shape index: {}]   ;;  %s7191_s1 = inlined_call_operand.vmem [shape: bf16[2,2304], index: 1, kind: input, shape index: {}]   ;;  %s7192_s2 = inlined_call_operand.vmem [shape: bf16[2,2304], index: 2, kind: input, shape index: {}]   ;;  %s7193_s3 = inlined_call_operand.vmem [shape: bf16[2,2304], index: 3, kind: input, shape index: {}]   ;;  %s7194_s5 = inlined_call_operand.vmem [shape: f32[1,256], index: 5, kind: input, shape index: {}]   ;;  %s7195_s6 = inlined_call_operand.vmem [shape: bf16[2,256], index: 6, kind: output, shape index: {}]  }
   0x1   :  { %v4273_v0 = vld [vmem:[%s7189_s4 + $0x4] ss:$8 sps:$4 sm:$0xff]   ;;  %v4275_v1 = vld [vmem:[%s7189_s4] ss:$8 sps:$4 sm:$0xff]   ;;  %v4276_v2 = vld [vmem:[%s7189_s4 + $0x14] ss:$8 sps:$4 sm:$0xff]   ;;  %v319_v8 = vunpack.c.l.s4 %v5001_v7 }
   0x2   :  { %1895 = vmatprep.subr.bf16.mxu0 %v4273_v0  ;;  %2408 = vmatprep.subr.bf16.mxu1 %v4273_v0  ;;  %v4278_v3 = vld [vmem:[%s7189_s4 + $0x10] ss:$8 sps:$4 sm:$0xff]   ;;  %v4279_v4 = vld [vmem:[%s7189_s4 + $0x24] ss:$8 sps:$4 sm:$0xff]   ;;  %v4281_v5 = vld [vmem:[%s7189_s4 + $0x20] ss:$8 sps:$4 sm:$0xff]  }
   0x3   :  { %1896 = vmatpush1.bf16.msra.mxu0 %v4275_v1  ;;  %2409 = vmatpush1.bf16.msra.mxu1 %v4275_v1  ;;  %v4282_v6 = vld [vmem:[%s7189_s4 + $0x34] ss:$8 sps:$4 sm:$0xff]   ;;  %v4284_v10 = vld [vmem:[%s7189_s4 + $0x30] ss:$8 sps:$4 sm:$0xff]   ;;  %v4285_v11 = vld [vmem:[%s7189_s4 + $0x44] ss:$8 sps:$4 sm:$0xff]   ;;  %v320_v12 = vunpack.c.0.s8 %v319_v8 }
   0x4   :  { %1897 = vmatprep.subr.bf16.mxu0 %v4276_v2  ;;  %2410 = vmatprep.subr.bf16.mxu1 %v4276_v2  ;;  %v5064_v13 = vshrl.u32 %v321_v9, 7  ;;  %v4287_v14 = vld [vmem:[%s7189_s4 + $0x40] ss:$8 sps:$4 sm:$0xff]   ;;  %v4288_v15 = vld [vmem:[%s7189_s4 + $0x54] ss:$8 sps:$4 sm:$0xff]  }
   0x5   :  { %v4290_v17 = vld [vmem:[%s7189_s4 + $0x50] ss:$8 sps:$4 sm:$0xff]   ;;  %v4291_v18 = vld [vmem:[%s7189_s4 + $0x64] ss:$8 sps:$4 sm:$0xff]   ;;  %v4293_v22 = vld [vmem:[%s7189_s4 + $0x60] ss:$8 sps:$4 sm:$0xff]  }
   0x6   :  { %v5073_v16 = vsub.s32 %v320_v12, %v5064_v13  ;;  %v5084_v19 = vld [vmem:[%s7190_s0] sm:$0xff]  ;;  %v4294_v24 = vld [vmem:[%s7189_s4 + $0x74] ss:$8 sps:$4 sm:$0xff]   ;;  %v4296_v28 = vld [vmem:[%s7189_s4 + $0x70] ss:$8 sps:$4 sm:$0xff]  }
   0x7   :  { %1898 = vmatpush1.bf16.msra.mxu0 %v4278_v3  ;;  %2411 = vmatpush1.bf16.msra.mxu1 %v4278_v3  ;;  %v5093_v21 = vld [vmem:[%s7191_s1] sm:$0xff]  ;;  %v4300_v32 = vld [vmem:[%s7189_s4 + $0x94] ss:$8 sps:$4 sm:$0xff]   ;;  %v4302_v33 = vld [vmem:[%s7189_s4 + $0x90] ss:$8 sps:$4 sm:$0xff]  }
   0x8   :  { %1899 = vmatprep.subr.bf16.mxu0 %v4279_v4  ;;  %2412 = vmatprep.subr.bf16.mxu1 %v4279_v4  ;;  %v5088_v20 = vrot.slane %v5084_v19, %v5073_v16  ;;  %v5100_v23 = vrot.slane %v5093_v21, %v5073_v16  ;;  %v4297_v30 = vld [vmem:[%s7189_s4 + $0x84] ss:$8 sps:$4 sm:$0xff]   ;;  %v4299_v31 = vld [vmem:[%s7189_s4 + $0x80] ss:$8 sps:$4 sm:$0xff]   ;;  %v4306_v36 = vld [vmem:[%s7189_s4 + $0xb4] ss:$8 sps:$4 sm:$0xff]  }
   0x9   :  { %v4303_v34 = vld [vmem:[%s7189_s4 + $0xa4] ss:$8 sps:$4 sm:$0xff]   ;;  %v4305_v35 = vld [vmem:[%s7189_s4 + $0xa0] ss:$8 sps:$4 sm:$0xff]   ;;  %v4308_v37 = vld [vmem:[%s7189_s4 + $0xb0] ss:$8 sps:$4 sm:$0xff]  }
   0xa   :  { %v332_v25 = vcombine.high %v5088_v20, %v5088_v20  ;;  %v2285_v26 = vcombine.high %v5100_v23, %v5100_v23  ;;  %v4309_v38 = vld [vmem:[%s7189_s4 + $0xc4] ss:$8 sps:$4 sm:$0xff]   ;;  %v4311_v39 = vld [vmem:[%s7189_s4 + $0xc0] ss:$8 sps:$4 sm:$0xff]   ;;  %v4312_v40 = vld [vmem:[%s7189_s4 + $0xd4] ss:$8 sps:$4 sm:$0xff]   ;;  %v5173_v47 = vrot.slane %v5088_v20, %v5073_v16  ;;  %v5177_v48 = vrot.slane %v5100_v23, %v5073_v16 }
   0xb   :  { %1900 = vmatpush1.bf16.msra.mxu0 %v4281_v5  ;;  %2413 = vmatpush1.bf16.msra.mxu1 %v4281_v5  ;;  %v4314_v41 = vld [vmem:[%s7189_s4 + $0xd0] ss:$8 sps:$4 sm:$0xff]   ;;  %v4315_v42 = vld [vmem:[%s7189_s4 + $0xe4] ss:$8 sps:$4 sm:$0xff]   ;;  %v4317_v43 = vld [vmem:[%s7189_s4 + $0xe0] ss:$8 sps:$4 sm:$0xff]  }
   0xc   :  { %1901 = vmatprep.subr.bf16.mxu0 %v4282_v6  ;;  %2414 = vmatprep.subr.bf16.mxu1 %v4282_v6  ;;  %v5110_v27 = vrot.slane %v332_v25, %v5073_v16  ;;  %v5116_v29 = vrot.slane %v2285_v26, %v5073_v16  ;;  %v4318_v44 = vld [vmem:[%s7189_s4 + $0xf4] ss:$8 sps:$4 sm:$0xff]   ;;  %v4320_v45 = vld [vmem:[%s7189_s4 + $0xf0] ss:$8 sps:$4 sm:$0xff]   ;;  %v4322_v46 = vld [vmem:[%s7189_s4 + $0x104] ss:$8 sps:$4 sm:$0xff]  }
   0xd   :  { %v4325_v49 = vld [vmem:[%s7189_s4 + $0x100] ss:$8 sps:$4 sm:$0xff]   ;;  %v4326_v50 = vld [vmem:[%s7189_s4 + $0x114] ss:$8 sps:$4 sm:$0xff]   ;;  %v4328_v53 = vld [vmem:[%s7189_s4 + $0x110] ss:$8 sps:$4 sm:$0xff]  }
   0xe   :  { %1927 = vmatprep.mubr.bf16.mxu0 %v5110_v27  ;;  %2440 = vmatprep.mubr.bf16.mxu1 %v5116_v29  ;;  %v364_v51 = vcombine.high %v5110_v27, %v5110_v27  ;;  %v2317_v52 = vcombine.high %v5116_v29, %v5116_v29  ;;  %v4329_v54 = vld [vmem:[%s7189_s4 + $0x124] ss:$8 sps:$4 sm:$0xff]   ;;  %v4331_v55 = vld [vmem:[%s7189_s4 + $0x120] ss:$8 sps:$4 sm:$0xff]   ;;  %v4332_v56 = vld [vmem:[%s7189_s4 + $0x134] ss:$8 sps:$4 sm:$0xff]   ;;  %v2315_v29 = vcombine.high %v5177_v48, %v5177_v48 }
   0xf   :  { %1902 = vmatpush1.bf16.msra.mxu0 %v4284_v10  ;;  %2415 = vmatpush1.bf16.msra.mxu1 %v4284_v10  ;;  %v4334_v57 = vld [vmem:[%s7189_s4 + $0x130] ss:$8 sps:$4 sm:$0xff]   ;;  %v4335_v58 = vld [vmem:[%s7189_s4 + $0x144] ss:$8 sps:$4 sm:$0xff]   ;;  %v4337_v59 = vld [vmem:[%s7189_s4 + $0x140] ss:$8 sps:$4 sm:$0xff]  }
  0x10   :  { %1903 = vmatprep.subr.bf16.mxu0 %v4285_v11  ;;  %2416 = vmatprep.subr.bf16.mxu1 %v4285_v11  ;;  %v4338_v60 = vld [vmem:[%s7189_s4 + $0x154] ss:$8 sps:$4 sm:$0xff]   ;;  %v4340_v61 = vld [vmem:[%s7189_s4 + $0x150] ss:$8 sps:$4 sm:$0xff]   ;;  %v4341_v62 = vld [vmem:[%s7189_s4 + $0x164] ss:$8 sps:$4 sm:$0xff]  }
  0x11   :  { %v4343_v63 = vld [vmem:[%s7189_s4 + $0x160] ss:$8 sps:$4 sm:$0xff]   ;;  %v4344_v0 = vld [vmem:[%s7189_s4 + $0x174] ss:$8 sps:$4 sm:$0xff]   ;;  %v4346_v1 = vld [vmem:[%s7189_s4 + $0x170] ss:$8 sps:$4 sm:$0xff]  }
  0x12   :  { %v4347_v2 = vld [vmem:[%s7189_s4 + $0x184] ss:$8 sps:$4 sm:$0xff]   ;;  %v4349_v3 = vld [vmem:[%s7189_s4 + $0x180] ss:$8 sps:$4 sm:$0xff]   ;;  %v4350_v4 = vld [vmem:[%s7189_s4 + $0x194] ss:$8 sps:$4 sm:$0xff]  }
  0x13   :  { %1904 = vmatpush1.bf16.msra.mxu0 %v4287_v14  ;;  %2417 = vmatpush1.bf16.msra.mxu1 %v4287_v14  ;;  %v4352_v5 = vld [vmem:[%s7189_s4 + $0x190] ss:$8 sps:$4 sm:$0xff]   ;;  %v4353_v6 = vld [vmem:[%s7189_s4 + $0x1a4] ss:$8 sps:$4 sm:$0xff]   ;;  %v4355_v7 = vld [vmem:[%s7189_s4 + $0x1a0] ss:$8 sps:$4 sm:$0xff]  }
  0x14   :  { %1905 = vmatprep.subr.bf16.mxu0 %v4288_v15  ;;  %2418 = vmatprep.subr.bf16.mxu1 %v4288_v15  ;;  %v4356_v8 = vld [vmem:[%s7189_s4 + $0x1b4] ss:$8 sps:$4 sm:$0xff]   ;;  %v4358_v9 = vld [vmem:[%s7189_s4 + $0x1b0] ss:$8 sps:$4 sm:$0xff]   ;;  %v4359_v10 = vld [vmem:[%s7189_s4 + $0x1c4] ss:$8 sps:$4 sm:$0xff]  }
  0x15   :  { %v4361_v11 = vld [vmem:[%s7189_s4 + $0x1c0] ss:$8 sps:$4 sm:$0xff]   ;;  %v4362_v12 = vld [vmem:[%s7189_s4 + $0x1d4] ss:$8 sps:$4 sm:$0xff]   ;;  %v4364_v14 = vld [vmem:[%s7189_s4 + $0x1d0] ss:$8 sps:$4 sm:$0xff]  }
  0x16   :  { %v4365_v15 = vld [vmem:[%s7189_s4 + $0x1e4] ss:$8 sps:$4 sm:$0xff]   ;;  %v4367_v20 = vld [vmem:[%s7189_s4 + $0x1e0] ss:$8 sps:$4 sm:$0xff]  }
  0x17   :  { %1906 = vmatpush1.bf16.msra.mxu0 %v4290_v17  ;;  %2419 = vmatpush1.bf16.msra.mxu1 %v4290_v17  ;;  %v317_v17 = vcombine.high %v5084_v19, %v5084_v19  ;;  %v4373_v25 = vld [vmem:[%s7189_s4 + $0x200] ss:$8 sps:$4 sm:$0xff]  }
  0x18   :  { %1907 = vmatprep.subr.bf16.mxu0 %v4291_v18  ;;  %2420 = vmatprep.subr.bf16.mxu1 %v4291_v18  ;;  %v2270_v18 = vcombine.high %v5093_v21, %v5093_v21  ;;  %v4370_v21 = vld [vmem:[%s7189_s4 + $0x1f0] ss:$8 sps:$4 sm:$0xff]  }
  0x19   :  { %v5280_v23 = vrot.slane %v317_v17, %v5073_v16  ;;  %v4439_v17 = vld [vmem:[%s7189_s4 + $0x360] ss:$8 sps:$4 sm:$0xff]  }
  0x1a   :  { %v5283_v19 = vrot.slane %v2270_v18, %v5073_v16  ;;  %v4440_v18 = vld [vmem:[%s7189_s4 + $0x374] ss:$8 sps:$4 sm:$0xff]  }
  0x1b   :  { %1908 = vmatpush1.bf16.msra.mxu0 %v4293_v22  ;;  %2421 = vmatpush1.bf16.msra.mxu1 %v4293_v22  ;;  %v4368_v22 = vld [vmem:[%s7189_s4 + $0x1f4] ss:$8 sps:$4 sm:$0xff]   ;;  %v333_v26 = vcombine.high %v5280_v23, %v5280_v23 }
  0x1c   :  { %1909 = vmatprep.subr.bf16.mxu0 %v4294_v24  ;;  %2422 = vmatprep.subr.bf16.mxu1 %v4294_v24  ;;  %v4371_v24 = vld [vmem:[%s7189_s4 + $0x204] ss:$8 sps:$4 sm:$0xff]   ;;  %v2286_v27 = vcombine.high %v5283_v19, %v5283_v19 }
  0x1f   :  { %1910 = vmatpush1.bf16.msra.mxu0 %v4296_v28  ;;  %2423 = vmatpush1.bf16.msra.mxu1 %v4296_v28  ;;  %v362_v28 = vcombine.high %v5173_v47, %v5173_v47 }
  0x20   :  { %1911 = vmatprep.subr.bf16.mxu0 %v4297_v30  ;;  %2424 = vmatprep.subr.bf16.mxu1 %v4297_v30  ;;  %v4374_v30 = vld [vmem:[%s7189_s4 + $0x214] ss:$8 sps:$4 sm:$0xff]  }
  0x23   :  { %1912 = vmatpush1.bf16.msra.mxu0 %v4299_v31  ;;  %2425 = vmatpush1.bf16.msra.mxu1 %v4299_v31  ;;  %v5306_v31 = vrot.slane %v333_v26, %v5073_v16  ;;  %v4452_v26 = vld [vmem:[%s7189_s4 + $0x3b4] ss:$8 sps:$4 sm:$0xff]  }
  0x24   :  { %1913 = vmatprep.subr.bf16.mxu0 %v4300_v32  ;;  %2426 = vmatprep.subr.bf16.mxu1 %v4300_v32  ;;  %v5309_v32 = vrot.slane %v2286_v27, %v5073_v16  ;;  %v4454_v27 = vld [vmem:[%s7189_s4 + $0x3b0] ss:$8 sps:$4 sm:$0xff]  }
  0x27   :  { %1914 = vmatpush1.bf16.msra.mxu0 %v4302_v33  ;;  %2427 = vmatpush1.bf16.msra.mxu1 %v4302_v33  ;;  %v4376_v33 = vld [vmem:[%s7189_s4 + $0x210] ss:$8 sps:$4 sm:$0xff]  }
  0x28   :  { %1915 = vmatprep.subr.bf16.mxu0 %v4303_v34  ;;  %2428 = vmatprep.subr.bf16.mxu1 %v4303_v34  ;;  %v4377_v34 = vld [vmem:[%s7189_s4 + $0x224] ss:$8 sps:$4 sm:$0xff]  }
  0x2b   :  { %1916 = vmatpush1.bf16.msra.mxu0 %v4305_v35  ;;  %2429 = vmatpush1.bf16.msra.mxu1 %v4305_v35  ;;  %v4379_v35 = vld [vmem:[%s7189_s4 + $0x220] ss:$8 sps:$4 sm:$0xff]  }
  0x2c   :  { %1917 = vmatprep.subr.bf16.mxu0 %v4306_v36  ;;  %2430 = vmatprep.subr.bf16.mxu1 %v4306_v36  ;;  %v4380_v36 = vld [vmem:[%s7189_s4 + $0x234] ss:$8 sps:$4 sm:$0xff]  }
  0x2f   :  { %1918 = vmatpush1.bf16.msra.mxu0 %v4308_v37  ;;  %2431 = vmatpush1.bf16.msra.mxu1 %v4308_v37  ;;  %v4382_v37 = vld [vmem:[%s7189_s4 + $0x230] ss:$8 sps:$4 sm:$0xff]  }
  0x30   :  { %1919 = vmatprep.subr.bf16.mxu0 %v4309_v38  ;;  %2432 = vmatprep.subr.bf16.mxu1 %v4309_v38  ;;  %v4383_v38 = vld [vmem:[%s7189_s4 + $0x244] ss:$8 sps:$4 sm:$0xff]  }
  0x33   :  { %1920 = vmatpush1.bf16.msra.mxu0 %v4311_v39  ;;  %2433 = vmatpush1.bf16.msra.mxu1 %v4311_v39  ;;  %v4385_v39 = vld [vmem:[%s7189_s4 + $0x240] ss:$8 sps:$4 sm:$0xff]  }
  0x34   :  { %1921 = vmatprep.subr.bf16.mxu0 %v4312_v40  ;;  %2434 = vmatprep.subr.bf16.mxu1 %v4312_v40  ;;  %v4386_v40 = vld [vmem:[%s7189_s4 + $0x254] ss:$8 sps:$4 sm:$0xff]  }
  0x37   :  { %1922 = vmatpush1.bf16.msra.mxu0 %v4314_v41  ;;  %2435 = vmatpush1.bf16.msra.mxu1 %v4314_v41  ;;  %v4388_v41 = vld [vmem:[%s7189_s4 + $0x250] ss:$8 sps:$4 sm:$0xff]  }
  0x38   :  { %1923 = vmatprep.subr.bf16.mxu0 %v4315_v42  ;;  %2436 = vmatprep.subr.bf16.mxu1 %v4315_v42  ;;  %v4389_v42 = vld [vmem:[%s7189_s4 + $0x264] ss:$8 sps:$4 sm:$0xff]  }
  0x3b   :  { %1924 = vmatpush1.bf16.msra.mxu0 %v4317_v43  ;;  %2437 = vmatpush1.bf16.msra.mxu1 %v4317_v43  ;;  %v4391_v43 = vld [vmem:[%s7189_s4 + $0x260] ss:$8 sps:$4 sm:$0xff]  }
  0x3c   :  { %1925 = vmatprep.subr.bf16.mxu0 %v4318_v44  ;;  %2438 = vmatprep.subr.bf16.mxu1 %v4318_v44  ;;  %v4392_v44 = vld [vmem:[%s7189_s4 + $0x274] ss:$8 sps:$4 sm:$0xff]  }
  0x3f   :  { %1926 = vmatpush1.bf16.msra.mxu0 %v4320_v45  ;;  %2439 = vmatpush1.bf16.msra.mxu1 %v4320_v45  ;;  %v4394_v45 = vld [vmem:[%s7189_s4 + $0x270] ss:$8 sps:$4 sm:$0xff]  }
  0x40   :  { %1936 = vmatprep.subr.bf16.mxu0 %v4322_v46  ;;  %2449 = vmatprep.subr.bf16.mxu1 %v4322_v46  ;;  %v4395_v46 = vld [vmem:[%s7189_s4 + $0x284] ss:$8 sps:$4 sm:$0xff]  }
  0x42   :  { %1928 = vmatmul.mubr.bf16.vlgmr.msra.gmra.mrb[0].mxu0 %v5173_v47  ;;  %2441 = vmatmul.mubr.bf16.vlgmr.msra.gmra.mrb[0].mxu1 %v5177_v48  ;;  %v4397_v47 = vld [vmem:[%s7189_s4 + $0x280] ss:$8 sps:$4 sm:$0xff]   ;;  %v4398_v48 = vld [vmem:[%s7189_s4 + $0x294] ss:$8 sps:$4 sm:$0xff]  }
  0x43   :  { %1937 = vmatpush1.bf16.msra.mxu0 %v4325_v49  ;;  %2450 = vmatpush1.bf16.msra.mxu1 %v4325_v49  ;;  %v4400_v49 = vld [vmem:[%s7189_s4 + $0x290] ss:$8 sps:$4 sm:$0xff]  }
  0x44   :  { %1938 = vmatprep.subr.bf16.mxu0 %v4326_v50  ;;  %2451 = vmatprep.subr.bf16.mxu1 %v4326_v50  ;;  %v4401_v50 = vld [vmem:[%s7189_s4 + $0x2a4] ss:$8 sps:$4 sm:$0xff]  }
  0x45   :  { %1968 = vmatprep.mubr.bf16.mxu0 %v364_v51  ;;  %2481 = vmatprep.mubr.bf16.mxu1 %v2317_v52  ;;  %v4403_v51 = vld [vmem:[%s7189_s4 + $0x2a0] ss:$8 sps:$4 sm:$0xff]   ;;  %v4404_v52 = vld [vmem:[%s7189_s4 + $0x2b4] ss:$8 sps:$4 sm:$0xff]  }
  0x47   :  { %1939 = vmatpush1.bf16.msra.mxu0 %v4328_v53  ;;  %2452 = vmatpush1.bf16.msra.mxu1 %v4328_v53  ;;  %v4406_v53 = vld [vmem:[%s7189_s4 + $0x2b0] ss:$8 sps:$4 sm:$0xff]  }
  0x48   :  { %1940 = vmatprep.subr.bf16.mxu0 %v4329_v54  ;;  %2453 = vmatprep.subr.bf16.mxu1 %v4329_v54  ;;  %v4407_v54 = vld [vmem:[%s7189_s4 + $0x2c4] ss:$8 sps:$4 sm:$0xff]  }
  0x4b   :  { %1941 = vmatpush1.bf16.msra.mxu0 %v4331_v55  ;;  %2454 = vmatpush1.bf16.msra.mxu1 %v4331_v55  ;;  %v4409_v55 = vld [vmem:[%s7189_s4 + $0x2c0] ss:$8 sps:$4 sm:$0xff]  }
  0x4c   :  { %1942 = vmatprep.subr.bf16.mxu0 %v4332_v56  ;;  %2455 = vmatprep.subr.bf16.mxu1 %v4332_v56  ;;  %v4410_v56 = vld [vmem:[%s7189_s4 + $0x2d4] ss:$8 sps:$4 sm:$0xff]  }
  0x4f   :  { %1943 = vmatpush1.bf16.msra.mxu0 %v4334_v57  ;;  %2456 = vmatpush1.bf16.msra.mxu1 %v4334_v57  ;;  %v4412_v57 = vld [vmem:[%s7189_s4 + $0x2d0] ss:$8 sps:$4 sm:$0xff]  }
  0x50   :  { %1944 = vmatprep.subr.bf16.mxu0 %v4335_v58  ;;  %2457 = vmatprep.subr.bf16.mxu1 %v4335_v58  ;;  %v4413_v58 = vld [vmem:[%s7189_s4 + $0x2e4] ss:$8 sps:$4 sm:$0xff]  }
  0x53   :  { %1945 = vmatpush1.bf16.msra.mxu0 %v4337_v59  ;;  %2458 = vmatpush1.bf16.msra.mxu1 %v4337_v59  ;;  %v4415_v59 = vld [vmem:[%s7189_s4 + $0x2e0] ss:$8 sps:$4 sm:$0xff]  }
  0x54   :  { %1946 = vmatprep.subr.bf16.mxu0 %v4338_v60  ;;  %2459 = vmatprep.subr.bf16.mxu1 %v4338_v60  ;;  %v4416_v60 = vld [vmem:[%s7189_s4 + $0x2f4] ss:$8 sps:$4 sm:$0xff]  }
  0x57   :  { %1947 = vmatpush1.bf16.msra.mxu0 %v4340_v61  ;;  %2460 = vmatpush1.bf16.msra.mxu1 %v4340_v61  ;;  %v4418_v61 = vld [vmem:[%s7189_s4 + $0x2f0] ss:$8 sps:$4 sm:$0xff]  }
  0x58   :  { %1948 = vmatprep.subr.bf16.mxu0 %v4341_v62  ;;  %2461 = vmatprep.subr.bf16.mxu1 %v4341_v62  ;;  %v4419_v62 = vld [vmem:[%s7189_s4 + $0x304] ss:$8 sps:$4 sm:$0xff]  }
  0x5b   :  { %1949 = vmatpush1.bf16.msra.mxu0 %v4343_v63  ;;  %2462 = vmatpush1.bf16.msra.mxu1 %v4343_v63  ;;  %v5405_v63 = vrot.slane %v5280_v23, %v5073_v16  ;;  %v4445_v23 = vld [vmem:[%s7189_s4 + $0x380] ss:$8 sps:$4 sm:$0xff]  }
  0x5c   :  { %1950 = vmatprep.subr.bf16.mxu0 %v4344_v0  ;;  %2463 = vmatprep.subr.bf16.mxu1 %v4344_v0  ;;  %v5409_v0 = vrot.slane %v5283_v19, %v5073_v16  ;;  %v4446_v19 = vld [vmem:[%s7189_s4 + $0x394] ss:$8 sps:$4 sm:$0xff]  }
  0x5f   :  { %1951 = vmatpush1.bf16.msra.mxu0 %v4346_v1  ;;  %2464 = vmatpush1.bf16.msra.mxu1 %v4346_v1  ;;  %v4421_v1 = vld [vmem:[%s7189_s4 + $0x300] ss:$8 sps:$4 sm:$0xff]  }
  0x60   :  { %1952 = vmatprep.subr.bf16.mxu0 %v4347_v2  ;;  %2465 = vmatprep.subr.bf16.mxu1 %v4347_v2  ;;  %v4422_v2 = vld [vmem:[%s7189_s4 + $0x314] ss:$8 sps:$4 sm:$0xff]  }
  0x63   :  { %1953 = vmatpush1.bf16.msra.mxu0 %v4349_v3  ;;  %2466 = vmatpush1.bf16.msra.mxu1 %v4349_v3  ;;  %v365_v3 = vcombine.high %v5306_v31, %v5306_v31 }
  0x64   :  { %1954 = vmatprep.subr.bf16.mxu0 %v4350_v4  ;;  %2467 = vmatprep.subr.bf16.mxu1 %v4350_v4  ;;  %v2318_v4 = vcombine.high %v5309_v32, %v5309_v32 }
  0x67   :  { %1955 = vmatpush1.bf16.msra.mxu0 %v4352_v5  ;;  %2468 = vmatpush1.bf16.msra.mxu1 %v4352_v5  ;;  %v4424_v5 = vld [vmem:[%s7189_s4 + $0x310] ss:$8 sps:$4 sm:$0xff]  }
  0x68   :  { %1956 = vmatprep.subr.bf16.mxu0 %v4353_v6  ;;  %2469 = vmatprep.subr.bf16.mxu1 %v4353_v6  ;;  %v4425_v6 = vld [vmem:[%s7189_s4 + $0x324] ss:$8 sps:$4 sm:$0xff]  }
  0x6b   :  { %1957 = vmatpush1.bf16.msra.mxu0 %v4355_v7  ;;  %2470 = vmatpush1.bf16.msra.mxu1 %v4355_v7  ;;  %v4427_v7 = vld [vmem:[%s7189_s4 + $0x320] ss:$8 sps:$4 sm:$0xff]  }
  0x6c   :  { %1958 = vmatprep.subr.bf16.mxu0 %v4356_v8  ;;  %2471 = vmatprep.subr.bf16.mxu1 %v4356_v8  ;;  %v4428_v8 = vld [vmem:[%s7189_s4 + $0x334] ss:$8 sps:$4 sm:$0xff]  }
  0x6f   :  { %1959 = vmatpush1.bf16.msra.mxu0 %v4358_v9  ;;  %2472 = vmatpush1.bf16.msra.mxu1 %v4358_v9  ;;  %v4430_v9 = vld [vmem:[%s7189_s4 + $0x330] ss:$8 sps:$4 sm:$0xff]  }
  0x70   :  { %1960 = vmatprep.subr.bf16.mxu0 %v4359_v10  ;;  %2473 = vmatprep.subr.bf16.mxu1 %v4359_v10  ;;  %v4431_v10 = vld [vmem:[%s7189_s4 + $0x344] ss:$8 sps:$4 sm:$0xff]  }
  0x73   :  { %1961 = vmatpush1.bf16.msra.mxu0 %v4361_v11  ;;  %2474 = vmatpush1.bf16.msra.mxu1 %v4361_v11  ;;  %v4433_v11 = vld [vmem:[%s7189_s4 + $0x340] ss:$8 sps:$4 sm:$0xff]  }
  0x74   :  { %1962 = vmatprep.subr.bf16.mxu0 %v4362_v12  ;;  %2475 = vmatprep.subr.bf16.mxu1 %v4362_v12  ;;  %v4434_v12 = vld [vmem:[%s7189_s4 + $0x354] ss:$8 sps:$4 sm:$0xff]  }
  0x77   :  { %1963 = vmatpush1.bf16.msra.mxu0 %v4364_v14  ;;  %2476 = vmatpush1.bf16.msra.mxu1 %v4364_v14  ;;  %v4436_v14 = vld [vmem:[%s7189_s4 + $0x350] ss:$8 sps:$4 sm:$0xff]  }
  0x78   :  { %1964 = vmatprep.subr.bf16.mxu0 %v4365_v15  ;;  %2477 = vmatprep.subr.bf16.mxu1 %v4365_v15  ;;  %v4437_v15 = vld [vmem:[%s7189_s4 + $0x364] ss:$8 sps:$4 sm:$0xff]  }
  0x7b   :  { %1965 = vmatpush1.bf16.msra.mxu0 %v4367_v20  ;;  %2478 = vmatpush1.bf16.msra.mxu1 %v4367_v20  ;;  %v4442_v20 = vld [vmem:[%s7189_s4 + $0x370] ss:$8 sps:$4 sm:$0xff]  }
  0x7c   :  { %1966 = vmatprep.subr.bf16.mxu0 %v4368_v22  ;;  %2479 = vmatprep.subr.bf16.mxu1 %v4368_v22  ;;  %v4443_v22 = vld [vmem:[%s7189_s4 + $0x384] ss:$8 sps:$4 sm:$0xff]  }
  0x7f   :  { %1967 = vmatpush1.bf16.msra.mxu0 %v4370_v21  ;;  %2480 = vmatpush1.bf16.msra.mxu1 %v4370_v21  ;;  %v4448_v21 = vld [vmem:[%s7189_s4 + $0x390] ss:$8 sps:$4 sm:$0xff]  }
  0x80   :  { %1977 = vmatprep.subr.bf16.mxu0 %v4371_v24  ;;  %2490 = vmatprep.subr.bf16.mxu1 %v4371_v24  ;;  %v4449_v24 = vld [vmem:[%s7189_s4 + $0x3a4] ss:$8 sps:$4 sm:$0xff]  }
  0x82   :  { %1969 = vmatmul.mubr.bf16.vlgmr.msra.gmra.mrb[0].mxu0 %v362_v28  ;;  %2482 = vmatmul.mubr.bf16.vlgmr.msra.gmra.mrb[0].mxu1 %v2315_v29  ;;  %v4455_v28 = vld [vmem:[%s7189_s4 + $0x3c4] ss:$8 sps:$4 sm:$0xff]   ;;  %v4457_v29 = vld [vmem:[%s7189_s4 + $0x3c0] ss:$8 sps:$4 sm:$0xff]  }
  0x83   :  { %1978 = vmatpush1.bf16.msra.mxu0 %v4373_v25  ;;  %2491 = vmatpush1.bf16.msra.mxu1 %v4373_v25  ;;  %v4451_v25 = vld [vmem:[%s7189_s4 + $0x3a0] ss:$8 sps:$4 sm:$0xff]  }
  0x84   :  { %1979 = vmatprep.subr.bf16.mxu0 %v4374_v30  ;;  %2492 = vmatprep.subr.bf16.mxu1 %v4374_v30  ;;  %v4458_v30 = vld [vmem:[%s7189_s4 + $0x3d4] ss:$8 sps:$4 sm:$0xff]  }
  0x85   :  { %2009 = vmatprep.mubr.bf16.mxu0 %v5306_v31  ;;  %2522 = vmatprep.mubr.bf16.mxu1 %v5309_v32  ;;  %v4460_v31 = vld [vmem:[%s7189_s4 + $0x3d0] ss:$8 sps:$4 sm:$0xff]   ;;  %v4461_v32 = vld [vmem:[%s7189_s4 + $0x3e4] ss:$8 sps:$4 sm:$0xff]  }
  0x87   :  { %1980 = vmatpush1.bf16.msra.mxu0 %v4376_v33  ;;  %2493 = vmatpush1.bf16.msra.mxu1 %v4376_v33  ;;  %v5504_v33 = vld [vmem:[%s7190_s0 + $0x8] sm:$0xff] }
  0x88   :  { %1981 = vmatprep.subr.bf16.mxu0 %v4377_v34  ;;  %2494 = vmatprep.subr.bf16.mxu1 %v4377_v34  ;;  %v5509_v34 = vld [vmem:[%s7191_s1 + $0x8] sm:$0xff] }
  0x8b   :  { %1982 = vmatpush1.bf16.msra.mxu0 %v4379_v35  ;;  %2495 = vmatpush1.bf16.msra.mxu1 %v4379_v35  ;;  %v4463_v35 = vld [vmem:[%s7189_s4 + $0x3e0] ss:$8 sps:$4 sm:$0xff]  }
  0x8c   :  { %1983 = vmatprep.subr.bf16.mxu0 %v4380_v36  ;;  %2496 = vmatprep.subr.bf16.mxu1 %v4380_v36  ;;  %v4464_v36 = vld [vmem:[%s7189_s4 + $0x3f4] ss:$8 sps:$4 sm:$0xff]  }
  0x8f   :  { %1984 = vmatpush1.bf16.msra.mxu0 %v4382_v37  ;;  %2497 = vmatpush1.bf16.msra.mxu1 %v4382_v37  ;;  %v5519_v37 = vrot.slane %v5504_v33, %v5073_v16 }
  0x90   :  { %1985 = vmatprep.subr.bf16.mxu0 %v4383_v38  ;;  %2498 = vmatprep.subr.bf16.mxu1 %v4383_v38  ;;  %v5523_v38 = vrot.slane %v5509_v34, %v5073_v16 }
  0x93   :  { %1986 = vmatpush1.bf16.msra.mxu0 %v4385_v39  ;;  %2499 = vmatpush1.bf16.msra.mxu1 %v4385_v39  ;;  %v4466_v39 = vld [vmem:[%s7189_s4 + $0x3f0] ss:$8 sps:$4 sm:$0xff]  }
  0x94   :  { %1987 = vmatprep.subr.bf16.mxu0 %v4386_v40  ;;  %2500 = vmatprep.subr.bf16.mxu1 %v4386_v40  ;;  %v4467_v40 = vld [vmem:[%s7189_s4 + $0x404] ss:$8 sps:$4 sm:$0xff]  }
  0x97   :  { %1988 = vmatpush1.bf16.msra.mxu0 %v4388_v41  ;;  %2501 = vmatpush1.bf16.msra.mxu1 %v4388_v41  ;;  %v381_v41 = vcombine.high %v5519_v37, %v5519_v37 }
  0x98   :  { %1989 = vmatprep.subr.bf16.mxu0 %v4389_v42  ;;  %2502 = vmatprep.subr.bf16.mxu1 %v4389_v42  ;;  %v2334_v42 = vcombine.high %v5523_v38, %v5523_v38 }
  0x9b   :  { %1990 = vmatpush1.bf16.msra.mxu0 %v4391_v43  ;;  %2503 = vmatpush1.bf16.msra.mxu1 %v4391_v43  ;;  %v363_v43 = vcombine.high %v5405_v63, %v5405_v63 }
  0x9c   :  { %1991 = vmatprep.subr.bf16.mxu0 %v4392_v44  ;;  %2504 = vmatprep.subr.bf16.mxu1 %v4392_v44  ;;  %v2316_v44 = vcombine.high %v5409_v0, %v5409_v0 }
  0x9f   :  { %1992 = vmatpush1.bf16.msra.mxu0 %v4394_v45  ;;  %2505 = vmatpush1.bf16.msra.mxu1 %v4394_v45  ;;  %v4469_v45 = vld [vmem:[%s7189_s4 + $0x400] ss:$8 sps:$4 sm:$0xff]  }
  0xa0   :  { %1993 = vmatprep.subr.bf16.mxu0 %v4395_v46  ;;  %2506 = vmatprep.subr.bf16.mxu1 %v4395_v46  ;;  %v4470_v46 = vld [vmem:[%s7189_s4 + $0x414] ss:$8 sps:$4 sm:$0xff]  }
  0xa3   :  { %1994 = vmatpush1.bf16.msra.mxu0 %v4397_v47  ;;  %2507 = vmatpush1.bf16.msra.mxu1 %v4397_v47  ;;  %v5546_v47 = vrot.slane %v381_v41, %v5073_v16  ;;  %v4544_v41 = vld [vmem:[%s7189_s4 + $0x590] ss:$8 sps:$4 sm:$0xff]  }
  0xa4   :  { %1995 = vmatprep.subr.bf16.mxu0 %v4398_v48  ;;  %2508 = vmatprep.subr.bf16.mxu1 %v4398_v48  ;;  %v5549_v48 = vrot.slane %v2334_v42, %v5073_v16  ;;  %v4545_v42 = vld [vmem:[%s7189_s4 + $0x5a4] ss:$8 sps:$4 sm:$0xff]  }
  0xa7   :  { %1996 = vmatpush1.bf16.msra.mxu0 %v4400_v49  ;;  %2509 = vmatpush1.bf16.msra.mxu1 %v4400_v49  ;;  %v4472_v49 = vld [vmem:[%s7189_s4 + $0x410] ss:$8 sps:$4 sm:$0xff]  }
  0xa8   :  { %1997 = vmatprep.subr.bf16.mxu0 %v4401_v50  ;;  %2510 = vmatprep.subr.bf16.mxu1 %v4401_v50  ;;  %v4473_v50 = vld [vmem:[%s7189_s4 + $0x424] ss:$8 sps:$4 sm:$0xff]  }
  0xab   :  { %1998 = vmatpush1.bf16.msra.mxu0 %v4403_v51  ;;  %2511 = vmatpush1.bf16.msra.mxu1 %v4403_v51  ;;  %v4475_v51 = vld [vmem:[%s7189_s4 + $0x420] ss:$8 sps:$4 sm:$0xff]  }
  0xac   :  { %1999 = vmatprep.subr.bf16.mxu0 %v4404_v52  ;;  %2512 = vmatprep.subr.bf16.mxu1 %v4404_v52  ;;  %v4476_v52 = vld [vmem:[%s7189_s4 + $0x434] ss:$8 sps:$4 sm:$0xff]  }
  0xaf   :  { %2000 = vmatpush1.bf16.msra.mxu0 %v4406_v53  ;;  %2513 = vmatpush1.bf16.msra.mxu1 %v4406_v53  ;;  %v4478_v53 = vld [vmem:[%s7189_s4 + $0x430] ss:$8 sps:$4 sm:$0xff]  }
  0xb0   :  { %2001 = vmatprep.subr.bf16.mxu0 %v4407_v54  ;;  %2514 = vmatprep.subr.bf16.mxu1 %v4407_v54  ;;  %v4479_v54 = vld [vmem:[%s7189_s4 + $0x444] ss:$8 sps:$4 sm:$0xff]  }
  0xb3   :  { %2002 = vmatpush1.bf16.msra.mxu0 %v4409_v55  ;;  %2515 = vmatpush1.bf16.msra.mxu1 %v4409_v55  ;;  %v4481_v55 = vld [vmem:[%s7189_s4 + $0x440] ss:$8 sps:$4 sm:$0xff]  }
  0xb4   :  { %2003 = vmatprep.subr.bf16.mxu0 %v4410_v56  ;;  %2516 = vmatprep.subr.bf16.mxu1 %v4410_v56  ;;  %v4482_v56 = vld [vmem:[%s7189_s4 + $0x454] ss:$8 sps:$4 sm:$0xff]  }
  0xb7   :  { %2004 = vmatpush1.bf16.msra.mxu0 %v4412_v57  ;;  %2517 = vmatpush1.bf16.msra.mxu1 %v4412_v57  ;;  %v4484_v57 = vld [vmem:[%s7189_s4 + $0x450] ss:$8 sps:$4 sm:$0xff]  }
  0xb8   :  { %2005 = vmatprep.subr.bf16.mxu0 %v4413_v58  ;;  %2518 = vmatprep.subr.bf16.mxu1 %v4413_v58  ;;  %v4485_v58 = vld [vmem:[%s7189_s4 + $0x464] ss:$8 sps:$4 sm:$0xff]  }
  0xbb   :  { %2006 = vmatpush1.bf16.msra.mxu0 %v4415_v59  ;;  %2519 = vmatpush1.bf16.msra.mxu1 %v4415_v59  ;;  %v4487_v59 = vld [vmem:[%s7189_s4 + $0x460] ss:$8 sps:$4 sm:$0xff]  }
  0xbc   :  { %2007 = vmatprep.subr.bf16.mxu0 %v4416_v60  ;;  %2520 = vmatprep.subr.bf16.mxu1 %v4416_v60  ;;  %v4488_v60 = vld [vmem:[%s7189_s4 + $0x474] ss:$8 sps:$4 sm:$0xff]  }
  0xbf   :  { %2008 = vmatpush1.bf16.msra.mxu0 %v4418_v61  ;;  %2521 = vmatpush1.bf16.msra.mxu1 %v4418_v61  ;;  %v4490_v61 = vld [vmem:[%s7189_s4 + $0x470] ss:$8 sps:$4 sm:$0xff]  }
  0xc0   :  { %2018 = vmatprep.subr.bf16.mxu0 %v4419_v62  ;;  %2531 = vmatprep.subr.bf16.mxu1 %v4419_v62  ;;  %v4491_v62 = vld [vmem:[%s7189_s4 + $0x484] ss:$8 sps:$4 sm:$0xff]  }
  0xc2   :  { %2010 = vmatmul.mubr.bf16.vlgmr.msra.gmra.mrb[0].mxu0 %v5405_v63  ;;  %2523 = vmatmul.mubr.bf16.vlgmr.msra.gmra.mrb[0].mxu1 %v5409_v0  ;;  %v4493_v63 = vld [vmem:[%s7189_s4 + $0x480] ss:$8 sps:$4 sm:$0xff]   ;;  %v4494_v0 = vld [vmem:[%s7189_s4 + $0x494] ss:$8 sps:$4 sm:$0xff]  }
  0xc3   :  { %2019 = vmatpush1.bf16.msra.mxu0 %v4421_v1  ;;  %2532 = vmatpush1.bf16.msra.mxu1 %v4421_v1  ;;  %v4496_v1 = vld [vmem:[%s7189_s4 + $0x490] ss:$8 sps:$4 sm:$0xff]  }
  0xc4   :  { %2020 = vmatprep.subr.bf16.mxu0 %v4422_v2  ;;  %2533 = vmatprep.subr.bf16.mxu1 %v4422_v2  ;;  %v4497_v2 = vld [vmem:[%s7189_s4 + $0x4a4] ss:$8 sps:$4 sm:$0xff]  }
  0xc5   :  { %2050 = vmatprep.mubr.bf16.mxu0 %v365_v3  ;;  %2563 = vmatprep.mubr.bf16.mxu1 %v2318_v4  ;;  %v4499_v3 = vld [vmem:[%s7189_s4 + $0x4a0] ss:$8 sps:$4 sm:$0xff]   ;;  %v4500_v4 = vld [vmem:[%s7189_s4 + $0x4b4] ss:$8 sps:$4 sm:$0xff]  }
  0xc7   :  { %2021 = vmatpush1.bf16.msra.mxu0 %v4424_v5  ;;  %2534 = vmatpush1.bf16.msra.mxu1 %v4424_v5  ;;  %v4502_v5 = vld [vmem:[%s7189_s4 + $0x4b0] ss:$8 sps:$4 sm:$0xff]  }
  0xc8   :  { %2022 = vmatprep.subr.bf16.mxu0 %v4425_v6  ;;  %2535 = vmatprep.subr.bf16.mxu1 %v4425_v6  ;;  %v4503_v6 = vld [vmem:[%s7189_s4 + $0x4c4] ss:$8 sps:$4 sm:$0xff]  }
  0xcb   :  { %2023 = vmatpush1.bf16.msra.mxu0 %v4427_v7  ;;  %2536 = vmatpush1.bf16.msra.mxu1 %v4427_v7  ;;  %v4505_v7 = vld [vmem:[%s7189_s4 + $0x4c0] ss:$8 sps:$4 sm:$0xff]  }
  0xcc   :  { %2024 = vmatprep.subr.bf16.mxu0 %v4428_v8  ;;  %2537 = vmatprep.subr.bf16.mxu1 %v4428_v8  ;;  %v4506_v8 = vld [vmem:[%s7189_s4 + $0x4d4] ss:$8 sps:$4 sm:$0xff]  }
  0xcf   :  { %2025 = vmatpush1.bf16.msra.mxu0 %v4430_v9  ;;  %2538 = vmatpush1.bf16.msra.mxu1 %v4430_v9  ;;  %v4508_v9 = vld [vmem:[%s7189_s4 + $0x4d0] ss:$8 sps:$4 sm:$0xff]  }
  0xd0   :  { %2026 = vmatprep.subr.bf16.mxu0 %v4431_v10  ;;  %2539 = vmatprep.subr.bf16.mxu1 %v4431_v10  ;;  %v4509_v10 = vld [vmem:[%s7189_s4 + $0x4e4] ss:$8 sps:$4 sm:$0xff]  }
  0xd3   :  { %2027 = vmatpush1.bf16.msra.mxu0 %v4433_v11  ;;  %2540 = vmatpush1.bf16.msra.mxu1 %v4433_v11  ;;  %v4511_v11 = vld [vmem:[%s7189_s4 + $0x4e0] ss:$8 sps:$4 sm:$0xff]  }
  0xd4   :  { %2028 = vmatprep.subr.bf16.mxu0 %v4434_v12  ;;  %2541 = vmatprep.subr.bf16.mxu1 %v4434_v12  ;;  %v4512_v12 = vld [vmem:[%s7189_s4 + $0x4f4] ss:$8 sps:$4 sm:$0xff]  }
  0xd7   :  { %2029 = vmatpush1.bf16.msra.mxu0 %v4436_v14  ;;  %2542 = vmatpush1.bf16.msra.mxu1 %v4436_v14  ;;  %v4514_v14 = vld [vmem:[%s7189_s4 + $0x4f0] ss:$8 sps:$4 sm:$0xff]  }
  0xd8   :  { %2030 = vmatprep.subr.bf16.mxu0 %v4437_v15  ;;  %2543 = vmatprep.subr.bf16.mxu1 %v4437_v15  ;;  %v4515_v15 = vld [vmem:[%s7189_s4 + $0x504] ss:$8 sps:$4 sm:$0xff]  }
  0xdb   :  { %2031 = vmatpush1.bf16.msra.mxu0 %v4439_v17  ;;  %2544 = vmatpush1.bf16.msra.mxu1 %v4439_v17  ;;  %v5645_v17 = vrot.slane %v5519_v37, %v5073_v16  ;;  %v4538_v37 = vld [vmem:[%s7189_s4 + $0x570] ss:$8 sps:$4 sm:$0xff]  }
  0xdc   :  { %2032 = vmatprep.subr.bf16.mxu0 %v4440_v18  ;;  %2545 = vmatprep.subr.bf16.mxu1 %v4440_v18  ;;  %v5649_v18 = vrot.slane %v5523_v38, %v5073_v16  ;;  %v4539_v38 = vld [vmem:[%s7189_s4 + $0x584] ss:$8 sps:$4 sm:$0xff]  }
  0xdf   :  { %2033 = vmatpush1.bf16.msra.mxu0 %v4442_v20  ;;  %2546 = vmatpush1.bf16.msra.mxu1 %v4442_v20  ;;  %v4517_v20 = vld [vmem:[%s7189_s4 + $0x500] ss:$8 sps:$4 sm:$0xff]  }
  0xe0   :  { %2034 = vmatprep.subr.bf16.mxu0 %v4443_v22  ;;  %2547 = vmatprep.subr.bf16.mxu1 %v4443_v22  ;;  %v4518_v22 = vld [vmem:[%s7189_s4 + $0x514] ss:$8 sps:$4 sm:$0xff]  }
  0xe3   :  { %2035 = vmatpush1.bf16.msra.mxu0 %v4445_v23  ;;  %2548 = vmatpush1.bf16.msra.mxu1 %v4445_v23  ;;  %v413_v23 = vcombine.high %v5546_v47, %v5546_v47 }
  0xe4   :  { %2036 = vmatprep.subr.bf16.mxu0 %v4446_v19  ;;  %2549 = vmatprep.subr.bf16.mxu1 %v4446_v19  ;;  %v2366_v19 = vcombine.high %v5549_v48, %v5549_v48 }
  0xe7   :  { %2037 = vmatpush1.bf16.msra.mxu0 %v4448_v21  ;;  %2550 = vmatpush1.bf16.msra.mxu1 %v4448_v21  ;;  %v4520_v21 = vld [vmem:[%s7189_s4 + $0x510] ss:$8 sps:$4 sm:$0xff]  }
  0xe8   :  { %2038 = vmatprep.subr.bf16.mxu0 %v4449_v24  ;;  %2551 = vmatprep.subr.bf16.mxu1 %v4449_v24  ;;  %v4521_v24 = vld [vmem:[%s7189_s4 + $0x524] ss:$8 sps:$4 sm:$0xff]  }
  0xeb   :  { %2039 = vmatpush1.bf16.msra.mxu0 %v4451_v25  ;;  %2552 = vmatpush1.bf16.msra.mxu1 %v4451_v25  ;;  %v4523_v25 = vld [vmem:[%s7189_s4 + $0x520] ss:$8 sps:$4 sm:$0xff]  }
  0xec   :  { %2040 = vmatprep.subr.bf16.mxu0 %v4452_v26  ;;  %2553 = vmatprep.subr.bf16.mxu1 %v4452_v26  ;;  %v4524_v26 = vld [vmem:[%s7189_s4 + $0x534] ss:$8 sps:$4 sm:$0xff]  }
  0xef   :  { %2041 = vmatpush1.bf16.msra.mxu0 %v4454_v27  ;;  %2554 = vmatpush1.bf16.msra.mxu1 %v4454_v27  ;;  %v4526_v27 = vld [vmem:[%s7189_s4 + $0x530] ss:$8 sps:$4 sm:$0xff]  }
  0xf0   :  { %2042 = vmatprep.subr.bf16.mxu0 %v4455_v28  ;;  %2555 = vmatprep.subr.bf16.mxu1 %v4455_v28  ;;  %v4527_v28 = vld [vmem:[%s7189_s4 + $0x544] ss:$8 sps:$4 sm:$0xff]  }
  0xf3   :  { %2043 = vmatpush1.bf16.msra.mxu0 %v4457_v29  ;;  %2556 = vmatpush1.bf16.msra.mxu1 %v4457_v29  ;;  %v4529_v29 = vld [vmem:[%s7189_s4 + $0x540] ss:$8 sps:$4 sm:$0xff]  }
  0xf4   :  { %2044 = vmatprep.subr.bf16.mxu0 %v4458_v30  ;;  %2557 = vmatprep.subr.bf16.mxu1 %v4458_v30  ;;  %v4530_v30 = vld [vmem:[%s7189_s4 + $0x554] ss:$8 sps:$4 sm:$0xff]  }
  0xf7   :  { %2045 = vmatpush1.bf16.msra.mxu0 %v4460_v31  ;;  %2558 = vmatpush1.bf16.msra.mxu1 %v4460_v31  ;;  %v4532_v31 = vld [vmem:[%s7189_s4 + $0x550] ss:$8 sps:$4 sm:$0xff]  }
  0xf8   :  { %2046 = vmatprep.subr.bf16.mxu0 %v4461_v32  ;;  %2559 = vmatprep.subr.bf16.mxu1 %v4461_v32  ;;  %v4533_v32 = vld [vmem:[%s7189_s4 + $0x564] ss:$8 sps:$4 sm:$0xff]  }
  0xfb   :  { %2047 = vmatpush1.bf16.msra.mxu0 %v4463_v35  ;;  %2560 = vmatpush1.bf16.msra.mxu1 %v4463_v35  ;;  %v4535_v35 = vld [vmem:[%s7189_s4 + $0x560] ss:$8 sps:$4 sm:$0xff]  }
  0xfc   :  { %2048 = vmatprep.subr.bf16.mxu0 %v4464_v36  ;;  %2561 = vmatprep.subr.bf16.mxu1 %v4464_v36  ;;  %v4536_v36 = vld [vmem:[%s7189_s4 + $0x574] ss:$8 sps:$4 sm:$0xff]  }
  0xff   :  { %2049 = vmatpush1.bf16.msra.mxu0 %v4466_v39  ;;  %2562 = vmatpush1.bf16.msra.mxu1 %v4466_v39  ;;  %v4541_v39 = vld [vmem:[%s7189_s4 + $0x580] ss:$8 sps:$4 sm:$0xff]  }
 0x100   :  { %2059 = vmatprep.subr.bf16.mxu0 %v4467_v40  ;;  %2572 = vmatprep.subr.bf16.mxu1 %v4467_v40  ;;  %v4542_v40 = vld [vmem:[%s7189_s4 + $0x594] ss:$8 sps:$4 sm:$0xff]  }
 0x102   :  { %2051 = vmatmul.mubr.bf16.vlgmr.msra.gmra.mrb[0].mxu0 %v363_v43  ;;  %2564 = vmatmul.mubr.bf16.vlgmr.msra.gmra.mrb[0].mxu1 %v2316_v44  ;;  %v4547_v43 = vld [vmem:[%s7189_s4 + $0x5a0] ss:$8 sps:$4 sm:$0xff]   ;;  %v4548_v44 = vld [vmem:[%s7189_s4 + $0x5b4] ss:$8 sps:$4 sm:$0xff]  }
 0x103   :  { %2060 = vmatpush1.bf16.msra.mxu0 %v4469_v45  ;;  %2573 = vmatpush1.bf16.msra.mxu1 %v4469_v45  ;;  %v4550_v45 = vld [vmem:[%s7189_s4 + $0x5b0] ss:$8 sps:$4 sm:$0xff]  }
 0x104   :  { %2061 = vmatprep.subr.bf16.mxu0 %v4470_v46  ;;  %2574 = vmatprep.subr.bf16.mxu1 %v4470_v46  ;;  %v4551_v46 = vld [vmem:[%s7189_s4 + $0x5c4] ss:$8 sps:$4 sm:$0xff]  }
 0x105   :  { %2091 = vmatprep.mubr.bf16.mxu0 %v5546_v47  ;;  %2604 = vmatprep.mubr.bf16.mxu1 %v5549_v48  ;;  %v4553_v47 = vld [vmem:[%s7189_s4 + $0x5c0] ss:$8 sps:$4 sm:$0xff]   ;;  %v4554_v48 = vld [vmem:[%s7189_s4 + $0x5d4] ss:$8 sps:$4 sm:$0xff]  }
 0x107   :  { %2062 = vmatpush1.bf16.msra.mxu0 %v4472_v49  ;;  %2575 = vmatpush1.bf16.msra.mxu1 %v4472_v49  ;;  %v4556_v49 = vld [vmem:[%s7189_s4 + $0x5d0] ss:$8 sps:$4 sm:$0xff]  }
 0x108   :  { %2063 = vmatprep.subr.bf16.mxu0 %v4473_v50  ;;  %2576 = vmatprep.subr.bf16.mxu1 %v4473_v50  ;;  %v4557_v50 = vld [vmem:[%s7189_s4 + $0x5e4] ss:$8 sps:$4 sm:$0xff]  }
 0x10b   :  { %2064 = vmatpush1.bf16.msra.mxu0 %v4475_v51  ;;  %2577 = vmatpush1.bf16.msra.mxu1 %v4475_v51  ;;  %v366_v51 = vcombine.high %v5504_v33, %v5504_v33 }
 0x10c   :  { %2065 = vmatprep.subr.bf16.mxu0 %v4476_v52  ;;  %2578 = vmatprep.subr.bf16.mxu1 %v4476_v52  ;;  %v2319_v52 = vcombine.high %v5509_v34, %v5509_v34  ;;  %v4562_v34 = vld [vmem:[%s7189_s4 + $0x5f0] ss:$8 sps:$4 sm:$0xff]  }
 0x10e   :  { %v5755_v33 = vrot.slane %v2319_v52, %v5073_v16  ;;  %v4634_v52 = vld [vmem:[%s7189_s4 + $0x774] ss:$8 sps:$4 sm:$0xff]  }
 0x10f   :  { %2066 = vmatpush1.bf16.msra.mxu0 %v4478_v53  ;;  %2579 = vmatpush1.bf16.msra.mxu1 %v4478_v53  ;;  %v4559_v53 = vld [vmem:[%s7189_s4 + $0x5e0] ss:$8 sps:$4 sm:$0xff]  }
 0x110   :  { %2067 = vmatprep.subr.bf16.mxu0 %v4479_v54  ;;  %2580 = vmatprep.subr.bf16.mxu1 %v4479_v54  ;;  %v4560_v54 = vld [vmem:[%s7189_s4 + $0x5f4] ss:$8 sps:$4 sm:$0xff]  }
 0x113   :  { %2068 = vmatpush1.bf16.msra.mxu0 %v4481_v55  ;;  %2581 = vmatpush1.bf16.msra.mxu1 %v4481_v55  ;;  %v5752_v55 = vrot.slane %v366_v51, %v5073_v16  ;;  %v4633_v51 = vld [vmem:[%s7189_s4 + $0x760] ss:$8 sps:$4 sm:$0xff]  }
 0x114   :  { %2069 = vmatprep.subr.bf16.mxu0 %v4482_v56  ;;  %2582 = vmatprep.subr.bf16.mxu1 %v4482_v56  ;;  %v4563_v56 = vld [vmem:[%s7189_s4 + $0x604] ss:$8 sps:$4 sm:$0xff]  }
 0x117   :  { %2070 = vmatpush1.bf16.msra.mxu0 %v4484_v57  ;;  %2583 = vmatpush1.bf16.msra.mxu1 %v4484_v57  ;;  %v382_v57 = vcombine.high %v5752_v55, %v5752_v55 }
 0x118   :  { %2071 = vmatprep.subr.bf16.mxu0 %v4485_v58  ;;  %2584 = vmatprep.subr.bf16.mxu1 %v4485_v58  ;;  %v2335_v58 = vcombine.high %v5755_v33, %v5755_v33 }
 0x11b   :  { %2072 = vmatpush1.bf16.msra.mxu0 %v4487_v59  ;;  %2585 = vmatpush1.bf16.msra.mxu1 %v4487_v59  ;;  %v411_v59 = vcombine.high %v5645_v17, %v5645_v17 }
 0x11c   :  { %2073 = vmatprep.subr.bf16.mxu0 %v4488_v60  ;;  %2586 = vmatprep.subr.bf16.mxu1 %v4488_v60  ;;  %v2364_v60 = vcombine.high %v5649_v18, %v5649_v18 }
 0x11f   :  { %2074 = vmatpush1.bf16.msra.mxu0 %v4490_v61  ;;  %2587 = vmatpush1.bf16.msra.mxu1 %v4490_v61  ;;  %v4565_v61 = vld [vmem:[%s7189_s4 + $0x600] ss:$8 sps:$4 sm:$0xff]  }
 0x120   :  { %2075 = vmatprep.subr.bf16.mxu0 %v4491_v62  ;;  %2588 = vmatprep.subr.bf16.mxu1 %v4491_v62  ;;  %v4566_v62 = vld [vmem:[%s7189_s4 + $0x614] ss:$8 sps:$4 sm:$0xff]  }
 0x123   :  { %2076 = vmatpush1.bf16.msra.mxu0 %v4493_v63  ;;  %2589 = vmatpush1.bf16.msra.mxu1 %v4493_v63  ;;  %v5778_v63 = vrot.slane %v382_v57, %v5073_v16  ;;  %v4645_v57 = vld [vmem:[%s7189_s4 + $0x7a0] ss:$8 sps:$4 sm:$0xff]  }
 0x124   :  { %2077 = vmatprep.subr.bf16.mxu0 %v4494_v0  ;;  %2590 = vmatprep.subr.bf16.mxu1 %v4494_v0  ;;  %v5781_v0 = vrot.slane %v2335_v58, %v5073_v16  ;;  %v4646_v58 = vld [vmem:[%s7189_s4 + $0x7b4] ss:$8 sps:$4 sm:$0xff]  }
 0x127   :  { %2078 = vmatpush1.bf16.msra.mxu0 %v4496_v1  ;;  %2591 = vmatpush1.bf16.msra.mxu1 %v4496_v1  ;;  %v4568_v1 = vld [vmem:[%s7189_s4 + $0x610] ss:$8 sps:$4 sm:$0xff]  }
 0x128   :  { %2079 = vmatprep.subr.bf16.mxu0 %v4497_v2  ;;  %2592 = vmatprep.subr.bf16.mxu1 %v4497_v2  ;;  %v4569_v2 = vld [vmem:[%s7189_s4 + $0x624] ss:$8 sps:$4 sm:$0xff]  }
 0x12b   :  { %2080 = vmatpush1.bf16.msra.mxu0 %v4499_v3  ;;  %2593 = vmatpush1.bf16.msra.mxu1 %v4499_v3  ;;  %v4571_v3 = vld [vmem:[%s7189_s4 + $0x620] ss:$8 sps:$4 sm:$0xff]  }
 0x12c   :  { %2081 = vmatprep.subr.bf16.mxu0 %v4500_v4  ;;  %2594 = vmatprep.subr.bf16.mxu1 %v4500_v4  ;;  %v4572_v4 = vld [vmem:[%s7189_s4 + $0x634] ss:$8 sps:$4 sm:$0xff]  }
 0x12f   :  { %2082 = vmatpush1.bf16.msra.mxu0 %v4502_v5  ;;  %2595 = vmatpush1.bf16.msra.mxu1 %v4502_v5  ;;  %v4574_v5 = vld [vmem:[%s7189_s4 + $0x630] ss:$8 sps:$4 sm:$0xff]  }
 0x130   :  { %2083 = vmatprep.subr.bf16.mxu0 %v4503_v6  ;;  %2596 = vmatprep.subr.bf16.mxu1 %v4503_v6  ;;  %v4575_v6 = vld [vmem:[%s7189_s4 + $0x644] ss:$8 sps:$4 sm:$0xff]  }
 0x133   :  { %2084 = vmatpush1.bf16.msra.mxu0 %v4505_v7  ;;  %2597 = vmatpush1.bf16.msra.mxu1 %v4505_v7  ;;  %v4577_v7 = vld [vmem:[%s7189_s4 + $0x640] ss:$8 sps:$4 sm:$0xff]  }
 0x134   :  { %2085 = vmatprep.subr.bf16.mxu0 %v4506_v8  ;;  %2598 = vmatprep.subr.bf16.mxu1 %v4506_v8  ;;  %v4578_v8 = vld [vmem:[%s7189_s4 + $0x654] ss:$8 sps:$4 sm:$0xff]  }
 0x137   :  { %2086 = vmatpush1.bf16.msra.mxu0 %v4508_v9  ;;  %2599 = vmatpush1.bf16.msra.mxu1 %v4508_v9  ;;  %v4580_v9 = vld [vmem:[%s7189_s4 + $0x650] ss:$8 sps:$4 sm:$0xff]  }
 0x138   :  { %2087 = vmatprep.subr.bf16.mxu0 %v4509_v10  ;;  %2600 = vmatprep.subr.bf16.mxu1 %v4509_v10  ;;  %v4581_v10 = vld [vmem:[%s7189_s4 + $0x664] ss:$8 sps:$4 sm:$0xff]  }
 0x13b   :  { %2088 = vmatpush1.bf16.msra.mxu0 %v4511_v11  ;;  %2601 = vmatpush1.bf16.msra.mxu1 %v4511_v11  ;;  %v4583_v11 = vld [vmem:[%s7189_s4 + $0x660] ss:$8 sps:$4 sm:$0xff]  }
 0x13c   :  { %2089 = vmatprep.subr.bf16.mxu0 %v4512_v12  ;;  %2602 = vmatprep.subr.bf16.mxu1 %v4512_v12  ;;  %v4584_v12 = vld [vmem:[%s7189_s4 + $0x674] ss:$8 sps:$4 sm:$0xff]  }
 0x13f   :  { %2090 = vmatpush1.bf16.msra.mxu0 %v4514_v14  ;;  %2603 = vmatpush1.bf16.msra.mxu1 %v4514_v14  ;;  %v4586_v14 = vld [vmem:[%s7189_s4 + $0x670] ss:$8 sps:$4 sm:$0xff]  }
 0x140   :  { %2100 = vmatprep.subr.bf16.mxu0 %v4515_v15  ;;  %2613 = vmatprep.subr.bf16.mxu1 %v4515_v15  ;;  %v4587_v15 = vld [vmem:[%s7189_s4 + $0x684] ss:$8 sps:$4 sm:$0xff]  }
 0x142   :  { %2092 = vmatmul.mubr.bf16.vlgmr.msra.gmra.mrb[0].mxu0 %v5645_v17  ;;  %2605 = vmatmul.mubr.bf16.vlgmr.msra.gmra.mrb[0].mxu1 %v5649_v18  ;;  %v4589_v17 = vld [vmem:[%s7189_s4 + $0x680] ss:$8 sps:$4 sm:$0xff]   ;;  %v4590_v18 = vld [vmem:[%s7189_s4 + $0x694] ss:$8 sps:$4 sm:$0xff]  }
 0x143   :  { %2101 = vmatpush1.bf16.msra.mxu0 %v4517_v20  ;;  %2614 = vmatpush1.bf16.msra.mxu1 %v4517_v20  ;;  %v4592_v20 = vld [vmem:[%s7189_s4 + $0x690] ss:$8 sps:$4 sm:$0xff]  }
 0x144   :  { %2102 = vmatprep.subr.bf16.mxu0 %v4518_v22  ;;  %2615 = vmatprep.subr.bf16.mxu1 %v4518_v22  ;;  %v4593_v22 = vld [vmem:[%s7189_s4 + $0x6a4] ss:$8 sps:$4 sm:$0xff]  }
 0x145   :  { %2132 = vmatprep.mubr.bf16.mxu0 %v413_v23  ;;  %2645 = vmatprep.mubr.bf16.mxu1 %v2366_v19  ;;  %v4595_v23 = vld [vmem:[%s7189_s4 + $0x6a0] ss:$8 sps:$4 sm:$0xff]   ;;  %v4596_v19 = vld [vmem:[%s7189_s4 + $0x6b4] ss:$8 sps:$4 sm:$0xff]  }
 0x147   :  { %2103 = vmatpush1.bf16.msra.mxu0 %v4520_v21  ;;  %2616 = vmatpush1.bf16.msra.mxu1 %v4520_v21  ;;  %v4598_v21 = vld [vmem:[%s7189_s4 + $0x6b0] ss:$8 sps:$4 sm:$0xff]  }
 0x148   :  { %2104 = vmatprep.subr.bf16.mxu0 %v4521_v24  ;;  %2617 = vmatprep.subr.bf16.mxu1 %v4521_v24  ;;  %v4599_v24 = vld [vmem:[%s7189_s4 + $0x6c4] ss:$8 sps:$4 sm:$0xff]  }
 0x14b   :  { %2105 = vmatpush1.bf16.msra.mxu0 %v4523_v25  ;;  %2618 = vmatpush1.bf16.msra.mxu1 %v4523_v25  ;;  %v4601_v25 = vld [vmem:[%s7189_s4 + $0x6c0] ss:$8 sps:$4 sm:$0xff]  }
 0x14c   :  { %2106 = vmatprep.subr.bf16.mxu0 %v4524_v26  ;;  %2619 = vmatprep.subr.bf16.mxu1 %v4524_v26  ;;  %v4602_v26 = vld [vmem:[%s7189_s4 + $0x6d4] ss:$8 sps:$4 sm:$0xff]  }
 0x14f   :  { %2107 = vmatpush1.bf16.msra.mxu0 %v4526_v27  ;;  %2620 = vmatpush1.bf16.msra.mxu1 %v4526_v27  ;;  %v4604_v27 = vld [vmem:[%s7189_s4 + $0x6d0] ss:$8 sps:$4 sm:$0xff]  }
 0x150   :  { %2108 = vmatprep.subr.bf16.mxu0 %v4527_v28  ;;  %2621 = vmatprep.subr.bf16.mxu1 %v4527_v28  ;;  %v4605_v28 = vld [vmem:[%s7189_s4 + $0x6e4] ss:$8 sps:$4 sm:$0xff]  }
 0x153   :  { %2109 = vmatpush1.bf16.msra.mxu0 %v4529_v29  ;;  %2622 = vmatpush1.bf16.msra.mxu1 %v4529_v29  ;;  %v4607_v29 = vld [vmem:[%s7189_s4 + $0x6e0] ss:$8 sps:$4 sm:$0xff]  }
 0x154   :  { %2110 = vmatprep.subr.bf16.mxu0 %v4530_v30  ;;  %2623 = vmatprep.subr.bf16.mxu1 %v4530_v30  ;;  %v4608_v30 = vld [vmem:[%s7189_s4 + $0x6f4] ss:$8 sps:$4 sm:$0xff]  }
 0x157   :  { %2111 = vmatpush1.bf16.msra.mxu0 %v4532_v31  ;;  %2624 = vmatpush1.bf16.msra.mxu1 %v4532_v31  ;;  %v4610_v31 = vld [vmem:[%s7189_s4 + $0x6f0] ss:$8 sps:$4 sm:$0xff]  }
 0x158   :  { %2112 = vmatprep.subr.bf16.mxu0 %v4533_v32  ;;  %2625 = vmatprep.subr.bf16.mxu1 %v4533_v32  ;;  %v4612_v32 = vld [vmem:[%s7189_s4 + $0x704] ss:$8 sps:$4 sm:$0xff]  }
 0x15b   :  { %2113 = vmatpush1.bf16.msra.mxu0 %v4535_v35  ;;  %2626 = vmatpush1.bf16.msra.mxu1 %v4535_v35  ;;  %v5877_v35 = vrot.slane %v5752_v55, %v5073_v16  ;;  %v4639_v55 = vld [vmem:[%s7189_s4 + $0x780] ss:$8 sps:$4 sm:$0xff]  }
 0x15c   :  { %2114 = vmatprep.subr.bf16.mxu0 %v4536_v36  ;;  %2627 = vmatprep.subr.bf16.mxu1 %v4536_v36  ;;  %v5881_v36 = vrot.slane %v5755_v33, %v5073_v16  ;;  %v4640_v33 = vld [vmem:[%s7189_s4 + $0x794] ss:$8 sps:$4 sm:$0xff]  }
 0x15f   :  { %2115 = vmatpush1.bf16.msra.mxu0 %v4538_v37  ;;  %2628 = vmatpush1.bf16.msra.mxu1 %v4538_v37  ;;  %v4615_v37 = vld [vmem:[%s7189_s4 + $0x700] ss:$8 sps:$4 sm:$0xff]  }
 0x160   :  { %2116 = vmatprep.subr.bf16.mxu0 %v4539_v38  ;;  %2629 = vmatprep.subr.bf16.mxu1 %v4539_v38  ;;  %v4616_v38 = vld [vmem:[%s7189_s4 + $0x714] ss:$8 sps:$4 sm:$0xff]  }
 0x163   :  { %2117 = vmatpush1.bf16.msra.mxu0 %v4541_v39  ;;  %2630 = vmatpush1.bf16.msra.mxu1 %v4541_v39  ;;  %v414_v39 = vcombine.high %v5778_v63, %v5778_v63 }
 0x164   :  { %2118 = vmatprep.subr.bf16.mxu0 %v4542_v40  ;;  %2631 = vmatprep.subr.bf16.mxu1 %v4542_v40  ;;  %v2367_v40 = vcombine.high %v5781_v0, %v5781_v0 }
 0x167   :  { %2119 = vmatpush1.bf16.msra.mxu0 %v4544_v41  ;;  %2632 = vmatpush1.bf16.msra.mxu1 %v4544_v41  ;;  %v4618_v41 = vld [vmem:[%s7189_s4 + $0x710] ss:$8 sps:$4 sm:$0xff]  }
 0x168   :  { %2120 = vmatprep.subr.bf16.mxu0 %v4545_v42  ;;  %2633 = vmatprep.subr.bf16.mxu1 %v4545_v42  ;;  %v4619_v42 = vld [vmem:[%s7189_s4 + $0x724] ss:$8 sps:$4 sm:$0xff]  }
 0x16b   :  { %2121 = vmatpush1.bf16.msra.mxu0 %v4547_v43  ;;  %2634 = vmatpush1.bf16.msra.mxu1 %v4547_v43  ;;  %v4621_v43 = vld [vmem:[%s7189_s4 + $0x720] ss:$8 sps:$4 sm:$0xff]  }
 0x16c   :  { %2122 = vmatprep.subr.bf16.mxu0 %v4548_v44  ;;  %2635 = vmatprep.subr.bf16.mxu1 %v4548_v44  ;;  %v4622_v44 = vld [vmem:[%s7189_s4 + $0x734] ss:$8 sps:$4 sm:$0xff]  }
 0x16f   :  { %2123 = vmatpush1.bf16.msra.mxu0 %v4550_v45  ;;  %2636 = vmatpush1.bf16.msra.mxu1 %v4550_v45  ;;  %v4624_v45 = vld [vmem:[%s7189_s4 + $0x730] ss:$8 sps:$4 sm:$0xff]  }
 0x170   :  { %2124 = vmatprep.subr.bf16.mxu0 %v4551_v46  ;;  %2637 = vmatprep.subr.bf16.mxu1 %v4551_v46  ;;  %v4625_v46 = vld [vmem:[%s7189_s4 + $0x744] ss:$8 sps:$4 sm:$0xff]  }
 0x173   :  { %2125 = vmatpush1.bf16.msra.mxu0 %v4553_v47  ;;  %2638 = vmatpush1.bf16.msra.mxu1 %v4553_v47  ;;  %v4627_v47 = vld [vmem:[%s7189_s4 + $0x740] ss:$8 sps:$4 sm:$0xff]  }
 0x174   :  { %2126 = vmatprep.subr.bf16.mxu0 %v4554_v48  ;;  %2639 = vmatprep.subr.bf16.mxu1 %v4554_v48  ;;  %v4628_v48 = vld [vmem:[%s7189_s4 + $0x754] ss:$8 sps:$4 sm:$0xff]  }
 0x177   :  { %2127 = vmatpush1.bf16.msra.mxu0 %v4556_v49  ;;  %2640 = vmatpush1.bf16.msra.mxu1 %v4556_v49  ;;  %v4630_v49 = vld [vmem:[%s7189_s4 + $0x750] ss:$8 sps:$4 sm:$0xff]  }
 0x178   :  { %2128 = vmatprep.subr.bf16.mxu0 %v4557_v50  ;;  %2641 = vmatprep.subr.bf16.mxu1 %v4557_v50  ;;  %v4631_v50 = vld [vmem:[%s7189_s4 + $0x764] ss:$8 sps:$4 sm:$0xff]  }
 0x17b   :  { %2129 = vmatpush1.bf16.msra.mxu0 %v4559_v53  ;;  %2642 = vmatpush1.bf16.msra.mxu1 %v4559_v53  ;;  %v4636_v53 = vld [vmem:[%s7189_s4 + $0x770] ss:$8 sps:$4 sm:$0xff]  }
 0x17c   :  { %2130 = vmatprep.subr.bf16.mxu0 %v4560_v54  ;;  %2643 = vmatprep.subr.bf16.mxu1 %v4560_v54  ;;  %v4637_v54 = vld [vmem:[%s7189_s4 + $0x784] ss:$8 sps:$4 sm:$0xff]  }
 0x17f   :  { %2131 = vmatpush1.bf16.msra.mxu0 %v4562_v34  ;;  %2644 = vmatpush1.bf16.msra.mxu1 %v4562_v34  ;;  %v4642_v34 = vld [vmem:[%s7189_s4 + $0x790] ss:$8 sps:$4 sm:$0xff]  }
 0x180   :  { %2141 = vmatprep.subr.bf16.mxu0 %v4563_v56  ;;  %2654 = vmatprep.subr.bf16.mxu1 %v4563_v56  ;;  %v4643_v56 = vld [vmem:[%s7189_s4 + $0x7a4] ss:$8 sps:$4 sm:$0xff]  }
 0x182   :  { %2133 = vmatmul.mubr.bf16.vlgmr.msra.gmra.mrb[0].mxu0 %v411_v59  ;;  %2646 = vmatmul.mubr.bf16.vlgmr.msra.gmra.mrb[0].mxu1 %v2364_v60  ;;  %v4648_v59 = vld [vmem:[%s7189_s4 + $0x7b0] ss:$8 sps:$4 sm:$0xff]   ;;  %v4649_v60 = vld [vmem:[%s7189_s4 + $0x7c4] ss:$8 sps:$4 sm:$0xff]  }
 0x183   :  { %2142 = vmatpush1.bf16.msra.mxu0 %v4565_v61  ;;  %2655 = vmatpush1.bf16.msra.mxu1 %v4565_v61  ;;  %v4651_v61 = vld [vmem:[%s7189_s4 + $0x7c0] ss:$8 sps:$4 sm:$0xff]  }
 0x184   :  { %2143 = vmatprep.subr.bf16.mxu0 %v4566_v62  ;;  %2656 = vmatprep.subr.bf16.mxu1 %v4566_v62  ;;  %v4652_v62 = vld [vmem:[%s7189_s4 + $0x7d4] ss:$8 sps:$4 sm:$0xff]  }
 0x185   :  { %2173 = vmatprep.mubr.bf16.mxu0 %v5778_v63  ;;  %2686 = vmatprep.mubr.bf16.mxu1 %v5781_v0  ;;  %v4654_v63 = vld [vmem:[%s7189_s4 + $0x7d0] ss:$8 sps:$4 sm:$0xff]   ;;  %v4655_v0 = vld [vmem:[%s7189_s4 + $0x7e4] ss:$8 sps:$4 sm:$0xff]  }
 0x187   :  { %2144 = vmatpush1.bf16.msra.mxu0 %v4568_v1  ;;  %2657 = vmatpush1.bf16.msra.mxu1 %v4568_v1  ;;  %v4657_v1 = vld [vmem:[%s7189_s4 + $0x7e0] ss:$8 sps:$4 sm:$0xff]  }
 0x188   :  { %2145 = vmatprep.subr.bf16.mxu0 %v4569_v2  ;;  %2658 = vmatprep.subr.bf16.mxu1 %v4569_v2  ;;  %v4658_v2 = vld [vmem:[%s7189_s4 + $0x7f4] ss:$8 sps:$4 sm:$0xff]  }
 0x18b   :  { %2146 = vmatpush1.bf16.msra.mxu0 %v4571_v3  ;;  %2659 = vmatpush1.bf16.msra.mxu1 %v4571_v3  ;;  %v5982_v3 = vld.sshfl [vmem:[%s7190_s0 + $0x10] sm:$0x11 pattern:$0x75316420] }
 0x18c   :  { %2147 = vmatprep.subr.bf16.mxu0 %v4572_v4  ;;  %2660 = vmatprep.subr.bf16.mxu1 %v4572_v4  ;;  %v5987_v4 = vld.sshfl [vmem:[%s7191_s1 + $0x10] sm:$0x11 pattern:$0x75316420] }
 0x18f   :  { %2148 = vmatpush1.bf16.msra.mxu0 %v4574_v5  ;;  %2661 = vmatpush1.bf16.msra.mxu1 %v4574_v5  ;;  %v4660_v5 = vld [vmem:[%s7189_s4 + $0x7f0] ss:$8 sps:$4 sm:$0xff]  }
 0x190   :  { %2149 = vmatprep.subr.bf16.mxu0 %v4575_v6  ;;  %2662 = vmatprep.subr.bf16.mxu1 %v4575_v6  ;;  %v4661_v6 = vld [vmem:[%s7189_s4 + $0x804] ss:$8 sps:$4 sm:$0xff]  }
 0x193   :  { %2150 = vmatpush1.bf16.msra.mxu0 %v4577_v7  ;;  %2663 = vmatpush1.bf16.msra.mxu1 %v4577_v7  ;;  %v422_v7 = vcombine.high %v5982_v3, %v5982_v3 }
 0x194   :  { %2151 = vmatprep.subr.bf16.mxu0 %v4578_v8  ;;  %2664 = vmatprep.subr.bf16.mxu1 %v4578_v8  ;;  %v2375_v8 = vcombine.high %v5987_v4, %v5987_v4 }
 0x197   :  { %2152 = vmatpush1.bf16.msra.mxu0 %v4580_v9  ;;  %2665 = vmatpush1.bf16.msra.mxu1 %v4580_v9  ;;  %v412_v9 = vcombine.high %v5877_v35, %v5877_v35 }
 0x198   :  { %2153 = vmatprep.subr.bf16.mxu0 %v4581_v10  ;;  %2666 = vmatprep.subr.bf16.mxu1 %v4581_v10  ;;  %v2365_v10 = vcombine.high %v5881_v36, %v5881_v36 }
 0x19b   :  { %2154 = vmatpush1.bf16.msra.mxu0 %v4583_v11  ;;  %2667 = vmatpush1.bf16.msra.mxu1 %v4583_v11  ;;  %v4663_v11 = vld [vmem:[%s7189_s4 + $0x800] ss:$8 sps:$4 sm:$0xff]  }
 0x19c   :  { %2155 = vmatprep.subr.bf16.mxu0 %v4584_v12  ;;  %2668 = vmatprep.subr.bf16.mxu1 %v4584_v12  ;;  %v4664_v12 = vld [vmem:[%s7189_s4 + $0x814] ss:$8 sps:$4 sm:$0xff]  }
 0x19f   :  { %2156 = vmatpush1.bf16.msra.mxu0 %v4586_v14  ;;  %2669 = vmatpush1.bf16.msra.mxu1 %v4586_v14  ;;  %v436_v14 = vrot.slane %v422_v7, %v5073_v16  ;;  %v4728_v7 = vld [vmem:[%s7189_s4 + $0x70] ss:$8 sps:$4 sm:$0xff]  }
 0x1a0   :  { %2157 = vmatprep.subr.bf16.mxu0 %v4587_v15  ;;  %2670 = vmatprep.subr.bf16.mxu1 %v4587_v15  ;;  %v2389_v15 = vrot.slane %v2375_v8, %v5073_v16  ;;  %v4729_v8 = vld [vmem:[%s7189_s4 + $0x84] ss:$8 sps:$4 sm:$0xff]  }
 0x1a3   :  { %2158 = vmatpush1.bf16.msra.mxu0 %v4589_v17  ;;  %2671 = vmatpush1.bf16.msra.mxu1 %v4589_v17  ;;  %v4666_v17 = vld [vmem:[%s7189_s4 + $0x810] ss:$8 sps:$4 sm:$0xff]  }
 0x1a4   :  { %2159 = vmatprep.subr.bf16.mxu0 %v4590_v18  ;;  %2672 = vmatprep.subr.bf16.mxu1 %v4590_v18  ;;  %v4667_v18 = vld [vmem:[%s7189_s4 + $0x824] ss:$8 sps:$4 sm:$0xff]  }
 0x1a7   :  { %2160 = vmatpush1.bf16.msra.mxu0 %v4592_v20  ;;  %2673 = vmatpush1.bf16.msra.mxu1 %v4592_v20  ;;  %v4669_v20 = vld [vmem:[%s7189_s4 + $0x820] ss:$8 sps:$4 sm:$0xff]  }
 0x1a8   :  { %2161 = vmatprep.subr.bf16.mxu0 %v4593_v22  ;;  %2674 = vmatprep.subr.bf16.mxu1 %v4593_v22  ;;  %v4670_v22 = vld [vmem:[%s7189_s4 + $0x834] ss:$8 sps:$4 sm:$0xff]  }
 0x1ab   :  { %2162 = vmatpush1.bf16.msra.mxu0 %v4595_v23  ;;  %2675 = vmatpush1.bf16.msra.mxu1 %v4595_v23  ;;  %v4672_v23 = vld [vmem:[%s7189_s4 + $0x830] ss:$8 sps:$4 sm:$0xff]  }
 0x1ac   :  { %2163 = vmatprep.subr.bf16.mxu0 %v4596_v19  ;;  %2676 = vmatprep.subr.bf16.mxu1 %v4596_v19  ;;  %v4673_v19 = vld [vmem:[%s7189_s4 + $0x844] ss:$8 sps:$4 sm:$0xff]  }
 0x1af   :  { %2164 = vmatpush1.bf16.msra.mxu0 %v4598_v21  ;;  %2677 = vmatpush1.bf16.msra.mxu1 %v4598_v21  ;;  %v4675_v21 = vld [vmem:[%s7189_s4 + $0x840] ss:$8 sps:$4 sm:$0xff]  }
 0x1b0   :  { %2165 = vmatprep.subr.bf16.mxu0 %v4599_v24  ;;  %2678 = vmatprep.subr.bf16.mxu1 %v4599_v24  ;;  %v4676_v24 = vld [vmem:[%s7189_s4 + $0x854] ss:$8 sps:$4 sm:$0xff]  }
 0x1b3   :  { %2166 = vmatpush1.bf16.msra.mxu0 %v4601_v25  ;;  %2679 = vmatpush1.bf16.msra.mxu1 %v4601_v25  ;;  %v4678_v25 = vld [vmem:[%s7189_s4 + $0x850] ss:$8 sps:$4 sm:$0xff]  }
 0x1b4   :  { %2167 = vmatprep.subr.bf16.mxu0 %v4602_v26  ;;  %2680 = vmatprep.subr.bf16.mxu1 %v4602_v26  ;;  %v4679_v26 = vld [vmem:[%s7189_s4 + $0x864] ss:$8 sps:$4 sm:$0xff]  }
 0x1b7   :  { %2168 = vmatpush1.bf16.msra.mxu0 %v4604_v27  ;;  %2681 = vmatpush1.bf16.msra.mxu1 %v4604_v27  ;;  %v4681_v27 = vld [vmem:[%s7189_s4 + $0x860] ss:$8 sps:$4 sm:$0xff]  }
 0x1b8   :  { %2169 = vmatprep.subr.bf16.mxu0 %v4605_v28  ;;  %2682 = vmatprep.subr.bf16.mxu1 %v4605_v28  ;;  %v4682_v28 = vld [vmem:[%s7189_s4 + $0x874] ss:$8 sps:$4 sm:$0xff]  }
 0x1bb   :  { %2170 = vmatpush1.bf16.msra.mxu0 %v4607_v29  ;;  %2683 = vmatpush1.bf16.msra.mxu1 %v4607_v29  ;;  %v4684_v29 = vld [vmem:[%s7189_s4 + $0x870] ss:$8 sps:$4 sm:$0xff]  }
 0x1bc   :  { %2171 = vmatprep.subr.bf16.mxu0 %v4608_v30  ;;  %2684 = vmatprep.subr.bf16.mxu1 %v4608_v30  ;;  %v4685_v30 = vld [vmem:[%s7189_s4 + $0x884] ss:$8 sps:$4 sm:$0xff]  }
 0x1bf   :  { %2172 = vmatpush1.bf16.msra.mxu0 %v4610_v31  ;;  %2685 = vmatpush1.bf16.msra.mxu1 %v4610_v31  ;;  %v4687_v31 = vld [vmem:[%s7189_s4 + $0x880] ss:$8 sps:$4 sm:$0xff]  }
 0x1c0   :  { %2182 = vmatprep.subr.bf16.mxu0 %v4612_v32  ;;  %2695 = vmatprep.subr.bf16.mxu1 %v4612_v32  ;;  %v4688_v32 = vld [vmem:[%s7189_s4 + $0x894] ss:$8 sps:$4 sm:$0xff]  }
 0x1c2   :  { %2174 = vmatmul.mubr.bf16.vlgmr.msra.gmra.mrb[0].mxu0 %v5877_v35  ;;  %2687 = vmatmul.mubr.bf16.vlgmr.msra.gmra.mrb[0].mxu1 %v5881_v36  ;;  %v4690_v35 = vld [vmem:[%s7189_s4 + $0x890] ss:$8 sps:$4 sm:$0xff]   ;;  %v4691_v36 = vld [vmem:[%s7189_s4 + $0x8a4] ss:$8 sps:$4 sm:$0xff]  }
 0x1c3   :  { %2183 = vmatpush1.bf16.msra.mxu0 %v4615_v37  ;;  %2696 = vmatpush1.bf16.msra.mxu1 %v4615_v37  ;;  %v4693_v37 = vld [vmem:[%s7189_s4 + $0x8a0] ss:$8 sps:$4 sm:$0xff]  }
 0x1c4   :  { %2184 = vmatprep.subr.bf16.mxu0 %v4616_v38  ;;  %2697 = vmatprep.subr.bf16.mxu1 %v4616_v38  ;;  %v4694_v38 = vld [vmem:[%s7189_s4 + $0x8b4] ss:$8 sps:$4 sm:$0xff]  }
 0x1c5   :  { %2214 = vmatprep.mubr.bf16.mxu0 %v414_v39  ;;  %2727 = vmatprep.mubr.bf16.mxu1 %v2367_v40  ;;  %v4696_v39 = vld [vmem:[%s7189_s4 + $0x8b0] ss:$8 sps:$4 sm:$0xff]   ;;  %v4697_v40 = vld [vmem:[%s7189_s4 + $0x8c4] ss:$8 sps:$4 sm:$0xff]  }
 0x1c7   :  { %2185 = vmatpush1.bf16.msra.mxu0 %v4618_v41  ;;  %2698 = vmatpush1.bf16.msra.mxu1 %v4618_v41  ;;  %v4699_v41 = vld [vmem:[%s7189_s4 + $0x8c0] ss:$8 sps:$4 sm:$0xff]  }
 0x1c8   :  { %2186 = vmatprep.subr.bf16.mxu0 %v4619_v42  ;;  %2699 = vmatprep.subr.bf16.mxu1 %v4619_v42  ;;  %v4700_v42 = vld [vmem:[%s7189_s4 + $0x8d4] ss:$8 sps:$4 sm:$0xff]  }
 0x1cb   :  { %2187 = vmatpush1.bf16.msra.mxu0 %v4621_v43  ;;  %2700 = vmatpush1.bf16.msra.mxu1 %v4621_v43  ;;  %v4702_v43 = vld [vmem:[%s7189_s4 + $0x8d0] ss:$8 sps:$4 sm:$0xff]  }
 0x1cc   :  { %2188 = vmatprep.subr.bf16.mxu0 %v4622_v44  ;;  %2701 = vmatprep.subr.bf16.mxu1 %v4622_v44  ;;  %v4703_v44 = vld [vmem:[%s7189_s4 + $0x8e4] ss:$8 sps:$4 sm:$0xff]  }
 0x1cf   :  { %2189 = vmatpush1.bf16.msra.mxu0 %v4624_v45  ;;  %2702 = vmatpush1.bf16.msra.mxu1 %v4624_v45  ;;  %v6092_v45 = vld [vmem:[%s7192_s2] sm:$0xff] }
 0x1d0   :  { %2190 = vmatprep.subr.bf16.mxu0 %v4625_v46  ;;  %2703 = vmatprep.subr.bf16.mxu1 %v4625_v46  ;;  %v6097_v46 = vld [vmem:[%s7193_s3] sm:$0xff] }
 0x1d3   :  { %2191 = vmatpush1.bf16.msra.mxu0 %v4627_v47  ;;  %2704 = vmatpush1.bf16.msra.mxu1 %v4627_v47  ;;  %v4705_v47 = vld [vmem:[%s7189_s4 + $0x8e0] ss:$8 sps:$4 sm:$0xff]  }
 0x1d4   :  { %2192 = vmatprep.subr.bf16.mxu0 %v4628_v48  ;;  %2705 = vmatprep.subr.bf16.mxu1 %v4628_v48  ;;  %v4706_v48 = vld [vmem:[%s7189_s4 + $0x8f4] ss:$8 sps:$4 sm:$0xff]  }
 0x1d7   :  { %2193 = vmatpush1.bf16.msra.mxu0 %v4630_v49  ;;  %2706 = vmatpush1.bf16.msra.mxu1 %v4630_v49  ;;  %v6107_v49 = vrot.slane %v6092_v45, %v5073_v16 }
 0x1d8   :  { %2194 = vmatprep.subr.bf16.mxu0 %v4631_v50  ;;  %2707 = vmatprep.subr.bf16.mxu1 %v4631_v50  ;;  %v6111_v50 = vrot.slane %v6097_v46, %v5073_v16 }
 0x1db   :  { %2195 = vmatpush1.bf16.msra.mxu0 %v4633_v51  ;;  %2708 = vmatpush1.bf16.msra.mxu1 %v4633_v51  ;;  %v4708_v51 = vld [vmem:[%s7189_s4 + $0x8f0] ss:$8 sps:$4 sm:$0xff]  }
 0x1dc   :  { %2196 = vmatprep.subr.bf16.mxu0 %v4634_v52  ;;  %2709 = vmatprep.subr.bf16.mxu1 %v4634_v52  ;;  %v2798_v52 = vcombine.high %v6107_v49, %v6107_v49 }
 0x1df   :  { %2197 = vmatpush1.bf16.msra.mxu0 %v4636_v53  ;;  %2710 = vmatpush1.bf16.msra.mxu1 %v4636_v53  ;;  %v3311_v53 = vcombine.high %v6111_v50, %v6111_v50 }
 0x1e0   :  { %2198 = vmatprep.subr.bf16.mxu0 %v4637_v54  ;;  %2711 = vmatprep.subr.bf16.mxu1 %v4637_v54  ;;  %v429_v54 = vrot.slane %v5982_v3, %v5073_v16  ;;  %v4724_v3 = vld [vmem:[%s7189_s4 + $0x50] ss:$8 sps:$4 sm:$0xff]  }
 0x1e3   :  { %2199 = vmatpush1.bf16.msra.mxu0 %v4639_v55  ;;  %2712 = vmatpush1.bf16.msra.mxu1 %v4639_v55  ;;  %v2382_v55 = vrot.slane %v5987_v4, %v5073_v16  ;;  %v4725_v4 = vld [vmem:[%s7189_s4 + $0x64] ss:$8 sps:$4 sm:$0xff]  }
 0x1e4   :  { %2200 = vmatprep.subr.bf16.mxu0 %v4640_v33  ;;  %2713 = vmatprep.subr.bf16.mxu1 %v4640_v33  ;;  %v4713_v33 = vld [vmem:[%s7189_s4 + $0x4] ss:$8 sps:$4 sm:$0xff]  }
 0x1e7   :  { %2201 = vmatpush1.bf16.msra.mxu0 %v4642_v34  ;;  %2714 = vmatpush1.bf16.msra.mxu1 %v4642_v34  ;;  %v6128_v34 = vrot.slane %v2798_v52, %v5073_v16  ;;  %v4763_v52 = vld [vmem:[%s7189_s4 + $0x194] ss:$8 sps:$4 sm:$0xff]  }
 0x1e8   :  { %2202 = vmatprep.subr.bf16.mxu0 %v4643_v56  ;;  %2715 = vmatprep.subr.bf16.mxu1 %v4643_v56  ;;  %v6131_v56 = vrot.slane %v3311_v53, %v5073_v16  ;;  %v4764_v53 = vld [vmem:[%s7189_s4 + $0x190] ss:$8 sps:$4 sm:$0xff]  }
 0x1eb   :  { %2203 = vmatpush1.bf16.msra.mxu0 %v4645_v57  ;;  %2716 = vmatpush1.bf16.msra.mxu1 %v4645_v57  ;;  %v4714_v57 = vld [vmem:[%s7189_s4] ss:$8 sps:$4 sm:$0xff]  }
 0x1ec   :  { %2204 = vmatprep.subr.bf16.mxu0 %v4646_v58  ;;  %2717 = vmatprep.subr.bf16.mxu1 %v4646_v58  ;;  %v4715_v58 = vld [vmem:[%s7189_s4 + $0x14] ss:$8 sps:$4 sm:$0xff]  }
 0x1ef   :  { %2205 = vmatpush1.bf16.msra.mxu0 %v4648_v59  ;;  %2718 = vmatpush1.bf16.msra.mxu1 %v4648_v59  ;;  %v4716_v59 = vld [vmem:[%s7189_s4 + $0x10] ss:$8 sps:$4 sm:$0xff]  }
 0x1f0   :  { %2206 = vmatprep.subr.bf16.mxu0 %v4649_v60  ;;  %2719 = vmatprep.subr.bf16.mxu1 %v4649_v60  ;;  %v4717_v60 = vld [vmem:[%s7189_s4 + $0x24] ss:$8 sps:$4 sm:$0xff]  }
 0x1f3   :  { %2207 = vmatpush1.bf16.msra.mxu0 %v4651_v61  ;;  %2720 = vmatpush1.bf16.msra.mxu1 %v4651_v61  ;;  %v4718_v61 = vld [vmem:[%s7189_s4 + $0x20] ss:$8 sps:$4 sm:$0xff]  }
 0x1f4   :  { %2208 = vmatprep.subr.bf16.mxu0 %v4652_v62  ;;  %2721 = vmatprep.subr.bf16.mxu1 %v4652_v62  ;;  %v4719_v62 = vld [vmem:[%s7189_s4 + $0x34] ss:$8 sps:$4 sm:$0xff]  }
 0x1f7   :  { %2209 = vmatpush1.bf16.msra.mxu0 %v4654_v63  ;;  %2722 = vmatpush1.bf16.msra.mxu1 %v4654_v63  ;;  %v4720_v63 = vld [vmem:[%s7189_s4 + $0x30] ss:$8 sps:$4 sm:$0xff]  }
 0x1f8   :  { %2210 = vmatprep.subr.bf16.mxu0 %v4655_v0  ;;  %2723 = vmatprep.subr.bf16.mxu1 %v4655_v0  ;;  %v4721_v0 = vld [vmem:[%s7189_s4 + $0x44] ss:$8 sps:$4 sm:$0xff]  }
 0x1fb   :  { %2211 = vmatpush1.bf16.msra.mxu0 %v4657_v1  ;;  %2724 = vmatpush1.bf16.msra.mxu1 %v4657_v1  ;;  %v4722_v1 = vld [vmem:[%s7189_s4 + $0x40] ss:$8 sps:$4 sm:$0xff]  }
 0x1fc   :  { %2212 = vmatprep.subr.bf16.mxu0 %v4658_v2  ;;  %2725 = vmatprep.subr.bf16.mxu1 %v4658_v2  ;;  %v4723_v2 = vld [vmem:[%s7189_s4 + $0x54] ss:$8 sps:$4 sm:$0xff]  }
 0x1ff   :  { %2213 = vmatpush1.bf16.msra.mxu0 %v4660_v5  ;;  %2726 = vmatpush1.bf16.msra.mxu1 %v4660_v5  ;;  %v4726_v5 = vld [vmem:[%s7189_s4 + $0x60] ss:$8 sps:$4 sm:$0xff]  }
 0x200   :  { %2223 = vmatprep.subr.bf16.mxu0 %v4661_v6  ;;  %2736 = vmatprep.subr.bf16.mxu1 %v4661_v6  ;;  %v4727_v6 = vld [vmem:[%s7189_s4 + $0x74] ss:$8 sps:$4 sm:$0xff]  }
 0x202   :  { %2215 = vmatmul.mubr.bf16.vlgmr.msra.gmra.mrb[0].mxu0 %v412_v9  ;;  %2728 = vmatmul.mubr.bf16.vlgmr.msra.gmra.mrb[0].mxu1 %v2365_v10  ;;  %v4730_v9 = vld [vmem:[%s7189_s4 + $0x80] ss:$8 sps:$4 sm:$0xff]   ;;  %v4731_v10 = vld [vmem:[%s7189_s4 + $0x94] ss:$8 sps:$4 sm:$0xff]  }
 0x203   :  { %2224 = vmatpush1.bf16.msra.mxu0 %v4663_v11  ;;  %2737 = vmatpush1.bf16.msra.mxu1 %v4663_v11  ;;  %v4732_v11 = vld [vmem:[%s7189_s4 + $0x90] ss:$8 sps:$4 sm:$0xff]  }
 0x204   :  { %2225 = vmatprep.subr.bf16.mxu0 %v4664_v12  ;;  %2738 = vmatprep.subr.bf16.mxu1 %v4664_v12  ;;  %v4733_v12 = vld [vmem:[%s7189_s4 + $0xa4] ss:$8 sps:$4 sm:$0xff]  }
 0x205   :  { %2255 = vmatprep.mubr.bf16.mxu0 %v436_v14  ;;  %2768 = vmatprep.mubr.bf16.mxu1 %v2389_v15  ;;  %v4734_v14 = vld [vmem:[%s7189_s4 + $0xa0] ss:$8 sps:$4 sm:$0xff]   ;;  %v4735_v15 = vld [vmem:[%s7189_s4 + $0xb4] ss:$8 sps:$4 sm:$0xff]  }
 0x207   :  { %2226 = vmatpush1.bf16.msra.mxu0 %v4666_v17  ;;  %2739 = vmatpush1.bf16.msra.mxu1 %v4666_v17  ;;  %v4736_v17 = vld [vmem:[%s7189_s4 + $0xb0] ss:$8 sps:$4 sm:$0xff]  }
 0x208   :  { %2227 = vmatprep.subr.bf16.mxu0 %v4667_v18  ;;  %2740 = vmatprep.subr.bf16.mxu1 %v4667_v18  ;;  %v4737_v18 = vld [vmem:[%s7189_s4 + $0xc4] ss:$8 sps:$4 sm:$0xff]  }
 0x20b   :  { %2228 = vmatpush1.bf16.msra.mxu0 %v4669_v20  ;;  %2741 = vmatpush1.bf16.msra.mxu1 %v4669_v20  ;;  %v4738_v20 = vld [vmem:[%s7189_s4 + $0xc0] ss:$8 sps:$4 sm:$0xff]  }
 0x20c   :  { %2229 = vmatprep.subr.bf16.mxu0 %v4670_v22  ;;  %2742 = vmatprep.subr.bf16.mxu1 %v4670_v22  ;;  %v4739_v22 = vld [vmem:[%s7189_s4 + $0xd4] ss:$8 sps:$4 sm:$0xff]  }
 0x20f   :  { %2230 = vmatpush1.bf16.msra.mxu0 %v4672_v23  ;;  %2743 = vmatpush1.bf16.msra.mxu1 %v4672_v23  ;;  %v4740_v23 = vld [vmem:[%s7189_s4 + $0xd0] ss:$8 sps:$4 sm:$0xff]  }
 0x210   :  { %2231 = vmatprep.subr.bf16.mxu0 %v4673_v19  ;;  %2744 = vmatprep.subr.bf16.mxu1 %v4673_v19  ;;  %v4741_v19 = vld [vmem:[%s7189_s4 + $0xe4] ss:$8 sps:$4 sm:$0xff]  }
 0x213   :  { %2232 = vmatpush1.bf16.msra.mxu0 %v4675_v21  ;;  %2745 = vmatpush1.bf16.msra.mxu1 %v4675_v21  ;;  %v4742_v21 = vld [vmem:[%s7189_s4 + $0xe0] ss:$8 sps:$4 sm:$0xff]  }
 0x214   :  { %2233 = vmatprep.subr.bf16.mxu0 %v4676_v24  ;;  %2746 = vmatprep.subr.bf16.mxu1 %v4676_v24  ;;  %v4743_v24 = vld [vmem:[%s7189_s4 + $0xf4] ss:$8 sps:$4 sm:$0xff]  }
 0x217   :  { %2234 = vmatpush1.bf16.msra.mxu0 %v4678_v25  ;;  %2747 = vmatpush1.bf16.msra.mxu1 %v4678_v25  ;;  %v6227_v25 = vrot.slane %v6107_v49, %v5073_v16  ;;  %v4760_v49 = vld [vmem:[%s7189_s4 + $0x170] ss:$8 sps:$4 sm:$0xff]  }
 0x218   :  { %2235 = vmatprep.subr.bf16.mxu0 %v4679_v26  ;;  %2748 = vmatprep.subr.bf16.mxu1 %v4679_v26  ;;  %v6231_v26 = vrot.slane %v6111_v50, %v5073_v16  ;;  %v4761_v50 = vld [vmem:[%s7189_s4 + $0x184] ss:$8 sps:$4 sm:$0xff]  }
 0x21b   :  { %2236 = vmatpush1.bf16.msra.mxu0 %v4681_v27  ;;  %2749 = vmatpush1.bf16.msra.mxu1 %v4681_v27  ;;  %v4744_v27 = vld [vmem:[%s7189_s4 + $0xf0] ss:$8 sps:$4 sm:$0xff]  }
 0x21c   :  { %2237 = vmatprep.subr.bf16.mxu0 %v4682_v28  ;;  %2750 = vmatprep.subr.bf16.mxu1 %v4682_v28  ;;  %v4745_v28 = vld [vmem:[%s7189_s4 + $0x104] ss:$8 sps:$4 sm:$0xff]  }
 0x21f   :  { %2238 = vmatpush1.bf16.msra.mxu0 %v4684_v29  ;;  %2751 = vmatpush1.bf16.msra.mxu1 %v4684_v29  ;;  %v2830_v29 = vcombine.high %v6128_v34, %v6128_v34 }
 0x220   :  { %2239 = vmatprep.subr.bf16.mxu0 %v4685_v30  ;;  %2752 = vmatprep.subr.bf16.mxu1 %v4685_v30  ;;  %v3343_v30 = vcombine.high %v6131_v56, %v6131_v56 }
 0x223   :  { %2240 = vmatpush1.bf16.msra.mxu0 %v4687_v31  ;;  %2753 = vmatpush1.bf16.msra.mxu1 %v4687_v31  ;;  %v4746_v31 = vld [vmem:[%s7189_s4 + $0x100] ss:$8 sps:$4 sm:$0xff]  }
 0x224   :  { %2241 = vmatprep.subr.bf16.mxu0 %v4688_v32  ;;  %2754 = vmatprep.subr.bf16.mxu1 %v4688_v32  ;;  %v4747_v32 = vld [vmem:[%s7189_s4 + $0x114] ss:$8 sps:$4 sm:$0xff]  }
 0x227   :  { %2242 = vmatpush1.bf16.msra.mxu0 %v4690_v35  ;;  %2755 = vmatpush1.bf16.msra.mxu1 %v4690_v35  ;;  %v4748_v35 = vld [vmem:[%s7189_s4 + $0x110] ss:$8 sps:$4 sm:$0xff]  }
 0x228   :  { %2243 = vmatprep.subr.bf16.mxu0 %v4691_v36  ;;  %2756 = vmatprep.subr.bf16.mxu1 %v4691_v36  ;;  %v4749_v36 = vld [vmem:[%s7189_s4 + $0x124] ss:$8 sps:$4 sm:$0xff]  }
 0x22b   :  { %2244 = vmatpush1.bf16.msra.mxu0 %v4693_v37  ;;  %2757 = vmatpush1.bf16.msra.mxu1 %v4693_v37  ;;  %v4750_v37 = vld [vmem:[%s7189_s4 + $0x120] ss:$8 sps:$4 sm:$0xff]  }
 0x22c   :  { %2245 = vmatprep.subr.bf16.mxu0 %v4694_v38  ;;  %2758 = vmatprep.subr.bf16.mxu1 %v4694_v38  ;;  %v4751_v38 = vld [vmem:[%s7189_s4 + $0x134] ss:$8 sps:$4 sm:$0xff]  }
 0x22f   :  { %2246 = vmatpush1.bf16.msra.mxu0 %v4696_v39  ;;  %2759 = vmatpush1.bf16.msra.mxu1 %v4696_v39  ;;  %v4752_v39 = vld [vmem:[%s7189_s4 + $0x130] ss:$8 sps:$4 sm:$0xff]  }
 0x230   :  { %2247 = vmatprep.subr.bf16.mxu0 %v4697_v40  ;;  %2760 = vmatprep.subr.bf16.mxu1 %v4697_v40  ;;  %v4753_v40 = vld [vmem:[%s7189_s4 + $0x144] ss:$8 sps:$4 sm:$0xff]  }
 0x233   :  { %2248 = vmatpush1.bf16.msra.mxu0 %v4699_v41  ;;  %2761 = vmatpush1.bf16.msra.mxu1 %v4699_v41  ;;  %v4754_v41 = vld [vmem:[%s7189_s4 + $0x140] ss:$8 sps:$4 sm:$0xff]  }
 0x234   :  { %2249 = vmatprep.subr.bf16.mxu0 %v4700_v42  ;;  %2762 = vmatprep.subr.bf16.mxu1 %v4700_v42  ;;  %v4755_v42 = vld [vmem:[%s7189_s4 + $0x154] ss:$8 sps:$4 sm:$0xff]  }
 0x237   :  { %2250 = vmatpush1.bf16.msra.mxu0 %v4702_v43  ;;  %2763 = vmatpush1.bf16.msra.mxu1 %v4702_v43  ;;  %v4756_v43 = vld [vmem:[%s7189_s4 + $0x150] ss:$8 sps:$4 sm:$0xff]  }
 0x238   :  { %2251 = vmatprep.subr.bf16.mxu0 %v4703_v44  ;;  %2764 = vmatprep.subr.bf16.mxu1 %v4703_v44  ;;  %v4757_v44 = vld [vmem:[%s7189_s4 + $0x164] ss:$8 sps:$4 sm:$0xff]  }
 0x23b   :  { %2252 = vmatpush1.bf16.msra.mxu0 %v4705_v47  ;;  %2765 = vmatpush1.bf16.msra.mxu1 %v4705_v47  ;;  %v4758_v47 = vld [vmem:[%s7189_s4 + $0x160] ss:$8 sps:$4 sm:$0xff]  }
 0x23c   :  { %2253 = vmatprep.subr.bf16.mxu0 %v4706_v48  ;;  %2766 = vmatprep.subr.bf16.mxu1 %v4706_v48  ;;  %v4759_v48 = vld [vmem:[%s7189_s4 + $0x174] ss:$8 sps:$4 sm:$0xff]  }
 0x23f   :  { %2254 = vmatpush1.bf16.msra.mxu0 %v4708_v51  ;;  %2767 = vmatpush1.bf16.msra.mxu1 %v4708_v51  ;;  %v4762_v51 = vld [vmem:[%s7189_s4 + $0x180] ss:$8 sps:$4 sm:$0xff]  }
 0x240   :  { %2921 = vmatprep.subr.bf16.mxu0 %v4713_v33  ;;  %3434 = vmatprep.subr.bf16.mxu1 %v4713_v33  ;;  %v4767_v33 = vld [vmem:[%s7189_s4 + $0x1b4] ss:$8 sps:$4 sm:$0xff]  }
 0x242   :  { %2256 = vmatmul.mubr.bf16.vlgmr.msra.gmra.mrb[0].mxu0 %v429_v54  ;;  %2769 = vmatmul.mubr.bf16.vlgmr.msra.gmra.mrb[0].mxu1 %v2382_v55  ;;  %v4765_v54 = vld [vmem:[%s7189_s4 + $0x1a4] ss:$8 sps:$4 sm:$0xff]   ;;  %v4766_v55 = vld [vmem:[%s7189_s4 + $0x1a0] ss:$8 sps:$4 sm:$0xff]  }
 0x243   :  { %2922 = vmatpush1.bf16.msra.mxu0 %v4714_v57  ;;  %3435 = vmatpush1.bf16.msra.mxu1 %v4714_v57  ;;  %v4770_v57 = vld [vmem:[%s7189_s4 + $0x1c0] ss:$8 sps:$4 sm:$0xff]  }
 0x244   :  { %2923 = vmatprep.subr.bf16.mxu0 %v4715_v58  ;;  %3436 = vmatprep.subr.bf16.mxu1 %v4715_v58  ;;  %v4771_v58 = vld [vmem:[%s7189_s4 + $0x1d4] ss:$8 sps:$4 sm:$0xff]  }
 0x245   :  { %2953 = vmatprep.mubr.bf16.mxu0 %v6128_v34  ;;  %3466 = vmatprep.mubr.bf16.mxu1 %v6131_v56  ;;  %v4768_v34 = vld [vmem:[%s7189_s4 + $0x1b0] ss:$8 sps:$4 sm:$0xff]   ;;  %v4769_v56 = vld [vmem:[%s7189_s4 + $0x1c4] ss:$8 sps:$4 sm:$0xff]  }
 0x247   :  { %2924 = vmatpush1.bf16.msra.mxu0 %v4716_v59  ;;  %3437 = vmatpush1.bf16.msra.mxu1 %v4716_v59  ;;  %v2783_v59 = vcombine.high %v6092_v45, %v6092_v45 }
 0x248   :  { %2925 = vmatprep.subr.bf16.mxu0 %v4717_v60  ;;  %3438 = vmatprep.subr.bf16.mxu1 %v4717_v60  ;;  %v3296_v60 = vcombine.high %v6097_v46, %v6097_v46  ;;  %v4774_v46 = vld [vmem:[%s7189_s4 + $0x1e0] ss:$8 sps:$4 sm:$0xff]  }
 0x24a   :  { %v6337_v45 = vrot.slane %v3296_v60, %v5073_v16 }
 0x24b   :  { %2926 = vmatpush1.bf16.msra.mxu0 %v4718_v61  ;;  %3439 = vmatpush1.bf16.msra.mxu1 %v4718_v61  ;;  %v4772_v61 = vld [vmem:[%s7189_s4 + $0x1d0] ss:$8 sps:$4 sm:$0xff]  }
 0x24c   :  { %2927 = vmatprep.subr.bf16.mxu0 %v4719_v62  ;;  %3440 = vmatprep.subr.bf16.mxu1 %v4719_v62  ;;  %v4773_v62 = vld [vmem:[%s7189_s4 + $0x1e4] ss:$8 sps:$4 sm:$0xff]  }
 0x24f   :  { %2928 = vmatpush1.bf16.msra.mxu0 %v4720_v63  ;;  %3441 = vmatpush1.bf16.msra.mxu1 %v4720_v63  ;;  %v6334_v63 = vrot.slane %v2783_v59, %v5073_v16 }
 0x250   :  { %2929 = vmatprep.subr.bf16.mxu0 %v4721_v0  ;;  %3442 = vmatprep.subr.bf16.mxu1 %v4721_v0  ;;  %v4775_v0 = vld [vmem:[%s7189_s4 + $0x1f4] ss:$8 sps:$4 sm:$0xff]  }
 0x253   :  { %2930 = vmatpush1.bf16.msra.mxu0 %v4722_v1  ;;  %3443 = vmatpush1.bf16.msra.mxu1 %v4722_v1  ;;  %v2799_v1 = vcombine.high %v6334_v63, %v6334_v63 }
 0x254   :  { %2931 = vmatprep.subr.bf16.mxu0 %v4723_v2  ;;  %3444 = vmatprep.subr.bf16.mxu1 %v4723_v2  ;;  %v3312_v2 = vcombine.high %v6337_v45, %v6337_v45 }
 0x257   :  { %2932 = vmatpush1.bf16.msra.mxu0 %v4724_v3  ;;  %3445 = vmatpush1.bf16.msra.mxu1 %v4724_v3  ;;  %v2828_v3 = vcombine.high %v6227_v25, %v6227_v25 }
 0x258   :  { %2933 = vmatprep.subr.bf16.mxu0 %v4725_v4  ;;  %3446 = vmatprep.subr.bf16.mxu1 %v4725_v4  ;;  %v3341_v4 = vcombine.high %v6231_v26, %v6231_v26 }
 0x25b   :  { %2934 = vmatpush1.bf16.msra.mxu0 %v4726_v5  ;;  %3447 = vmatpush1.bf16.msra.mxu1 %v4726_v5  ;;  %v4776_v5 = vld [vmem:[%s7189_s4 + $0x1f0] ss:$8 sps:$4 sm:$0xff]  }
 0x25c   :  { %2935 = vmatprep.subr.bf16.mxu0 %v4727_v6  ;;  %3448 = vmatprep.subr.bf16.mxu1 %v4727_v6  ;;  %v4777_v6 = vld [vmem:[%s7189_s4 + $0x204] ss:$8 sps:$4 sm:$0xff]  }
 0x25f   :  { %2936 = vmatpush1.bf16.msra.mxu0 %v4728_v7  ;;  %3449 = vmatpush1.bf16.msra.mxu1 %v4728_v7  ;;  %v6360_v7 = vrot.slane %v2799_v1, %v5073_v16  ;;  %v4820_v1 = vld [vmem:[%s7189_s4 + $0x350] ss:$8 sps:$4 sm:$0xff]  }
 0x260   :  { %2937 = vmatprep.subr.bf16.mxu0 %v4729_v8  ;;  %3450 = vmatprep.subr.bf16.mxu1 %v4729_v8  ;;  %v6363_v8 = vrot.slane %v3312_v2, %v5073_v16 }
 0x263   :  { %2938 = vmatpush1.bf16.msra.mxu0 %v4730_v9  ;;  %3451 = vmatpush1.bf16.msra.mxu1 %v4730_v9  ;;  %v4778_v9 = vld [vmem:[%s7189_s4 + $0x200] ss:$8 sps:$4 sm:$0xff]  }
 0x264   :  { %2939 = vmatprep.subr.bf16.mxu0 %v4731_v10  ;;  %3452 = vmatprep.subr.bf16.mxu1 %v4731_v10  ;;  %v4779_v10 = vld [vmem:[%s7189_s4 + $0x214] ss:$8 sps:$4 sm:$0xff]  }
 0x267   :  { %2940 = vmatpush1.bf16.msra.mxu0 %v4732_v11  ;;  %3453 = vmatpush1.bf16.msra.mxu1 %v4732_v11  ;;  %v4780_v11 = vld [vmem:[%s7189_s4 + $0x210] ss:$8 sps:$4 sm:$0xff]  }
 0x268   :  { %2941 = vmatprep.subr.bf16.mxu0 %v4733_v12  ;;  %3454 = vmatprep.subr.bf16.mxu1 %v4733_v12  ;;  %v4781_v12 = vld [vmem:[%s7189_s4 + $0x224] ss:$8 sps:$4 sm:$0xff]  }
 0x26b   :  { %2942 = vmatpush1.bf16.msra.mxu0 %v4734_v14  ;;  %3455 = vmatpush1.bf16.msra.mxu1 %v4734_v14  ;;  %v4782_v14 = vld [vmem:[%s7189_s4 + $0x220] ss:$8 sps:$4 sm:$0xff]  }
 0x26c   :  { %2943 = vmatprep.subr.bf16.mxu0 %v4735_v15  ;;  %3456 = vmatprep.subr.bf16.mxu1 %v4735_v15  ;;  %v4783_v15 = vld [vmem:[%s7189_s4 + $0x234] ss:$8 sps:$4 sm:$0xff]  }
 0x26f   :  { %2944 = vmatpush1.bf16.msra.mxu0 %v4736_v17  ;;  %3457 = vmatpush1.bf16.msra.mxu1 %v4736_v17  ;;  %v4784_v17 = vld [vmem:[%s7189_s4 + $0x230] ss:$8 sps:$4 sm:$0xff]  }
 0x270   :  { %2945 = vmatprep.subr.bf16.mxu0 %v4737_v18  ;;  %3458 = vmatprep.subr.bf16.mxu1 %v4737_v18  ;;  %v4785_v18 = vld [vmem:[%s7189_s4 + $0x244] ss:$8 sps:$4 sm:$0xff]  }
 0x273   :  { %2946 = vmatpush1.bf16.msra.mxu0 %v4738_v20  ;;  %3459 = vmatpush1.bf16.msra.mxu1 %v4738_v20  ;;  %v4786_v20 = vld [vmem:[%s7189_s4 + $0x240] ss:$8 sps:$4 sm:$0xff]  }
 0x274   :  { %2947 = vmatprep.subr.bf16.mxu0 %v4739_v22  ;;  %3460 = vmatprep.subr.bf16.mxu1 %v4739_v22  ;;  %v4787_v22 = vld [vmem:[%s7189_s4 + $0x254] ss:$8 sps:$4 sm:$0xff]  }
 0x277   :  { %2948 = vmatpush1.bf16.msra.mxu0 %v4740_v23  ;;  %3461 = vmatpush1.bf16.msra.mxu1 %v4740_v23  ;;  %v4788_v23 = vld [vmem:[%s7189_s4 + $0x250] ss:$8 sps:$4 sm:$0xff]  }
 0x278   :  { %2949 = vmatprep.subr.bf16.mxu0 %v4741_v19  ;;  %3462 = vmatprep.subr.bf16.mxu1 %v4741_v19  ;;  %v4789_v19 = vld [vmem:[%s7189_s4 + $0x264] ss:$8 sps:$4 sm:$0xff]  }
 0x27b   :  { %2950 = vmatpush1.bf16.msra.mxu0 %v4742_v21  ;;  %3463 = vmatpush1.bf16.msra.mxu1 %v4742_v21  ;;  %v4790_v21 = vld [vmem:[%s7189_s4 + $0x260] ss:$8 sps:$4 sm:$0xff]  }
 0x27c   :  { %2951 = vmatprep.subr.bf16.mxu0 %v4743_v24  ;;  %3464 = vmatprep.subr.bf16.mxu1 %v4743_v24  ;;  %v4791_v24 = vld [vmem:[%s7189_s4 + $0x274] ss:$8 sps:$4 sm:$0xff]  }
 0x27f   :  { %2952 = vmatpush1.bf16.msra.mxu0 %v4744_v27  ;;  %3465 = vmatpush1.bf16.msra.mxu1 %v4744_v27  ;;  %v4794_v27 = vld [vmem:[%s7189_s4 + $0x280] ss:$8 sps:$4 sm:$0xff]  }
 0x280   :  { %2962 = vmatprep.subr.bf16.mxu0 %v4745_v28  ;;  %3475 = vmatprep.subr.bf16.mxu1 %v4745_v28  ;;  %v4795_v28 = vld [vmem:[%s7189_s4 + $0x294] ss:$8 sps:$4 sm:$0xff]  }
 0x282   :  { %2954 = vmatmul.mubr.bf16.vlgmr.msra.gmra.mrb[4].mxu0 %v6227_v25  ;;  %3467 = vmatmul.mubr.bf16.vlgmr.msra.gmra.mrb[4].mxu1 %v6231_v26  ;;  %v4792_v25 = vld [vmem:[%s7189_s4 + $0x270] ss:$8 sps:$4 sm:$0xff]   ;;  %v4793_v26 = vld [vmem:[%s7189_s4 + $0x284] ss:$8 sps:$4 sm:$0xff]  }
 0x283   :  { %2963 = vmatpush1.bf16.msra.mxu0 %v4746_v31  ;;  %3476 = vmatpush1.bf16.msra.mxu1 %v4746_v31  ;;  %v4798_v31 = vld [vmem:[%s7189_s4 + $0x2a0] ss:$8 sps:$4 sm:$0xff]  }
 0x284   :  { %2964 = vmatprep.subr.bf16.mxu0 %v4747_v32  ;;  %3477 = vmatprep.subr.bf16.mxu1 %v4747_v32  ;;  %v4799_v32 = vld [vmem:[%s7189_s4 + $0x2b4] ss:$8 sps:$4 sm:$0xff]  }
 0x285   :  { %2994 = vmatprep.mubr.bf16.mxu0 %v2830_v29  ;;  %3507 = vmatprep.mubr.bf16.mxu1 %v3343_v30  ;;  %v4796_v29 = vld [vmem:[%s7189_s4 + $0x290] ss:$8 sps:$4 sm:$0xff]   ;;  %v4797_v30 = vld [vmem:[%s7189_s4 + $0x2a4] ss:$8 sps:$4 sm:$0xff]  }
 0x287   :  { %2965 = vmatpush1.bf16.msra.mxu0 %v4748_v35  ;;  %3478 = vmatpush1.bf16.msra.mxu1 %v4748_v35  ;;  %v4800_v35 = vld [vmem:[%s7189_s4 + $0x2b0] ss:$8 sps:$4 sm:$0xff]  }
 0x288   :  { %2966 = vmatprep.subr.bf16.mxu0 %v4749_v36  ;;  %3479 = vmatprep.subr.bf16.mxu1 %v4749_v36  ;;  %v4801_v36 = vld [vmem:[%s7189_s4 + $0x2c4] ss:$8 sps:$4 sm:$0xff]  }
 0x28b   :  { %2967 = vmatpush1.bf16.msra.mxu0 %v4750_v37  ;;  %3480 = vmatpush1.bf16.msra.mxu1 %v4750_v37  ;;  %v4802_v37 = vld [vmem:[%s7189_s4 + $0x2c0] ss:$8 sps:$4 sm:$0xff]  }
 0x28c   :  { %2968 = vmatprep.subr.bf16.mxu0 %v4751_v38  ;;  %3481 = vmatprep.subr.bf16.mxu1 %v4751_v38  ;;  %v4803_v38 = vld [vmem:[%s7189_s4 + $0x2d4] ss:$8 sps:$4 sm:$0xff]  }
 0x28f   :  { %2969 = vmatpush1.bf16.msra.mxu0 %v4752_v39  ;;  %3482 = vmatpush1.bf16.msra.mxu1 %v4752_v39  ;;  %v4804_v39 = vld [vmem:[%s7189_s4 + $0x2d0] ss:$8 sps:$4 sm:$0xff]  }
 0x290   :  { %2970 = vmatprep.subr.bf16.mxu0 %v4753_v40  ;;  %3483 = vmatprep.subr.bf16.mxu1 %v4753_v40  ;;  %v4805_v40 = vld [vmem:[%s7189_s4 + $0x2e4] ss:$8 sps:$4 sm:$0xff]  }
 0x293   :  { %2971 = vmatpush1.bf16.msra.mxu0 %v4754_v41  ;;  %3484 = vmatpush1.bf16.msra.mxu1 %v4754_v41  ;;  %v4806_v41 = vld [vmem:[%s7189_s4 + $0x2e0] ss:$8 sps:$4 sm:$0xff]  }
 0x294   :  { %2972 = vmatprep.subr.bf16.mxu0 %v4755_v42  ;;  %3485 = vmatprep.subr.bf16.mxu1 %v4755_v42  ;;  %v4807_v42 = vld [vmem:[%s7189_s4 + $0x2f4] ss:$8 sps:$4 sm:$0xff]  }
 0x297   :  { %2973 = vmatpush1.bf16.msra.mxu0 %v4756_v43  ;;  %3486 = vmatpush1.bf16.msra.mxu1 %v4756_v43  ;;  %v6459_v43 = vrot.slane %v6334_v63, %v5073_v16 }
 0x298   :  { %2974 = vmatprep.subr.bf16.mxu0 %v4757_v44  ;;  %3487 = vmatprep.subr.bf16.mxu1 %v4757_v44  ;;  %v6463_v44 = vrot.slane %v6337_v45, %v5073_v16 }
 0x29b   :  { %2975 = vmatpush1.bf16.msra.mxu0 %v4758_v47  ;;  %3488 = vmatpush1.bf16.msra.mxu1 %v4758_v47  ;;  %v4808_v47 = vld [vmem:[%s7189_s4 + $0x2f0] ss:$8 sps:$4 sm:$0xff]  }
 0x29c   :  { %2976 = vmatprep.subr.bf16.mxu0 %v4759_v48  ;;  %3489 = vmatprep.subr.bf16.mxu1 %v4759_v48  ;;  %v4809_v48 = vld [vmem:[%s7189_s4 + $0x304] ss:$8 sps:$4 sm:$0xff]  }
 0x29f   :  { %2977 = vmatpush1.bf16.msra.mxu0 %v4760_v49  ;;  %3490 = vmatpush1.bf16.msra.mxu1 %v4760_v49  ;;  %v2831_v49 = vcombine.high %v6360_v7, %v6360_v7 }
 0x2a0   :  { %2978 = vmatprep.subr.bf16.mxu0 %v4761_v50  ;;  %3491 = vmatprep.subr.bf16.mxu1 %v4761_v50  ;;  %v3344_v50 = vcombine.high %v6363_v8, %v6363_v8 }
 0x2a3   :  { %2979 = vmatpush1.bf16.msra.mxu0 %v4762_v51  ;;  %3492 = vmatpush1.bf16.msra.mxu1 %v4762_v51  ;;  %v4810_v51 = vld [vmem:[%s7189_s4 + $0x300] ss:$8 sps:$4 sm:$0xff]  }
 0x2a4   :  { %2980 = vmatprep.subr.bf16.mxu0 %v4763_v52  ;;  %3493 = vmatprep.subr.bf16.mxu1 %v4763_v52  ;;  %v4811_v52 = vld [vmem:[%s7189_s4 + $0x314] ss:$8 sps:$4 sm:$0xff]  }
 0x2a7   :  { %2981 = vmatpush1.bf16.msra.mxu0 %v4764_v53  ;;  %3494 = vmatpush1.bf16.msra.mxu1 %v4764_v53  ;;  %v4812_v53 = vld [vmem:[%s7189_s4 + $0x310] ss:$8 sps:$4 sm:$0xff]  }
 0x2a8   :  { %2982 = vmatprep.subr.bf16.mxu0 %v4765_v54  ;;  %3495 = vmatprep.subr.bf16.mxu1 %v4765_v54  ;;  %v4813_v54 = vld [vmem:[%s7189_s4 + $0x324] ss:$8 sps:$4 sm:$0xff]  }
 0x2ab   :  { %2983 = vmatpush1.bf16.msra.mxu0 %v4766_v55  ;;  %3496 = vmatpush1.bf16.msra.mxu1 %v4766_v55  ;;  %v4814_v55 = vld [vmem:[%s7189_s4 + $0x320] ss:$8 sps:$4 sm:$0xff]  }
 0x2ac   :  { %2984 = vmatprep.subr.bf16.mxu0 %v4767_v33  ;;  %3497 = vmatprep.subr.bf16.mxu1 %v4767_v33  ;;  %v4815_v33 = vld [vmem:[%s7189_s4 + $0x334] ss:$8 sps:$4 sm:$0xff]  }
 0x2af   :  { %2985 = vmatpush1.bf16.msra.mxu0 %v4768_v34  ;;  %3498 = vmatpush1.bf16.msra.mxu1 %v4768_v34  ;;  %v4816_v34 = vld [vmem:[%s7189_s4 + $0x330] ss:$8 sps:$4 sm:$0xff]  }
 0x2b0   :  { %2986 = vmatprep.subr.bf16.mxu0 %v4769_v56  ;;  %3499 = vmatprep.subr.bf16.mxu1 %v4769_v56  ;;  %v4817_v56 = vld [vmem:[%s7189_s4 + $0x344] ss:$8 sps:$4 sm:$0xff]  }
 0x2b3   :  { %2987 = vmatpush1.bf16.msra.mxu0 %v4770_v57  ;;  %3500 = vmatpush1.bf16.msra.mxu1 %v4770_v57  ;;  %v4818_v57 = vld [vmem:[%s7189_s4 + $0x340] ss:$8 sps:$4 sm:$0xff]  }
 0x2b4   :  { %2988 = vmatprep.subr.bf16.mxu0 %v4771_v58  ;;  %3501 = vmatprep.subr.bf16.mxu1 %v4771_v58  ;;  %v4819_v58 = vld [vmem:[%s7189_s4 + $0x354] ss:$8 sps:$4 sm:$0xff]  }
 0x2b7   :  { %2989 = vmatpush1.bf16.msra.mxu0 %v4772_v61  ;;  %3502 = vmatpush1.bf16.msra.mxu1 %v4772_v61 }
 0x2b8   :  { %2990 = vmatprep.subr.bf16.mxu0 %v4773_v62  ;;  %3503 = vmatprep.subr.bf16.mxu1 %v4773_v62 }
 0x2bb   :  { %2991 = vmatpush1.bf16.msra.mxu0 %v4774_v46  ;;  %3504 = vmatpush1.bf16.msra.mxu1 %v4774_v46 }
 0x2bc   :  { %2992 = vmatprep.subr.bf16.mxu0 %v4775_v0  ;;  %3505 = vmatprep.subr.bf16.mxu1 %v4775_v0 }
 0x2bf   :  { %2993 = vmatpush1.bf16.msra.mxu0 %v4776_v5  ;;  %3506 = vmatpush1.bf16.msra.mxu1 %v4776_v5  ;;  %v4822_v5 = vld [vmem:[%s7189_s4 + $0x360] ss:$8 sps:$4 sm:$0xff]  }
 0x2c0   :  { %3003 = vmatprep.subr.bf16.mxu0 %v4777_v6  ;;  %3516 = vmatprep.subr.bf16.mxu1 %v4777_v6  ;;  %v4823_v6 = vld [vmem:[%s7189_s4 + $0x374] ss:$8 sps:$4 sm:$0xff]  }
 0x2c2   :  { %2995 = vmatmul.mubr.bf16.vlgmr.msra.gmra.mrb[4].mxu0 %v2828_v3  ;;  %3508 = vmatmul.mubr.bf16.vlgmr.msra.gmra.mrb[4].mxu1 %v3341_v4  ;;  %v4821_v4 = vld [vmem:[%s7189_s4 + $0x364] ss:$8 sps:$4 sm:$0xff]  }
 0x2c3   :  { %3004 = vmatpush1.bf16.msra.mxu0 %v4778_v9  ;;  %3517 = vmatpush1.bf16.msra.mxu1 %v4778_v9  ;;  %v4826_v9 = vld [vmem:[%s7189_s4 + $0x380] ss:$8 sps:$4 sm:$0xff]  }
 0x2c4   :  { %3005 = vmatprep.subr.bf16.mxu0 %v4779_v10  ;;  %3518 = vmatprep.subr.bf16.mxu1 %v4779_v10  ;;  %v4827_v10 = vld [vmem:[%s7189_s4 + $0x394] ss:$8 sps:$4 sm:$0xff]  }
 0x2c5   :  { %3035 = vmatprep.mubr.bf16.mxu0 %v6360_v7  ;;  %3548 = vmatprep.mubr.bf16.mxu1 %v6363_v8  ;;  %v4824_v7 = vld [vmem:[%s7189_s4 + $0x370] ss:$8 sps:$4 sm:$0xff]   ;;  %v4825_v8 = vld [vmem:[%s7189_s4 + $0x384] ss:$8 sps:$4 sm:$0xff]  }
 0x2c7   :  { %3006 = vmatpush1.bf16.msra.mxu0 %v4780_v11  ;;  %3519 = vmatpush1.bf16.msra.mxu1 %v4780_v11  ;;  %v4828_v11 = vld [vmem:[%s7189_s4 + $0x390] ss:$8 sps:$4 sm:$0xff]  }
 0x2c8   :  { %3007 = vmatprep.subr.bf16.mxu0 %v4781_v12  ;;  %3520 = vmatprep.subr.bf16.mxu1 %v4781_v12  ;;  %v4829_v12 = vld [vmem:[%s7189_s4 + $0x3a4] ss:$8 sps:$4 sm:$0xff]  }
 0x2cb   :  { %3008 = vmatpush1.bf16.msra.mxu0 %v4782_v14  ;;  %3521 = vmatpush1.bf16.msra.mxu1 %v4782_v14  ;;  %v4830_v14 = vld [vmem:[%s7189_s4 + $0x3a0] ss:$8 sps:$4 sm:$0xff]  }
 0x2cc   :  { %3009 = vmatprep.subr.bf16.mxu0 %v4783_v15  ;;  %3522 = vmatprep.subr.bf16.mxu1 %v4783_v15  ;;  %v4831_v15 = vld [vmem:[%s7189_s4 + $0x3b4] ss:$8 sps:$4 sm:$0xff]  }
 0x2cf   :  { %3010 = vmatpush1.bf16.msra.mxu0 %v4784_v17  ;;  %3523 = vmatpush1.bf16.msra.mxu1 %v4784_v17  ;;  %v4832_v17 = vld [vmem:[%s7189_s4 + $0x3b0] ss:$8 sps:$4 sm:$0xff]  }
 0x2d0   :  { %3011 = vmatprep.subr.bf16.mxu0 %v4785_v18  ;;  %3524 = vmatprep.subr.bf16.mxu1 %v4785_v18  ;;  %v4833_v18 = vld [vmem:[%s7189_s4 + $0x3c4] ss:$8 sps:$4 sm:$0xff]  }
 0x2d3   :  { %3012 = vmatpush1.bf16.msra.mxu0 %v4786_v20  ;;  %3525 = vmatpush1.bf16.msra.mxu1 %v4786_v20  ;;  %v4834_v20 = vld [vmem:[%s7189_s4 + $0x3c0] ss:$8 sps:$4 sm:$0xff]  }
 0x2d4   :  { %3013 = vmatprep.subr.bf16.mxu0 %v4787_v22  ;;  %3526 = vmatprep.subr.bf16.mxu1 %v4787_v22  ;;  %v4835_v22 = vld [vmem:[%s7189_s4 + $0x3d4] ss:$8 sps:$4 sm:$0xff]  }
 0x2d7   :  { %3014 = vmatpush1.bf16.msra.mxu0 %v4788_v23  ;;  %3527 = vmatpush1.bf16.msra.mxu1 %v4788_v23  ;;  %v6570_v23 = vld [vmem:[%s7192_s2 + $0x8] sm:$0xff] }
 0x2d8   :  { %3015 = vmatprep.subr.bf16.mxu0 %v4789_v19  ;;  %3528 = vmatprep.subr.bf16.mxu1 %v4789_v19  ;;  %v6575_v19 = vld [vmem:[%s7193_s3 + $0x8] sm:$0xff] }
 0x2db   :  { %3016 = vmatpush1.bf16.msra.mxu0 %v4790_v21  ;;  %3529 = vmatpush1.bf16.msra.mxu1 %v4790_v21  ;;  %v4836_v21 = vld [vmem:[%s7189_s4 + $0x3d0] ss:$8 sps:$4 sm:$0xff]  }
 0x2dc   :  { %3017 = vmatprep.subr.bf16.mxu0 %v4791_v24  ;;  %3530 = vmatprep.subr.bf16.mxu1 %v4791_v24  ;;  %v4837_v24 = vld [vmem:[%s7189_s4 + $0x3e4] ss:$8 sps:$4 sm:$0xff]  }
 0x2df   :  { %3018 = vmatpush1.bf16.msra.mxu0 %v4792_v25  ;;  %3531 = vmatpush1.bf16.msra.mxu1 %v4792_v25  ;;  %v6585_v25 = vrot.slane %v6570_v23, %v5073_v16 }
 0x2e0   :  { %3019 = vmatprep.subr.bf16.mxu0 %v4793_v26  ;;  %3532 = vmatprep.subr.bf16.mxu1 %v4793_v26  ;;  %v6589_v26 = vrot.slane %v6575_v19, %v5073_v16 }
 0x2e3   :  { %3020 = vmatpush1.bf16.msra.mxu0 %v4794_v27  ;;  %3533 = vmatpush1.bf16.msra.mxu1 %v4794_v27  ;;  %v4838_v27 = vld [vmem:[%s7189_s4 + $0x3e0] ss:$8 sps:$4 sm:$0xff]  }
 0x2e4   :  { %3021 = vmatprep.subr.bf16.mxu0 %v4795_v28  ;;  %3534 = vmatprep.subr.bf16.mxu1 %v4795_v28  ;;  %v4839_v28 = vld [vmem:[%s7189_s4 + $0x3f4] ss:$8 sps:$4 sm:$0xff]  }
 0x2e7   :  { %3022 = vmatpush1.bf16.msra.mxu0 %v4796_v29  ;;  %3535 = vmatpush1.bf16.msra.mxu1 %v4796_v29  ;;  %v2847_v29 = vcombine.high %v6585_v25, %v6585_v25 }
 0x2e8   :  { %3023 = vmatprep.subr.bf16.mxu0 %v4797_v30  ;;  %3536 = vmatprep.subr.bf16.mxu1 %v4797_v30  ;;  %v3360_v30 = vcombine.high %v6589_v26, %v6589_v26 }
 0x2eb   :  { %3024 = vmatpush1.bf16.msra.mxu0 %v4798_v31  ;;  %3537 = vmatpush1.bf16.msra.mxu1 %v4798_v31  ;;  %v2829_v31 = vcombine.high %v6459_v43, %v6459_v43 }
 0x2ec   :  { %3025 = vmatprep.subr.bf16.mxu0 %v4799_v32  ;;  %3538 = vmatprep.subr.bf16.mxu1 %v4799_v32  ;;  %v3342_v32 = vcombine.high %v6463_v44, %v6463_v44 }
 0x2ef   :  { %3026 = vmatpush1.bf16.msra.mxu0 %v4800_v35  ;;  %3539 = vmatpush1.bf16.msra.mxu1 %v4800_v35  ;;  %v4840_v35 = vld [vmem:[%s7189_s4 + $0x3f0] ss:$8 sps:$4 sm:$0xff]  }
 0x2f0   :  { %3027 = vmatprep.subr.bf16.mxu0 %v4801_v36  ;;  %3540 = vmatprep.subr.bf16.mxu1 %v4801_v36  ;;  %v4841_v36 = vld [vmem:[%s7189_s4 + $0x404] ss:$8 sps:$4 sm:$0xff]  }
 0x2f3   :  { %3028 = vmatpush1.bf16.msra.mxu0 %v4802_v37  ;;  %3541 = vmatpush1.bf16.msra.mxu1 %v4802_v37  ;;  %v6612_v37 = vrot.slane %v2847_v29, %v5073_v16  ;;  %v4884_v29 = vld [vmem:[%s7189_s4 + $0x550] ss:$8 sps:$4 sm:$0xff]  }
 0x2f4   :  { %3029 = vmatprep.subr.bf16.mxu0 %v4803_v38  ;;  %3542 = vmatprep.subr.bf16.mxu1 %v4803_v38  ;;  %v6615_v38 = vrot.slane %v3360_v30, %v5073_v16  ;;  %v4885_v30 = vld [vmem:[%s7189_s4 + $0x564] ss:$8 sps:$4 sm:$0xff]  }
 0x2f7   :  { %3030 = vmatpush1.bf16.msra.mxu0 %v4804_v39  ;;  %3543 = vmatpush1.bf16.msra.mxu1 %v4804_v39  ;;  %v4842_v39 = vld [vmem:[%s7189_s4 + $0x400] ss:$8 sps:$4 sm:$0xff]  }
 0x2f8   :  { %3031 = vmatprep.subr.bf16.mxu0 %v4805_v40  ;;  %3544 = vmatprep.subr.bf16.mxu1 %v4805_v40  ;;  %v4843_v40 = vld [vmem:[%s7189_s4 + $0x414] ss:$8 sps:$4 sm:$0xff]  }
 0x2fb   :  { %3032 = vmatpush1.bf16.msra.mxu0 %v4806_v41  ;;  %3545 = vmatpush1.bf16.msra.mxu1 %v4806_v41  ;;  %v4844_v41 = vld [vmem:[%s7189_s4 + $0x410] ss:$8 sps:$4 sm:$0xff]  }
 0x2fc   :  { %3033 = vmatprep.subr.bf16.mxu0 %v4807_v42  ;;  %3546 = vmatprep.subr.bf16.mxu1 %v4807_v42  ;;  %v4845_v42 = vld [vmem:[%s7189_s4 + $0x424] ss:$8 sps:$4 sm:$0xff]  }
 0x2ff   :  { %3034 = vmatpush1.bf16.msra.mxu0 %v4808_v47  ;;  %3547 = vmatpush1.bf16.msra.mxu1 %v4808_v47  ;;  %v4848_v47 = vld [vmem:[%s7189_s4 + $0x430] ss:$8 sps:$4 sm:$0xff]  }
 0x300   :  { %3044 = vmatprep.subr.bf16.mxu0 %v4809_v48  ;;  %3557 = vmatprep.subr.bf16.mxu1 %v4809_v48  ;;  %v4849_v48 = vld [vmem:[%s7189_s4 + $0x444] ss:$8 sps:$4 sm:$0xff]  }
 0x302   :  { %3036 = vmatmul.mubr.bf16.vlgmr.msra.gmra.mrb[4].mxu0 %v6459_v43  ;;  %3549 = vmatmul.mubr.bf16.vlgmr.msra.gmra.mrb[4].mxu1 %v6463_v44  ;;  %v4846_v43 = vld [vmem:[%s7189_s4 + $0x420] ss:$8 sps:$4 sm:$0xff]   ;;  %v4847_v44 = vld [vmem:[%s7189_s4 + $0x434] ss:$8 sps:$4 sm:$0xff]  }
 0x303   :  { %3045 = vmatpush1.bf16.msra.mxu0 %v4810_v51  ;;  %3558 = vmatpush1.bf16.msra.mxu1 %v4810_v51  ;;  %v4852_v51 = vld [vmem:[%s7189_s4 + $0x450] ss:$8 sps:$4 sm:$0xff]  }
 0x304   :  { %3046 = vmatprep.subr.bf16.mxu0 %v4811_v52  ;;  %3559 = vmatprep.subr.bf16.mxu1 %v4811_v52  ;;  %v4853_v52 = vld [vmem:[%s7189_s4 + $0x464] ss:$8 sps:$4 sm:$0xff]  }
 0x305   :  { %3076 = vmatprep.mubr.bf16.mxu0 %v2831_v49  ;;  %3589 = vmatprep.mubr.bf16.mxu1 %v3344_v50  ;;  %v4850_v49 = vld [vmem:[%s7189_s4 + $0x440] ss:$8 sps:$4 sm:$0xff]   ;;  %v4851_v50 = vld [vmem:[%s7189_s4 + $0x454] ss:$8 sps:$4 sm:$0xff]  }
 0x307   :  { %3047 = vmatpush1.bf16.msra.mxu0 %v4812_v53  ;;  %3560 = vmatpush1.bf16.msra.mxu1 %v4812_v53  ;;  %v4854_v53 = vld [vmem:[%s7189_s4 + $0x460] ss:$8 sps:$4 sm:$0xff]  }
 0x308   :  { %3048 = vmatprep.subr.bf16.mxu0 %v4813_v54  ;;  %3561 = vmatprep.subr.bf16.mxu1 %v4813_v54  ;;  %v4855_v54 = vld [vmem:[%s7189_s4 + $0x474] ss:$8 sps:$4 sm:$0xff]  }
 0x30b   :  { %3049 = vmatpush1.bf16.msra.mxu0 %v4814_v55  ;;  %3562 = vmatpush1.bf16.msra.mxu1 %v4814_v55  ;;  %v4856_v55 = vld [vmem:[%s7189_s4 + $0x470] ss:$8 sps:$4 sm:$0xff]  }
 0x30c   :  { %3050 = vmatprep.subr.bf16.mxu0 %v4815_v33  ;;  %3563 = vmatprep.subr.bf16.mxu1 %v4815_v33  ;;  %v4857_v33 = vld [vmem:[%s7189_s4 + $0x484] ss:$8 sps:$4 sm:$0xff]  }
 0x30f   :  { %3051 = vmatpush1.bf16.msra.mxu0 %v4816_v34  ;;  %3564 = vmatpush1.bf16.msra.mxu1 %v4816_v34  ;;  %v4858_v34 = vld [vmem:[%s7189_s4 + $0x480] ss:$8 sps:$4 sm:$0xff]  }
 0x310   :  { %3052 = vmatprep.subr.bf16.mxu0 %v4817_v56  ;;  %3565 = vmatprep.subr.bf16.mxu1 %v4817_v56  ;;  %v4859_v56 = vld [vmem:[%s7189_s4 + $0x494] ss:$8 sps:$4 sm:$0xff]  }
 0x313   :  { %3053 = vmatpush1.bf16.msra.mxu0 %v4818_v57  ;;  %3566 = vmatpush1.bf16.msra.mxu1 %v4818_v57  ;;  %v4860_v57 = vld [vmem:[%s7189_s4 + $0x490] ss:$8 sps:$4 sm:$0xff]  }
 0x314   :  { %3054 = vmatprep.subr.bf16.mxu0 %v4819_v58  ;;  %3567 = vmatprep.subr.bf16.mxu1 %v4819_v58  ;;  %v4861_v58 = vld [vmem:[%s7189_s4 + $0x4a4] ss:$8 sps:$4 sm:$0xff]  }
 0x315   :  { %v6507_v59 = vpop.f32.mrb[0].mxu0  ;;  %v6509_v60 = vpop.f32.mrb[0].mxu1 }
 0x316   :  { %v3803_v61 = vmax.f32 %v6507_v59, %v6509_v60  ;;  %v6513_v62 = vpop.f32.mrb[1].mxu0  ;;  %v6515_v63 = vpop.f32.mrb[1].mxu1 }
 0x317   :  { %v3804_v45 = vmax.f32 %v6513_v62, %v6515_v63  ;;  %v2261_v46 = vpop.f32.mrb[2].mxu0  ;;  %v2774_v0 = vpop.f32.mrb[2].mxu1  ;;  %3055 = vmatpush1.bf16.msra.mxu0 %v4820_v1  ;;  %3568 = vmatpush1.bf16.msra.mxu1 %v4820_v1  ;;  %v4864_v1 = vld [vmem:[%s7189_s4 + $0x4b0] ss:$8 sps:$4 sm:$0xff]  }
 0x318   :  { %v2262_v2 = vpop.f32.mrb[3].mxu0  ;;  %v2775_v3 = vpop.f32.mrb[3].mxu1  ;;  %3056 = vmatprep.subr.bf16.mxu0 %v4821_v4  ;;  %3569 = vmatprep.subr.bf16.mxu1 %v4821_v4  ;;  %v4862_v46 = vld [vmem:[%s7189_s4 + $0x4a0] ss:$8 sps:$4 sm:$0xff]   ;;  %v4863_v0 = vld [vmem:[%s7189_s4 + $0x4b4] ss:$8 sps:$4 sm:$0xff]  }
 0x319   :  { %v4865_v2 = vld [vmem:[%s7189_s4 + $0x4c4] ss:$8 sps:$4 sm:$0xff]   ;;  %v4866_v3 = vld [vmem:[%s7189_s4 + $0x4c0] ss:$8 sps:$4 sm:$0xff]   ;;  %v4867_v4 = vld [vmem:[%s7189_s4 + $0x4d4] ss:$8 sps:$4 sm:$0xff]  }
 0x31b   :  { %3057 = vmatpush1.bf16.msra.mxu0 %v4822_v5  ;;  %3570 = vmatpush1.bf16.msra.mxu1 %v4822_v5  ;;  %v4868_v5 = vld [vmem:[%s7189_s4 + $0x4d0] ss:$8 sps:$4 sm:$0xff]  }
 0x31c   :  { %3058 = vmatprep.subr.bf16.mxu0 %v4823_v6  ;;  %3571 = vmatprep.subr.bf16.mxu1 %v4823_v6  ;;  %v4869_v6 = vld [vmem:[%s7189_s4 + $0x4e4] ss:$8 sps:$4 sm:$0xff]  }
 0x31f   :  { %3059 = vmatpush1.bf16.msra.mxu0 %v4824_v7  ;;  %3572 = vmatpush1.bf16.msra.mxu1 %v4824_v7  ;;  %v4870_v7 = vld [vmem:[%s7189_s4 + $0x4e0] ss:$8 sps:$4 sm:$0xff]  }
 0x320   :  { %3060 = vmatprep.subr.bf16.mxu0 %v4825_v8  ;;  %3573 = vmatprep.subr.bf16.mxu1 %v4825_v8  ;;  %v4871_v8 = vld [vmem:[%s7189_s4 + $0x4f4] ss:$8 sps:$4 sm:$0xff]  }
 0x323   :  { %3061 = vmatpush1.bf16.msra.mxu0 %v4826_v9  ;;  %3574 = vmatpush1.bf16.msra.mxu1 %v4826_v9  ;;  %v6711_v9 = vrot.slane %v6585_v25, %v5073_v16  ;;  %v4880_v25 = vld [vmem:[%s7189_s4 + $0x530] ss:$8 sps:$4 sm:$0xff]  }
 0x324   :  { %3062 = vmatprep.subr.bf16.mxu0 %v4827_v10  ;;  %3575 = vmatprep.subr.bf16.mxu1 %v4827_v10  ;;  %v6715_v10 = vrot.slane %v6589_v26, %v5073_v16  ;;  %v4881_v26 = vld [vmem:[%s7189_s4 + $0x544] ss:$8 sps:$4 sm:$0xff]  }
 0x327   :  { %3063 = vmatpush1.bf16.msra.mxu0 %v4828_v11  ;;  %3576 = vmatpush1.bf16.msra.mxu1 %v4828_v11  ;;  %v4872_v11 = vld [vmem:[%s7189_s4 + $0x4f0] ss:$8 sps:$4 sm:$0xff]  }
 0x328   :  { %3064 = vmatprep.subr.bf16.mxu0 %v4829_v12  ;;  %3577 = vmatprep.subr.bf16.mxu1 %v4829_v12  ;;  %v4873_v12 = vld [vmem:[%s7189_s4 + $0x504] ss:$8 sps:$4 sm:$0xff]  }
 0x32b   :  { %3065 = vmatpush1.bf16.msra.mxu0 %v4830_v14  ;;  %3578 = vmatpush1.bf16.msra.mxu1 %v4830_v14  ;;  %v2879_v14 = vcombine.high %v6612_v37, %v6612_v37 }
 0x32c   :  { %3066 = vmatprep.subr.bf16.mxu0 %v4831_v15  ;;  %3579 = vmatprep.subr.bf16.mxu1 %v4831_v15  ;;  %v3392_v15 = vcombine.high %v6615_v38, %v6615_v38 }
 0x32f   :  { %3067 = vmatpush1.bf16.msra.mxu0 %v4832_v17  ;;  %3580 = vmatpush1.bf16.msra.mxu1 %v4832_v17  ;;  %v4874_v17 = vld [vmem:[%s7189_s4 + $0x500] ss:$8 sps:$4 sm:$0xff]  }
 0x330   :  { %3068 = vmatprep.subr.bf16.mxu0 %v4833_v18  ;;  %3581 = vmatprep.subr.bf16.mxu1 %v4833_v18  ;;  %v4875_v18 = vld [vmem:[%s7189_s4 + $0x514] ss:$8 sps:$4 sm:$0xff]  }
 0x333   :  { %3069 = vmatpush1.bf16.msra.mxu0 %v4834_v20  ;;  %3582 = vmatpush1.bf16.msra.mxu1 %v4834_v20  ;;  %v4876_v20 = vld [vmem:[%s7189_s4 + $0x510] ss:$8 sps:$4 sm:$0xff]  }
 0x334   :  { %3070 = vmatprep.subr.bf16.mxu0 %v4835_v22  ;;  %3583 = vmatprep.subr.bf16.mxu1 %v4835_v22  ;;  %v4877_v22 = vld [vmem:[%s7189_s4 + $0x524] ss:$8 sps:$4 sm:$0xff]  }
 0x337   :  { %3071 = vmatpush1.bf16.msra.mxu0 %v4836_v21  ;;  %3584 = vmatpush1.bf16.msra.mxu1 %v4836_v21  ;;  %v4878_v21 = vld [vmem:[%s7189_s4 + $0x520] ss:$8 sps:$4 sm:$0xff]  }
 0x338   :  { %3072 = vmatprep.subr.bf16.mxu0 %v4837_v24  ;;  %3585 = vmatprep.subr.bf16.mxu1 %v4837_v24  ;;  %v4879_v24 = vld [vmem:[%s7189_s4 + $0x534] ss:$8 sps:$4 sm:$0xff]  }
 0x33b   :  { %3073 = vmatpush1.bf16.msra.mxu0 %v4838_v27  ;;  %3586 = vmatpush1.bf16.msra.mxu1 %v4838_v27  ;;  %v4882_v27 = vld [vmem:[%s7189_s4 + $0x540] ss:$8 sps:$4 sm:$0xff]  }
 0x33c   :  { %3074 = vmatprep.subr.bf16.mxu0 %v4839_v28  ;;  %3587 = vmatprep.subr.bf16.mxu1 %v4839_v28  ;;  %v4883_v28 = vld [vmem:[%s7189_s4 + $0x554] ss:$8 sps:$4 sm:$0xff]  }
 0x33f   :  { %3075 = vmatpush1.bf16.msra.mxu0 %v4840_v35  ;;  %3588 = vmatpush1.bf16.msra.mxu1 %v4840_v35  ;;  %v4888_v35 = vld [vmem:[%s7189_s4 + $0x570] ss:$8 sps:$4 sm:$0xff]  }
 0x340   :  { %3085 = vmatprep.subr.bf16.mxu0 %v4841_v36  ;;  %3598 = vmatprep.subr.bf16.mxu1 %v4841_v36  ;;  %v4889_v36 = vld [vmem:[%s7189_s4 + $0x584] ss:$8 sps:$4 sm:$0xff]  }
 0x342   :  { %3077 = vmatmul.mubr.bf16.vlgmr.msra.gmra.mrb[4].mxu0 %v2829_v31  ;;  %3590 = vmatmul.mubr.bf16.vlgmr.msra.gmra.mrb[4].mxu1 %v3342_v32  ;;  %v4886_v31 = vld [vmem:[%s7189_s4 + $0x560] ss:$8 sps:$4 sm:$0xff]   ;;  %v4887_v32 = vld [vmem:[%s7189_s4 + $0x574] ss:$8 sps:$4 sm:$0xff]  }
 0x343   :  { %3086 = vmatpush1.bf16.msra.mxu0 %v4842_v39  ;;  %3599 = vmatpush1.bf16.msra.mxu1 %v4842_v39  ;;  %v4892_v39 = vld [vmem:[%s7189_s4 + $0x590] ss:$8 sps:$4 sm:$0xff]  }
 0x344   :  { %3087 = vmatprep.subr.bf16.mxu0 %v4843_v40  ;;  %3600 = vmatprep.subr.bf16.mxu1 %v4843_v40  ;;  %v4893_v40 = vld [vmem:[%s7189_s4 + $0x5a4] ss:$8 sps:$4 sm:$0xff]  }
 0x345   :  { %3117 = vmatprep.mubr.bf16.mxu0 %v6612_v37  ;;  %3630 = vmatprep.mubr.bf16.mxu1 %v6615_v38  ;;  %v4890_v37 = vld [vmem:[%s7189_s4 + $0x580] ss:$8 sps:$4 sm:$0xff]   ;;  %v4891_v38 = vld [vmem:[%s7189_s4 + $0x594] ss:$8 sps:$4 sm:$0xff]  }
 0x347   :  { %3088 = vmatpush1.bf16.msra.mxu0 %v4844_v41  ;;  %3601 = vmatpush1.bf16.msra.mxu1 %v4844_v41  ;;  %v4894_v41 = vld [vmem:[%s7189_s4 + $0x5a0] ss:$8 sps:$4 sm:$0xff]  }
 0x348   :  { %3089 = vmatprep.subr.bf16.mxu0 %v4845_v42  ;;  %3602 = vmatprep.subr.bf16.mxu1 %v4845_v42  ;;  %v4895_v42 = vld [vmem:[%s7189_s4 + $0x5b4] ss:$8 sps:$4 sm:$0xff]  }
 0x34b   :  { %3090 = vmatpush1.bf16.msra.mxu0 %v4846_v43  ;;  %3603 = vmatpush1.bf16.msra.mxu1 %v4846_v43  ;;  %v4896_v43 = vld [vmem:[%s7189_s4 + $0x5b0] ss:$8 sps:$4 sm:$0xff]  }
 0x34c   :  { %3091 = vmatprep.subr.bf16.mxu0 %v4847_v44  ;;  %3604 = vmatprep.subr.bf16.mxu1 %v4847_v44  ;;  %v4897_v44 = vld [vmem:[%s7189_s4 + $0x5c4] ss:$8 sps:$4 sm:$0xff]  }
 0x34f   :  { %3092 = vmatpush1.bf16.msra.mxu0 %v4848_v47  ;;  %3605 = vmatpush1.bf16.msra.mxu1 %v4848_v47  ;;  %v4898_v47 = vld [vmem:[%s7189_s4 + $0x5c0] ss:$8 sps:$4 sm:$0xff]  }
 0x350   :  { %3093 = vmatprep.subr.bf16.mxu0 %v4849_v48  ;;  %3606 = vmatprep.subr.bf16.mxu1 %v4849_v48  ;;  %v4899_v48 = vld [vmem:[%s7189_s4 + $0x5d4] ss:$8 sps:$4 sm:$0xff]  }
 0x353   :  { %3094 = vmatpush1.bf16.msra.mxu0 %v4850_v49  ;;  %3607 = vmatpush1.bf16.msra.mxu1 %v4850_v49  ;;  %v2832_v49 = vcombine.high %v6570_v23, %v6570_v23 }
 0x354   :  { %3095 = vmatprep.subr.bf16.mxu0 %v4851_v50  ;;  %3608 = vmatprep.subr.bf16.mxu1 %v4851_v50  ;;  %v3345_v50 = vcombine.high %v6575_v19, %v6575_v19  ;;  %v4902_v19 = vld [vmem:[%s7189_s4 + $0x5e0] ss:$8 sps:$4 sm:$0xff]  }
 0x356   :  { %v6821_v23 = vrot.slane %v3345_v50, %v5073_v16  ;;  %v4943_v50 = vld [vmem:[%s7189_s4 + $0x734] ss:$8 sps:$4 sm:$0xff]  }
 0x357   :  { %3096 = vmatpush1.bf16.msra.mxu0 %v4852_v51  ;;  %3609 = vmatpush1.bf16.msra.mxu1 %v4852_v51  ;;  %v4900_v51 = vld [vmem:[%s7189_s4 + $0x5d0] ss:$8 sps:$4 sm:$0xff]  }
 0x358   :  { %3097 = vmatprep.subr.bf16.mxu0 %v4853_v52  ;;  %3610 = vmatprep.subr.bf16.mxu1 %v4853_v52  ;;  %v4901_v52 = vld [vmem:[%s7189_s4 + $0x5e4] ss:$8 sps:$4 sm:$0xff]  }
 0x35b   :  { %3098 = vmatpush1.bf16.msra.mxu0 %v4854_v53  ;;  %3611 = vmatpush1.bf16.msra.mxu1 %v4854_v53  ;;  %v6818_v53 = vrot.slane %v2832_v49, %v5073_v16  ;;  %v4942_v49 = vld [vmem:[%s7189_s4 + $0x720] ss:$8 sps:$4 sm:$0xff]  }
 0x35c   :  { %3099 = vmatprep.subr.bf16.mxu0 %v4855_v54  ;;  %3612 = vmatprep.subr.bf16.mxu1 %v4855_v54  ;;  %v4903_v54 = vld [vmem:[%s7189_s4 + $0x5f4] ss:$8 sps:$4 sm:$0xff]  }
 0x35f   :  { %3100 = vmatpush1.bf16.msra.mxu0 %v4856_v55  ;;  %3613 = vmatpush1.bf16.msra.mxu1 %v4856_v55  ;;  %v2848_v55 = vcombine.high %v6818_v53, %v6818_v53 }
 0x360   :  { %3101 = vmatprep.subr.bf16.mxu0 %v4857_v33  ;;  %3614 = vmatprep.subr.bf16.mxu1 %v4857_v33  ;;  %v3361_v33 = vcombine.high %v6821_v23, %v6821_v23 }
 0x363   :  { %3102 = vmatpush1.bf16.msra.mxu0 %v4858_v34  ;;  %3615 = vmatpush1.bf16.msra.mxu1 %v4858_v34  ;;  %v2877_v34 = vcombine.high %v6711_v9, %v6711_v9 }
 0x364   :  { %3103 = vmatprep.subr.bf16.mxu0 %v4859_v56  ;;  %3616 = vmatprep.subr.bf16.mxu1 %v4859_v56  ;;  %v3390_v56 = vcombine.high %v6715_v10, %v6715_v10 }
 0x367   :  { %3104 = vmatpush1.bf16.msra.mxu0 %v4860_v57  ;;  %3617 = vmatpush1.bf16.msra.mxu1 %v4860_v57  ;;  %v4904_v57 = vld [vmem:[%s7189_s4 + $0x5f0] ss:$8 sps:$4 sm:$0xff]  }
 0x368   :  { %3105 = vmatprep.subr.bf16.mxu0 %v4861_v58  ;;  %3618 = vmatprep.subr.bf16.mxu1 %v4861_v58  ;;  %v4905_v58 = vld [vmem:[%s7189_s4 + $0x604] ss:$8 sps:$4 sm:$0xff]  }
 0x36b   :  { %3106 = vmatpush1.bf16.msra.mxu0 %v4862_v46  ;;  %3619 = vmatpush1.bf16.msra.mxu1 %v4862_v46  ;;  %v6844_v46 = vrot.slane %v2848_v55, %v5073_v16  ;;  %v4950_v55 = vld [vmem:[%s7189_s4 + $0x760] ss:$8 sps:$4 sm:$0xff]  }
 0x36c   :  { %3107 = vmatprep.subr.bf16.mxu0 %v4863_v0  ;;  %3620 = vmatprep.subr.bf16.mxu1 %v4863_v0  ;;  %v6847_v0 = vrot.slane %v3361_v33, %v5073_v16  ;;  %v4951_v33 = vld [vmem:[%s7189_s4 + $0x774] ss:$8 sps:$4 sm:$0xff]  }
 0x36f   :  { %3108 = vmatpush1.bf16.msra.mxu0 %v4864_v1  ;;  %3621 = vmatpush1.bf16.msra.mxu1 %v4864_v1  ;;  %v4906_v1 = vld [vmem:[%s7189_s4 + $0x600] ss:$8 sps:$4 sm:$0xff]  }
 0x370   :  { %3109 = vmatprep.subr.bf16.mxu0 %v4865_v2  ;;  %3622 = vmatprep.subr.bf16.mxu1 %v4865_v2  ;;  %v4907_v2 = vld [vmem:[%s7189_s4 + $0x614] ss:$8 sps:$4 sm:$0xff]  }
 0x373   :  { %3110 = vmatpush1.bf16.msra.mxu0 %v4866_v3  ;;  %3623 = vmatpush1.bf16.msra.mxu1 %v4866_v3  ;;  %v4908_v3 = vld [vmem:[%s7189_s4 + $0x610] ss:$8 sps:$4 sm:$0xff]  }
 0x374   :  { %3111 = vmatprep.subr.bf16.mxu0 %v4867_v4  ;;  %3624 = vmatprep.subr.bf16.mxu1 %v4867_v4  ;;  %v4909_v4 = vld [vmem:[%s7189_s4 + $0x624] ss:$8 sps:$4 sm:$0xff]  }
 0x377   :  { %3112 = vmatpush1.bf16.msra.mxu0 %v4868_v5  ;;  %3625 = vmatpush1.bf16.msra.mxu1 %v4868_v5  ;;  %v4910_v5 = vld [vmem:[%s7189_s4 + $0x620] ss:$8 sps:$4 sm:$0xff]  }
 0x378   :  { %3113 = vmatprep.subr.bf16.mxu0 %v4869_v6  ;;  %3626 = vmatprep.subr.bf16.mxu1 %v4869_v6  ;;  %v4911_v6 = vld [vmem:[%s7189_s4 + $0x634] ss:$8 sps:$4 sm:$0xff]  }
 0x37b   :  { %3114 = vmatpush1.bf16.msra.mxu0 %v4870_v7  ;;  %3627 = vmatpush1.bf16.msra.mxu1 %v4870_v7  ;;  %v4912_v7 = vld [vmem:[%s7189_s4 + $0x630] ss:$8 sps:$4 sm:$0xff]  }
 0x37c   :  { %3115 = vmatprep.subr.bf16.mxu0 %v4871_v8  ;;  %3628 = vmatprep.subr.bf16.mxu1 %v4871_v8  ;;  %v4913_v8 = vld [vmem:[%s7189_s4 + $0x644] ss:$8 sps:$4 sm:$0xff]  }
 0x37f   :  { %3116 = vmatpush1.bf16.msra.mxu0 %v4872_v11  ;;  %3629 = vmatpush1.bf16.msra.mxu1 %v4872_v11  ;;  %v4916_v11 = vld [vmem:[%s7189_s4 + $0x650] ss:$8 sps:$4 sm:$0xff]  }
 0x380   :  { %3126 = vmatprep.subr.bf16.mxu0 %v4873_v12  ;;  %3639 = vmatprep.subr.bf16.mxu1 %v4873_v12  ;;  %v4917_v12 = vld [vmem:[%s7189_s4 + $0x664] ss:$8 sps:$4 sm:$0xff]  }
 0x382   :  { %3118 = vmatmul.mubr.bf16.vlgmr.msra.gmra.mrb[4].mxu0 %v6711_v9  ;;  %3631 = vmatmul.mubr.bf16.vlgmr.msra.gmra.mrb[4].mxu1 %v6715_v10  ;;  %v4914_v9 = vld [vmem:[%s7189_s4 + $0x640] ss:$8 sps:$4 sm:$0xff]   ;;  %v4915_v10 = vld [vmem:[%s7189_s4 + $0x654] ss:$8 sps:$4 sm:$0xff]  }
 0x383   :  { %3127 = vmatpush1.bf16.msra.mxu0 %v4874_v17  ;;  %3640 = vmatpush1.bf16.msra.mxu1 %v4874_v17  ;;  %v4920_v17 = vld [vmem:[%s7189_s4 + $0x670] ss:$8 sps:$4 sm:$0xff]  }
 0x384   :  { %3128 = vmatprep.subr.bf16.mxu0 %v4875_v18  ;;  %3641 = vmatprep.subr.bf16.mxu1 %v4875_v18  ;;  %v4921_v18 = vld [vmem:[%s7189_s4 + $0x684] ss:$8 sps:$4 sm:$0xff]  }
 0x385   :  { %3158 = vmatprep.mubr.bf16.mxu0 %v2879_v14  ;;  %3671 = vmatprep.mubr.bf16.mxu1 %v3392_v15  ;;  %v4918_v14 = vld [vmem:[%s7189_s4 + $0x660] ss:$8 sps:$4 sm:$0xff]   ;;  %v4919_v15 = vld [vmem:[%s7189_s4 + $0x674] ss:$8 sps:$4 sm:$0xff]  }
 0x387   :  { %3129 = vmatpush1.bf16.msra.mxu0 %v4876_v20  ;;  %3642 = vmatpush1.bf16.msra.mxu1 %v4876_v20  ;;  %v4922_v20 = vld [vmem:[%s7189_s4 + $0x680] ss:$8 sps:$4 sm:$0xff]  }
 0x388   :  { %3130 = vmatprep.subr.bf16.mxu0 %v4877_v22  ;;  %3643 = vmatprep.subr.bf16.mxu1 %v4877_v22  ;;  %v4923_v22 = vld [vmem:[%s7189_s4 + $0x694] ss:$8 sps:$4 sm:$0xff]  }
 0x38b   :  { %3131 = vmatpush1.bf16.msra.mxu0 %v4878_v21  ;;  %3644 = vmatpush1.bf16.msra.mxu1 %v4878_v21  ;;  %v4924_v21 = vld [vmem:[%s7189_s4 + $0x690] ss:$8 sps:$4 sm:$0xff]  }
 0x38c   :  { %3132 = vmatprep.subr.bf16.mxu0 %v4879_v24  ;;  %3645 = vmatprep.subr.bf16.mxu1 %v4879_v24  ;;  %v4925_v24 = vld [vmem:[%s7189_s4 + $0x6a4] ss:$8 sps:$4 sm:$0xff]  }
 0x38f   :  { %3133 = vmatpush1.bf16.msra.mxu0 %v4880_v25  ;;  %3646 = vmatpush1.bf16.msra.mxu1 %v4880_v25  ;;  %v4926_v25 = vld [vmem:[%s7189_s4 + $0x6a0] ss:$8 sps:$4 sm:$0xff]  }
 0x390   :  { %3134 = vmatprep.subr.bf16.mxu0 %v4881_v26  ;;  %3647 = vmatprep.subr.bf16.mxu1 %v4881_v26  ;;  %v4927_v26 = vld [vmem:[%s7189_s4 + $0x6b4] ss:$8 sps:$4 sm:$0xff]  }
 0x393   :  { %3135 = vmatpush1.bf16.msra.mxu0 %v4882_v27  ;;  %3648 = vmatpush1.bf16.msra.mxu1 %v4882_v27  ;;  %v4928_v27 = vld [vmem:[%s7189_s4 + $0x6b0] ss:$8 sps:$4 sm:$0xff]  }
 0x394   :  { %3136 = vmatprep.subr.bf16.mxu0 %v4883_v28  ;;  %3649 = vmatprep.subr.bf16.mxu1 %v4883_v28  ;;  %v4929_v28 = vld [vmem:[%s7189_s4 + $0x6c4] ss:$8 sps:$4 sm:$0xff]  }
 0x397   :  { %3137 = vmatpush1.bf16.msra.mxu0 %v4884_v29  ;;  %3650 = vmatpush1.bf16.msra.mxu1 %v4884_v29  ;;  %v4930_v29 = vld [vmem:[%s7189_s4 + $0x6c0] ss:$8 sps:$4 sm:$0xff]  }
 0x398   :  { %3138 = vmatprep.subr.bf16.mxu0 %v4885_v30  ;;  %3651 = vmatprep.subr.bf16.mxu1 %v4885_v30  ;;  %v4931_v30 = vld [vmem:[%s7189_s4 + $0x6d4] ss:$8 sps:$4 sm:$0xff]  }
 0x39b   :  { %3139 = vmatpush1.bf16.msra.mxu0 %v4886_v31  ;;  %3652 = vmatpush1.bf16.msra.mxu1 %v4886_v31  ;;  %v4932_v31 = vld [vmem:[%s7189_s4 + $0x6d0] ss:$8 sps:$4 sm:$0xff]  }
 0x39c   :  { %3140 = vmatprep.subr.bf16.mxu0 %v4887_v32  ;;  %3653 = vmatprep.subr.bf16.mxu1 %v4887_v32  ;;  %v4933_v32 = vld [vmem:[%s7189_s4 + $0x6e4] ss:$8 sps:$4 sm:$0xff]  }
 0x39f   :  { %3141 = vmatpush1.bf16.msra.mxu0 %v4888_v35  ;;  %3654 = vmatpush1.bf16.msra.mxu1 %v4888_v35  ;;  %v4934_v35 = vld [vmem:[%s7189_s4 + $0x6e0] ss:$8 sps:$4 sm:$0xff]  }
 0x3a0   :  { %3142 = vmatprep.subr.bf16.mxu0 %v4889_v36  ;;  %3655 = vmatprep.subr.bf16.mxu1 %v4889_v36  ;;  %v4935_v36 = vld [vmem:[%s7189_s4 + $0x6f4] ss:$8 sps:$4 sm:$0xff]  }
 0x3a3   :  { %3143 = vmatpush1.bf16.msra.mxu0 %v4890_v37  ;;  %3656 = vmatpush1.bf16.msra.mxu1 %v4890_v37  ;;  %v6943_v37 = vrot.slane %v6818_v53, %v5073_v16  ;;  %v4946_v53 = vld [vmem:[%s7189_s4 + $0x740] ss:$8 sps:$4 sm:$0xff]  }
 0x3a4   :  { %3144 = vmatprep.subr.bf16.mxu0 %v4891_v38  ;;  %3657 = vmatprep.subr.bf16.mxu1 %v4891_v38  ;;  %v6947_v38 = vrot.slane %v6821_v23, %v5073_v16  ;;  %v4947_v23 = vld [vmem:[%s7189_s4 + $0x754] ss:$8 sps:$4 sm:$0xff]  }
 0x3a7   :  { %3145 = vmatpush1.bf16.msra.mxu0 %v4892_v39  ;;  %3658 = vmatpush1.bf16.msra.mxu1 %v4892_v39  ;;  %v4936_v39 = vld [vmem:[%s7189_s4 + $0x6f0] ss:$8 sps:$4 sm:$0xff]  }
 0x3a8   :  { %3146 = vmatprep.subr.bf16.mxu0 %v4893_v40  ;;  %3659 = vmatprep.subr.bf16.mxu1 %v4893_v40  ;;  %v4937_v40 = vld [vmem:[%s7189_s4 + $0x704] ss:$8 sps:$4 sm:$0xff]  }
 0x3ab   :  { %3147 = vmatpush1.bf16.msra.mxu0 %v4894_v41  ;;  %3660 = vmatpush1.bf16.msra.mxu1 %v4894_v41  ;;  %v2880_v41 = vcombine.high %v6844_v46, %v6844_v46 }
 0x3ac   :  { %3148 = vmatprep.subr.bf16.mxu0 %v4895_v42  ;;  %3661 = vmatprep.subr.bf16.mxu1 %v4895_v42  ;;  %v3393_v42 = vcombine.high %v6847_v0, %v6847_v0 }
 0x3af   :  { %3149 = vmatpush1.bf16.msra.mxu0 %v4896_v43  ;;  %3662 = vmatpush1.bf16.msra.mxu1 %v4896_v43  ;;  %v4938_v43 = vld [vmem:[%s7189_s4 + $0x700] ss:$8 sps:$4 sm:$0xff]  }
 0x3b0   :  { %3150 = vmatprep.subr.bf16.mxu0 %v4897_v44  ;;  %3663 = vmatprep.subr.bf16.mxu1 %v4897_v44  ;;  %v4939_v44 = vld [vmem:[%s7189_s4 + $0x714] ss:$8 sps:$4 sm:$0xff]  }
 0x3b3   :  { %3151 = vmatpush1.bf16.msra.mxu0 %v4898_v47  ;;  %3664 = vmatpush1.bf16.msra.mxu1 %v4898_v47  ;;  %v4940_v47 = vld [vmem:[%s7189_s4 + $0x710] ss:$8 sps:$4 sm:$0xff]  }
 0x3b4   :  { %3152 = vmatprep.subr.bf16.mxu0 %v4899_v48  ;;  %3665 = vmatprep.subr.bf16.mxu1 %v4899_v48  ;;  %v4941_v48 = vld [vmem:[%s7189_s4 + $0x724] ss:$8 sps:$4 sm:$0xff]  }
 0x3b7   :  { %3153 = vmatpush1.bf16.msra.mxu0 %v4900_v51  ;;  %3666 = vmatpush1.bf16.msra.mxu1 %v4900_v51  ;;  %v4944_v51 = vld [vmem:[%s7189_s4 + $0x730] ss:$8 sps:$4 sm:$0xff]  }
 0x3b8   :  { %3154 = vmatprep.subr.bf16.mxu0 %v4901_v52  ;;  %3667 = vmatprep.subr.bf16.mxu1 %v4901_v52  ;;  %v4945_v52 = vld [vmem:[%s7189_s4 + $0x744] ss:$8 sps:$4 sm:$0xff]  }
 0x3bb   :  { %3155 = vmatpush1.bf16.msra.mxu0 %v4902_v19  ;;  %3668 = vmatpush1.bf16.msra.mxu1 %v4902_v19  ;;  %v4948_v19 = vld [vmem:[%s7189_s4 + $0x750] ss:$8 sps:$4 sm:$0xff]  }
 0x3bc   :  { %3156 = vmatprep.subr.bf16.mxu0 %v4903_v54  ;;  %3669 = vmatprep.subr.bf16.mxu1 %v4903_v54  ;;  %v4949_v54 = vld [vmem:[%s7189_s4 + $0x764] ss:$8 sps:$4 sm:$0xff]  }
 0x3bf   :  { %3157 = vmatpush1.bf16.msra.mxu0 %v4904_v57  ;;  %3670 = vmatpush1.bf16.msra.mxu1 %v4904_v57  ;;  %v4954_v57 = vld [vmem:[%s7189_s4 + $0x780] ss:$8 sps:$4 sm:$0xff]  }
 0x3c0   :  { %3167 = vmatprep.subr.bf16.mxu0 %v4905_v58  ;;  %3680 = vmatprep.subr.bf16.mxu1 %v4905_v58  ;;  %v4955_v58 = vld [vmem:[%s7189_s4 + $0x794] ss:$8 sps:$4 sm:$0xff]  }
 0x3c2   :  { %3159 = vmatmul.mubr.bf16.vlgmr.msra.gmra.mrb[4].mxu0 %v2877_v34  ;;  %3672 = vmatmul.mubr.bf16.vlgmr.msra.gmra.mrb[4].mxu1 %v3390_v56  ;;  %v4952_v34 = vld [vmem:[%s7189_s4 + $0x770] ss:$8 sps:$4 sm:$0xff]   ;;  %v4953_v56 = vld [vmem:[%s7189_s4 + $0x784] ss:$8 sps:$4 sm:$0xff]  }
 0x3c3   :  { %3168 = vmatpush1.bf16.msra.mxu0 %v4906_v1  ;;  %3681 = vmatpush1.bf16.msra.mxu1 %v4906_v1  ;;  %v4958_v1 = vld [vmem:[%s7189_s4 + $0x7a0] ss:$8 sps:$4 sm:$0xff]  }
 0x3c4   :  { %3169 = vmatprep.subr.bf16.mxu0 %v4907_v2  ;;  %3682 = vmatprep.subr.bf16.mxu1 %v4907_v2  ;;  %v4959_v2 = vld [vmem:[%s7189_s4 + $0x7b4] ss:$8 sps:$4 sm:$0xff]  }
 0x3c5   :  { %3199 = vmatprep.mubr.bf16.mxu0 %v6844_v46  ;;  %3712 = vmatprep.mubr.bf16.mxu1 %v6847_v0  ;;  %v4956_v46 = vld [vmem:[%s7189_s4 + $0x790] ss:$8 sps:$4 sm:$0xff]   ;;  %v4957_v0 = vld [vmem:[%s7189_s4 + $0x7a4] ss:$8 sps:$4 sm:$0xff]  }
 0x3c7   :  { %3170 = vmatpush1.bf16.msra.mxu0 %v4908_v3  ;;  %3683 = vmatpush1.bf16.msra.mxu1 %v4908_v3  ;;  %v4960_v3 = vld [vmem:[%s7189_s4 + $0x7b0] ss:$8 sps:$4 sm:$0xff]  }
 0x3c8   :  { %3171 = vmatprep.subr.bf16.mxu0 %v4909_v4  ;;  %3684 = vmatprep.subr.bf16.mxu1 %v4909_v4  ;;  %v4961_v4 = vld [vmem:[%s7189_s4 + $0x7c4] ss:$8 sps:$4 sm:$0xff]  }
 0x3cb   :  { %3172 = vmatpush1.bf16.msra.mxu0 %v4910_v5  ;;  %3685 = vmatpush1.bf16.msra.mxu1 %v4910_v5  ;;  %v4962_v5 = vld [vmem:[%s7189_s4 + $0x7c0] ss:$8 sps:$4 sm:$0xff]  }
 0x3cc   :  { %3173 = vmatprep.subr.bf16.mxu0 %v4911_v6  ;;  %3686 = vmatprep.subr.bf16.mxu1 %v4911_v6  ;;  %v4963_v6 = vld [vmem:[%s7189_s4 + $0x7d4] ss:$8 sps:$4 sm:$0xff]  }
 0x3cf   :  { %3174 = vmatpush1.bf16.msra.mxu0 %v4912_v7  ;;  %3687 = vmatpush1.bf16.msra.mxu1 %v4912_v7  ;;  %v4964_v7 = vld [vmem:[%s7189_s4 + $0x7d0] ss:$8 sps:$4 sm:$0xff]  }
 0x3d0   :  { %3175 = vmatprep.subr.bf16.mxu0 %v4913_v8  ;;  %3688 = vmatprep.subr.bf16.mxu1 %v4913_v8  ;;  %v4965_v8 = vld [vmem:[%s7189_s4 + $0x7e4] ss:$8 sps:$4 sm:$0xff]  }
 0x3d3   :  { %3176 = vmatpush1.bf16.msra.mxu0 %v4914_v9  ;;  %3689 = vmatpush1.bf16.msra.mxu1 %v4914_v9  ;;  %v7048_v9 = vld.sshfl [vmem:[%s7192_s2 + $0x10] sm:$0x11 pattern:$0x75316420] }
 0x3d4   :  { %3177 = vmatprep.subr.bf16.mxu0 %v4915_v10  ;;  %3690 = vmatprep.subr.bf16.mxu1 %v4915_v10  ;;  %v7053_v10 = vld.sshfl [vmem:[%s7193_s3 + $0x10] sm:$0x11 pattern:$0x75316420] }
 0x3d7   :  { %3178 = vmatpush1.bf16.msra.mxu0 %v4916_v11  ;;  %3691 = vmatpush1.bf16.msra.mxu1 %v4916_v11  ;;  %v4966_v11 = vld [vmem:[%s7189_s4 + $0x7e0] ss:$8 sps:$4 sm:$0xff]  }
 0x3d8   :  { %3179 = vmatprep.subr.bf16.mxu0 %v4917_v12  ;;  %3692 = vmatprep.subr.bf16.mxu1 %v4917_v12  ;;  %v4967_v12 = vld [vmem:[%s7189_s4 + $0x7f4] ss:$8 sps:$4 sm:$0xff]  }
 0x3db   :  { %3180 = vmatpush1.bf16.msra.mxu0 %v4918_v14  ;;  %3693 = vmatpush1.bf16.msra.mxu1 %v4918_v14  ;;  %v2888_v14 = vcombine.high %v7048_v9, %v7048_v9 }
 0x3dc   :  { %3181 = vmatprep.subr.bf16.mxu0 %v4919_v15  ;;  %3694 = vmatprep.subr.bf16.mxu1 %v4919_v15  ;;  %v3401_v15 = vcombine.high %v7053_v10, %v7053_v10 }
 0x3df   :  { %3182 = vmatpush1.bf16.msra.mxu0 %v4920_v17  ;;  %3695 = vmatpush1.bf16.msra.mxu1 %v4920_v17  ;;  %v2878_v17 = vcombine.high %v6943_v37, %v6943_v37 }
 0x3e0   :  { %3183 = vmatprep.subr.bf16.mxu0 %v4921_v18  ;;  %3696 = vmatprep.subr.bf16.mxu1 %v4921_v18  ;;  %v3391_v18 = vcombine.high %v6947_v38, %v6947_v38 }
 0x3e3   :  { %3184 = vmatpush1.bf16.msra.mxu0 %v4922_v20  ;;  %3697 = vmatpush1.bf16.msra.mxu1 %v4922_v20  ;;  %v4968_v20 = vld [vmem:[%s7189_s4 + $0x7f0] ss:$8 sps:$4 sm:$0xff]  }
 0x3e4   :  { %3185 = vmatprep.subr.bf16.mxu0 %v4923_v22  ;;  %3698 = vmatprep.subr.bf16.mxu1 %v4923_v22  ;;  %v4969_v22 = vld [vmem:[%s7189_s4 + $0x804] ss:$8 sps:$4 sm:$0xff]  }
 0x3e7   :  { %3186 = vmatpush1.bf16.msra.mxu0 %v4924_v21  ;;  %3699 = vmatpush1.bf16.msra.mxu1 %v4924_v21  ;;  %v2902_v21 = vrot.slane %v2888_v14, %v5073_v16 }
 0x3e8   :  { %3187 = vmatprep.subr.bf16.mxu0 %v4925_v24  ;;  %3700 = vmatprep.subr.bf16.mxu1 %v4925_v24  ;;  %v3415_v24 = vrot.slane %v3401_v15, %v5073_v16 }
 0x3eb   :  { %3188 = vmatpush1.bf16.msra.mxu0 %v4926_v25  ;;  %3701 = vmatpush1.bf16.msra.mxu1 %v4926_v25  ;;  %v4970_v25 = vld [vmem:[%s7189_s4 + $0x800] ss:$8 sps:$4 sm:$0xff]  }
 0x3ec   :  { %3189 = vmatprep.subr.bf16.mxu0 %v4927_v26  ;;  %3702 = vmatprep.subr.bf16.mxu1 %v4927_v26  ;;  %v4971_v26 = vld [vmem:[%s7189_s4 + $0x814] ss:$8 sps:$4 sm:$0xff]  }
 0x3ef   :  { %3190 = vmatpush1.bf16.msra.mxu0 %v4928_v27  ;;  %3703 = vmatpush1.bf16.msra.mxu1 %v4928_v27  ;;  %v4972_v27 = vld [vmem:[%s7189_s4 + $0x810] ss:$8 sps:$4 sm:$0xff]  }
 0x3f0   :  { %3191 = vmatprep.subr.bf16.mxu0 %v4929_v28  ;;  %3704 = vmatprep.subr.bf16.mxu1 %v4929_v28  ;;  %v4973_v28 = vld [vmem:[%s7189_s4 + $0x824] ss:$8 sps:$4 sm:$0xff]  }
 0x3f3   :  { %3192 = vmatpush1.bf16.msra.mxu0 %v4930_v29  ;;  %3705 = vmatpush1.bf16.msra.mxu1 %v4930_v29  ;;  %v4974_v29 = vld [vmem:[%s7189_s4 + $0x820] ss:$8 sps:$4 sm:$0xff]  }
 0x3f4   :  { %3193 = vmatprep.subr.bf16.mxu0 %v4931_v30  ;;  %3706 = vmatprep.subr.bf16.mxu1 %v4931_v30  ;;  %v4975_v30 = vld [vmem:[%s7189_s4 + $0x834] ss:$8 sps:$4 sm:$0xff]  }
 0x3f7   :  { %3194 = vmatpush1.bf16.msra.mxu0 %v4932_v31  ;;  %3707 = vmatpush1.bf16.msra.mxu1 %v4932_v31  ;;  %v4976_v31 = vld [vmem:[%s7189_s4 + $0x830] ss:$8 sps:$4 sm:$0xff]  }
 0x3f8   :  { %3195 = vmatprep.subr.bf16.mxu0 %v4933_v32  ;;  %3708 = vmatprep.subr.bf16.mxu1 %v4933_v32  ;;  %v4977_v32 = vld [vmem:[%s7189_s4 + $0x844] ss:$8 sps:$4 sm:$0xff]  }
 0x3fb   :  { %3196 = vmatpush1.bf16.msra.mxu0 %v4934_v35  ;;  %3709 = vmatpush1.bf16.msra.mxu1 %v4934_v35  ;;  %v4978_v35 = vld [vmem:[%s7189_s4 + $0x840] ss:$8 sps:$4 sm:$0xff]  }
 0x3fc   :  { %3197 = vmatprep.subr.bf16.mxu0 %v4935_v36  ;;  %3710 = vmatprep.subr.bf16.mxu1 %v4935_v36  ;;  %v4979_v36 = vld [vmem:[%s7189_s4 + $0x854] ss:$8 sps:$4 sm:$0xff]  }
 0x3ff   :  { %3198 = vmatpush1.bf16.msra.mxu0 %v4936_v39  ;;  %3711 = vmatpush1.bf16.msra.mxu1 %v4936_v39  ;;  %v4982_v39 = vld [vmem:[%s7189_s4 + $0x860] ss:$8 sps:$4 sm:$0xff]  }
 0x400   :  { %3208 = vmatprep.subr.bf16.mxu0 %v4937_v40  ;;  %3721 = vmatprep.subr.bf16.mxu1 %v4937_v40  ;;  %v4983_v40 = vld [vmem:[%s7189_s4 + $0x874] ss:$8 sps:$4 sm:$0xff]  }
 0x402   :  { %3200 = vmatmul.mubr.bf16.vlgmr.msra.gmra.mrb[4].mxu0 %v6943_v37  ;;  %3713 = vmatmul.mubr.bf16.vlgmr.msra.gmra.mrb[4].mxu1 %v6947_v38  ;;  %v4980_v37 = vld [vmem:[%s7189_s4 + $0x850] ss:$8 sps:$4 sm:$0xff]   ;;  %v4981_v38 = vld [vmem:[%s7189_s4 + $0x864] ss:$8 sps:$4 sm:$0xff]  }
 0x403   :  { %3209 = vmatpush1.bf16.msra.mxu0 %v4938_v43  ;;  %3722 = vmatpush1.bf16.msra.mxu1 %v4938_v43  ;;  %v4986_v43 = vld [vmem:[%s7189_s4 + $0x880] ss:$8 sps:$4 sm:$0xff]  }
 0x404   :  { %3210 = vmatprep.subr.bf16.mxu0 %v4939_v44  ;;  %3723 = vmatprep.subr.bf16.mxu1 %v4939_v44  ;;  %v4987_v44 = vld [vmem:[%s7189_s4 + $0x894] ss:$8 sps:$4 sm:$0xff]  }
 0x405   :  { %3240 = vmatprep.mubr.bf16.mxu0 %v2880_v41  ;;  %3753 = vmatprep.mubr.bf16.mxu1 %v3393_v42  ;;  %v4984_v41 = vld [vmem:[%s7189_s4 + $0x870] ss:$8 sps:$4 sm:$0xff]   ;;  %v4985_v42 = vld [vmem:[%s7189_s4 + $0x884] ss:$8 sps:$4 sm:$0xff]  }
 0x407   :  { %3211 = vmatpush1.bf16.msra.mxu0 %v4940_v47  ;;  %3724 = vmatpush1.bf16.msra.mxu1 %v4940_v47  ;;  %v4988_v47 = vld [vmem:[%s7189_s4 + $0x890] ss:$8 sps:$4 sm:$0xff]  }
 0x408   :  { %3212 = vmatprep.subr.bf16.mxu0 %v4941_v48  ;;  %3725 = vmatprep.subr.bf16.mxu1 %v4941_v48  ;;  %v4989_v48 = vld [vmem:[%s7189_s4 + $0x8a4] ss:$8 sps:$4 sm:$0xff]  }
 0x40b   :  { %3213 = vmatpush1.bf16.msra.mxu0 %v4942_v49  ;;  %3726 = vmatpush1.bf16.msra.mxu1 %v4942_v49  ;;  %v4990_v49 = vld [vmem:[%s7189_s4 + $0x8a0] ss:$8 sps:$4 sm:$0xff]  }
 0x40c   :  { %3214 = vmatprep.subr.bf16.mxu0 %v4943_v50  ;;  %3727 = vmatprep.subr.bf16.mxu1 %v4943_v50  ;;  %v4991_v50 = vld [vmem:[%s7189_s4 + $0x8b4] ss:$8 sps:$4 sm:$0xff]  }
 0x40f   :  { %3215 = vmatpush1.bf16.msra.mxu0 %v4944_v51  ;;  %3728 = vmatpush1.bf16.msra.mxu1 %v4944_v51  ;;  %v4992_v51 = vld [vmem:[%s7189_s4 + $0x8b0] ss:$8 sps:$4 sm:$0xff]  }
 0x410   :  { %3216 = vmatprep.subr.bf16.mxu0 %v4945_v52  ;;  %3729 = vmatprep.subr.bf16.mxu1 %v4945_v52  ;;  %v4993_v52 = vld [vmem:[%s7189_s4 + $0x8c4] ss:$8 sps:$4 sm:$0xff]  }
 0x413   :  { %3217 = vmatpush1.bf16.msra.mxu0 %v4946_v53  ;;  %3730 = vmatpush1.bf16.msra.mxu1 %v4946_v53  ;;  %v4994_v53 = vld [vmem:[%s7189_s4 + $0x8c0] ss:$8 sps:$4 sm:$0xff]  }
 0x414   :  { %3218 = vmatprep.subr.bf16.mxu0 %v4947_v23  ;;  %3731 = vmatprep.subr.bf16.mxu1 %v4947_v23  ;;  %v4995_v23 = vld [vmem:[%s7189_s4 + $0x8d4] ss:$8 sps:$4 sm:$0xff]  }
 0x417   :  { %3219 = vmatpush1.bf16.msra.mxu0 %v4948_v19  ;;  %3732 = vmatpush1.bf16.msra.mxu1 %v4948_v19  ;;  %v4996_v19 = vld [vmem:[%s7189_s4 + $0x8d0] ss:$8 sps:$4 sm:$0xff]  }
 0x418   :  { %3220 = vmatprep.subr.bf16.mxu0 %v4949_v54  ;;  %3733 = vmatprep.subr.bf16.mxu1 %v4949_v54  ;;  %v4997_v54 = vld [vmem:[%s7189_s4 + $0x8e4] ss:$8 sps:$4 sm:$0xff]  }
 0x41b   :  { %3221 = vmatpush1.bf16.msra.mxu0 %v4950_v55  ;;  %3734 = vmatpush1.bf16.msra.mxu1 %v4950_v55  ;;  %v4998_v55 = vld [vmem:[%s7189_s4 + $0x8e0] ss:$8 sps:$4 sm:$0xff]  }
 0x41c   :  { %3222 = vmatprep.subr.bf16.mxu0 %v4951_v33  ;;  %3735 = vmatprep.subr.bf16.mxu1 %v4951_v33  ;;  %v4999_v33 = vld [vmem:[%s7189_s4 + $0x8f4] ss:$8 sps:$4 sm:$0xff]  }
 0x41f   :  { %3223 = vmatpush1.bf16.msra.mxu0 %v4952_v34  ;;  %3736 = vmatpush1.bf16.msra.mxu1 %v4952_v34  ;;  %v2895_v34 = vrot.slane %v7048_v9, %v5073_v16 }
 0x420   :  { %3224 = vmatprep.subr.bf16.mxu0 %v4953_v56  ;;  %3737 = vmatprep.subr.bf16.mxu1 %v4953_v56  ;;  %v3408_v56 = vrot.slane %v7053_v10, %v5073_v16 }
 0x423   :  { %3225 = vmatpush1.bf16.msra.mxu0 %v4954_v57  ;;  %3738 = vmatpush1.bf16.msra.mxu1 %v4954_v57  ;;  %v5000_v57 = vld [vmem:[%s7189_s4 + $0x8f0] ss:$8 sps:$4 sm:$0xff]  }
 0x424   :  { %3226 = vmatprep.subr.bf16.mxu0 %v4955_v58  ;;  %3739 = vmatprep.subr.bf16.mxu1 %v4955_v58  ;;  %v3813_v58 = vsub.s32 0, %v5064_v13 }
 0x427   :  { %3227 = vmatpush1.bf16.msra.mxu0 %v4956_v46  ;;  %3740 = vmatpush1.bf16.msra.mxu1 %v4956_v46  ;;  %v3809_v46 = vld [vmem:[%s7194_s5] sm:$0x3] }
 0x428   :  { %3228 = vmatprep.subr.bf16.mxu0 %v4957_v0  ;;  %3741 = vmatprep.subr.bf16.mxu1 %v4957_v0  ;;  %v3817_v0 = vsub.s32 1, %v5064_v13 }
 0x42b   :  { %3229 = vmatpush1.bf16.msra.mxu0 %v4958_v1  ;;  %3742 = vmatpush1.bf16.msra.mxu1 %v4958_v1 }
 0x42c   :  { %3230 = vmatprep.subr.bf16.mxu0 %v4959_v2  ;;  %3743 = vmatprep.subr.bf16.mxu1 %v4959_v2 }
 0x42f   :  { %3231 = vmatpush1.bf16.msra.mxu0 %v4960_v3  ;;  %3744 = vmatpush1.bf16.msra.mxu1 %v4960_v3 }
 0x430   :  { %3232 = vmatprep.subr.bf16.mxu0 %v4961_v4  ;;  %3745 = vmatprep.subr.bf16.mxu1 %v4961_v4  ;;  %v3814_v4 = vrot.slane %v3809_v46, %v3813_v58 }
 0x433   :  { %3233 = vmatpush1.bf16.msra.mxu0 %v4962_v5  ;;  %3746 = vmatpush1.bf16.msra.mxu1 %v4962_v5 }
 0x434   :  { %3234 = vmatprep.subr.bf16.mxu0 %v4963_v6  ;;  %3747 = vmatprep.subr.bf16.mxu1 %v4963_v6 }
 0x437   :  { %3235 = vmatpush1.bf16.msra.mxu0 %v4964_v7  ;;  %3748 = vmatpush1.bf16.msra.mxu1 %v4964_v7 }
 0x438   :  { %3236 = vmatprep.subr.bf16.mxu0 %v4965_v8  ;;  %3749 = vmatprep.subr.bf16.mxu1 %v4965_v8  ;;  %v3818_v8 = vrot.slane %v3809_v46, %v3817_v0 }
 0x43b   :  { %3237 = vmatpush1.bf16.msra.mxu0 %v4966_v11  ;;  %3750 = vmatpush1.bf16.msra.mxu1 %v4966_v11 }
 0x43c   :  { %3238 = vmatprep.subr.bf16.mxu0 %v4967_v12  ;;  %3751 = vmatprep.subr.bf16.mxu1 %v4967_v12 }
 0x43f   :  { %3239 = vmatpush1.bf16.msra.mxu0 %v4968_v20  ;;  %3752 = vmatpush1.bf16.msra.mxu1 %v4968_v20 }
 0x440   :  { %3249 = vmatprep.subr.bf16.mxu0 %v4969_v22  ;;  %3762 = vmatprep.subr.bf16.mxu1 %v4969_v22 }
 0x442   :  { %3241 = vmatmul.mubr.bf16.vlgmr.msra.gmra.mrb[4].mxu0 %v2878_v17  ;;  %3754 = vmatmul.mubr.bf16.vlgmr.msra.gmra.mrb[4].mxu1 %v3391_v18 }
 0x443   :  { %3250 = vmatpush1.bf16.msra.mxu0 %v4970_v25  ;;  %3763 = vmatpush1.bf16.msra.mxu1 %v4970_v25 }
 0x444   :  { %3251 = vmatprep.subr.bf16.mxu0 %v4971_v26  ;;  %3764 = vmatprep.subr.bf16.mxu1 %v4971_v26 }
 0x445   :  { %3281 = vmatprep.mubr.bf16.mxu0 %v2902_v21  ;;  %3794 = vmatprep.mubr.bf16.mxu1 %v3415_v24 }
 0x447   :  { %3252 = vmatpush1.bf16.msra.mxu0 %v4972_v27  ;;  %3765 = vmatpush1.bf16.msra.mxu1 %v4972_v27 }
 0x448   :  { %3253 = vmatprep.subr.bf16.mxu0 %v4973_v28  ;;  %3766 = vmatprep.subr.bf16.mxu1 %v4973_v28 }
 0x44b   :  { %3254 = vmatpush1.bf16.msra.mxu0 %v4974_v29  ;;  %3767 = vmatpush1.bf16.msra.mxu1 %v4974_v29 }
 0x44c   :  { %3255 = vmatprep.subr.bf16.mxu0 %v4975_v30  ;;  %3768 = vmatprep.subr.bf16.mxu1 %v4975_v30 }
 0x44f   :  { %3256 = vmatpush1.bf16.msra.mxu0 %v4976_v31  ;;  %3769 = vmatpush1.bf16.msra.mxu1 %v4976_v31 }
 0x450   :  { %3257 = vmatprep.subr.bf16.mxu0 %v4977_v32  ;;  %3770 = vmatprep.subr.bf16.mxu1 %v4977_v32 }
 0x453   :  { %3258 = vmatpush1.bf16.msra.mxu0 %v4978_v35  ;;  %3771 = vmatpush1.bf16.msra.mxu1 %v4978_v35 }
 0x454   :  { %3259 = vmatprep.subr.bf16.mxu0 %v4979_v36  ;;  %3772 = vmatprep.subr.bf16.mxu1 %v4979_v36 }
 0x457   :  { %3260 = vmatpush1.bf16.msra.mxu0 %v4980_v37  ;;  %3773 = vmatpush1.bf16.msra.mxu1 %v4980_v37 }
 0x458   :  { %3261 = vmatprep.subr.bf16.mxu0 %v4981_v38  ;;  %3774 = vmatprep.subr.bf16.mxu1 %v4981_v38 }
 0x45b   :  { %3262 = vmatpush1.bf16.msra.mxu0 %v4982_v39  ;;  %3775 = vmatpush1.bf16.msra.mxu1 %v4982_v39 }
 0x45c   :  { %3263 = vmatprep.subr.bf16.mxu0 %v4983_v40  ;;  %3776 = vmatprep.subr.bf16.mxu1 %v4983_v40 }
 0x45f   :  { %3264 = vmatpush1.bf16.msra.mxu0 %v4984_v41  ;;  %3777 = vmatpush1.bf16.msra.mxu1 %v4984_v41 }
 0x460   :  { %3265 = vmatprep.subr.bf16.mxu0 %v4985_v42  ;;  %3778 = vmatprep.subr.bf16.mxu1 %v4985_v42 }
 0x463   :  { %3266 = vmatpush1.bf16.msra.mxu0 %v4986_v43  ;;  %3779 = vmatpush1.bf16.msra.mxu1 %v4986_v43 }
 0x464   :  { %3267 = vmatprep.subr.bf16.mxu0 %v4987_v44  ;;  %3780 = vmatprep.subr.bf16.mxu1 %v4987_v44 }
 0x467   :  { %3268 = vmatpush1.bf16.msra.mxu0 %v4988_v47  ;;  %3781 = vmatpush1.bf16.msra.mxu1 %v4988_v47 }
 0x468   :  { %3269 = vmatprep.subr.bf16.mxu0 %v4989_v48  ;;  %3782 = vmatprep.subr.bf16.mxu1 %v4989_v48 }
 0x46b   :  { %3270 = vmatpush1.bf16.msra.mxu0 %v4990_v49  ;;  %3783 = vmatpush1.bf16.msra.mxu1 %v4990_v49 }
 0x46c   :  { %3271 = vmatprep.subr.bf16.mxu0 %v4991_v50  ;;  %3784 = vmatprep.subr.bf16.mxu1 %v4991_v50 }
 0x46f   :  { %3272 = vmatpush1.bf16.msra.mxu0 %v4992_v51  ;;  %3785 = vmatpush1.bf16.msra.mxu1 %v4992_v51 }
 0x470   :  { %3273 = vmatprep.subr.bf16.mxu0 %v4993_v52  ;;  %3786 = vmatprep.subr.bf16.mxu1 %v4993_v52 }
 0x473   :  { %3274 = vmatpush1.bf16.msra.mxu0 %v4994_v53  ;;  %3787 = vmatpush1.bf16.msra.mxu1 %v4994_v53 }
 0x474   :  { %3275 = vmatprep.subr.bf16.mxu0 %v4995_v23  ;;  %3788 = vmatprep.subr.bf16.mxu1 %v4995_v23 }
 0x477   :  { %3276 = vmatpush1.bf16.msra.mxu0 %v4996_v19  ;;  %3789 = vmatpush1.bf16.msra.mxu1 %v4996_v19 }
 0x478   :  { %3277 = vmatprep.subr.bf16.mxu0 %v4997_v54  ;;  %3790 = vmatprep.subr.bf16.mxu1 %v4997_v54 }
 0x47b   :  { %3278 = vmatpush1.bf16.msra.mxu0 %v4998_v55  ;;  %3791 = vmatpush1.bf16.msra.mxu1 %v4998_v55 }
 0x47c   :  { %3279 = vmatprep.subr.bf16.mxu0 %v4999_v33  ;;  %3792 = vmatprep.subr.bf16.mxu1 %v4999_v33 }
 0x47f   :  { %3280 = vmatpush1.bf16.msra.mxu0 %v5000_v57  ;;  %3793 = vmatpush1.bf16.msra.mxu1 %v5000_v57 }
 0x482   :  { %3282 = vmatmul.mubr.bf16.vlgmr.msra.gmra.mrb[4].mxu0 %v2895_v34  ;;  %3795 = vmatmul.mubr.bf16.vlgmr.msra.gmra.mrb[4].mxu1 %v3408_v56 }
 0x555   :  { %v3283_v1 = vpop.f32.mrb[4].mxu0  ;;  %v3796_v2 = vpop.f32.mrb[4].mxu1 }
 0x556   :  { %v3805_v3 = vmax.f32 %v3283_v1, %v3796_v2  ;;  %v3285_v5 = vpop.f32.mrb[5].mxu0  ;;  %v3798_v6 = vpop.f32.mrb[5].mxu1 }
 0x557   :  { %v3806_v7 = vmax.f32 %v3285_v5, %v3798_v6  ;;  %v3287_v9 = vpop.f32.mrb[6].mxu0  ;;  %v3800_v10 = vpop.f32.mrb[6].mxu1 }
 0x558   :  { %v3807_v11 = vmax.f32 %v3803_v61, %v3805_v3  ;;  %v3288_v12 = vpop.f32.mrb[7].mxu0  ;;  %v3801_v14 = vpop.f32.mrb[7].mxu1 }
 0x559   :  { %v3808_v13 = vmax.f32 %v3804_v45, %v3806_v7 }
 0x55a   :  { %v3821_v15 = vadd.f32 %v3814_v4, %v3807_v11 }
 0x55b   :  { %v3822_v17 = vadd.f32 %v3818_v8, %v3808_v13 }
 0x55c   :  { %v3823_v18 = vmax.f32 %v3821_v15, 0.0 }
 0x55d   :  { %v3824_v20 = vmax.f32 %v3822_v17, 0.0 }
 0x55f   :  { %v4142_v22 = vpack.c.bf16 %v3824_v20, %v3823_v18 }
 0x561   :  { %v3836_v21 = vrot.slane %v4142_v22, %v5073_v16 }
 0x563   :  { %4143 = vst.sshfl [vmem:[%s7195_s6] sm:$0x5 pattern:$0x73625140] %v3836_v21 }

</bundles_post_ra>
